<compile_context>
chip_gen: v5e
topology: v5e:2x2
jax: 0.10.0
libtpu: 0.0.40
codegen_flags: <defaults>
</compile_context>

<pallas_src>
import functools

import numpy as np
import jax
import jax.numpy as jnp
from jax import lax
from jax.experimental import pallas as pl
from jax.experimental.pallas import tpu as pltpu

MIN_CONN = 1
MAX_CONN = 16
WINDOW = 3
NWIN = WINDOW * WINDOW
PAD = WINDOW // 2
CENTER = PAD * WINDOW + PAD
FFN_BF16 = False  # run the 1x1-conv matmuls in bf16 (validate before enabling)


# ----------------------------------------------------------------------------
# glue helpers
# ----------------------------------------------------------------------------
def _num_groups(c):
    for i in range(min(32, c), 0, -1):
        if c % i == 0:
            return i
    return 1


def _bilinear_half_roundtrip_matrix(n):
    """Matrix A (n,n) with A @ v == upsample(downsample(v)) along one axis,
    matching F.interpolate(bilinear, align_corners=False) scale 0.5 then resize
    back to n (n must be even)."""
    assert n % 2 == 0
    n2 = n // 2
    D = np.zeros((n2, n), np.float32)
    for i in range(n2):
        D[i, 2 * i] = 0.5
        D[i, 2 * i + 1] = 0.5
    U = np.zeros((n, n2), np.float32)
    for o in range(n):
        src = max(0.5 * o - 0.25, 0.0)
        i0 = int(np.floor(src))
        i1 = min(i0 + 1, n2 - 1)
        w1 = src - i0
        U[o, i0] += 1.0 - w1
        U[o, i1] += w1
    return (U @ D).astype(np.float32)


def _vmem_limit_bytes():
    """Generation-aware VMEM limit: <= 3/4 of physical, capped at 64 MiB."""
    cap = 128 * 1024 * 1024
    try:
        info = pltpu.get_tpu_info()
        cap = int(getattr(info, "vmem_capacity_bytes", cap) or cap)
    except Exception:
        pass
    return int(min(64 * 1024 * 1024, (cap * 3) // 4))


# ----------------------------------------------------------------------------
# fused kernel: DF detector + dynamic-top-k aggregation + GroupNorm + conv_ffn
# ----------------------------------------------------------------------------
def _ipg_ffn_kernel(x_ref, ah_ref, awt_ref, gamma_ref, beta_ref,
                    w1_ref, b1_ref, w2_ref, b2_ref,
                    out_ref, xs_sc, e_sc, *, C, H, W, G):
    f32 = jnp.float32
    x = x_ref[0]                                             # (C, H, W)

    # ---- in-kernel reflect pad + the 3 lane-shifted tiles, built ONCE -------
    # xs_sc[dx][c, hr, w] == x_reflect[c, hr - 1, w + dx - 1], hr in [0, H+1],
    # so nbr(dy, dx) == xs_sc[dx][:, dy:dy+H, :].
    xs_sc[1, :, PAD:PAD + H, :] = x
    xs_sc[1, :, 0:1, :] = x[:, 1:2, :]                       # reflect row -1
    xs_sc[1, :, H + 1:H + 2, :] = x[:, H - 2:H - 1, :]       # reflect row H
    c0 = xs_sc[1]                                            # (C, H+2, W)
    xs_sc[0, :, :, 1:W] = c0[:, :, 0:W - 1]                  # shift lanes +1
    xs_sc[0, :, :, 0:1] = c0[:, :, 1:2]                      # reflect col -1
    xs_sc[2, :, :, 0:W - 1] = c0[:, :, 1:W]                  # shift lanes -1
    xs_sc[2, :, :, W - 1:W] = c0[:, :, W - 2:W - 1]          # reflect col W

    def nbr(dy, dx, ch=None):
        if ch is None:
            if dy == PAD and dx == PAD:
                return x
            return xs_sc[dx, :, dy:dy + H, :]                # (C, H, W)
        if dy == PAD and dx == PAD:
            return x[ch]
        return xs_sc[dx, ch, dy:dy + H, :]                   # (H, W)

    # ---- DF detector: bilinear 0.5x down+up round-trip ----------------------
    # W axis: one big (C*H, W) @ (W, W) MXU matmul (leading-dim merge is free).
    t = jnp.dot(x.reshape(C * H, W), awt_ref[...],
                preferred_element_type=f32).reshape(C, H, W)
    # H axis: per-channel (H,H)@(H,W) dots, |x - r| accumulated directly
    # (no (C,H,H) broadcast, no (C,H,W) round-trip tensor kept live).
    df = jnp.zeros((H, W), f32)
    for ch in range(C):
        r_c = jnp.dot(ah_ref[...], t[ch], preferred_element_type=f32)
        df = df + jnp.abs(x[ch] - r_c)
    dmin = jnp.min(df)
    dmax = jnp.max(df)
    dfn = (df - dmin) / (dmax - dmin + 1e-8)
    p = dfn * dfn
    p = p * p                                                # dfn ** 4
    thr = 0.9
    mask = (p > thr).astype(f32)
    conn_range = float(MAX_CONN - MIN_CONN)
    above = jnp.maximum(jnp.round((p - thr) / (1.0 - thr + 1e-8) * conn_range),
                        0.0) * mask
    kc = jnp.minimum(float(MIN_CONN) + above, float(NWIN))   # per-pixel k

    # ---- pass 1: the nine cosine-similarity planes ---------------------------
    eps_sq = 1e-24                      # == F.normalize(eps=1e-12), squared
    inv_xn = lax.rsqrt(jnp.maximum(jnp.sum(x * x, axis=0), eps_sq))
    sims = []
    for j in range(NWIN):
        dy, dx = divmod(j, WINDOW)
        nb = nbr(dy, dx)
        dotv = jnp.sum(x * nb, axis=0)
        inv_nn = lax.rsqrt(jnp.maximum(jnp.sum(nb * nb, axis=0), eps_sq))
        sims.append(dotv * inv_xn * inv_nn)                  # (H, W)

    # ---- dynamic-top-k: pairwise ranks (36 compares) + masked exp softmax ----
    ranks = [jnp.zeros((H, W), f32) for _ in range(NWIN)]
    for i in range(NWIN):
        for j in range(i + 1, NWIN):
            c_ij = (sims[i] >= sims[j]).astype(f32)          # earlier idx wins ties
            ranks[j] = ranks[j] + c_ij
            ranks[i] = ranks[i] + (1.0 - c_ij)
    weights = [jnp.exp(sims[j]) * (ranks[j] < kc).astype(f32)
               for j in range(NWIN)]
    wsum = weights[0]
    for j in range(1, NWIN):
        wsum = wsum + weights[j]
    inv_w = pl.reciprocal(wsum + 1e-8, approx=True)          # EUP, off the VALU
    wn = [weights[j] * inv_w for j in range(NWIN)]

    # ---- GroupNorm(x) stats -> per-channel scale/shift scalars ---------------
    cg = C // G
    scales, shifts = [], []
    for g in range(G):
        xg = x[g * cg:(g + 1) * cg]
        mu = jnp.mean(xg)
        var = jnp.mean((xg - mu) ** 2)
        istd = lax.rsqrt(var + 1e-5)
        for ci in range(cg):
            ch = g * cg + ci
            sc = gamma_ref[ch] * istd
            scales.append(sc)
            shifts.append(beta_ref[ch] - mu * sc)

    # ---- pass 2: per-channel aggregation + fused GroupNorm residual -> VMEM --
    for ch in range(C):
        acc_c = wn[CENTER] * x[ch]
        for j in range(NWIN):
            if j == CENTER:
                continue
            dy, dx = divmod(j, WINDOW)
            acc_c = acc_c + wn[j] * nbr(dy, dx, ch)
        e_sc[ch] = acc_c + x[ch] * scales[ch] + shifts[ch]   # enhanced[ch]

    # ---- fused conv_ffn epilogue: per-row channel matmuls + residual ---------
    w1 = w1_ref[...]
    w2 = w2_ref[...]
    b1 = b1_ref[...]                                         # (2C, 1)
    b2 = b2_ref[...]                                         # (C, 1)
    if FFN_BF16:
        w1 = w1.astype(jnp.bfloat16)
        w2 = w2.astype(jnp.bfloat16)
    for r in range(H):
        e_row = e_sc[:, r, :]                                # (C, W) f32
        lhs = e_row.astype(jnp.bfloat16) if FFN_BF16 else e_row
        h1 = jnp.dot(w1, lhs, preferred_element_type=jnp.float32) + b1
        h1 = jnp.maximum(h1, 0.0)
        rhs = h1.astype(jnp.bfloat16) if FFN_BF16 else h1
        o = jnp.dot(w2, rhs, preferred_element_type=jnp.float32) + b2
        out_ref[0, :, r * W:(r + 1) * W] = e_row + o         # lane-dense block


# ----------------------------------------------------------------------------
# wrapper
# ----------------------------------------------------------------------------
@jax.jit
def fast_ipg_forward(x, params):
    B, C, H, W = x.shape
    assert H % 2 == 0 and W % 2 == 0, "bilinear 0.5x round-trip assumes even H, W"
    assert H >= 3 and W >= 3, "reflect pad of 1 needs spatial dims >= 3"
    G = _num_groups(C)
    x = x.astype(jnp.float32)

    ah = jnp.asarray(_bilinear_half_roundtrip_matrix(H))          # (H, H)
    awt = jnp.asarray(_bilinear_half_roundtrip_matrix(W).T)       # (W, W)
    gamma = params["gamma"].reshape(C).astype(jnp.float32)        # SMEM scalars
    beta = params["beta"].reshape(C).astype(jnp.float32)
    w1 = params["w1"].astype(jnp.float32)                         # (2C, C)
    b1 = params["b1"].reshape(2 * C, 1).astype(jnp.float32)
    w2 = params["w2"].astype(jnp.float32)                         # (C, 2C)
    b2 = params["b2"].reshape(C, 1).astype(jnp.float32)

    HW = H * W
    vmem_limit = _vmem_limit_bytes()

    flops = B * (2 * C * H * W * W          # W-axis round-trip matmul
                 + 2 * C * H * H * W        # H-axis round-trip matmuls
                 + 8 * C * C * HW           # two 1x1-conv matmuls
                 + 80 * C * HW + 250 * HW)  # elementwise passes
    cost = pl.CostEstimate(
        flops=int(flops),
        transcendentals=int(B * 12 * HW),
        bytes_accessed=int(B * 2 * C * HW * 4
                           + 4 * (4 * C * C + H * H + W * W + 6 * C)))

    out_flat = pl.pallas_call(
        functools.partial(_ipg_ffn_kernel, C=C, H=H, W=W, G=G),
        out_shape=jax.ShapeDtypeStruct((B, C, HW), jnp.float32),
        grid_spec=pltpu.PrefetchScalarGridSpec(
            num_scalar_prefetch=0,
            grid=(B,),
            in_specs=[
                pl.BlockSpec((1, C, H, W), lambda b: (b, 0, 0, 0)),      # x
                pl.BlockSpec((H, H), lambda b: (0, 0)),                  # ah
                pl.BlockSpec((W, W), lambda b: (0, 0)),                  # awt
                pl.BlockSpec(memory_space=pltpu.MemorySpace.SMEM),       # gamma
                pl.BlockSpec(memory_space=pltpu.MemorySpace.SMEM),       # beta
                pl.BlockSpec((2 * C, C), lambda b: (0, 0)),              # w1
                pl.BlockSpec((2 * C, 1), lambda b: (0, 0)),              # b1
                pl.BlockSpec((C, 2 * C), lambda b: (0, 0)),              # w2
                pl.BlockSpec((C, 1), lambda b: (0, 0)),                  # b2
            ],
            out_specs=pl.BlockSpec((1, C, HW), lambda b: (b, 0, 0)),
            scratch_shapes=[
                pltpu.VMEM((WINDOW, C, H + 2 * PAD, W), jnp.float32),    # 3 shifted tiles
                pltpu.VMEM((C, H, W), jnp.float32),                      # enhanced
            ]),
        compiler_params=pltpu.CompilerParams(
            dimension_semantics=("parallel",),
            vmem_limit_bytes=vmem_limit),
        cost_estimate=cost,
    )(x, ah, awt, gamma, beta, w1, b1, w2, b2)

    return out_flat.reshape(B, C, H, W)


# ----------------------------------------------------------------------------
if __name__ == "__main__":
    B, C, H, W = 2, 4, 16, 16
    key = jax.random.PRNGKey(0)
    kx, kg, kb, k1, k2, k3, k4 = jax.random.split(key, 7)
    x = jax.random.normal(kx, (B, C, H, W), jnp.float32)
    params = {
        "gamma": 1.0 + 0.1 * jax.random.normal(kg, (C,), jnp.float32),
        "beta": 0.05 * jax.random.normal(kb, (C,), jnp.float32),
        "w1": 0.1 * jax.random.normal(k1, (2 * C, C), jnp.float32),
        "b1": 0.01 * jax.random.normal(k2, (2 * C,), jnp.float32),
        "w2": 0.1 * jax.random.normal(k3, (C, 2 * C), jnp.float32),
        "b2": 0.01 * jax.random.normal(k4, (C,), jnp.float32),
    }
    out = fast_ipg_forward(x, params)
    jax.block_until_ready(out)
    assert out.shape == (B, C, H, W) and out.dtype == jnp.float32
    assert bool(jnp.all(jnp.isfinite(out)))
    print("KERNEL_OK")
</pallas_src>

<mosaic_0001>
module attributes {stable_mosaic.version = 11 : i64} {
  func.func @_ipg_ffn_kernel(%arg0: i32, %arg1: memref<1x4x16x16xf32, #tpu.memory_space<vmem>>, %arg2: memref<16x16xf32, #tpu.memory_space<vmem>>, %arg3: memref<16x16xf32, #tpu.memory_space<vmem>>, %arg4: memref<4xf32, #tpu.memory_space<smem>>, %arg5: memref<4xf32, #tpu.memory_space<smem>>, %arg6: memref<8x4xf32, #tpu.memory_space<vmem>>, %arg7: memref<8x1xf32, #tpu.memory_space<vmem>>, %arg8: memref<4x8xf32, #tpu.memory_space<vmem>>, %arg9: memref<4x1xf32, #tpu.memory_space<vmem>>, %arg10: memref<1x4x256xf32, #tpu.memory_space<vmem>>, %arg11: memref<3x4x18x16xf32, #tpu.memory_space<vmem>>, %arg12: memref<4x16x16xf32, #tpu.memory_space<vmem>>) attributes {dimension_semantics = [#tpu.dimension_semantics<parallel>], iteration_bounds = array<i64: 2>, scalar_prefetch = 0 : i64, scratch_operands = 2 : i64, tpu.core_type = #tpu.core_type<tc>, window_params = [{transform_indices = @transform_0, window_bounds = array<i64: 1, 4, 16, 16>}, {pipeline_mode = #tpu.pipeline_mode<synchronous>, transform_indices = @transform_1, window_bounds = array<i64: 16, 16>}, {pipeline_mode = #tpu.pipeline_mode<synchronous>, transform_indices = @transform_2, window_bounds = array<i64: 16, 16>}, {transform_indices = @transform_3, window_bounds = array<i64: 4>}, {transform_indices = @transform_4, window_bounds = array<i64: 4>}, {pipeline_mode = #tpu.pipeline_mode<synchronous>, transform_indices = @transform_5, window_bounds = array<i64: 8, 4>}, {pipeline_mode = #tpu.pipeline_mode<synchronous>, transform_indices = @transform_6, window_bounds = array<i64: 8, 1>}, {pipeline_mode = #tpu.pipeline_mode<synchronous>, transform_indices = @transform_7, window_bounds = array<i64: 4, 8>}, {pipeline_mode = #tpu.pipeline_mode<synchronous>, transform_indices = @transform_8, window_bounds = array<i64: 4, 1>}, {transform_indices = @transform_9, window_bounds = array<i64: 1, 4, 256>}]} {
    %c0 = arith.constant 0 : index
    %c0_0 = arith.constant 0 : index
    %c0_1 = arith.constant 0 : index
    %c0_2 = arith.constant 0 : index
    %0 = vector.load %arg1[%c0, %c0_0, %c0_1, %c0_2] : memref<1x4x16x16xf32, #tpu.memory_space<vmem>>, vector<1x4x16x16xf32>
    %1 = vector.shape_cast %0 : vector<1x4x16x16xf32> to vector<4x16x16xf32>
    %c1 = arith.constant 1 : index
    %c0_3 = arith.constant 0 : index
    %c1_4 = arith.constant 1 : index
    %c0_5 = arith.constant 0 : index
    %2 = vector.load %arg11[%c1, %c0_3, %c1_4, %c0_5] : memref<3x4x18x16xf32, #tpu.memory_space<vmem>>, vector<1x4x16x16xf32>
    %3 = vector.shape_cast %2 : vector<1x4x16x16xf32> to vector<4x16x16xf32>
    %4 = vector.shape_cast %1 : vector<4x16x16xf32> to vector<1x4x16x16xf32>
    tpu.vector_store %arg11[%c1, %c0_3, %c1_4, %c0_5], %4 {strides = array<i32>} : memref<3x4x18x16xf32, #tpu.memory_space<vmem>>, vector<1x4x16x16xf32>,
    %5 = vector.extract_strided_slice %1 {offsets = [0, 1, 0], sizes = [4, 1, 16], strides = [1, 1, 1]} : vector<4x16x16xf32> to vector<4x1x16xf32>
    %c1_6 = arith.constant 1 : index
    %c0_7 = arith.constant 0 : index
    %c0_8 = arith.constant 0 : index
    %c0_9 = arith.constant 0 : index
    %6 = vector.load %arg11[%c1_6, %c0_7, %c0_8, %c0_9] : memref<3x4x18x16xf32, #tpu.memory_space<vmem>>, vector<1x4x1x16xf32>
    %7 = vector.shape_cast %6 : vector<1x4x1x16xf32> to vector<4x1x16xf32>
    %8 = vector.shape_cast %5 : vector<4x1x16xf32> to vector<1x4x1x16xf32>
    tpu.vector_store %arg11[%c1_6, %c0_7, %c0_8, %c0_9], %8 {strides = array<i32>} : memref<3x4x18x16xf32, #tpu.memory_space<vmem>>, vector<1x4x1x16xf32>,
    %9 = vector.extract_strided_slice %1 {offsets = [0, 14, 0], sizes = [4, 1, 16], strides = [1, 1, 1]} : vector<4x16x16xf32> to vector<4x1x16xf32>
    %c1_10 = arith.constant 1 : index
    %c0_11 = arith.constant 0 : index
    %c17 = arith.constant 17 : index
    %c0_12 = arith.constant 0 : index
    %10 = vector.load %arg11[%c1_10, %c0_11, %c17, %c0_12] : memref<3x4x18x16xf32, #tpu.memory_space<vmem>>, vector<1x4x1x16xf32>
    %11 = vector.shape_cast %10 : vector<1x4x1x16xf32> to vector<4x1x16xf32>
    %12 = vector.shape_cast %9 : vector<4x1x16xf32> to vector<1x4x1x16xf32>
    tpu.vector_store %arg11[%c1_10, %c0_11, %c17, %c0_12], %12 {strides = array<i32>} : memref<3x4x18x16xf32, #tpu.memory_space<vmem>>, vector<1x4x1x16xf32>,
    %c1_13 = arith.constant 1 : index
    %c0_14 = arith.constant 0 : index
    %c0_15 = arith.constant 0 : index
    %c0_16 = arith.constant 0 : index
    %13 = vector.load %arg11[%c1_13, %c0_14, %c0_15, %c0_16] : memref<3x4x18x16xf32, #tpu.memory_space<vmem>>, vector<1x4x18x16xf32>
    %14 = vector.shape_cast %13 : vector<1x4x18x16xf32> to vector<4x18x16xf32>
    %15 = vector.extract_strided_slice %14 {offsets = [0, 0, 0], sizes = [4, 18, 15], strides = [1, 1, 1]} : vector<4x18x16xf32> to vector<4x18x15xf32>
    %c0_17 = arith.constant 0 : index
    %c0_18 = arith.constant 0 : index
    %c0_19 = arith.constant 0 : index
    %c1_20 = arith.constant 1 : index
    %16 = vector.load %arg11[%c0_17, %c0_18, %c0_19, %c1_20] : memref<3x4x18x16xf32, #tpu.memory_space<vmem>>, vector<1x4x18x15xf32>
    %17 = vector.shape_cast %16 : vector<1x4x18x15xf32> to vector<4x18x15xf32>
    %18 = vector.shape_cast %15 : vector<4x18x15xf32> to vector<1x4x18x15xf32>
    tpu.vector_store %arg11[%c0_17, %c0_18, %c0_19, %c1_20], %18 {strides = array<i32>} : memref<3x4x18x16xf32, #tpu.memory_space<vmem>>, vector<1x4x18x15xf32>,
    %19 = vector.extract_strided_slice %14 {offsets = [0, 0, 1], sizes = [4, 18, 1], strides = [1, 1, 1]} : vector<4x18x16xf32> to vector<4x18x1xf32>
    %c0_21 = arith.constant 0 : index
    %c0_22 = arith.constant 0 : index
    %c0_23 = arith.constant 0 : index
    %c0_24 = arith.constant 0 : index
    %20 = vector.load %arg11[%c0_21, %c0_22, %c0_23, %c0_24] : memref<3x4x18x16xf32, #tpu.memory_space<vmem>>, vector<1x4x18x1xf32>
    %21 = vector.shape_cast %20 : vector<1x4x18x1xf32> to vector<4x18x1xf32>
    %22 = vector.shape_cast %19 : vector<4x18x1xf32> to vector<1x4x18x1xf32>
    tpu.vector_store %arg11[%c0_21, %c0_22, %c0_23, %c0_24], %22 {strides = array<i32>} : memref<3x4x18x16xf32, #tpu.memory_space<vmem>>, vector<1x4x18x1xf32>,
    %23 = vector.extract_strided_slice %14 {offsets = [0, 0, 1], sizes = [4, 18, 15], strides = [1, 1, 1]} : vector<4x18x16xf32> to vector<4x18x15xf32>
    %c2 = arith.constant 2 : index
    %c0_25 = arith.constant 0 : index
    %c0_26 = arith.constant 0 : index
    %c0_27 = arith.constant 0 : index
    %24 = vector.load %arg11[%c2, %c0_25, %c0_26, %c0_27] : memref<3x4x18x16xf32, #tpu.memory_space<vmem>>, vector<1x4x18x15xf32>
    %25 = vector.shape_cast %24 : vector<1x4x18x15xf32> to vector<4x18x15xf32>
    %26 = vector.shape_cast %23 : vector<4x18x15xf32> to vector<1x4x18x15xf32>
    tpu.vector_store %arg11[%c2, %c0_25, %c0_26, %c0_27], %26 {strides = array<i32>} : memref<3x4x18x16xf32, #tpu.memory_space<vmem>>, vector<1x4x18x15xf32>,
    %27 = vector.extract_strided_slice %14 {offsets = [0, 0, 14], sizes = [4, 18, 1], strides = [1, 1, 1]} : vector<4x18x16xf32> to vector<4x18x1xf32>
    %c2_28 = arith.constant 2 : index
    %c0_29 = arith.constant 0 : index
    %c0_30 = arith.constant 0 : index
    %c15 = arith.constant 15 : index
    %28 = vector.load %arg11[%c2_28, %c0_29, %c0_30, %c15] : memref<3x4x18x16xf32, #tpu.memory_space<vmem>>, vector<1x4x18x1xf32>
    %29 = vector.shape_cast %28 : vector<1x4x18x1xf32> to vector<4x18x1xf32>
    %30 = vector.shape_cast %27 : vector<4x18x1xf32> to vector<1x4x18x1xf32>
    tpu.vector_store %arg11[%c2_28, %c0_29, %c0_30, %c15], %30 {strides = array<i32>} : memref<3x4x18x16xf32, #tpu.memory_space<vmem>>, vector<1x4x18x1xf32>,
    %31 = vector.shape_cast %1 : vector<4x16x16xf32> to vector<64x16xf32>
    %c0_31 = arith.constant 0 : index
    %c0_32 = arith.constant 0 : index
    %32 = vector.load %arg3[%c0_31, %c0_32] : memref<16x16xf32, #tpu.memory_space<vmem>>, vector<16x16xf32>
    %cst = arith.constant dense<0.000000e+00> : vector<64x16xf32>
    %33 = tpu.matmul %31, %32, %cst {dimension_numbers = #tpu.dot_dimension_numbers<[1], [0], [0], [1], [0, 0, 1, 1], [], []>} : vector<64x16xf32>, vector<16x16xf32>, vector<64x16xf32> -> vector<64x16xf32>
    %34 = vector.shape_cast %33 : vector<64x16xf32> to vector<4x16x16xf32>
    %cst_33 = arith.constant 0.000000e+00 : f32
    %35 = vector.broadcast %cst_33 : f32 to vector<16x16xf32>
    %c0_34 = arith.constant 0 : index
    %c0_35 = arith.constant 0 : index
    %36 = vector.load %arg2[%c0_34, %c0_35] : memref<16x16xf32, #tpu.memory_space<vmem>>, vector<16x16xf32>
    %37 = vector.extract_strided_slice %34 {offsets = [0, 0, 0], sizes = [1, 16, 16], strides = [1, 1, 1]} : vector<4x16x16xf32> to vector<1x16x16xf32>
    %38 = vector.shape_cast %37 : vector<1x16x16xf32> to vector<16x16xf32>
    %cst_36 = arith.constant dense<0.000000e+00> : vector<16x16xf32>
    %39 = tpu.matmul %36, %38, %cst_36 {dimension_numbers = #tpu.dot_dimension_numbers<[1], [0], [0], [1], [0, 0, 1, 1], [], []>} : vector<16x16xf32>, vector<16x16xf32>, vector<16x16xf32> -> vector<16x16xf32>
    %40 = vector.extract_strided_slice %1 {offsets = [0, 0, 0], sizes = [1, 16, 16], strides = [1, 1, 1]} : vector<4x16x16xf32> to vector<1x16x16xf32>
    %41 = vector.shape_cast %40 : vector<1x16x16xf32> to vector<16x16xf32>
    %42 = arith.subf %41, %39 : vector<16x16xf32>
    %43 = math.absf %42 : vector<16x16xf32>
    %44 = arith.addf %35, %43 : vector<16x16xf32>
    %c0_37 = arith.constant 0 : index
    %c0_38 = arith.constant 0 : index
    %45 = vector.load %arg2[%c0_37, %c0_38] : memref<16x16xf32, #tpu.memory_space<vmem>>, vector<16x16xf32>
    %46 = vector.extract_strided_slice %34 {offsets = [1, 0, 0], sizes = [1, 16, 16], strides = [1, 1, 1]} : vector<4x16x16xf32> to vector<1x16x16xf32>
    %47 = vector.shape_cast %46 : vector<1x16x16xf32> to vector<16x16xf32>
    %cst_39 = arith.constant dense<0.000000e+00> : vector<16x16xf32>
    %48 = tpu.matmul %45, %47, %cst_39 {dimension_numbers = #tpu.dot_dimension_numbers<[1], [0], [0], [1], [0, 0, 1, 1], [], []>} : vector<16x16xf32>, vector<16x16xf32>, vector<16x16xf32> -> vector<16x16xf32>
    %49 = vector.extract_strided_slice %1 {offsets = [1, 0, 0], sizes = [1, 16, 16], strides = [1, 1, 1]} : vector<4x16x16xf32> to vector<1x16x16xf32>
    %50 = vector.shape_cast %49 : vector<1x16x16xf32> to vector<16x16xf32>
    %51 = arith.subf %50, %48 : vector<16x16xf32>
    %52 = math.absf %51 : vector<16x16xf32>
    %53 = arith.addf %44, %52 : vector<16x16xf32>
    %c0_40 = arith.constant 0 : index
    %c0_41 = arith.constant 0 : index
    %54 = vector.load %arg2[%c0_40, %c0_41] : memref<16x16xf32, #tpu.memory_space<vmem>>, vector<16x16xf32>
    %55 = vector.extract_strided_slice %34 {offsets = [2, 0, 0], sizes = [1, 16, 16], strides = [1, 1, 1]} : vector<4x16x16xf32> to vector<1x16x16xf32>
    %56 = vector.shape_cast %55 : vector<1x16x16xf32> to vector<16x16xf32>
    %cst_42 = arith.constant dense<0.000000e+00> : vector<16x16xf32>
    %57 = tpu.matmul %54, %56, %cst_42 {dimension_numbers = #tpu.dot_dimension_numbers<[1], [0], [0], [1], [0, 0, 1, 1], [], []>} : vector<16x16xf32>, vector<16x16xf32>, vector<16x16xf32> -> vector<16x16xf32>
    %58 = vector.extract_strided_slice %1 {offsets = [2, 0, 0], sizes = [1, 16, 16], strides = [1, 1, 1]} : vector<4x16x16xf32> to vector<1x16x16xf32>
    %59 = vector.shape_cast %58 : vector<1x16x16xf32> to vector<16x16xf32>
    %60 = arith.subf %59, %57 : vector<16x16xf32>
    %61 = math.absf %60 : vector<16x16xf32>
    %62 = arith.addf %53, %61 : vector<16x16xf32>
    %c0_43 = arith.constant 0 : index
    %c0_44 = arith.constant 0 : index
    %63 = vector.load %arg2[%c0_43, %c0_44] : memref<16x16xf32, #tpu.memory_space<vmem>>, vector<16x16xf32>
    %64 = vector.extract_strided_slice %34 {offsets = [3, 0, 0], sizes = [1, 16, 16], strides = [1, 1, 1]} : vector<4x16x16xf32> to vector<1x16x16xf32>
    %65 = vector.shape_cast %64 : vector<1x16x16xf32> to vector<16x16xf32>
    %cst_45 = arith.constant dense<0.000000e+00> : vector<16x16xf32>
    %66 = tpu.matmul %63, %65, %cst_45 {dimension_numbers = #tpu.dot_dimension_numbers<[1], [0], [0], [1], [0, 0, 1, 1], [], []>} : vector<16x16xf32>, vector<16x16xf32>, vector<16x16xf32> -> vector<16x16xf32>
    %67 = vector.extract_strided_slice %1 {offsets = [3, 0, 0], sizes = [1, 16, 16], strides = [1, 1, 1]} : vector<4x16x16xf32> to vector<1x16x16xf32>
    %68 = vector.shape_cast %67 : vector<1x16x16xf32> to vector<16x16xf32>
    %69 = arith.subf %68, %66 : vector<16x16xf32>
    %70 = math.absf %69 : vector<16x16xf32>
    %71 = arith.addf %62, %70 : vector<16x16xf32>
    %72 = vector.shape_cast %71 : vector<16x16xf32> to vector<1x16x16xf32>
    %cst_46 = arith.constant dense<0x7F800000> : vector<1xf32>
    %73 = vector.multi_reduction <minimumf>, %72, %cst_46 [1, 2] : vector<1x16x16xf32> to vector<1xf32>
    %74 = vector.shape_cast %73 : vector<1xf32> to vector<1x1x1xf32>
    %75 = vector.extract %74[0, 0, 0] : f32 from vector<1x1x1xf32>
    %76 = vector.shape_cast %71 : vector<16x16xf32> to vector<1x16x16xf32>
    %cst_47 = arith.constant dense<0xFF800000> : vector<1xf32>
    %77 = vector.multi_reduction <maximumf>, %76, %cst_47 [1, 2] : vector<1x16x16xf32> to vector<1xf32>
    %78 = vector.shape_cast %77 : vector<1xf32> to vector<1x1x1xf32>
    %79 = vector.extract %78[0, 0, 0] : f32 from vector<1x1x1xf32>
    %80 = vector.broadcast %75 : f32 to vector<16x16xf32>
    %81 = arith.subf %71, %80 : vector<16x16xf32>
    %82 = arith.subf %79, %75 : f32
    %cst_48 = arith.constant 9.99999993E-9 : f32
    %83 = arith.addf %82, %cst_48 : f32
    %84 = vector.broadcast %83 : f32 to vector<16x16xf32>
    %85 = arith.divf %81, %84 : vector<16x16xf32>
    %86 = arith.mulf %85, %85 : vector<16x16xf32>
    %87 = arith.mulf %86, %86 : vector<16x16xf32>
    %cst_49 = arith.constant 0.899999976 : f32
    %88 = vector.broadcast %cst_49 : f32 to vector<16x16xf32>
    %89 = arith.cmpf ogt, %87, %88 : vector<16x16xf32>
    %90 = arith.extui %89 : vector<16x16xi1> to vector<16x16xi32>
    %91 = arith.sitofp %90 : vector<16x16xi32> to vector<16x16xf32>
    %cst_50 = arith.constant 0.899999976 : f32
    %92 = vector.broadcast %cst_50 : f32 to vector<16x16xf32>
    %93 = arith.subf %87, %92 : vector<16x16xf32>
    %cst_51 = arith.constant 0.100000009 : f32
    %94 = vector.broadcast %cst_51 : f32 to vector<16x16xf32>
    %95 = arith.divf %93, %94 : vector<16x16xf32>
    %cst_52 = arith.constant 1.500000e+01 : f32
    %96 = vector.broadcast %cst_52 : f32 to vector<16x16xf32>
    %97 = arith.mulf %95, %96 : vector<16x16xf32>
    %98 = math.roundeven %97 : vector<16x16xf32>
    %cst_53 = arith.constant 0.000000e+00 : f32
    %99 = vector.broadcast %cst_53 : f32 to vector<16x16xf32>
    %100 = arith.maximumf %98, %99 : vector<16x16xf32>
    %101 = arith.mulf %100, %91 : vector<16x16xf32>
    %cst_54 = arith.constant 1.000000e+00 : f32
    %102 = vector.broadcast %cst_54 : f32 to vector<16x16xf32>
    %103 = arith.addf %102, %101 : vector<16x16xf32>
    %cst_55 = arith.constant 9.000000e+00 : f32
    %104 = vector.broadcast %cst_55 : f32 to vector<16x16xf32>
    %105 = arith.minimumf %103, %104 : vector<16x16xf32>
    %106 = arith.mulf %1, %1 : vector<4x16x16xf32>
    %cst_56 = arith.constant dense<0.000000e+00> : vector<16x16xf32>
    %107 = vector.multi_reduction <add>, %106, %cst_56 [0] : vector<4x16x16xf32> to vector<16x16xf32>
    %cst_57 = arith.constant 1.000000e-24 : f32
    %108 = vector.broadcast %cst_57 : f32 to vector<16x16xf32>
    %109 = arith.maximumf %107, %108 : vector<16x16xf32>
    %110 = math.rsqrt %109 : vector<16x16xf32>
    %c0_58 = arith.constant 0 : index
    %c0_59 = arith.constant 0 : index
    %c0_60 = arith.constant 0 : index
    %c0_61 = arith.constant 0 : index
    %111 = vector.load %arg11[%c0_58, %c0_59, %c0_60, %c0_61] : memref<3x4x18x16xf32, #tpu.memory_space<vmem>>, vector<1x4x16x16xf32>
    %112 = vector.shape_cast %111 : vector<1x4x16x16xf32> to vector<4x16x16xf32>
    %113 = arith.mulf %1, %112 : vector<4x16x16xf32>
    %cst_62 = arith.constant dense<0.000000e+00> : vector<16x16xf32>
    %114 = vector.multi_reduction <add>, %113, %cst_62 [0] : vector<4x16x16xf32> to vector<16x16xf32>
    %115 = arith.mulf %112, %112 : vector<4x16x16xf32>
    %cst_63 = arith.constant dense<0.000000e+00> : vector<16x16xf32>
    %116 = vector.multi_reduction <add>, %115, %cst_63 [0] : vector<4x16x16xf32> to vector<16x16xf32>
    %cst_64 = arith.constant 1.000000e-24 : f32
    %117 = vector.broadcast %cst_64 : f32 to vector<16x16xf32>
    %118 = arith.maximumf %116, %117 : vector<16x16xf32>
    %119 = math.rsqrt %118 : vector<16x16xf32>
    %120 = arith.mulf %114, %110 : vector<16x16xf32>
    %121 = arith.mulf %120, %119 : vector<16x16xf32>
    %c1_65 = arith.constant 1 : index
    %c0_66 = arith.constant 0 : index
    %c0_67 = arith.constant 0 : index
    %c0_68 = arith.constant 0 : index
    %122 = vector.load %arg11[%c1_65, %c0_66, %c0_67, %c0_68] : memref<3x4x18x16xf32, #tpu.memory_space<vmem>>, vector<1x4x16x16xf32>
    %123 = vector.shape_cast %122 : vector<1x4x16x16xf32> to vector<4x16x16xf32>
    %124 = arith.mulf %1, %123 : vector<4x16x16xf32>
    %cst_69 = arith.constant dense<0.000000e+00> : vector<16x16xf32>
    %125 = vector.multi_reduction <add>, %124, %cst_69 [0] : vector<4x16x16xf32> to vector<16x16xf32>
    %126 = arith.mulf %123, %123 : vector<4x16x16xf32>
    %cst_70 = arith.constant dense<0.000000e+00> : vector<16x16xf32>
    %127 = vector.multi_reduction <add>, %126, %cst_70 [0] : vector<4x16x16xf32> to vector<16x16xf32>
    %cst_71 = arith.constant 1.000000e-24 : f32
    %128 = vector.broadcast %cst_71 : f32 to vector<16x16xf32>
    %129 = arith.maximumf %127, %128 : vector<16x16xf32>
    %130 = math.rsqrt %129 : vector<16x16xf32>
    %131 = arith.mulf %125, %110 : vector<16x16xf32>
    %132 = arith.mulf %131, %130 : vector<16x16xf32>
    %c2_72 = arith.constant 2 : index
    %c0_73 = arith.constant 0 : index
    %c0_74 = arith.constant 0 : index
    %c0_75 = arith.constant 0 : index
    %133 = vector.load %arg11[%c2_72, %c0_73, %c0_74, %c0_75] : memref<3x4x18x16xf32, #tpu.memory_space<vmem>>, vector<1x4x16x16xf32>
    %134 = vector.shape_cast %133 : vector<1x4x16x16xf32> to vector<4x16x16xf32>
    %135 = arith.mulf %1, %134 : vector<4x16x16xf32>
    %cst_76 = arith.constant dense<0.000000e+00> : vector<16x16xf32>
    %136 = vector.multi_reduction <add>, %135, %cst_76 [0] : vector<4x16x16xf32> to vector<16x16xf32>
    %137 = arith.mulf %134, %134 : vector<4x16x16xf32>
    %cst_77 = arith.constant dense<0.000000e+00> : vector<16x16xf32>
    %138 = vector.multi_reduction <add>, %137, %cst_77 [0] : vector<4x16x16xf32> to vector<16x16xf32>
    %cst_78 = arith.constant 1.000000e-24 : f32
    %139 = vector.broadcast %cst_78 : f32 to vector<16x16xf32>
    %140 = arith.maximumf %138, %139 : vector<16x16xf32>
    %141 = math.rsqrt %140 : vector<16x16xf32>
    %142 = arith.mulf %136, %110 : vector<16x16xf32>
    %143 = arith.mulf %142, %141 : vector<16x16xf32>
    %c0_79 = arith.constant 0 : index
    %c0_80 = arith.constant 0 : index
    %c1_81 = arith.constant 1 : index
    %c0_82 = arith.constant 0 : index
    %144 = vector.load %arg11[%c0_79, %c0_80, %c1_81, %c0_82] : memref<3x4x18x16xf32, #tpu.memory_space<vmem>>, vector<1x4x16x16xf32>
    %145 = vector.shape_cast %144 : vector<1x4x16x16xf32> to vector<4x16x16xf32>
    %146 = arith.mulf %1, %145 : vector<4x16x16xf32>
    %cst_83 = arith.constant dense<0.000000e+00> : vector<16x16xf32>
    %147 = vector.multi_reduction <add>, %146, %cst_83 [0] : vector<4x16x16xf32> to vector<16x16xf32>
    %148 = arith.mulf %145, %145 : vector<4x16x16xf32>
    %cst_84 = arith.constant dense<0.000000e+00> : vector<16x16xf32>
    %149 = vector.multi_reduction <add>, %148, %cst_84 [0] : vector<4x16x16xf32> to vector<16x16xf32>
    %cst_85 = arith.constant 1.000000e-24 : f32
    %150 = vector.broadcast %cst_85 : f32 to vector<16x16xf32>
    %151 = arith.maximumf %149, %150 : vector<16x16xf32>
    %152 = math.rsqrt %151 : vector<16x16xf32>
    %153 = arith.mulf %147, %110 : vector<16x16xf32>
    %154 = arith.mulf %153, %152 : vector<16x16xf32>
    %155 = arith.mulf %1, %1 : vector<4x16x16xf32>
    %cst_86 = arith.constant dense<0.000000e+00> : vector<16x16xf32>
    %156 = vector.multi_reduction <add>, %155, %cst_86 [0] : vector<4x16x16xf32> to vector<16x16xf32>
    %157 = arith.mulf %1, %1 : vector<4x16x16xf32>
    %cst_87 = arith.constant dense<0.000000e+00> : vector<16x16xf32>
    %158 = vector.multi_reduction <add>, %157, %cst_87 [0] : vector<4x16x16xf32> to vector<16x16xf32>
    %cst_88 = arith.constant 1.000000e-24 : f32
    %159 = vector.broadcast %cst_88 : f32 to vector<16x16xf32>
    %160 = arith.maximumf %158, %159 : vector<16x16xf32>
    %161 = math.rsqrt %160 : vector<16x16xf32>
    %162 = arith.mulf %156, %110 : vector<16x16xf32>
    %163 = arith.mulf %162, %161 : vector<16x16xf32>
    %c2_89 = arith.constant 2 : index
    %c0_90 = arith.constant 0 : index
    %c1_91 = arith.constant 1 : index
    %c0_92 = arith.constant 0 : index
    %164 = vector.load %arg11[%c2_89, %c0_90, %c1_91, %c0_92] : memref<3x4x18x16xf32, #tpu.memory_space<vmem>>, vector<1x4x16x16xf32>
    %165 = vector.shape_cast %164 : vector<1x4x16x16xf32> to vector<4x16x16xf32>
    %166 = arith.mulf %1, %165 : vector<4x16x16xf32>
    %cst_93 = arith.constant dense<0.000000e+00> : vector<16x16xf32>
    %167 = vector.multi_reduction <add>, %166, %cst_93 [0] : vector<4x16x16xf32> to vector<16x16xf32>
    %168 = arith.mulf %165, %165 : vector<4x16x16xf32>
    %cst_94 = arith.constant dense<0.000000e+00> : vector<16x16xf32>
    %169 = vector.multi_reduction <add>, %168, %cst_94 [0] : vector<4x16x16xf32> to vector<16x16xf32>
    %cst_95 = arith.constant 1.000000e-24 : f32
    %170 = vector.broadcast %cst_95 : f32 to vector<16x16xf32>
    %171 = arith.maximumf %169, %170 : vector<16x16xf32>
    %172 = math.rsqrt %171 : vector<16x16xf32>
    %173 = arith.mulf %167, %110 : vector<16x16xf32>
    %174 = arith.mulf %173, %172 : vector<16x16xf32>
    %c0_96 = arith.constant 0 : index
    %c0_97 = arith.constant 0 : index
    %c2_98 = arith.constant 2 : index
    %c0_99 = arith.constant 0 : index
    %175 = vector.load %arg11[%c0_96, %c0_97, %c2_98, %c0_99] : memref<3x4x18x16xf32, #tpu.memory_space<vmem>>, vector<1x4x16x16xf32>
    %176 = vector.shape_cast %175 : vector<1x4x16x16xf32> to vector<4x16x16xf32>
    %177 = arith.mulf %1, %176 : vector<4x16x16xf32>
    %cst_100 = arith.constant dense<0.000000e+00> : vector<16x16xf32>
    %178 = vector.multi_reduction <add>, %177, %cst_100 [0] : vector<4x16x16xf32> to vector<16x16xf32>
    %179 = arith.mulf %176, %176 : vector<4x16x16xf32>
    %cst_101 = arith.constant dense<0.000000e+00> : vector<16x16xf32>
    %180 = vector.multi_reduction <add>, %179, %cst_101 [0] : vector<4x16x16xf32> to vector<16x16xf32>
    %cst_102 = arith.constant 1.000000e-24 : f32
    %181 = vector.broadcast %cst_102 : f32 to vector<16x16xf32>
    %182 = arith.maximumf %180, %181 : vector<16x16xf32>
    %183 = math.rsqrt %182 : vector<16x16xf32>
    %184 = arith.mulf %178, %110 : vector<16x16xf32>
    %185 = arith.mulf %184, %183 : vector<16x16xf32>
    %c1_103 = arith.constant 1 : index
    %c0_104 = arith.constant 0 : index
    %c2_105 = arith.constant 2 : index
    %c0_106 = arith.constant 0 : index
    %186 = vector.load %arg11[%c1_103, %c0_104, %c2_105, %c0_106] : memref<3x4x18x16xf32, #tpu.memory_space<vmem>>, vector<1x4x16x16xf32>
    %187 = vector.shape_cast %186 : vector<1x4x16x16xf32> to vector<4x16x16xf32>
    %188 = arith.mulf %1, %187 : vector<4x16x16xf32>
    %cst_107 = arith.constant dense<0.000000e+00> : vector<16x16xf32>
    %189 = vector.multi_reduction <add>, %188, %cst_107 [0] : vector<4x16x16xf32> to vector<16x16xf32>
    %190 = arith.mulf %187, %187 : vector<4x16x16xf32>
    %cst_108 = arith.constant dense<0.000000e+00> : vector<16x16xf32>
    %191 = vector.multi_reduction <add>, %190, %cst_108 [0] : vector<4x16x16xf32> to vector<16x16xf32>
    %cst_109 = arith.constant 1.000000e-24 : f32
    %192 = vector.broadcast %cst_109 : f32 to vector<16x16xf32>
    %193 = arith.maximumf %191, %192 : vector<16x16xf32>
    %194 = math.rsqrt %193 : vector<16x16xf32>
    %195 = arith.mulf %189, %110 : vector<16x16xf32>
    %196 = arith.mulf %195, %194 : vector<16x16xf32>
    %c2_110 = arith.constant 2 : index
    %c0_111 = arith.constant 0 : index
    %c2_112 = arith.constant 2 : index
    %c0_113 = arith.constant 0 : index
    %197 = vector.load %arg11[%c2_110, %c0_111, %c2_112, %c0_113] : memref<3x4x18x16xf32, #tpu.memory_space<vmem>>, vector<1x4x16x16xf32>
    %198 = vector.shape_cast %197 : vector<1x4x16x16xf32> to vector<4x16x16xf32>
    %199 = arith.mulf %1, %198 : vector<4x16x16xf32>
    %cst_114 = arith.constant dense<0.000000e+00> : vector<16x16xf32>
    %200 = vector.multi_reduction <add>, %199, %cst_114 [0] : vector<4x16x16xf32> to vector<16x16xf32>
    %201 = arith.mulf %198, %198 : vector<4x16x16xf32>
    %cst_115 = arith.constant dense<0.000000e+00> : vector<16x16xf32>
    %202 = vector.multi_reduction <add>, %201, %cst_115 [0] : vector<4x16x16xf32> to vector<16x16xf32>
    %cst_116 = arith.constant 1.000000e-24 : f32
    %203 = vector.broadcast %cst_116 : f32 to vector<16x16xf32>
    %204 = arith.maximumf %202, %203 : vector<16x16xf32>
    %205 = math.rsqrt %204 : vector<16x16xf32>
    %206 = arith.mulf %200, %110 : vector<16x16xf32>
    %207 = arith.mulf %206, %205 : vector<16x16xf32>
    %cst_117 = arith.constant 0.000000e+00 : f32
    %208 = vector.broadcast %cst_117 : f32 to vector<16x16xf32>
    %cst_118 = arith.constant 0.000000e+00 : f32
    %209 = vector.broadcast %cst_118 : f32 to vector<16x16xf32>
    %cst_119 = arith.constant 0.000000e+00 : f32
    %210 = vector.broadcast %cst_119 : f32 to vector<16x16xf32>
    %cst_120 = arith.constant 0.000000e+00 : f32
    %211 = vector.broadcast %cst_120 : f32 to vector<16x16xf32>
    %cst_121 = arith.constant 0.000000e+00 : f32
    %212 = vector.broadcast %cst_121 : f32 to vector<16x16xf32>
    %cst_122 = arith.constant 0.000000e+00 : f32
    %213 = vector.broadcast %cst_122 : f32 to vector<16x16xf32>
    %cst_123 = arith.constant 0.000000e+00 : f32
    %214 = vector.broadcast %cst_123 : f32 to vector<16x16xf32>
    %cst_124 = arith.constant 0.000000e+00 : f32
    %215 = vector.broadcast %cst_124 : f32 to vector<16x16xf32>
    %cst_125 = arith.constant 0.000000e+00 : f32
    %216 = vector.broadcast %cst_125 : f32 to vector<16x16xf32>
    %217 = arith.cmpf oge, %121, %132 : vector<16x16xf32>
    %218 = arith.extui %217 : vector<16x16xi1> to vector<16x16xi32>
    %219 = arith.sitofp %218 : vector<16x16xi32> to vector<16x16xf32>
    %220 = arith.addf %209, %219 : vector<16x16xf32>
    %cst_126 = arith.constant 1.000000e+00 : f32
    %221 = vector.broadcast %cst_126 : f32 to vector<16x16xf32>
    %222 = arith.subf %221, %219 : vector<16x16xf32>
    %223 = arith.addf %208, %222 : vector<16x16xf32>
    %224 = arith.cmpf oge, %121, %143 : vector<16x16xf32>
    %225 = arith.extui %224 : vector<16x16xi1> to vector<16x16xi32>
    %226 = arith.sitofp %225 : vector<16x16xi32> to vector<16x16xf32>
    %227 = arith.addf %210, %226 : vector<16x16xf32>
    %cst_127 = arith.constant 1.000000e+00 : f32
    %228 = vector.broadcast %cst_127 : f32 to vector<16x16xf32>
    %229 = arith.subf %228, %226 : vector<16x16xf32>
    %230 = arith.addf %223, %229 : vector<16x16xf32>
    %231 = arith.cmpf oge, %121, %154 : vector<16x16xf32>
    %232 = arith.extui %231 : vector<16x16xi1> to vector<16x16xi32>
    %233 = arith.sitofp %232 : vector<16x16xi32> to vector<16x16xf32>
    %234 = arith.addf %211, %233 : vector<16x16xf32>
    %cst_128 = arith.constant 1.000000e+00 : f32
    %235 = vector.broadcast %cst_128 : f32 to vector<16x16xf32>
    %236 = arith.subf %235, %233 : vector<16x16xf32>
    %237 = arith.addf %230, %236 : vector<16x16xf32>
    %238 = arith.cmpf oge, %121, %163 : vector<16x16xf32>
    %239 = arith.extui %238 : vector<16x16xi1> to vector<16x16xi32>
    %240 = arith.sitofp %239 : vector<16x16xi32> to vector<16x16xf32>
    %241 = arith.addf %212, %240 : vector<16x16xf32>
    %cst_129 = arith.constant 1.000000e+00 : f32
    %242 = vector.broadcast %cst_129 : f32 to vector<16x16xf32>
    %243 = arith.subf %242, %240 : vector<16x16xf32>
    %244 = arith.addf %237, %243 : vector<16x16xf32>
    %245 = arith.cmpf oge, %121, %174 : vector<16x16xf32>
    %246 = arith.extui %245 : vector<16x16xi1> to vector<16x16xi32>
    %247 = arith.sitofp %246 : vector<16x16xi32> to vector<16x16xf32>
    %248 = arith.addf %213, %247 : vector<16x16xf32>
    %cst_130 = arith.constant 1.000000e+00 : f32
    %249 = vector.broadcast %cst_130 : f32 to vector<16x16xf32>
    %250 = arith.subf %249, %247 : vector<16x16xf32>
    %251 = arith.addf %244, %250 : vector<16x16xf32>
    %252 = arith.cmpf oge, %121, %185 : vector<16x16xf32>
    %253 = arith.extui %252 : vector<16x16xi1> to vector<16x16xi32>
    %254 = arith.sitofp %253 : vector<16x16xi32> to vector<16x16xf32>
    %255 = arith.addf %214, %254 : vector<16x16xf32>
    %cst_131 = arith.constant 1.000000e+00 : f32
    %256 = vector.broadcast %cst_131 : f32 to vector<16x16xf32>
    %257 = arith.subf %256, %254 : vector<16x16xf32>
    %258 = arith.addf %251, %257 : vector<16x16xf32>
    %259 = arith.cmpf oge, %121, %196 : vector<16x16xf32>
    %260 = arith.extui %259 : vector<16x16xi1> to vector<16x16xi32>
    %261 = arith.sitofp %260 : vector<16x16xi32> to vector<16x16xf32>
    %262 = arith.addf %215, %261 : vector<16x16xf32>
    %cst_132 = arith.constant 1.000000e+00 : f32
    %263 = vector.broadcast %cst_132 : f32 to vector<16x16xf32>
    %264 = arith.subf %263, %261 : vector<16x16xf32>
    %265 = arith.addf %258, %264 : vector<16x16xf32>
    %266 = arith.cmpf oge, %121, %207 : vector<16x16xf32>
    %267 = arith.extui %266 : vector<16x16xi1> to vector<16x16xi32>
    %268 = arith.sitofp %267 : vector<16x16xi32> to vector<16x16xf32>
    %269 = arith.addf %216, %268 : vector<16x16xf32>
    %cst_133 = arith.constant 1.000000e+00 : f32
    %270 = vector.broadcast %cst_133 : f32 to vector<16x16xf32>
    %271 = arith.subf %270, %268 : vector<16x16xf32>
    %272 = arith.addf %265, %271 : vector<16x16xf32>
    %273 = arith.cmpf oge, %132, %143 : vector<16x16xf32>
    %274 = arith.extui %273 : vector<16x16xi1> to vector<16x16xi32>
    %275 = arith.sitofp %274 : vector<16x16xi32> to vector<16x16xf32>
    %276 = arith.addf %227, %275 : vector<16x16xf32>
    %cst_134 = arith.constant 1.000000e+00 : f32
    %277 = vector.broadcast %cst_134 : f32 to vector<16x16xf32>
    %278 = arith.subf %277, %275 : vector<16x16xf32>
    %279 = arith.addf %220, %278 : vector<16x16xf32>
    %280 = arith.cmpf oge, %132, %154 : vector<16x16xf32>
    %281 = arith.extui %280 : vector<16x16xi1> to vector<16x16xi32>
    %282 = arith.sitofp %281 : vector<16x16xi32> to vector<16x16xf32>
    %283 = arith.addf %234, %282 : vector<16x16xf32>
    %cst_135 = arith.constant 1.000000e+00 : f32
    %284 = vector.broadcast %cst_135 : f32 to vector<16x16xf32>
    %285 = arith.subf %284, %282 : vector<16x16xf32>
    %286 = arith.addf %279, %285 : vector<16x16xf32>
    %287 = arith.cmpf oge, %132, %163 : vector<16x16xf32>
    %288 = arith.extui %287 : vector<16x16xi1> to vector<16x16xi32>
    %289 = arith.sitofp %288 : vector<16x16xi32> to vector<16x16xf32>
    %290 = arith.addf %241, %289 : vector<16x16xf32>
    %cst_136 = arith.constant 1.000000e+00 : f32
    %291 = vector.broadcast %cst_136 : f32 to vector<16x16xf32>
    %292 = arith.subf %291, %289 : vector<16x16xf32>
    %293 = arith.addf %286, %292 : vector<16x16xf32>
    %294 = arith.cmpf oge, %132, %174 : vector<16x16xf32>
    %295 = arith.extui %294 : vector<16x16xi1> to vector<16x16xi32>
    %296 = arith.sitofp %295 : vector<16x16xi32> to vector<16x16xf32>
    %297 = arith.addf %248, %296 : vector<16x16xf32>
    %cst_137 = arith.constant 1.000000e+00 : f32
    %298 = vector.broadcast %cst_137 : f32 to vector<16x16xf32>
    %299 = arith.subf %298, %296 : vector<16x16xf32>
    %300 = arith.addf %293, %299 : vector<16x16xf32>
    %301 = arith.cmpf oge, %132, %185 : vector<16x16xf32>
    %302 = arith.extui %301 : vector<16x16xi1> to vector<16x16xi32>
    %303 = arith.sitofp %302 : vector<16x16xi32> to vector<16x16xf32>
    %304 = arith.addf %255, %303 : vector<16x16xf32>
    %cst_138 = arith.constant 1.000000e+00 : f32
    %305 = vector.broadcast %cst_138 : f32 to vector<16x16xf32>
    %306 = arith.subf %305, %303 : vector<16x16xf32>
    %307 = arith.addf %300, %306 : vector<16x16xf32>
    %308 = arith.cmpf oge, %132, %196 : vector<16x16xf32>
    %309 = arith.extui %308 : vector<16x16xi1> to vector<16x16xi32>
    %310 = arith.sitofp %309 : vector<16x16xi32> to vector<16x16xf32>
    %311 = arith.addf %262, %310 : vector<16x16xf32>
    %cst_139 = arith.constant 1.000000e+00 : f32
    %312 = vector.broadcast %cst_139 : f32 to vector<16x16xf32>
    %313 = arith.subf %312, %310 : vector<16x16xf32>
    %314 = arith.addf %307, %313 : vector<16x16xf32>
    %315 = arith.cmpf oge, %132, %207 : vector<16x16xf32>
    %316 = arith.extui %315 : vector<16x16xi1> to vector<16x16xi32>
    %317 = arith.sitofp %316 : vector<16x16xi32> to vector<16x16xf32>
    %318 = arith.addf %269, %317 : vector<16x16xf32>
    %cst_140 = arith.constant 1.000000e+00 : f32
    %319 = vector.broadcast %cst_140 : f32 to vector<16x16xf32>
    %320 = arith.subf %319, %317 : vector<16x16xf32>
    %321 = arith.addf %314, %320 : vector<16x16xf32>
    %322 = arith.cmpf oge, %143, %154 : vector<16x16xf32>
    %323 = arith.extui %322 : vector<16x16xi1> to vector<16x16xi32>
    %324 = arith.sitofp %323 : vector<16x16xi32> to vector<16x16xf32>
    %325 = arith.addf %283, %324 : vector<16x16xf32>
    %cst_141 = arith.constant 1.000000e+00 : f32
    %326 = vector.broadcast %cst_141 : f32 to vector<16x16xf32>
    %327 = arith.subf %326, %324 : vector<16x16xf32>
    %328 = arith.addf %276, %327 : vector<16x16xf32>
    %329 = arith.cmpf oge, %143, %163 : vector<16x16xf32>
    %330 = arith.extui %329 : vector<16x16xi1> to vector<16x16xi32>
    %331 = arith.sitofp %330 : vector<16x16xi32> to vector<16x16xf32>
    %332 = arith.addf %290, %331 : vector<16x16xf32>
    %cst_142 = arith.constant 1.000000e+00 : f32
    %333 = vector.broadcast %cst_142 : f32 to vector<16x16xf32>
    %334 = arith.subf %333, %331 : vector<16x16xf32>
    %335 = arith.addf %328, %334 : vector<16x16xf32>
    %336 = arith.cmpf oge, %143, %174 : vector<16x16xf32>
    %337 = arith.extui %336 : vector<16x16xi1> to vector<16x16xi32>
    %338 = arith.sitofp %337 : vector<16x16xi32> to vector<16x16xf32>
    %339 = arith.addf %297, %338 : vector<16x16xf32>
    %cst_143 = arith.constant 1.000000e+00 : f32
    %340 = vector.broadcast %cst_143 : f32 to vector<16x16xf32>
    %341 = arith.subf %340, %338 : vector<16x16xf32>
    %342 = arith.addf %335, %341 : vector<16x16xf32>
    %343 = arith.cmpf oge, %143, %185 : vector<16x16xf32>
    %344 = arith.extui %343 : vector<16x16xi1> to vector<16x16xi32>
    %345 = arith.sitofp %344 : vector<16x16xi32> to vector<16x16xf32>
    %346 = arith.addf %304, %345 : vector<16x16xf32>
    %cst_144 = arith.constant 1.000000e+00 : f32
    %347 = vector.broadcast %cst_144 : f32 to vector<16x16xf32>
    %348 = arith.subf %347, %345 : vector<16x16xf32>
    %349 = arith.addf %342, %348 : vector<16x16xf32>
    %350 = arith.cmpf oge, %143, %196 : vector<16x16xf32>
    %351 = arith.extui %350 : vector<16x16xi1> to vector<16x16xi32>
    %352 = arith.sitofp %351 : vector<16x16xi32> to vector<16x16xf32>
    %353 = arith.addf %311, %352 : vector<16x16xf32>
    %cst_145 = arith.constant 1.000000e+00 : f32
    %354 = vector.broadcast %cst_145 : f32 to vector<16x16xf32>
    %355 = arith.subf %354, %352 : vector<16x16xf32>
    %356 = arith.addf %349, %355 : vector<16x16xf32>
    %357 = arith.cmpf oge, %143, %207 : vector<16x16xf32>
    %358 = arith.extui %357 : vector<16x16xi1> to vector<16x16xi32>
    %359 = arith.sitofp %358 : vector<16x16xi32> to vector<16x16xf32>
    %360 = arith.addf %318, %359 : vector<16x16xf32>
    %cst_146 = arith.constant 1.000000e+00 : f32
    %361 = vector.broadcast %cst_146 : f32 to vector<16x16xf32>
    %362 = arith.subf %361, %359 : vector<16x16xf32>
    %363 = arith.addf %356, %362 : vector<16x16xf32>
    %364 = arith.cmpf oge, %154, %163 : vector<16x16xf32>
    %365 = arith.extui %364 : vector<16x16xi1> to vector<16x16xi32>
    %366 = arith.sitofp %365 : vector<16x16xi32> to vector<16x16xf32>
    %367 = arith.addf %332, %366 : vector<16x16xf32>
    %cst_147 = arith.constant 1.000000e+00 : f32
    %368 = vector.broadcast %cst_147 : f32 to vector<16x16xf32>
    %369 = arith.subf %368, %366 : vector<16x16xf32>
    %370 = arith.addf %325, %369 : vector<16x16xf32>
    %371 = arith.cmpf oge, %154, %174 : vector<16x16xf32>
    %372 = arith.extui %371 : vector<16x16xi1> to vector<16x16xi32>
    %373 = arith.sitofp %372 : vector<16x16xi32> to vector<16x16xf32>
    %374 = arith.addf %339, %373 : vector<16x16xf32>
    %cst_148 = arith.constant 1.000000e+00 : f32
    %375 = vector.broadcast %cst_148 : f32 to vector<16x16xf32>
    %376 = arith.subf %375, %373 : vector<16x16xf32>
    %377 = arith.addf %370, %376 : vector<16x16xf32>
    %378 = arith.cmpf oge, %154, %185 : vector<16x16xf32>
    %379 = arith.extui %378 : vector<16x16xi1> to vector<16x16xi32>
    %380 = arith.sitofp %379 : vector<16x16xi32> to vector<16x16xf32>
    %381 = arith.addf %346, %380 : vector<16x16xf32>
    %cst_149 = arith.constant 1.000000e+00 : f32
    %382 = vector.broadcast %cst_149 : f32 to vector<16x16xf32>
    %383 = arith.subf %382, %380 : vector<16x16xf32>
    %384 = arith.addf %377, %383 : vector<16x16xf32>
    %385 = arith.cmpf oge, %154, %196 : vector<16x16xf32>
    %386 = arith.extui %385 : vector<16x16xi1> to vector<16x16xi32>
    %387 = arith.sitofp %386 : vector<16x16xi32> to vector<16x16xf32>
    %388 = arith.addf %353, %387 : vector<16x16xf32>
    %cst_150 = arith.constant 1.000000e+00 : f32
    %389 = vector.broadcast %cst_150 : f32 to vector<16x16xf32>
    %390 = arith.subf %389, %387 : vector<16x16xf32>
    %391 = arith.addf %384, %390 : vector<16x16xf32>
    %392 = arith.cmpf oge, %154, %207 : vector<16x16xf32>
    %393 = arith.extui %392 : vector<16x16xi1> to vector<16x16xi32>
    %394 = arith.sitofp %393 : vector<16x16xi32> to vector<16x16xf32>
    %395 = arith.addf %360, %394 : vector<16x16xf32>
    %cst_151 = arith.constant 1.000000e+00 : f32
    %396 = vector.broadcast %cst_151 : f32 to vector<16x16xf32>
    %397 = arith.subf %396, %394 : vector<16x16xf32>
    %398 = arith.addf %391, %397 : vector<16x16xf32>
    %399 = arith.cmpf oge, %163, %174 : vector<16x16xf32>
    %400 = arith.extui %399 : vector<16x16xi1> to vector<16x16xi32>
    %401 = arith.sitofp %400 : vector<16x16xi32> to vector<16x16xf32>
    %402 = arith.addf %374, %401 : vector<16x16xf32>
    %cst_152 = arith.constant 1.000000e+00 : f32
    %403 = vector.broadcast %cst_152 : f32 to vector<16x16xf32>
    %404 = arith.subf %403, %401 : vector<16x16xf32>
    %405 = arith.addf %367, %404 : vector<16x16xf32>
    %406 = arith.cmpf oge, %163, %185 : vector<16x16xf32>
    %407 = arith.extui %406 : vector<16x16xi1> to vector<16x16xi32>
    %408 = arith.sitofp %407 : vector<16x16xi32> to vector<16x16xf32>
    %409 = arith.addf %381, %408 : vector<16x16xf32>
    %cst_153 = arith.constant 1.000000e+00 : f32
    %410 = vector.broadcast %cst_153 : f32 to vector<16x16xf32>
    %411 = arith.subf %410, %408 : vector<16x16xf32>
    %412 = arith.addf %405, %411 : vector<16x16xf32>
    %413 = arith.cmpf oge, %163, %196 : vector<16x16xf32>
    %414 = arith.extui %413 : vector<16x16xi1> to vector<16x16xi32>
    %415 = arith.sitofp %414 : vector<16x16xi32> to vector<16x16xf32>
    %416 = arith.addf %388, %415 : vector<16x16xf32>
    %cst_154 = arith.constant 1.000000e+00 : f32
    %417 = vector.broadcast %cst_154 : f32 to vector<16x16xf32>
    %418 = arith.subf %417, %415 : vector<16x16xf32>
    %419 = arith.addf %412, %418 : vector<16x16xf32>
    %420 = arith.cmpf oge, %163, %207 : vector<16x16xf32>
    %421 = arith.extui %420 : vector<16x16xi1> to vector<16x16xi32>
    %422 = arith.sitofp %421 : vector<16x16xi32> to vector<16x16xf32>
    %423 = arith.addf %395, %422 : vector<16x16xf32>
    %cst_155 = arith.constant 1.000000e+00 : f32
    %424 = vector.broadcast %cst_155 : f32 to vector<16x16xf32>
    %425 = arith.subf %424, %422 : vector<16x16xf32>
    %426 = arith.addf %419, %425 : vector<16x16xf32>
    %427 = arith.cmpf oge, %174, %185 : vector<16x16xf32>
    %428 = arith.extui %427 : vector<16x16xi1> to vector<16x16xi32>
    %429 = arith.sitofp %428 : vector<16x16xi32> to vector<16x16xf32>
    %430 = arith.addf %409, %429 : vector<16x16xf32>
    %cst_156 = arith.constant 1.000000e+00 : f32
    %431 = vector.broadcast %cst_156 : f32 to vector<16x16xf32>
    %432 = arith.subf %431, %429 : vector<16x16xf32>
    %433 = arith.addf %402, %432 : vector<16x16xf32>
    %434 = arith.cmpf oge, %174, %196 : vector<16x16xf32>
    %435 = arith.extui %434 : vector<16x16xi1> to vector<16x16xi32>
    %436 = arith.sitofp %435 : vector<16x16xi32> to vector<16x16xf32>
    %437 = arith.addf %416, %436 : vector<16x16xf32>
    %cst_157 = arith.constant 1.000000e+00 : f32
    %438 = vector.broadcast %cst_157 : f32 to vector<16x16xf32>
    %439 = arith.subf %438, %436 : vector<16x16xf32>
    %440 = arith.addf %433, %439 : vector<16x16xf32>
    %441 = arith.cmpf oge, %174, %207 : vector<16x16xf32>
    %442 = arith.extui %441 : vector<16x16xi1> to vector<16x16xi32>
    %443 = arith.sitofp %442 : vector<16x16xi32> to vector<16x16xf32>
    %444 = arith.addf %423, %443 : vector<16x16xf32>
    %cst_158 = arith.constant 1.000000e+00 : f32
    %445 = vector.broadcast %cst_158 : f32 to vector<16x16xf32>
    %446 = arith.subf %445, %443 : vector<16x16xf32>
    %447 = arith.addf %440, %446 : vector<16x16xf32>
    %448 = arith.cmpf oge, %185, %196 : vector<16x16xf32>
    %449 = arith.extui %448 : vector<16x16xi1> to vector<16x16xi32>
    %450 = arith.sitofp %449 : vector<16x16xi32> to vector<16x16xf32>
    %451 = arith.addf %437, %450 : vector<16x16xf32>
    %cst_159 = arith.constant 1.000000e+00 : f32
    %452 = vector.broadcast %cst_159 : f32 to vector<16x16xf32>
    %453 = arith.subf %452, %450 : vector<16x16xf32>
    %454 = arith.addf %430, %453 : vector<16x16xf32>
    %455 = arith.cmpf oge, %185, %207 : vector<16x16xf32>
    %456 = arith.extui %455 : vector<16x16xi1> to vector<16x16xi32>
    %457 = arith.sitofp %456 : vector<16x16xi32> to vector<16x16xf32>
    %458 = arith.addf %444, %457 : vector<16x16xf32>
    %cst_160 = arith.constant 1.000000e+00 : f32
    %459 = vector.broadcast %cst_160 : f32 to vector<16x16xf32>
    %460 = arith.subf %459, %457 : vector<16x16xf32>
    %461 = arith.addf %454, %460 : vector<16x16xf32>
    %462 = arith.cmpf oge, %196, %207 : vector<16x16xf32>
    %463 = arith.extui %462 : vector<16x16xi1> to vector<16x16xi32>
    %464 = arith.sitofp %463 : vector<16x16xi32> to vector<16x16xf32>
    %465 = arith.addf %458, %464 : vector<16x16xf32>
    %cst_161 = arith.constant 1.000000e+00 : f32
    %466 = vector.broadcast %cst_161 : f32 to vector<16x16xf32>
    %467 = arith.subf %466, %464 : vector<16x16xf32>
    %468 = arith.addf %451, %467 : vector<16x16xf32>
    %469 = math.exp %121 : vector<16x16xf32>
    %470 = arith.cmpf olt, %272, %105 : vector<16x16xf32>
    %471 = arith.extui %470 : vector<16x16xi1> to vector<16x16xi32>
    %472 = arith.sitofp %471 : vector<16x16xi32> to vector<16x16xf32>
    %473 = arith.mulf %469, %472 : vector<16x16xf32>
    %474 = math.exp %132 : vector<16x16xf32>
    %475 = arith.cmpf olt, %321, %105 : vector<16x16xf32>
    %476 = arith.extui %475 : vector<16x16xi1> to vector<16x16xi32>
    %477 = arith.sitofp %476 : vector<16x16xi32> to vector<16x16xf32>
    %478 = arith.mulf %474, %477 : vector<16x16xf32>
    %479 = math.exp %143 : vector<16x16xf32>
    %480 = arith.cmpf olt, %363, %105 : vector<16x16xf32>
    %481 = arith.extui %480 : vector<16x16xi1> to vector<16x16xi32>
    %482 = arith.sitofp %481 : vector<16x16xi32> to vector<16x16xf32>
    %483 = arith.mulf %479, %482 : vector<16x16xf32>
    %484 = math.exp %154 : vector<16x16xf32>
    %485 = arith.cmpf olt, %398, %105 : vector<16x16xf32>
    %486 = arith.extui %485 : vector<16x16xi1> to vector<16x16xi32>
    %487 = arith.sitofp %486 : vector<16x16xi32> to vector<16x16xf32>
    %488 = arith.mulf %484, %487 : vector<16x16xf32>
    %489 = math.exp %163 : vector<16x16xf32>
    %490 = arith.cmpf olt, %426, %105 : vector<16x16xf32>
    %491 = arith.extui %490 : vector<16x16xi1> to vector<16x16xi32>
    %492 = arith.sitofp %491 : vector<16x16xi32> to vector<16x16xf32>
    %493 = arith.mulf %489, %492 : vector<16x16xf32>
    %494 = math.exp %174 : vector<16x16xf32>
    %495 = arith.cmpf olt, %447, %105 : vector<16x16xf32>
    %496 = arith.extui %495 : vector<16x16xi1> to vector<16x16xi32>
    %497 = arith.sitofp %496 : vector<16x16xi32> to vector<16x16xf32>
    %498 = arith.mulf %494, %497 : vector<16x16xf32>
    %499 = math.exp %185 : vector<16x16xf32>
    %500 = arith.cmpf olt, %461, %105 : vector<16x16xf32>
    %501 = arith.extui %500 : vector<16x16xi1> to vector<16x16xi32>
    %502 = arith.sitofp %501 : vector<16x16xi32> to vector<16x16xf32>
    %503 = arith.mulf %499, %502 : vector<16x16xf32>
    %504 = math.exp %196 : vector<16x16xf32>
    %505 = arith.cmpf olt, %468, %105 : vector<16x16xf32>
    %506 = arith.extui %505 : vector<16x16xi1> to vector<16x16xi32>
    %507 = arith.sitofp %506 : vector<16x16xi32> to vector<16x16xf32>
    %508 = arith.mulf %504, %507 : vector<16x16xf32>
    %509 = math.exp %207 : vector<16x16xf32>
    %510 = arith.cmpf olt, %465, %105 : vector<16x16xf32>
    %511 = arith.extui %510 : vector<16x16xi1> to vector<16x16xi32>
    %512 = arith.sitofp %511 : vector<16x16xi32> to vector<16x16xf32>
    %513 = arith.mulf %509, %512 : vector<16x16xf32>
    %514 = arith.addf %473, %478 : vector<16x16xf32>
    %515 = arith.addf %514, %483 : vector<16x16xf32>
    %516 = arith.addf %515, %488 : vector<16x16xf32>
    %517 = arith.addf %516, %493 : vector<16x16xf32>
    %518 = arith.addf %517, %498 : vector<16x16xf32>
    %519 = arith.addf %518, %503 : vector<16x16xf32>
    %520 = arith.addf %519, %508 : vector<16x16xf32>
    %521 = arith.addf %520, %513 : vector<16x16xf32>
    %cst_162 = arith.constant 9.99999993E-9 : f32
    %522 = vector.broadcast %cst_162 : f32 to vector<16x16xf32>
    %523 = arith.addf %521, %522 : vector<16x16xf32>
    %524 = tpu.reciprocal %523 {approx = true} : vector<16x16xf32> -> vector<16x16xf32>
    %525 = arith.mulf %473, %524 : vector<16x16xf32>
    %526 = arith.mulf %478, %524 : vector<16x16xf32>
    %527 = arith.mulf %483, %524 : vector<16x16xf32>
    %528 = arith.mulf %488, %524 : vector<16x16xf32>
    %529 = arith.mulf %493, %524 : vector<16x16xf32>
    %530 = arith.mulf %498, %524 : vector<16x16xf32>
    %531 = arith.mulf %503, %524 : vector<16x16xf32>
    %532 = arith.mulf %508, %524 : vector<16x16xf32>
    %533 = arith.mulf %513, %524 : vector<16x16xf32>
    %534 = vector.extract_strided_slice %1 {offsets = [0, 0, 0], sizes = [1, 16, 16], strides = [1, 1, 1]} : vector<4x16x16xf32> to vector<1x16x16xf32>
    %535 = vector.shape_cast %534 : vector<1x16x16xf32> to vector<1x1x16x16xf32>
    %cst_163 = arith.constant dense<0.000000e+00> : vector<1xf32>
    %536 = vector.multi_reduction <add>, %535, %cst_163 [1, 2, 3] : vector<1x1x16x16xf32> to vector<1xf32>
    %537 = vector.shape_cast %536 : vector<1xf32> to vector<1x1x1x1xf32>
    %538 = vector.extract %537[0, 0, 0, 0] : f32 from vector<1x1x1x1xf32>
    %cst_164 = arith.constant 2.560000e+02 : f32
    %539 = arith.divf %538, %cst_164 : f32
    %540 = vector.broadcast %539 : f32 to vector<1x16x16xf32>
    %541 = arith.subf %534, %540 : vector<1x16x16xf32>
    %542 = arith.mulf %541, %541 : vector<1x16x16xf32>
    %543 = vector.shape_cast %542 : vector<1x16x16xf32> to vector<1x1x16x16xf32>
    %cst_165 = arith.constant dense<0.000000e+00> : vector<1xf32>
    %544 = vector.multi_reduction <add>, %543, %cst_165 [1, 2, 3] : vector<1x1x16x16xf32> to vector<1xf32>
    %545 = vector.shape_cast %544 : vector<1xf32> to vector<1x1x1x1xf32>
    %546 = vector.extract %545[0, 0, 0, 0] : f32 from vector<1x1x1x1xf32>
    %cst_166 = arith.constant 2.560000e+02 : f32
    %547 = arith.divf %546, %cst_166 : f32
    %cst_167 = arith.constant 9.99999974E-6 : f32
    %548 = arith.addf %547, %cst_167 : f32
    %549 = math.rsqrt %548 : f32
    %c0_168 = arith.constant 0 : index
    %550 = memref.load %arg4[%c0_168] : memref<4xf32, #tpu.memory_space<smem>>
    %551 = arith.mulf %550, %549 : f32
    %c0_169 = arith.constant 0 : index
    %552 = memref.load %arg5[%c0_169] : memref<4xf32, #tpu.memory_space<smem>>
    %553 = arith.mulf %539, %551 : f32
    %554 = arith.subf %552, %553 : f32
    %555 = vector.extract_strided_slice %1 {offsets = [1, 0, 0], sizes = [1, 16, 16], strides = [1, 1, 1]} : vector<4x16x16xf32> to vector<1x16x16xf32>
    %556 = vector.shape_cast %555 : vector<1x16x16xf32> to vector<1x1x16x16xf32>
    %cst_170 = arith.constant dense<0.000000e+00> : vector<1xf32>
    %557 = vector.multi_reduction <add>, %556, %cst_170 [1, 2, 3] : vector<1x1x16x16xf32> to vector<1xf32>
    %558 = vector.shape_cast %557 : vector<1xf32> to vector<1x1x1x1xf32>
    %559 = vector.extract %558[0, 0, 0, 0] : f32 from vector<1x1x1x1xf32>
    %cst_171 = arith.constant 2.560000e+02 : f32
    %560 = arith.divf %559, %cst_171 : f32
    %561 = vector.broadcast %560 : f32 to vector<1x16x16xf32>
    %562 = arith.subf %555, %561 : vector<1x16x16xf32>
    %563 = arith.mulf %562, %562 : vector<1x16x16xf32>
    %564 = vector.shape_cast %563 : vector<1x16x16xf32> to vector<1x1x16x16xf32>
    %cst_172 = arith.constant dense<0.000000e+00> : vector<1xf32>
    %565 = vector.multi_reduction <add>, %564, %cst_172 [1, 2, 3] : vector<1x1x16x16xf32> to vector<1xf32>
    %566 = vector.shape_cast %565 : vector<1xf32> to vector<1x1x1x1xf32>
    %567 = vector.extract %566[0, 0, 0, 0] : f32 from vector<1x1x1x1xf32>
    %cst_173 = arith.constant 2.560000e+02 : f32
    %568 = arith.divf %567, %cst_173 : f32
    %cst_174 = arith.constant 9.99999974E-6 : f32
    %569 = arith.addf %568, %cst_174 : f32
    %570 = math.rsqrt %569 : f32
    %c1_175 = arith.constant 1 : index
    %571 = memref.load %arg4[%c1_175] : memref<4xf32, #tpu.memory_space<smem>>
    %572 = arith.mulf %571, %570 : f32
    %c1_176 = arith.constant 1 : index
    %573 = memref.load %arg5[%c1_176] : memref<4xf32, #tpu.memory_space<smem>>
    %574 = arith.mulf %560, %572 : f32
    %575 = arith.subf %573, %574 : f32
    %576 = vector.extract_strided_slice %1 {offsets = [2, 0, 0], sizes = [1, 16, 16], strides = [1, 1, 1]} : vector<4x16x16xf32> to vector<1x16x16xf32>
    %577 = vector.shape_cast %576 : vector<1x16x16xf32> to vector<1x1x16x16xf32>
    %cst_177 = arith.constant dense<0.000000e+00> : vector<1xf32>
    %578 = vector.multi_reduction <add>, %577, %cst_177 [1, 2, 3] : vector<1x1x16x16xf32> to vector<1xf32>
    %579 = vector.shape_cast %578 : vector<1xf32> to vector<1x1x1x1xf32>
    %580 = vector.extract %579[0, 0, 0, 0] : f32 from vector<1x1x1x1xf32>
    %cst_178 = arith.constant 2.560000e+02 : f32
    %581 = arith.divf %580, %cst_178 : f32
    %582 = vector.broadcast %581 : f32 to vector<1x16x16xf32>
    %583 = arith.subf %576, %582 : vector<1x16x16xf32>
    %584 = arith.mulf %583, %583 : vector<1x16x16xf32>
    %585 = vector.shape_cast %584 : vector<1x16x16xf32> to vector<1x1x16x16xf32>
    %cst_179 = arith.constant dense<0.000000e+00> : vector<1xf32>
    %586 = vector.multi_reduction <add>, %585, %cst_179 [1, 2, 3] : vector<1x1x16x16xf32> to vector<1xf32>
    %587 = vector.shape_cast %586 : vector<1xf32> to vector<1x1x1x1xf32>
    %588 = vector.extract %587[0, 0, 0, 0] : f32 from vector<1x1x1x1xf32>
    %cst_180 = arith.constant 2.560000e+02 : f32
    %589 = arith.divf %588, %cst_180 : f32
    %cst_181 = arith.constant 9.99999974E-6 : f32
    %590 = arith.addf %589, %cst_181 : f32
    %591 = math.rsqrt %590 : f32
    %c2_182 = arith.constant 2 : index
    %592 = memref.load %arg4[%c2_182] : memref<4xf32, #tpu.memory_space<smem>>
    %593 = arith.mulf %592, %591 : f32
    %c2_183 = arith.constant 2 : index
    %594 = memref.load %arg5[%c2_183] : memref<4xf32, #tpu.memory_space<smem>>
    %595 = arith.mulf %581, %593 : f32
    %596 = arith.subf %594, %595 : f32
    %597 = vector.extract_strided_slice %1 {offsets = [3, 0, 0], sizes = [1, 16, 16], strides = [1, 1, 1]} : vector<4x16x16xf32> to vector<1x16x16xf32>
    %598 = vector.shape_cast %597 : vector<1x16x16xf32> to vector<1x1x16x16xf32>
    %cst_184 = arith.constant dense<0.000000e+00> : vector<1xf32>
    %599 = vector.multi_reduction <add>, %598, %cst_184 [1, 2, 3] : vector<1x1x16x16xf32> to vector<1xf32>
    %600 = vector.shape_cast %599 : vector<1xf32> to vector<1x1x1x1xf32>
    %601 = vector.extract %600[0, 0, 0, 0] : f32 from vector<1x1x1x1xf32>
    %cst_185 = arith.constant 2.560000e+02 : f32
    %602 = arith.divf %601, %cst_185 : f32
    %603 = vector.broadcast %602 : f32 to vector<1x16x16xf32>
    %604 = arith.subf %597, %603 : vector<1x16x16xf32>
    %605 = arith.mulf %604, %604 : vector<1x16x16xf32>
    %606 = vector.shape_cast %605 : vector<1x16x16xf32> to vector<1x1x16x16xf32>
    %cst_186 = arith.constant dense<0.000000e+00> : vector<1xf32>
    %607 = vector.multi_reduction <add>, %606, %cst_186 [1, 2, 3] : vector<1x1x16x16xf32> to vector<1xf32>
    %608 = vector.shape_cast %607 : vector<1xf32> to vector<1x1x1x1xf32>
    %609 = vector.extract %608[0, 0, 0, 0] : f32 from vector<1x1x1x1xf32>
    %cst_187 = arith.constant 2.560000e+02 : f32
    %610 = arith.divf %609, %cst_187 : f32
    %cst_188 = arith.constant 9.99999974E-6 : f32
    %611 = arith.addf %610, %cst_188 : f32
    %612 = math.rsqrt %611 : f32
    %c3 = arith.constant 3 : index
    %613 = memref.load %arg4[%c3] : memref<4xf32, #tpu.memory_space<smem>>
    %614 = arith.mulf %613, %612 : f32
    %c3_189 = arith.constant 3 : index
    %615 = memref.load %arg5[%c3_189] : memref<4xf32, #tpu.memory_space<smem>>
    %616 = arith.mulf %602, %614 : f32
    %617 = arith.subf %615, %616 : f32
    %618 = vector.extract_strided_slice %1 {offsets = [0, 0, 0], sizes = [1, 16, 16], strides = [1, 1, 1]} : vector<4x16x16xf32> to vector<1x16x16xf32>
    %619 = vector.shape_cast %618 : vector<1x16x16xf32> to vector<16x16xf32>
    %620 = arith.mulf %529, %619 : vector<16x16xf32>
    %c0_190 = arith.constant 0 : index
    %c0_191 = arith.constant 0 : index
    %c0_192 = arith.constant 0 : index
    %c0_193 = arith.constant 0 : index
    %621 = vector.load %arg11[%c0_190, %c0_191, %c0_192, %c0_193] : memref<3x4x18x16xf32, #tpu.memory_space<vmem>>, vector<1x1x16x16xf32>
    %622 = vector.shape_cast %621 : vector<1x1x16x16xf32> to vector<16x16xf32>
    %623 = arith.mulf %525, %622 : vector<16x16xf32>
    %624 = arith.addf %620, %623 : vector<16x16xf32>
    %c1_194 = arith.constant 1 : index
    %c0_195 = arith.constant 0 : index
    %c0_196 = arith.constant 0 : index
    %c0_197 = arith.constant 0 : index
    %625 = vector.load %arg11[%c1_194, %c0_195, %c0_196, %c0_197] : memref<3x4x18x16xf32, #tpu.memory_space<vmem>>, vector<1x1x16x16xf32>
    %626 = vector.shape_cast %625 : vector<1x1x16x16xf32> to vector<16x16xf32>
    %627 = arith.mulf %526, %626 : vector<16x16xf32>
    %628 = arith.addf %624, %627 : vector<16x16xf32>
    %c2_198 = arith.constant 2 : index
    %c0_199 = arith.constant 0 : index
    %c0_200 = arith.constant 0 : index
    %c0_201 = arith.constant 0 : index
    %629 = vector.load %arg11[%c2_198, %c0_199, %c0_200, %c0_201] : memref<3x4x18x16xf32, #tpu.memory_space<vmem>>, vector<1x1x16x16xf32>
    %630 = vector.shape_cast %629 : vector<1x1x16x16xf32> to vector<16x16xf32>
    %631 = arith.mulf %527, %630 : vector<16x16xf32>
    %632 = arith.addf %628, %631 : vector<16x16xf32>
    %c0_202 = arith.constant 0 : index
    %c0_203 = arith.constant 0 : index
    %c1_204 = arith.constant 1 : index
    %c0_205 = arith.constant 0 : index
    %633 = vector.load %arg11[%c0_202, %c0_203, %c1_204, %c0_205] : memref<3x4x18x16xf32, #tpu.memory_space<vmem>>, vector<1x1x16x16xf32>
    %634 = vector.shape_cast %633 : vector<1x1x16x16xf32> to vector<16x16xf32>
    %635 = arith.mulf %528, %634 : vector<16x16xf32>
    %636 = arith.addf %632, %635 : vector<16x16xf32>
    %c2_206 = arith.constant 2 : index
    %c0_207 = arith.constant 0 : index
    %c1_208 = arith.constant 1 : index
    %c0_209 = arith.constant 0 : index
    %637 = vector.load %arg11[%c2_206, %c0_207, %c1_208, %c0_209] : memref<3x4x18x16xf32, #tpu.memory_space<vmem>>, vector<1x1x16x16xf32>
    %638 = vector.shape_cast %637 : vector<1x1x16x16xf32> to vector<16x16xf32>
    %639 = arith.mulf %530, %638 : vector<16x16xf32>
    %640 = arith.addf %636, %639 : vector<16x16xf32>
    %c0_210 = arith.constant 0 : index
    %c0_211 = arith.constant 0 : index
    %c2_212 = arith.constant 2 : index
    %c0_213 = arith.constant 0 : index
    %641 = vector.load %arg11[%c0_210, %c0_211, %c2_212, %c0_213] : memref<3x4x18x16xf32, #tpu.memory_space<vmem>>, vector<1x1x16x16xf32>
    %642 = vector.shape_cast %641 : vector<1x1x16x16xf32> to vector<16x16xf32>
    %643 = arith.mulf %531, %642 : vector<16x16xf32>
    %644 = arith.addf %640, %643 : vector<16x16xf32>
    %c1_214 = arith.constant 1 : index
    %c0_215 = arith.constant 0 : index
    %c2_216 = arith.constant 2 : index
    %c0_217 = arith.constant 0 : index
    %645 = vector.load %arg11[%c1_214, %c0_215, %c2_216, %c0_217] : memref<3x4x18x16xf32, #tpu.memory_space<vmem>>, vector<1x1x16x16xf32>
    %646 = vector.shape_cast %645 : vector<1x1x16x16xf32> to vector<16x16xf32>
    %647 = arith.mulf %532, %646 : vector<16x16xf32>
    %648 = arith.addf %644, %647 : vector<16x16xf32>
    %c2_218 = arith.constant 2 : index
    %c0_219 = arith.constant 0 : index
    %c2_220 = arith.constant 2 : index
    %c0_221 = arith.constant 0 : index
    %649 = vector.load %arg11[%c2_218, %c0_219, %c2_220, %c0_221] : memref<3x4x18x16xf32, #tpu.memory_space<vmem>>, vector<1x1x16x16xf32>
    %650 = vector.shape_cast %649 : vector<1x1x16x16xf32> to vector<16x16xf32>
    %651 = arith.mulf %533, %650 : vector<16x16xf32>
    %652 = arith.addf %648, %651 : vector<16x16xf32>
    %653 = vector.extract_strided_slice %1 {offsets = [0, 0, 0], sizes = [1, 16, 16], strides = [1, 1, 1]} : vector<4x16x16xf32> to vector<1x16x16xf32>
    %654 = vector.shape_cast %653 : vector<1x16x16xf32> to vector<16x16xf32>
    %655 = vector.broadcast %551 : f32 to vector<16x16xf32>
    %656 = arith.mulf %654, %655 : vector<16x16xf32>
    %657 = arith.addf %652, %656 : vector<16x16xf32>
    %658 = vector.broadcast %554 : f32 to vector<16x16xf32>
    %659 = arith.addf %657, %658 : vector<16x16xf32>
    %c0_222 = arith.constant 0 : index
    %c0_223 = arith.constant 0 : index
    %c0_224 = arith.constant 0 : index
    %660 = vector.load %arg12[%c0_222, %c0_223, %c0_224] : memref<4x16x16xf32, #tpu.memory_space<vmem>>, vector<1x16x16xf32>
    %661 = vector.shape_cast %660 : vector<1x16x16xf32> to vector<16x16xf32>
    %662 = vector.shape_cast %659 : vector<16x16xf32> to vector<1x16x16xf32>
    tpu.vector_store %arg12[%c0_222, %c0_223, %c0_224], %662 {strides = array<i32>} : memref<4x16x16xf32, #tpu.memory_space<vmem>>, vector<1x16x16xf32>,
    %663 = vector.extract_strided_slice %1 {offsets = [1, 0, 0], sizes = [1, 16, 16], strides = [1, 1, 1]} : vector<4x16x16xf32> to vector<1x16x16xf32>
    %664 = vector.shape_cast %663 : vector<1x16x16xf32> to vector<16x16xf32>
    %665 = arith.mulf %529, %664 : vector<16x16xf32>
    %c0_225 = arith.constant 0 : index
    %c1_226 = arith.constant 1 : index
    %c0_227 = arith.constant 0 : index
    %c0_228 = arith.constant 0 : index
    %666 = vector.load %arg11[%c0_225, %c1_226, %c0_227, %c0_228] : memref<3x4x18x16xf32, #tpu.memory_space<vmem>>, vector<1x1x16x16xf32>
    %667 = vector.shape_cast %666 : vector<1x1x16x16xf32> to vector<16x16xf32>
    %668 = arith.mulf %525, %667 : vector<16x16xf32>
    %669 = arith.addf %665, %668 : vector<16x16xf32>
    %c1_229 = arith.constant 1 : index
    %c1_230 = arith.constant 1 : index
    %c0_231 = arith.constant 0 : index
    %c0_232 = arith.constant 0 : index
    %670 = vector.load %arg11[%c1_229, %c1_230, %c0_231, %c0_232] : memref<3x4x18x16xf32, #tpu.memory_space<vmem>>, vector<1x1x16x16xf32>
    %671 = vector.shape_cast %670 : vector<1x1x16x16xf32> to vector<16x16xf32>
    %672 = arith.mulf %526, %671 : vector<16x16xf32>
    %673 = arith.addf %669, %672 : vector<16x16xf32>
    %c2_233 = arith.constant 2 : index
    %c1_234 = arith.constant 1 : index
    %c0_235 = arith.constant 0 : index
    %c0_236 = arith.constant 0 : index
    %674 = vector.load %arg11[%c2_233, %c1_234, %c0_235, %c0_236] : memref<3x4x18x16xf32, #tpu.memory_space<vmem>>, vector<1x1x16x16xf32>
    %675 = vector.shape_cast %674 : vector<1x1x16x16xf32> to vector<16x16xf32>
    %676 = arith.mulf %527, %675 : vector<16x16xf32>
    %677 = arith.addf %673, %676 : vector<16x16xf32>
    %c0_237 = arith.constant 0 : index
    %c1_238 = arith.constant 1 : index
    %c1_239 = arith.constant 1 : index
    %c0_240 = arith.constant 0 : index
    %678 = vector.load %arg11[%c0_237, %c1_238, %c1_239, %c0_240] : memref<3x4x18x16xf32, #tpu.memory_space<vmem>>, vector<1x1x16x16xf32>
    %679 = vector.shape_cast %678 : vector<1x1x16x16xf32> to vector<16x16xf32>
    %680 = arith.mulf %528, %679 : vector<16x16xf32>
    %681 = arith.addf %677, %680 : vector<16x16xf32>
    %c2_241 = arith.constant 2 : index
    %c1_242 = arith.constant 1 : index
    %c1_243 = arith.constant 1 : index
    %c0_244 = arith.constant 0 : index
    %682 = vector.load %arg11[%c2_241, %c1_242, %c1_243, %c0_244] : memref<3x4x18x16xf32, #tpu.memory_space<vmem>>, vector<1x1x16x16xf32>
    %683 = vector.shape_cast %682 : vector<1x1x16x16xf32> to vector<16x16xf32>
    %684 = arith.mulf %530, %683 : vector<16x16xf32>
    %685 = arith.addf %681, %684 : vector<16x16xf32>
    %c0_245 = arith.constant 0 : index
    %c1_246 = arith.constant 1 : index
    %c2_247 = arith.constant 2 : index
    %c0_248 = arith.constant 0 : index
    %686 = vector.load %arg11[%c0_245, %c1_246, %c2_247, %c0_248] : memref<3x4x18x16xf32, #tpu.memory_space<vmem>>, vector<1x1x16x16xf32>
    %687 = vector.shape_cast %686 : vector<1x1x16x16xf32> to vector<16x16xf32>
    %688 = arith.mulf %531, %687 : vector<16x16xf32>
    %689 = arith.addf %685, %688 : vector<16x16xf32>
    %c1_249 = arith.constant 1 : index
    %c1_250 = arith.constant 1 : index
    %c2_251 = arith.constant 2 : index
    %c0_252 = arith.constant 0 : index
    %690 = vector.load %arg11[%c1_249, %c1_250, %c2_251, %c0_252] : memref<3x4x18x16xf32, #tpu.memory_space<vmem>>, vector<1x1x16x16xf32>
    %691 = vector.shape_cast %690 : vector<1x1x16x16xf32> to vector<16x16xf32>
    %692 = arith.mulf %532, %691 : vector<16x16xf32>
    %693 = arith.addf %689, %692 : vector<16x16xf32>
    %c2_253 = arith.constant 2 : index
    %c1_254 = arith.constant 1 : index
    %c2_255 = arith.constant 2 : index
    %c0_256 = arith.constant 0 : index
    %694 = vector.load %arg11[%c2_253, %c1_254, %c2_255, %c0_256] : memref<3x4x18x16xf32, #tpu.memory_space<vmem>>, vector<1x1x16x16xf32>
    %695 = vector.shape_cast %694 : vector<1x1x16x16xf32> to vector<16x16xf32>
    %696 = arith.mulf %533, %695 : vector<16x16xf32>
    %697 = arith.addf %693, %696 : vector<16x16xf32>
    %698 = vector.extract_strided_slice %1 {offsets = [1, 0, 0], sizes = [1, 16, 16], strides = [1, 1, 1]} : vector<4x16x16xf32> to vector<1x16x16xf32>
    %699 = vector.shape_cast %698 : vector<1x16x16xf32> to vector<16x16xf32>
    %700 = vector.broadcast %572 : f32 to vector<16x16xf32>
    %701 = arith.mulf %699, %700 : vector<16x16xf32>
    %702 = arith.addf %697, %701 : vector<16x16xf32>
    %703 = vector.broadcast %575 : f32 to vector<16x16xf32>
    %704 = arith.addf %702, %703 : vector<16x16xf32>
    %c1_257 = arith.constant 1 : index
    %c0_258 = arith.constant 0 : index
    %c0_259 = arith.constant 0 : index
    %705 = vector.load %arg12[%c1_257, %c0_258, %c0_259] : memref<4x16x16xf32, #tpu.memory_space<vmem>>, vector<1x16x16xf32>
    %706 = vector.shape_cast %705 : vector<1x16x16xf32> to vector<16x16xf32>
    %707 = vector.shape_cast %704 : vector<16x16xf32> to vector<1x16x16xf32>
    tpu.vector_store %arg12[%c1_257, %c0_258, %c0_259], %707 {strides = array<i32>} : memref<4x16x16xf32, #tpu.memory_space<vmem>>, vector<1x16x16xf32>,
    %708 = vector.extract_strided_slice %1 {offsets = [2, 0, 0], sizes = [1, 16, 16], strides = [1, 1, 1]} : vector<4x16x16xf32> to vector<1x16x16xf32>
    %709 = vector.shape_cast %708 : vector<1x16x16xf32> to vector<16x16xf32>
    %710 = arith.mulf %529, %709 : vector<16x16xf32>
    %c0_260 = arith.constant 0 : index
    %c2_261 = arith.constant 2 : index
    %c0_262 = arith.constant 0 : index
    %c0_263 = arith.constant 0 : index
    %711 = vector.load %arg11[%c0_260, %c2_261, %c0_262, %c0_263] : memref<3x4x18x16xf32, #tpu.memory_space<vmem>>, vector<1x1x16x16xf32>
    %712 = vector.shape_cast %711 : vector<1x1x16x16xf32> to vector<16x16xf32>
    %713 = arith.mulf %525, %712 : vector<16x16xf32>
    %714 = arith.addf %710, %713 : vector<16x16xf32>
    %c1_264 = arith.constant 1 : index
    %c2_265 = arith.constant 2 : index
    %c0_266 = arith.constant 0 : index
    %c0_267 = arith.constant 0 : index
    %715 = vector.load %arg11[%c1_264, %c2_265, %c0_266, %c0_267] : memref<3x4x18x16xf32, #tpu.memory_space<vmem>>, vector<1x1x16x16xf32>
    %716 = vector.shape_cast %715 : vector<1x1x16x16xf32> to vector<16x16xf32>
    %717 = arith.mulf %526, %716 : vector<16x16xf32>
    %718 = arith.addf %714, %717 : vector<16x16xf32>
    %c2_268 = arith.constant 2 : index
    %c2_269 = arith.constant 2 : index
    %c0_270 = arith.constant 0 : index
    %c0_271 = arith.constant 0 : index
    %719 = vector.load %arg11[%c2_268, %c2_269, %c0_270, %c0_271] : memref<3x4x18x16xf32, #tpu.memory_space<vmem>>, vector<1x1x16x16xf32>
    %720 = vector.shape_cast %719 : vector<1x1x16x16xf32> to vector<16x16xf32>
    %721 = arith.mulf %527, %720 : vector<16x16xf32>
    %722 = arith.addf %718, %721 : vector<16x16xf32>
    %c0_272 = arith.constant 0 : index
    %c2_273 = arith.constant 2 : index
    %c1_274 = arith.constant 1 : index
    %c0_275 = arith.constant 0 : index
    %723 = vector.load %arg11[%c0_272, %c2_273, %c1_274, %c0_275] : memref<3x4x18x16xf32, #tpu.memory_space<vmem>>, vector<1x1x16x16xf32>
    %724 = vector.shape_cast %723 : vector<1x1x16x16xf32> to vector<16x16xf32>
    %725 = arith.mulf %528, %724 : vector<16x16xf32>
    %726 = arith.addf %722, %725 : vector<16x16xf32>
    %c2_276 = arith.constant 2 : index
    %c2_277 = arith.constant 2 : index
    %c1_278 = arith.constant 1 : index
    %c0_279 = arith.constant 0 : index
    %727 = vector.load %arg11[%c2_276, %c2_277, %c1_278, %c0_279] : memref<3x4x18x16xf32, #tpu.memory_space<vmem>>, vector<1x1x16x16xf32>
    %728 = vector.shape_cast %727 : vector<1x1x16x16xf32> to vector<16x16xf32>
    %729 = arith.mulf %530, %728 : vector<16x16xf32>
    %730 = arith.addf %726, %729 : vector<16x16xf32>
    %c0_280 = arith.constant 0 : index
    %c2_281 = arith.constant 2 : index
    %c2_282 = arith.constant 2 : index
    %c0_283 = arith.constant 0 : index
    %731 = vector.load %arg11[%c0_280, %c2_281, %c2_282, %c0_283] : memref<3x4x18x16xf32, #tpu.memory_space<vmem>>, vector<1x1x16x16xf32>
    %732 = vector.shape_cast %731 : vector<1x1x16x16xf32> to vector<16x16xf32>
    %733 = arith.mulf %531, %732 : vector<16x16xf32>
    %734 = arith.addf %730, %733 : vector<16x16xf32>
    %c1_284 = arith.constant 1 : index
    %c2_285 = arith.constant 2 : index
    %c2_286 = arith.constant 2 : index
    %c0_287 = arith.constant 0 : index
    %735 = vector.load %arg11[%c1_284, %c2_285, %c2_286, %c0_287] : memref<3x4x18x16xf32, #tpu.memory_space<vmem>>, vector<1x1x16x16xf32>
    %736 = vector.shape_cast %735 : vector<1x1x16x16xf32> to vector<16x16xf32>
    %737 = arith.mulf %532, %736 : vector<16x16xf32>
    %738 = arith.addf %734, %737 : vector<16x16xf32>
    %c2_288 = arith.constant 2 : index
    %c2_289 = arith.constant 2 : index
    %c2_290 = arith.constant 2 : index
    %c0_291 = arith.constant 0 : index
    %739 = vector.load %arg11[%c2_288, %c2_289, %c2_290, %c0_291] : memref<3x4x18x16xf32, #tpu.memory_space<vmem>>, vector<1x1x16x16xf32>
    %740 = vector.shape_cast %739 : vector<1x1x16x16xf32> to vector<16x16xf32>
    %741 = arith.mulf %533, %740 : vector<16x16xf32>
    %742 = arith.addf %738, %741 : vector<16x16xf32>
    %743 = vector.extract_strided_slice %1 {offsets = [2, 0, 0], sizes = [1, 16, 16], strides = [1, 1, 1]} : vector<4x16x16xf32> to vector<1x16x16xf32>
    %744 = vector.shape_cast %743 : vector<1x16x16xf32> to vector<16x16xf32>
    %745 = vector.broadcast %593 : f32 to vector<16x16xf32>
    %746 = arith.mulf %744, %745 : vector<16x16xf32>
    %747 = arith.addf %742, %746 : vector<16x16xf32>
    %748 = vector.broadcast %596 : f32 to vector<16x16xf32>
    %749 = arith.addf %747, %748 : vector<16x16xf32>
    %c2_292 = arith.constant 2 : index
    %c0_293 = arith.constant 0 : index
    %c0_294 = arith.constant 0 : index
    %750 = vector.load %arg12[%c2_292, %c0_293, %c0_294] : memref<4x16x16xf32, #tpu.memory_space<vmem>>, vector<1x16x16xf32>
    %751 = vector.shape_cast %750 : vector<1x16x16xf32> to vector<16x16xf32>
    %752 = vector.shape_cast %749 : vector<16x16xf32> to vector<1x16x16xf32>
    tpu.vector_store %arg12[%c2_292, %c0_293, %c0_294], %752 {strides = array<i32>} : memref<4x16x16xf32, #tpu.memory_space<vmem>>, vector<1x16x16xf32>,
    %753 = vector.extract_strided_slice %1 {offsets = [3, 0, 0], sizes = [1, 16, 16], strides = [1, 1, 1]} : vector<4x16x16xf32> to vector<1x16x16xf32>
    %754 = vector.shape_cast %753 : vector<1x16x16xf32> to vector<16x16xf32>
    %755 = arith.mulf %529, %754 : vector<16x16xf32>
    %c0_295 = arith.constant 0 : index
    %c3_296 = arith.constant 3 : index
    %c0_297 = arith.constant 0 : index
    %c0_298 = arith.constant 0 : index
    %756 = vector.load %arg11[%c0_295, %c3_296, %c0_297, %c0_298] : memref<3x4x18x16xf32, #tpu.memory_space<vmem>>, vector<1x1x16x16xf32>
    %757 = vector.shape_cast %756 : vector<1x1x16x16xf32> to vector<16x16xf32>
    %758 = arith.mulf %525, %757 : vector<16x16xf32>
    %759 = arith.addf %755, %758 : vector<16x16xf32>
    %c1_299 = arith.constant 1 : index
    %c3_300 = arith.constant 3 : index
    %c0_301 = arith.constant 0 : index
    %c0_302 = arith.constant 0 : index
    %760 = vector.load %arg11[%c1_299, %c3_300, %c0_301, %c0_302] : memref<3x4x18x16xf32, #tpu.memory_space<vmem>>, vector<1x1x16x16xf32>
    %761 = vector.shape_cast %760 : vector<1x1x16x16xf32> to vector<16x16xf32>
    %762 = arith.mulf %526, %761 : vector<16x16xf32>
    %763 = arith.addf %759, %762 : vector<16x16xf32>
    %c2_303 = arith.constant 2 : index
    %c3_304 = arith.constant 3 : index
    %c0_305 = arith.constant 0 : index
    %c0_306 = arith.constant 0 : index
    %764 = vector.load %arg11[%c2_303, %c3_304, %c0_305, %c0_306] : memref<3x4x18x16xf32, #tpu.memory_space<vmem>>, vector<1x1x16x16xf32>
    %765 = vector.shape_cast %764 : vector<1x1x16x16xf32> to vector<16x16xf32>
    %766 = arith.mulf %527, %765 : vector<16x16xf32>
    %767 = arith.addf %763, %766 : vector<16x16xf32>
    %c0_307 = arith.constant 0 : index
    %c3_308 = arith.constant 3 : index
    %c1_309 = arith.constant 1 : index
    %c0_310 = arith.constant 0 : index
    %768 = vector.load %arg11[%c0_307, %c3_308, %c1_309, %c0_310] : memref<3x4x18x16xf32, #tpu.memory_space<vmem>>, vector<1x1x16x16xf32>
    %769 = vector.shape_cast %768 : vector<1x1x16x16xf32> to vector<16x16xf32>
    %770 = arith.mulf %528, %769 : vector<16x16xf32>
    %771 = arith.addf %767, %770 : vector<16x16xf32>
    %c2_311 = arith.constant 2 : index
    %c3_312 = arith.constant 3 : index
    %c1_313 = arith.constant 1 : index
    %c0_314 = arith.constant 0 : index
    %772 = vector.load %arg11[%c2_311, %c3_312, %c1_313, %c0_314] : memref<3x4x18x16xf32, #tpu.memory_space<vmem>>, vector<1x1x16x16xf32>
    %773 = vector.shape_cast %772 : vector<1x1x16x16xf32> to vector<16x16xf32>
    %774 = arith.mulf %530, %773 : vector<16x16xf32>
    %775 = arith.addf %771, %774 : vector<16x16xf32>
    %c0_315 = arith.constant 0 : index
    %c3_316 = arith.constant 3 : index
    %c2_317 = arith.constant 2 : index
    %c0_318 = arith.constant 0 : index
    %776 = vector.load %arg11[%c0_315, %c3_316, %c2_317, %c0_318] : memref<3x4x18x16xf32, #tpu.memory_space<vmem>>, vector<1x1x16x16xf32>
    %777 = vector.shape_cast %776 : vector<1x1x16x16xf32> to vector<16x16xf32>
    %778 = arith.mulf %531, %777 : vector<16x16xf32>
    %779 = arith.addf %775, %778 : vector<16x16xf32>
    %c1_319 = arith.constant 1 : index
    %c3_320 = arith.constant 3 : index
    %c2_321 = arith.constant 2 : index
    %c0_322 = arith.constant 0 : index
    %780 = vector.load %arg11[%c1_319, %c3_320, %c2_321, %c0_322] : memref<3x4x18x16xf32, #tpu.memory_space<vmem>>, vector<1x1x16x16xf32>
    %781 = vector.shape_cast %780 : vector<1x1x16x16xf32> to vector<16x16xf32>
    %782 = arith.mulf %532, %781 : vector<16x16xf32>
    %783 = arith.addf %779, %782 : vector<16x16xf32>
    %c2_323 = arith.constant 2 : index
    %c3_324 = arith.constant 3 : index
    %c2_325 = arith.constant 2 : index
    %c0_326 = arith.constant 0 : index
    %784 = vector.load %arg11[%c2_323, %c3_324, %c2_325, %c0_326] : memref<3x4x18x16xf32, #tpu.memory_space<vmem>>, vector<1x1x16x16xf32>
    %785 = vector.shape_cast %784 : vector<1x1x16x16xf32> to vector<16x16xf32>
    %786 = arith.mulf %533, %785 : vector<16x16xf32>
    %787 = arith.addf %783, %786 : vector<16x16xf32>
    %788 = vector.extract_strided_slice %1 {offsets = [3, 0, 0], sizes = [1, 16, 16], strides = [1, 1, 1]} : vector<4x16x16xf32> to vector<1x16x16xf32>
    %789 = vector.shape_cast %788 : vector<1x16x16xf32> to vector<16x16xf32>
    %790 = vector.broadcast %614 : f32 to vector<16x16xf32>
    %791 = arith.mulf %789, %790 : vector<16x16xf32>
    %792 = arith.addf %787, %791 : vector<16x16xf32>
    %793 = vector.broadcast %617 : f32 to vector<16x16xf32>
    %794 = arith.addf %792, %793 : vector<16x16xf32>
    %c3_327 = arith.constant 3 : index
    %c0_328 = arith.constant 0 : index
    %c0_329 = arith.constant 0 : index
    %795 = vector.load %arg12[%c3_327, %c0_328, %c0_329] : memref<4x16x16xf32, #tpu.memory_space<vmem>>, vector<1x16x16xf32>
    %796 = vector.shape_cast %795 : vector<1x16x16xf32> to vector<16x16xf32>
    %797 = vector.shape_cast %794 : vector<16x16xf32> to vector<1x16x16xf32>
    tpu.vector_store %arg12[%c3_327, %c0_328, %c0_329], %797 {strides = array<i32>} : memref<4x16x16xf32, #tpu.memory_space<vmem>>, vector<1x16x16xf32>,
    %c0_330 = arith.constant 0 : index
    %c0_331 = arith.constant 0 : index
    %798 = vector.load %arg6[%c0_330, %c0_331] : memref<8x4xf32, #tpu.memory_space<vmem>>, vector<8x4xf32>
    %c0_332 = arith.constant 0 : index
    %c0_333 = arith.constant 0 : index
    %799 = vector.load %arg8[%c0_332, %c0_333] : memref<4x8xf32, #tpu.memory_space<vmem>>, vector<4x8xf32>
    %c0_334 = arith.constant 0 : index
    %c0_335 = arith.constant 0 : index
    %800 = vector.load %arg7[%c0_334, %c0_335] : memref<8x1xf32, #tpu.memory_space<vmem>>, vector<8x1xf32>
    %c0_336 = arith.constant 0 : index
    %c0_337 = arith.constant 0 : index
    %801 = vector.load %arg9[%c0_336, %c0_337] : memref<4x1xf32, #tpu.memory_space<vmem>>, vector<4x1xf32>
    %c0_338 = arith.constant 0 : index
    %c0_339 = arith.constant 0 : index
    %c0_340 = arith.constant 0 : index
    %802 = vector.load %arg12[%c0_338, %c0_339, %c0_340] : memref<4x16x16xf32, #tpu.memory_space<vmem>>, vector<4x1x16xf32>
    %803 = vector.shape_cast %802 : vector<4x1x16xf32> to vector<4x16xf32>
    %cst_341 = arith.constant dense<0.000000e+00> : vector<8x16xf32>
    %804 = tpu.matmul %798, %803, %cst_341 {dimension_numbers = #tpu.dot_dimension_numbers<[1], [0], [0], [1], [0, 0, 1, 1], [], []>} : vector<8x4xf32>, vector<4x16xf32>, vector<8x16xf32> -> vector<8x16xf32>
    %805 = vector.broadcast %800 : vector<8x1xf32> to vector<8x16xf32>
    %806 = arith.addf %804, %805 : vector<8x16xf32>
    %cst_342 = arith.constant 0.000000e+00 : f32
    %807 = vector.broadcast %cst_342 : f32 to vector<8x16xf32>
    %808 = arith.maximumf %806, %807 : vector<8x16xf32>
    %cst_343 = arith.constant dense<0.000000e+00> : vector<4x16xf32>
    %809 = tpu.matmul %799, %808, %cst_343 {dimension_numbers = #tpu.dot_dimension_numbers<[1], [0], [0], [1], [0, 0, 1, 1], [], []>} : vector<4x8xf32>, vector<8x16xf32>, vector<4x16xf32> -> vector<4x16xf32>
    %810 = vector.broadcast %801 : vector<4x1xf32> to vector<4x16xf32>
    %811 = arith.addf %809, %810 : vector<4x16xf32>
    %812 = arith.addf %803, %811 : vector<4x16xf32>
    %c0_344 = arith.constant 0 : index
    %c0_345 = arith.constant 0 : index
    %c0_346 = arith.constant 0 : index
    %813 = vector.load %arg10[%c0_344, %c0_345, %c0_346] : memref<1x4x256xf32, #tpu.memory_space<vmem>>, vector<1x4x16xf32>
    %814 = vector.shape_cast %813 : vector<1x4x16xf32> to vector<4x16xf32>
    %815 = vector.shape_cast %812 : vector<4x16xf32> to vector<1x4x16xf32>
    tpu.vector_store %arg10[%c0_344, %c0_345, %c0_346], %815 {strides = array<i32>} : memref<1x4x256xf32, #tpu.memory_space<vmem>>, vector<1x4x16xf32>,
    %c0_347 = arith.constant 0 : index
    %c1_348 = arith.constant 1 : index
    %c0_349 = arith.constant 0 : index
    %816 = vector.load %arg12[%c0_347, %c1_348, %c0_349] : memref<4x16x16xf32, #tpu.memory_space<vmem>>, vector<4x1x16xf32>
    %817 = vector.shape_cast %816 : vector<4x1x16xf32> to vector<4x16xf32>
    %cst_350 = arith.constant dense<0.000000e+00> : vector<8x16xf32>
    %818 = tpu.matmul %798, %817, %cst_350 {dimension_numbers = #tpu.dot_dimension_numbers<[1], [0], [0], [1], [0, 0, 1, 1], [], []>} : vector<8x4xf32>, vector<4x16xf32>, vector<8x16xf32> -> vector<8x16xf32>
    %819 = vector.broadcast %800 : vector<8x1xf32> to vector<8x16xf32>
    %820 = arith.addf %818, %819 : vector<8x16xf32>
    %cst_351 = arith.constant 0.000000e+00 : f32
    %821 = vector.broadcast %cst_351 : f32 to vector<8x16xf32>
    %822 = arith.maximumf %820, %821 : vector<8x16xf32>
    %cst_352 = arith.constant dense<0.000000e+00> : vector<4x16xf32>
    %823 = tpu.matmul %799, %822, %cst_352 {dimension_numbers = #tpu.dot_dimension_numbers<[1], [0], [0], [1], [0, 0, 1, 1], [], []>} : vector<4x8xf32>, vector<8x16xf32>, vector<4x16xf32> -> vector<4x16xf32>
    %824 = vector.broadcast %801 : vector<4x1xf32> to vector<4x16xf32>
    %825 = arith.addf %823, %824 : vector<4x16xf32>
    %826 = arith.addf %817, %825 : vector<4x16xf32>
    %c0_353 = arith.constant 0 : index
    %c0_354 = arith.constant 0 : index
    %c16 = arith.constant 16 : index
    %827 = vector.load %arg10[%c0_353, %c0_354, %c16] : memref<1x4x256xf32, #tpu.memory_space<vmem>>, vector<1x4x16xf32>
    %828 = vector.shape_cast %827 : vector<1x4x16xf32> to vector<4x16xf32>
    %829 = vector.shape_cast %826 : vector<4x16xf32> to vector<1x4x16xf32>
    tpu.vector_store %arg10[%c0_353, %c0_354, %c16], %829 {strides = array<i32>} : memref<1x4x256xf32, #tpu.memory_space<vmem>>, vector<1x4x16xf32>,
    %c0_355 = arith.constant 0 : index
    %c2_356 = arith.constant 2 : index
    %c0_357 = arith.constant 0 : index
    %830 = vector.load %arg12[%c0_355, %c2_356, %c0_357] : memref<4x16x16xf32, #tpu.memory_space<vmem>>, vector<4x1x16xf32>
    %831 = vector.shape_cast %830 : vector<4x1x16xf32> to vector<4x16xf32>
    %cst_358 = arith.constant dense<0.000000e+00> : vector<8x16xf32>
    %832 = tpu.matmul %798, %831, %cst_358 {dimension_numbers = #tpu.dot_dimension_numbers<[1], [0], [0], [1], [0, 0, 1, 1], [], []>} : vector<8x4xf32>, vector<4x16xf32>, vector<8x16xf32> -> vector<8x16xf32>
    %833 = vector.broadcast %800 : vector<8x1xf32> to vector<8x16xf32>
    %834 = arith.addf %832, %833 : vector<8x16xf32>
    %cst_359 = arith.constant 0.000000e+00 : f32
    %835 = vector.broadcast %cst_359 : f32 to vector<8x16xf32>
    %836 = arith.maximumf %834, %835 : vector<8x16xf32>
    %cst_360 = arith.constant dense<0.000000e+00> : vector<4x16xf32>
    %837 = tpu.matmul %799, %836, %cst_360 {dimension_numbers = #tpu.dot_dimension_numbers<[1], [0], [0], [1], [0, 0, 1, 1], [], []>} : vector<4x8xf32>, vector<8x16xf32>, vector<4x16xf32> -> vector<4x16xf32>
    %838 = vector.broadcast %801 : vector<4x1xf32> to vector<4x16xf32>
    %839 = arith.addf %837, %838 : vector<4x16xf32>
    %840 = arith.addf %831, %839 : vector<4x16xf32>
    %c0_361 = arith.constant 0 : index
    %c0_362 = arith.constant 0 : index
    %c32 = arith.constant 32 : index
    %841 = vector.load %arg10[%c0_361, %c0_362, %c32] : memref<1x4x256xf32, #tpu.memory_space<vmem>>, vector<1x4x16xf32>
    %842 = vector.shape_cast %841 : vector<1x4x16xf32> to vector<4x16xf32>
    %843 = vector.shape_cast %840 : vector<4x16xf32> to vector<1x4x16xf32>
    tpu.vector_store %arg10[%c0_361, %c0_362, %c32], %843 {strides = array<i32>} : memref<1x4x256xf32, #tpu.memory_space<vmem>>, vector<1x4x16xf32>,
    %c0_363 = arith.constant 0 : index
    %c3_364 = arith.constant 3 : index
    %c0_365 = arith.constant 0 : index
    %844 = vector.load %arg12[%c0_363, %c3_364, %c0_365] : memref<4x16x16xf32, #tpu.memory_space<vmem>>, vector<4x1x16xf32>
    %845 = vector.shape_cast %844 : vector<4x1x16xf32> to vector<4x16xf32>
    %cst_366 = arith.constant dense<0.000000e+00> : vector<8x16xf32>
    %846 = tpu.matmul %798, %845, %cst_366 {dimension_numbers = #tpu.dot_dimension_numbers<[1], [0], [0], [1], [0, 0, 1, 1], [], []>} : vector<8x4xf32>, vector<4x16xf32>, vector<8x16xf32> -> vector<8x16xf32>
    %847 = vector.broadcast %800 : vector<8x1xf32> to vector<8x16xf32>
    %848 = arith.addf %846, %847 : vector<8x16xf32>
    %cst_367 = arith.constant 0.000000e+00 : f32
    %849 = vector.broadcast %cst_367 : f32 to vector<8x16xf32>
    %850 = arith.maximumf %848, %849 : vector<8x16xf32>
    %cst_368 = arith.constant dense<0.000000e+00> : vector<4x16xf32>
    %851 = tpu.matmul %799, %850, %cst_368 {dimension_numbers = #tpu.dot_dimension_numbers<[1], [0], [0], [1], [0, 0, 1, 1], [], []>} : vector<4x8xf32>, vector<8x16xf32>, vector<4x16xf32> -> vector<4x16xf32>
    %852 = vector.broadcast %801 : vector<4x1xf32> to vector<4x16xf32>
    %853 = arith.addf %851, %852 : vector<4x16xf32>
    %854 = arith.addf %845, %853 : vector<4x16xf32>
    %c0_369 = arith.constant 0 : index
    %c0_370 = arith.constant 0 : index
    %c48 = arith.constant 48 : index
    %855 = vector.load %arg10[%c0_369, %c0_370, %c48] : memref<1x4x256xf32, #tpu.memory_space<vmem>>, vector<1x4x16xf32>
    %856 = vector.shape_cast %855 : vector<1x4x16xf32> to vector<4x16xf32>
    %857 = vector.shape_cast %854 : vector<4x16xf32> to vector<1x4x16xf32>
    tpu.vector_store %arg10[%c0_369, %c0_370, %c48], %857 {strides = array<i32>} : memref<1x4x256xf32, #tpu.memory_space<vmem>>, vector<1x4x16xf32>,
    %c0_371 = arith.constant 0 : index
    %c4 = arith.constant 4 : index
    %c0_372 = arith.constant 0 : index
    %858 = vector.load %arg12[%c0_371, %c4, %c0_372] : memref<4x16x16xf32, #tpu.memory_space<vmem>>, vector<4x1x16xf32>
    %859 = vector.shape_cast %858 : vector<4x1x16xf32> to vector<4x16xf32>
    %cst_373 = arith.constant dense<0.000000e+00> : vector<8x16xf32>
    %860 = tpu.matmul %798, %859, %cst_373 {dimension_numbers = #tpu.dot_dimension_numbers<[1], [0], [0], [1], [0, 0, 1, 1], [], []>} : vector<8x4xf32>, vector<4x16xf32>, vector<8x16xf32> -> vector<8x16xf32>
    %861 = vector.broadcast %800 : vector<8x1xf32> to vector<8x16xf32>
    %862 = arith.addf %860, %861 : vector<8x16xf32>
    %cst_374 = arith.constant 0.000000e+00 : f32
    %863 = vector.broadcast %cst_374 : f32 to vector<8x16xf32>
    %864 = arith.maximumf %862, %863 : vector<8x16xf32>
    %cst_375 = arith.constant dense<0.000000e+00> : vector<4x16xf32>
    %865 = tpu.matmul %799, %864, %cst_375 {dimension_numbers = #tpu.dot_dimension_numbers<[1], [0], [0], [1], [0, 0, 1, 1], [], []>} : vector<4x8xf32>, vector<8x16xf32>, vector<4x16xf32> -> vector<4x16xf32>
    %866 = vector.broadcast %801 : vector<4x1xf32> to vector<4x16xf32>
    %867 = arith.addf %865, %866 : vector<4x16xf32>
    %868 = arith.addf %859, %867 : vector<4x16xf32>
    %c0_376 = arith.constant 0 : index
    %c0_377 = arith.constant 0 : index
    %c64 = arith.constant 64 : index
    %869 = vector.load %arg10[%c0_376, %c0_377, %c64] : memref<1x4x256xf32, #tpu.memory_space<vmem>>, vector<1x4x16xf32>
    %870 = vector.shape_cast %869 : vector<1x4x16xf32> to vector<4x16xf32>
    %871 = vector.shape_cast %868 : vector<4x16xf32> to vector<1x4x16xf32>
    tpu.vector_store %arg10[%c0_376, %c0_377, %c64], %871 {strides = array<i32>} : memref<1x4x256xf32, #tpu.memory_space<vmem>>, vector<1x4x16xf32>,
    %c0_378 = arith.constant 0 : index
    %c5 = arith.constant 5 : index
    %c0_379 = arith.constant 0 : index
    %872 = vector.load %arg12[%c0_378, %c5, %c0_379] : memref<4x16x16xf32, #tpu.memory_space<vmem>>, vector<4x1x16xf32>
    %873 = vector.shape_cast %872 : vector<4x1x16xf32> to vector<4x16xf32>
    %cst_380 = arith.constant dense<0.000000e+00> : vector<8x16xf32>
    %874 = tpu.matmul %798, %873, %cst_380 {dimension_numbers = #tpu.dot_dimension_numbers<[1], [0], [0], [1], [0, 0, 1, 1], [], []>} : vector<8x4xf32>, vector<4x16xf32>, vector<8x16xf32> -> vector<8x16xf32>
    %875 = vector.broadcast %800 : vector<8x1xf32> to vector<8x16xf32>
    %876 = arith.addf %874, %875 : vector<8x16xf32>
    %cst_381 = arith.constant 0.000000e+00 : f32
    %877 = vector.broadcast %cst_381 : f32 to vector<8x16xf32>
    %878 = arith.maximumf %876, %877 : vector<8x16xf32>
    %cst_382 = arith.constant dense<0.000000e+00> : vector<4x16xf32>
    %879 = tpu.matmul %799, %878, %cst_382 {dimension_numbers = #tpu.dot_dimension_numbers<[1], [0], [0], [1], [0, 0, 1, 1], [], []>} : vector<4x8xf32>, vector<8x16xf32>, vector<4x16xf32> -> vector<4x16xf32>
    %880 = vector.broadcast %801 : vector<4x1xf32> to vector<4x16xf32>
    %881 = arith.addf %879, %880 : vector<4x16xf32>
    %882 = arith.addf %873, %881 : vector<4x16xf32>
    %c0_383 = arith.constant 0 : index
    %c0_384 = arith.constant 0 : index
    %c80 = arith.constant 80 : index
    %883 = vector.load %arg10[%c0_383, %c0_384, %c80] : memref<1x4x256xf32, #tpu.memory_space<vmem>>, vector<1x4x16xf32>
    %884 = vector.shape_cast %883 : vector<1x4x16xf32> to vector<4x16xf32>
    %885 = vector.shape_cast %882 : vector<4x16xf32> to vector<1x4x16xf32>
    tpu.vector_store %arg10[%c0_383, %c0_384, %c80], %885 {strides = array<i32>} : memref<1x4x256xf32, #tpu.memory_space<vmem>>, vector<1x4x16xf32>,
    %c0_385 = arith.constant 0 : index
    %c6 = arith.constant 6 : index
    %c0_386 = arith.constant 0 : index
    %886 = vector.load %arg12[%c0_385, %c6, %c0_386] : memref<4x16x16xf32, #tpu.memory_space<vmem>>, vector<4x1x16xf32>
    %887 = vector.shape_cast %886 : vector<4x1x16xf32> to vector<4x16xf32>
    %cst_387 = arith.constant dense<0.000000e+00> : vector<8x16xf32>
    %888 = tpu.matmul %798, %887, %cst_387 {dimension_numbers = #tpu.dot_dimension_numbers<[1], [0], [0], [1], [0, 0, 1, 1], [], []>} : vector<8x4xf32>, vector<4x16xf32>, vector<8x16xf32> -> vector<8x16xf32>
    %889 = vector.broadcast %800 : vector<8x1xf32> to vector<8x16xf32>
    %890 = arith.addf %888, %889 : vector<8x16xf32>
    %cst_388 = arith.constant 0.000000e+00 : f32
    %891 = vector.broadcast %cst_388 : f32 to vector<8x16xf32>
    %892 = arith.maximumf %890, %891 : vector<8x16xf32>
    %cst_389 = arith.constant dense<0.000000e+00> : vector<4x16xf32>
    %893 = tpu.matmul %799, %892, %cst_389 {dimension_numbers = #tpu.dot_dimension_numbers<[1], [0], [0], [1], [0, 0, 1, 1], [], []>} : vector<4x8xf32>, vector<8x16xf32>, vector<4x16xf32> -> vector<4x16xf32>
    %894 = vector.broadcast %801 : vector<4x1xf32> to vector<4x16xf32>
    %895 = arith.addf %893, %894 : vector<4x16xf32>
    %896 = arith.addf %887, %895 : vector<4x16xf32>
    %c0_390 = arith.constant 0 : index
    %c0_391 = arith.constant 0 : index
    %c96 = arith.constant 96 : index
    %897 = vector.load %arg10[%c0_390, %c0_391, %c96] : memref<1x4x256xf32, #tpu.memory_space<vmem>>, vector<1x4x16xf32>
    %898 = vector.shape_cast %897 : vector<1x4x16xf32> to vector<4x16xf32>
    %899 = vector.shape_cast %896 : vector<4x16xf32> to vector<1x4x16xf32>
    tpu.vector_store %arg10[%c0_390, %c0_391, %c96], %899 {strides = array<i32>} : memref<1x4x256xf32, #tpu.memory_space<vmem>>, vector<1x4x16xf32>,
    %c0_392 = arith.constant 0 : index
    %c7 = arith.constant 7 : index
    %c0_393 = arith.constant 0 : index
    %900 = vector.load %arg12[%c0_392, %c7, %c0_393] : memref<4x16x16xf32, #tpu.memory_space<vmem>>, vector<4x1x16xf32>
    %901 = vector.shape_cast %900 : vector<4x1x16xf32> to vector<4x16xf32>
    %cst_394 = arith.constant dense<0.000000e+00> : vector<8x16xf32>
    %902 = tpu.matmul %798, %901, %cst_394 {dimension_numbers = #tpu.dot_dimension_numbers<[1], [0], [0], [1], [0, 0, 1, 1], [], []>} : vector<8x4xf32>, vector<4x16xf32>, vector<8x16xf32> -> vector<8x16xf32>
    %903 = vector.broadcast %800 : vector<8x1xf32> to vector<8x16xf32>
    %904 = arith.addf %902, %903 : vector<8x16xf32>
    %cst_395 = arith.constant 0.000000e+00 : f32
    %905 = vector.broadcast %cst_395 : f32 to vector<8x16xf32>
    %906 = arith.maximumf %904, %905 : vector<8x16xf32>
    %cst_396 = arith.constant dense<0.000000e+00> : vector<4x16xf32>
    %907 = tpu.matmul %799, %906, %cst_396 {dimension_numbers = #tpu.dot_dimension_numbers<[1], [0], [0], [1], [0, 0, 1, 1], [], []>} : vector<4x8xf32>, vector<8x16xf32>, vector<4x16xf32> -> vector<4x16xf32>
    %908 = vector.broadcast %801 : vector<4x1xf32> to vector<4x16xf32>
    %909 = arith.addf %907, %908 : vector<4x16xf32>
    %910 = arith.addf %901, %909 : vector<4x16xf32>
    %c0_397 = arith.constant 0 : index
    %c0_398 = arith.constant 0 : index
    %c112 = arith.constant 112 : index
    %911 = vector.load %arg10[%c0_397, %c0_398, %c112] : memref<1x4x256xf32, #tpu.memory_space<vmem>>, vector<1x4x16xf32>
    %912 = vector.shape_cast %911 : vector<1x4x16xf32> to vector<4x16xf32>
    %913 = vector.shape_cast %910 : vector<4x16xf32> to vector<1x4x16xf32>
    tpu.vector_store %arg10[%c0_397, %c0_398, %c112], %913 {strides = array<i32>} : memref<1x4x256xf32, #tpu.memory_space<vmem>>, vector<1x4x16xf32>,
    %c0_399 = arith.constant 0 : index
    %c8 = arith.constant 8 : index
    %c0_400 = arith.constant 0 : index
    %914 = vector.load %arg12[%c0_399, %c8, %c0_400] : memref<4x16x16xf32, #tpu.memory_space<vmem>>, vector<4x1x16xf32>
    %915 = vector.shape_cast %914 : vector<4x1x16xf32> to vector<4x16xf32>
    %cst_401 = arith.constant dense<0.000000e+00> : vector<8x16xf32>
    %916 = tpu.matmul %798, %915, %cst_401 {dimension_numbers = #tpu.dot_dimension_numbers<[1], [0], [0], [1], [0, 0, 1, 1], [], []>} : vector<8x4xf32>, vector<4x16xf32>, vector<8x16xf32> -> vector<8x16xf32>
    %917 = vector.broadcast %800 : vector<8x1xf32> to vector<8x16xf32>
    %918 = arith.addf %916, %917 : vector<8x16xf32>
    %cst_402 = arith.constant 0.000000e+00 : f32
    %919 = vector.broadcast %cst_402 : f32 to vector<8x16xf32>
    %920 = arith.maximumf %918, %919 : vector<8x16xf32>
    %cst_403 = arith.constant dense<0.000000e+00> : vector<4x16xf32>
    %921 = tpu.matmul %799, %920, %cst_403 {dimension_numbers = #tpu.dot_dimension_numbers<[1], [0], [0], [1], [0, 0, 1, 1], [], []>} : vector<4x8xf32>, vector<8x16xf32>, vector<4x16xf32> -> vector<4x16xf32>
    %922 = vector.broadcast %801 : vector<4x1xf32> to vector<4x16xf32>
    %923 = arith.addf %921, %922 : vector<4x16xf32>
    %924 = arith.addf %915, %923 : vector<4x16xf32>
    %c0_404 = arith.constant 0 : index
    %c0_405 = arith.constant 0 : index
    %c128 = arith.constant 128 : index
    %925 = vector.load %arg10[%c0_404, %c0_405, %c128] : memref<1x4x256xf32, #tpu.memory_space<vmem>>, vector<1x4x16xf32>
    %926 = vector.shape_cast %925 : vector<1x4x16xf32> to vector<4x16xf32>
    %927 = vector.shape_cast %924 : vector<4x16xf32> to vector<1x4x16xf32>
    tpu.vector_store %arg10[%c0_404, %c0_405, %c128], %927 {strides = array<i32>} : memref<1x4x256xf32, #tpu.memory_space<vmem>>, vector<1x4x16xf32>,
    %c0_406 = arith.constant 0 : index
    %c9 = arith.constant 9 : index
    %c0_407 = arith.constant 0 : index
    %928 = vector.load %arg12[%c0_406, %c9, %c0_407] : memref<4x16x16xf32, #tpu.memory_space<vmem>>, vector<4x1x16xf32>
    %929 = vector.shape_cast %928 : vector<4x1x16xf32> to vector<4x16xf32>
    %cst_408 = arith.constant dense<0.000000e+00> : vector<8x16xf32>
    %930 = tpu.matmul %798, %929, %cst_408 {dimension_numbers = #tpu.dot_dimension_numbers<[1], [0], [0], [1], [0, 0, 1, 1], [], []>} : vector<8x4xf32>, vector<4x16xf32>, vector<8x16xf32> -> vector<8x16xf32>
    %931 = vector.broadcast %800 : vector<8x1xf32> to vector<8x16xf32>
    %932 = arith.addf %930, %931 : vector<8x16xf32>
    %cst_409 = arith.constant 0.000000e+00 : f32
    %933 = vector.broadcast %cst_409 : f32 to vector<8x16xf32>
    %934 = arith.maximumf %932, %933 : vector<8x16xf32>
    %cst_410 = arith.constant dense<0.000000e+00> : vector<4x16xf32>
    %935 = tpu.matmul %799, %934, %cst_410 {dimension_numbers = #tpu.dot_dimension_numbers<[1], [0], [0], [1], [0, 0, 1, 1], [], []>} : vector<4x8xf32>, vector<8x16xf32>, vector<4x16xf32> -> vector<4x16xf32>
    %936 = vector.broadcast %801 : vector<4x1xf32> to vector<4x16xf32>
    %937 = arith.addf %935, %936 : vector<4x16xf32>
    %938 = arith.addf %929, %937 : vector<4x16xf32>
    %c0_411 = arith.constant 0 : index
    %c0_412 = arith.constant 0 : index
    %c144 = arith.constant 144 : index
    %939 = vector.load %arg10[%c0_411, %c0_412, %c144] : memref<1x4x256xf32, #tpu.memory_space<vmem>>, vector<1x4x16xf32>
    %940 = vector.shape_cast %939 : vector<1x4x16xf32> to vector<4x16xf32>
    %941 = vector.shape_cast %938 : vector<4x16xf32> to vector<1x4x16xf32>
    tpu.vector_store %arg10[%c0_411, %c0_412, %c144], %941 {strides = array<i32>} : memref<1x4x256xf32, #tpu.memory_space<vmem>>, vector<1x4x16xf32>,
    %c0_413 = arith.constant 0 : index
    %c10 = arith.constant 10 : index
    %c0_414 = arith.constant 0 : index
    %942 = vector.load %arg12[%c0_413, %c10, %c0_414] : memref<4x16x16xf32, #tpu.memory_space<vmem>>, vector<4x1x16xf32>
    %943 = vector.shape_cast %942 : vector<4x1x16xf32> to vector<4x16xf32>
    %cst_415 = arith.constant dense<0.000000e+00> : vector<8x16xf32>
    %944 = tpu.matmul %798, %943, %cst_415 {dimension_numbers = #tpu.dot_dimension_numbers<[1], [0], [0], [1], [0, 0, 1, 1], [], []>} : vector<8x4xf32>, vector<4x16xf32>, vector<8x16xf32> -> vector<8x16xf32>
    %945 = vector.broadcast %800 : vector<8x1xf32> to vector<8x16xf32>
    %946 = arith.addf %944, %945 : vector<8x16xf32>
    %cst_416 = arith.constant 0.000000e+00 : f32
    %947 = vector.broadcast %cst_416 : f32 to vector<8x16xf32>
    %948 = arith.maximumf %946, %947 : vector<8x16xf32>
    %cst_417 = arith.constant dense<0.000000e+00> : vector<4x16xf32>
    %949 = tpu.matmul %799, %948, %cst_417 {dimension_numbers = #tpu.dot_dimension_numbers<[1], [0], [0], [1], [0, 0, 1, 1], [], []>} : vector<4x8xf32>, vector<8x16xf32>, vector<4x16xf32> -> vector<4x16xf32>
    %950 = vector.broadcast %801 : vector<4x1xf32> to vector<4x16xf32>
    %951 = arith.addf %949, %950 : vector<4x16xf32>
    %952 = arith.addf %943, %951 : vector<4x16xf32>
    %c0_418 = arith.constant 0 : index
    %c0_419 = arith.constant 0 : index
    %c160 = arith.constant 160 : index
    %953 = vector.load %arg10[%c0_418, %c0_419, %c160] : memref<1x4x256xf32, #tpu.memory_space<vmem>>, vector<1x4x16xf32>
    %954 = vector.shape_cast %953 : vector<1x4x16xf32> to vector<4x16xf32>
    %955 = vector.shape_cast %952 : vector<4x16xf32> to vector<1x4x16xf32>
    tpu.vector_store %arg10[%c0_418, %c0_419, %c160], %955 {strides = array<i32>} : memref<1x4x256xf32, #tpu.memory_space<vmem>>, vector<1x4x16xf32>,
    %c0_420 = arith.constant 0 : index
    %c11 = arith.constant 11 : index
    %c0_421 = arith.constant 0 : index
    %956 = vector.load %arg12[%c0_420, %c11, %c0_421] : memref<4x16x16xf32, #tpu.memory_space<vmem>>, vector<4x1x16xf32>
    %957 = vector.shape_cast %956 : vector<4x1x16xf32> to vector<4x16xf32>
    %cst_422 = arith.constant dense<0.000000e+00> : vector<8x16xf32>
    %958 = tpu.matmul %798, %957, %cst_422 {dimension_numbers = #tpu.dot_dimension_numbers<[1], [0], [0], [1], [0, 0, 1, 1], [], []>} : vector<8x4xf32>, vector<4x16xf32>, vector<8x16xf32> -> vector<8x16xf32>
    %959 = vector.broadcast %800 : vector<8x1xf32> to vector<8x16xf32>
    %960 = arith.addf %958, %959 : vector<8x16xf32>
    %cst_423 = arith.constant 0.000000e+00 : f32
    %961 = vector.broadcast %cst_423 : f32 to vector<8x16xf32>
    %962 = arith.maximumf %960, %961 : vector<8x16xf32>
    %cst_424 = arith.constant dense<0.000000e+00> : vector<4x16xf32>
    %963 = tpu.matmul %799, %962, %cst_424 {dimension_numbers = #tpu.dot_dimension_numbers<[1], [0], [0], [1], [0, 0, 1, 1], [], []>} : vector<4x8xf32>, vector<8x16xf32>, vector<4x16xf32> -> vector<4x16xf32>
    %964 = vector.broadcast %801 : vector<4x1xf32> to vector<4x16xf32>
    %965 = arith.addf %963, %964 : vector<4x16xf32>
    %966 = arith.addf %957, %965 : vector<4x16xf32>
    %c0_425 = arith.constant 0 : index
    %c0_426 = arith.constant 0 : index
    %c176 = arith.constant 176 : index
    %967 = vector.load %arg10[%c0_425, %c0_426, %c176] : memref<1x4x256xf32, #tpu.memory_space<vmem>>, vector<1x4x16xf32>
    %968 = vector.shape_cast %967 : vector<1x4x16xf32> to vector<4x16xf32>
    %969 = vector.shape_cast %966 : vector<4x16xf32> to vector<1x4x16xf32>
    tpu.vector_store %arg10[%c0_425, %c0_426, %c176], %969 {strides = array<i32>} : memref<1x4x256xf32, #tpu.memory_space<vmem>>, vector<1x4x16xf32>,
    %c0_427 = arith.constant 0 : index
    %c12 = arith.constant 12 : index
    %c0_428 = arith.constant 0 : index
    %970 = vector.load %arg12[%c0_427, %c12, %c0_428] : memref<4x16x16xf32, #tpu.memory_space<vmem>>, vector<4x1x16xf32>
    %971 = vector.shape_cast %970 : vector<4x1x16xf32> to vector<4x16xf32>
    %cst_429 = arith.constant dense<0.000000e+00> : vector<8x16xf32>
    %972 = tpu.matmul %798, %971, %cst_429 {dimension_numbers = #tpu.dot_dimension_numbers<[1], [0], [0], [1], [0, 0, 1, 1], [], []>} : vector<8x4xf32>, vector<4x16xf32>, vector<8x16xf32> -> vector<8x16xf32>
    %973 = vector.broadcast %800 : vector<8x1xf32> to vector<8x16xf32>
    %974 = arith.addf %972, %973 : vector<8x16xf32>
    %cst_430 = arith.constant 0.000000e+00 : f32
    %975 = vector.broadcast %cst_430 : f32 to vector<8x16xf32>
    %976 = arith.maximumf %974, %975 : vector<8x16xf32>
    %cst_431 = arith.constant dense<0.000000e+00> : vector<4x16xf32>
    %977 = tpu.matmul %799, %976, %cst_431 {dimension_numbers = #tpu.dot_dimension_numbers<[1], [0], [0], [1], [0, 0, 1, 1], [], []>} : vector<4x8xf32>, vector<8x16xf32>, vector<4x16xf32> -> vector<4x16xf32>
    %978 = vector.broadcast %801 : vector<4x1xf32> to vector<4x16xf32>
    %979 = arith.addf %977, %978 : vector<4x16xf32>
    %980 = arith.addf %971, %979 : vector<4x16xf32>
    %c0_432 = arith.constant 0 : index
    %c0_433 = arith.constant 0 : index
    %c192 = arith.constant 192 : index
    %981 = vector.load %arg10[%c0_432, %c0_433, %c192] : memref<1x4x256xf32, #tpu.memory_space<vmem>>, vector<1x4x16xf32>
    %982 = vector.shape_cast %981 : vector<1x4x16xf32> to vector<4x16xf32>
    %983 = vector.shape_cast %980 : vector<4x16xf32> to vector<1x4x16xf32>
    tpu.vector_store %arg10[%c0_432, %c0_433, %c192], %983 {strides = array<i32>} : memref<1x4x256xf32, #tpu.memory_space<vmem>>, vector<1x4x16xf32>,
    %c0_434 = arith.constant 0 : index
    %c13 = arith.constant 13 : index
    %c0_435 = arith.constant 0 : index
    %984 = vector.load %arg12[%c0_434, %c13, %c0_435] : memref<4x16x16xf32, #tpu.memory_space<vmem>>, vector<4x1x16xf32>
    %985 = vector.shape_cast %984 : vector<4x1x16xf32> to vector<4x16xf32>
    %cst_436 = arith.constant dense<0.000000e+00> : vector<8x16xf32>
    %986 = tpu.matmul %798, %985, %cst_436 {dimension_numbers = #tpu.dot_dimension_numbers<[1], [0], [0], [1], [0, 0, 1, 1], [], []>} : vector<8x4xf32>, vector<4x16xf32>, vector<8x16xf32> -> vector<8x16xf32>
    %987 = vector.broadcast %800 : vector<8x1xf32> to vector<8x16xf32>
    %988 = arith.addf %986, %987 : vector<8x16xf32>
    %cst_437 = arith.constant 0.000000e+00 : f32
    %989 = vector.broadcast %cst_437 : f32 to vector<8x16xf32>
    %990 = arith.maximumf %988, %989 : vector<8x16xf32>
    %cst_438 = arith.constant dense<0.000000e+00> : vector<4x16xf32>
    %991 = tpu.matmul %799, %990, %cst_438 {dimension_numbers = #tpu.dot_dimension_numbers<[1], [0], [0], [1], [0, 0, 1, 1], [], []>} : vector<4x8xf32>, vector<8x16xf32>, vector<4x16xf32> -> vector<4x16xf32>
    %992 = vector.broadcast %801 : vector<4x1xf32> to vector<4x16xf32>
    %993 = arith.addf %991, %992 : vector<4x16xf32>
    %994 = arith.addf %985, %993 : vector<4x16xf32>
    %c0_439 = arith.constant 0 : index
    %c0_440 = arith.constant 0 : index
    %c208 = arith.constant 208 : index
    %995 = vector.load %arg10[%c0_439, %c0_440, %c208] : memref<1x4x256xf32, #tpu.memory_space<vmem>>, vector<1x4x16xf32>
    %996 = vector.shape_cast %995 : vector<1x4x16xf32> to vector<4x16xf32>
    %997 = vector.shape_cast %994 : vector<4x16xf32> to vector<1x4x16xf32>
    tpu.vector_store %arg10[%c0_439, %c0_440, %c208], %997 {strides = array<i32>} : memref<1x4x256xf32, #tpu.memory_space<vmem>>, vector<1x4x16xf32>,
    %c0_441 = arith.constant 0 : index
    %c14 = arith.constant 14 : index
    %c0_442 = arith.constant 0 : index
    %998 = vector.load %arg12[%c0_441, %c14, %c0_442] : memref<4x16x16xf32, #tpu.memory_space<vmem>>, vector<4x1x16xf32>
    %999 = vector.shape_cast %998 : vector<4x1x16xf32> to vector<4x16xf32>
    %cst_443 = arith.constant dense<0.000000e+00> : vector<8x16xf32>
    %1000 = tpu.matmul %798, %999, %cst_443 {dimension_numbers = #tpu.dot_dimension_numbers<[1], [0], [0], [1], [0, 0, 1, 1], [], []>} : vector<8x4xf32>, vector<4x16xf32>, vector<8x16xf32> -> vector<8x16xf32>
    %1001 = vector.broadcast %800 : vector<8x1xf32> to vector<8x16xf32>
    %1002 = arith.addf %1000, %1001 : vector<8x16xf32>
    %cst_444 = arith.constant 0.000000e+00 : f32
    %1003 = vector.broadcast %cst_444 : f32 to vector<8x16xf32>
    %1004 = arith.maximumf %1002, %1003 : vector<8x16xf32>
    %cst_445 = arith.constant dense<0.000000e+00> : vector<4x16xf32>
    %1005 = tpu.matmul %799, %1004, %cst_445 {dimension_numbers = #tpu.dot_dimension_numbers<[1], [0], [0], [1], [0, 0, 1, 1], [], []>} : vector<4x8xf32>, vector<8x16xf32>, vector<4x16xf32> -> vector<4x16xf32>
    %1006 = vector.broadcast %801 : vector<4x1xf32> to vector<4x16xf32>
    %1007 = arith.addf %1005, %1006 : vector<4x16xf32>
    %1008 = arith.addf %999, %1007 : vector<4x16xf32>
    %c0_446 = arith.constant 0 : index
    %c0_447 = arith.constant 0 : index
    %c224 = arith.constant 224 : index
    %1009 = vector.load %arg10[%c0_446, %c0_447, %c224] : memref<1x4x256xf32, #tpu.memory_space<vmem>>, vector<1x4x16xf32>
    %1010 = vector.shape_cast %1009 : vector<1x4x16xf32> to vector<4x16xf32>
    %1011 = vector.shape_cast %1008 : vector<4x16xf32> to vector<1x4x16xf32>
    tpu.vector_store %arg10[%c0_446, %c0_447, %c224], %1011 {strides = array<i32>} : memref<1x4x256xf32, #tpu.memory_space<vmem>>, vector<1x4x16xf32>,
    %c0_448 = arith.constant 0 : index
    %c15_449 = arith.constant 15 : index
    %c0_450 = arith.constant 0 : index
    %1012 = vector.load %arg12[%c0_448, %c15_449, %c0_450] : memref<4x16x16xf32, #tpu.memory_space<vmem>>, vector<4x1x16xf32>
    %1013 = vector.shape_cast %1012 : vector<4x1x16xf32> to vector<4x16xf32>
    %cst_451 = arith.constant dense<0.000000e+00> : vector<8x16xf32>
    %1014 = tpu.matmul %798, %1013, %cst_451 {dimension_numbers = #tpu.dot_dimension_numbers<[1], [0], [0], [1], [0, 0, 1, 1], [], []>} : vector<8x4xf32>, vector<4x16xf32>, vector<8x16xf32> -> vector<8x16xf32>
    %1015 = vector.broadcast %800 : vector<8x1xf32> to vector<8x16xf32>
    %1016 = arith.addf %1014, %1015 : vector<8x16xf32>
    %cst_452 = arith.constant 0.000000e+00 : f32
    %1017 = vector.broadcast %cst_452 : f32 to vector<8x16xf32>
    %1018 = arith.maximumf %1016, %1017 : vector<8x16xf32>
    %cst_453 = arith.constant dense<0.000000e+00> : vector<4x16xf32>
    %1019 = tpu.matmul %799, %1018, %cst_453 {dimension_numbers = #tpu.dot_dimension_numbers<[1], [0], [0], [1], [0, 0, 1, 1], [], []>} : vector<4x8xf32>, vector<8x16xf32>, vector<4x16xf32> -> vector<4x16xf32>
    %1020 = vector.broadcast %801 : vector<4x1xf32> to vector<4x16xf32>
    %1021 = arith.addf %1019, %1020 : vector<4x16xf32>
    %1022 = arith.addf %1013, %1021 : vector<4x16xf32>
    %c0_454 = arith.constant 0 : index
    %c0_455 = arith.constant 0 : index
    %c240 = arith.constant 240 : index
    %1023 = vector.load %arg10[%c0_454, %c0_455, %c240] : memref<1x4x256xf32, #tpu.memory_space<vmem>>, vector<1x4x16xf32>
    %1024 = vector.shape_cast %1023 : vector<1x4x16xf32> to vector<4x16xf32>
    %1025 = vector.shape_cast %1022 : vector<4x16xf32> to vector<1x4x16xf32>
    tpu.vector_store %arg10[%c0_454, %c0_455, %c240], %1025 {strides = array<i32>} : memref<1x4x256xf32, #tpu.memory_space<vmem>>, vector<1x4x16xf32>,
    return
  }
  func.func @transform_0(%arg0: i32) -> (i32, i32, i32, i32) {
    %c0_i32 = arith.constant 0 : i32
    %c0_i32_0 = arith.constant 0 : i32
    %c0_i32_1 = arith.constant 0 : i32
    %c0_i32_2 = arith.constant 0 : i32
    return %arg0, %c0_i32, %c0_i32_0, %c0_i32_1 : i32, i32, i32, i32
  }
  func.func @transform_1(%arg0: i32) -> (i32, i32) {
    %c0_i32 = arith.constant 0 : i32
    %c0_i32_0 = arith.constant 0 : i32
    %c0_i32_1 = arith.constant 0 : i32
    return %c0_i32, %c0_i32_0 : i32, i32
  }
  func.func @transform_2(%arg0: i32) -> (i32, i32) {
    %c0_i32 = arith.constant 0 : i32
    %c0_i32_0 = arith.constant 0 : i32
    %c0_i32_1 = arith.constant 0 : i32
    return %c0_i32, %c0_i32_0 : i32, i32
  }
  func.func @transform_3(%arg0: i32) -> i32 {
    %c0_i32 = arith.constant 0 : i32
    %c0_i32_0 = arith.constant 0 : i32
    return %c0_i32 : i32
  }
  func.func @transform_4(%arg0: i32) -> i32 {
    %c0_i32 = arith.constant 0 : i32
    %c0_i32_0 = arith.constant 0 : i32
    return %c0_i32 : i32
  }
  func.func @transform_5(%arg0: i32) -> (i32, i32) {
    %c0_i32 = arith.constant 0 : i32
    %c0_i32_0 = arith.constant 0 : i32
    %c0_i32_1 = arith.constant 0 : i32
    return %c0_i32, %c0_i32_0 : i32, i32
  }
  func.func @transform_6(%arg0: i32) -> (i32, i32) {
    %c0_i32 = arith.constant 0 : i32
    %c0_i32_0 = arith.constant 0 : i32
    %c0_i32_1 = arith.constant 0 : i32
    return %c0_i32, %c0_i32_0 : i32, i32
  }
  func.func @transform_7(%arg0: i32) -> (i32, i32) {
    %c0_i32 = arith.constant 0 : i32
    %c0_i32_0 = arith.constant 0 : i32
    %c0_i32_1 = arith.constant 0 : i32
    return %c0_i32, %c0_i32_0 : i32, i32
  }
  func.func @transform_8(%arg0: i32) -> (i32, i32) {
    %c0_i32 = arith.constant 0 : i32
    %c0_i32_0 = arith.constant 0 : i32
    %c0_i32_1 = arith.constant 0 : i32
    return %c0_i32, %c0_i32_0 : i32, i32
  }
  func.func @transform_9(%arg0: i32) -> (i32, i32, i32) {
    %c0_i32 = arith.constant 0 : i32
    %c0_i32_0 = arith.constant 0 : i32
    %c0_i32_1 = arith.constant 0 : i32
    return %arg0, %c0_i32, %c0_i32_0 : i32, i32, i32
  }
}

</mosaic_0001>

<bundles_post_ra>
// kernel: fast_ipg_forward.1
= control target key start
LH: loop header
LB: loop body
LE: loop exit
PB: predicated region body
PF: predicated region fallthrough
CT: control target
= control target key end

     0   :  { %s7300_s0 = inlined_call_operand.hbm [shape: f32[2,4,16,16], index: 0, kind: input, shape index: {}]   ;;  %s7301_s1 = inlined_call_operand.vmem [shape: f32[16,16], index: 1, kind: input, shape index: {}]   ;;  %s7302_s2 = inlined_call_operand.vmem [shape: f32[16,16], index: 2, kind: input, shape index: {}]   ;;  %s7303_s3 = inlined_call_operand.hbm [shape: f32[4], index: 3, kind: input, shape index: {}]   ;;  %s7304_s4 = inlined_call_operand.hbm [shape: f32[4], index: 4, kind: input, shape index: {}]   ;;  %s7305_s5 = inlined_call_operand.vmem [shape: f32[8,4], index: 5, kind: input, shape index: {}]   ;;  %s7306_s6 = inlined_call_operand.vmem [shape: f32[8,1], index: 6, kind: input, shape index: {}]   ;;  %s7307_s7 = inlined_call_operand.hbm [shape: f32[4,8], index: 7, kind: input, shape index: {}]   ;;  %s7308_s8 = inlined_call_operand.vmem [shape: f32[4,1], index: 8, kind: input, shape index: {}]   ;;  %s7309_s9 = inlined_call_operand.vmem [shape: f32[2,4,256], index: 9, kind: output, shape index: {}]  }
   0x1   :  { %7338 = sst [smem:[#allocation35_spill]] %s7303_s3 }
   0x2   :  { %14 = vsyncpa [#allocation5], 0 }
   0x3   :  { %16 = vsyncpa [#allocation5 + $0x1], 0 }
   0x4   :  { %17 = vsyncpa [#allocation6], 0 }
   0x5   :  { %18 = vsyncpa [#allocation9], 0 }
   0x6   :  { %19 = vsyncpa [#allocation11], 0  ;;  %s4747_s30 = smov 0   ;;  %s4749_s10 = smov 0  }
   0x7   :  { %s4751_s11 = smov 0   ;;  %s4753_s12 = smov 0  }
   0x8 LB: > { %s4766_s13 = sadd.s32 4294967295, %s4677_s12   ;;  %p45_p0 = scmp.ne.s32.totalorder %s4669_s10, %s4665_s30  ;;  %s4677_s12 = sphi %s4753_s12, %s7416_s12   ;;  %s4673_s11 = sphi %s4751_s11, %s7415_s11   ;;  %s4669_s10 = sphi %s4749_s10, %s7414_s10   ;;  %s4665_s30 = sphi %s4747_s30, %s7413_s30  }
   0x9   : > { %p46_p1 = scmp.eq.s32.totalorder %s4766_s13, 0  ;;  %p4119_p2 = scmp.ge.s32.totalorder %s4677_s12, 1 }
   0xa   : > { %p250_p3 = scmp.lt.s32.totalorder %s4677_s12, 3  ;;  %s7340_s3 = sld [smem:[#allocation35_spill]] }
   0xb   : > { %p4774_p4 = por %p46_p1, %p45_p0  ;;  %s278_s21 = sshll.u32 %s7304_s4, 4  ;;  %s279_s21 = int_to_ptr.hbm [resolvable:$true] %s278_s21 }
   0xc   : > { %p4781_p5 = pnand %p4119_p2, %p250_p3  ;;  %s294_s24 = sshll.u32 %s7307_s7, 4  ;;  %s295_s24 = int_to_ptr.hbm [resolvable:$true] %s294_s24 }
   0xd   : > { %s4679_s25 = smov [#allocation10]   ;;  %s4680_s27 = smov [#allocation7]  }
   0xe   : > { %p4362_p6 = pneg %p4781_p5  ;;  %s296_s26 = sshll.u32 %s4679_s25, 4  ;;  %s297_s26 = int_to_ptr.vmem [resolvable:$true] %s296_s26 }
   0xf   : > { %s4681_s28 = smov [#allocation8]   ;;  %s4796_s29 = sadd.s32 1, %s4677_s12  }
  0x10   : > { %s268_s17 = sshll.u32 %s7340_s3, 4  ;;  %p4363_p7 = pnand %p4362_p6, %p46_p1  ;;  %s269_s17 = int_to_ptr.hbm [resolvable:$true] %s268_s17 }
  0x11   : > { %s29_s30 = ssub.s32 %s4677_s12, %s4796_s29  ;;  %s32_s15 = sadd.s32 1, %s4673_s11 }
  0x12   : > { %4365 = dma.hbm_to_smem (!%p4363_p7), %s269_s17, 16, %s4680_s27, [#allocation6]  }
  0x13   : > { %4368 = dma.hbm_to_smem (!%p4363_p7), %s279_s21, 16, %s4681_s28, [#allocation9]  }
  0x14   : > { %4371 = dma.hbm_to_vmem [thread:$0]  (!%p4363_p7), %s295_s24, 64, %s297_s26, [#allocation11]  }
  0x15   : > { %p30_p8 = scmp.eq.s32.totalorder %s29_s30, 0  ;;  %p39_p9 = scmp.ne.s32.totalorder %s4673_s11, %s4669_s10 }
  0x16   : > { %p40_p10 = scmp.eq.s32.totalorder %s4677_s12, 0  ;;  %p4379_p11 = scmp.lt.s32.totalorder %s4677_s12, 2 }
  0x17   : > { %s4806_s16 = scalar_select %p30_p8, %s4673_s11, %s32_s15  }
  0x18   : > { %p41_p12 = por %p40_p10, %p39_p9  ;;  %s310_s19 = sand.u32 1, %s4673_s11  }
  0x19   : > { %s4124_s20 = sshll.u32 %s310_s19, 6  ;;  %s4300_s17 = sshll.u32 %s4677_s12, 6 }
  0x1a   : > { %s319_s21 = scalar_lea.hbm %s7300_s0, %s4300_s17  ;;  %s314_s24 = scalar_lea.vmem [#allocation4], %s4124_s20 }
  0x1b   : > { %s322_s25 = sshll.u32 %s314_s24, 4  ;;  %s320_s26 = sshll.u32 %s319_s21, 4  ;;  %s323_s25 = int_to_ptr.vmem [resolvable:$true] %s322_s25  ;;  %s321_s26 = int_to_ptr.hbm [resolvable:$true] %s320_s26 }
  0x1c   : > { %p4813_p13 = pnand %p4379_p11, %p41_p12  ;;  %s311_s28 = scalar_lea.sflag [#allocation5], %s310_s19 }
  0x1d   : > { %s4601_s30 = sshra.s32 %s321_s26, 4  ;;  %s4608_s17 = scalar_lea.hbm %s7300_s0, 128  ;;  %s4602_s30 = int_to_ptr.hbm [resolvable:$true] %s4601_s30 }
  0x1e   : > { %s4603_s15 = scalar_lea.hbm %s4602_s30, 64  ;;  %p4605_p2 = pneg %p4813_p13 }
  0x1f   : > { %p4604_p0 = scmp.ne.s32.totalorder %s4602_s30, %s4603_s15  ;;  %p4609_p7 = scmp.lt.s32.totalorder %s4602_s30, %s7300_s0 }
  0x20   : > { %p4610_p8 = scmp.lt.s32.totalorder %s4608_s17, %s4603_s15 }
  0x21   : > { %p4606_p3 = pnand %p4605_p2, %p4604_p0 }
  0x22   : > { %p4611_p9 = por %p4610_p8, %p4609_p7 }
  0x23   : > { %p4607_p6 = pneg %p4606_p3 }
  0x25   : > { %p4612_p10 = pnand %p4611_p9, %p4607_p6 }
  0x27   : > { %4615 = shalt.err (!%p4612_p10)
}
  0x28   : > { %s4682_s19 = smov 128   ;;  %s4683_s21 = smov 8  }
  0x29   : > { %4375 = dma.hbm_to_vmem [thread:$0]  (!%p4813_p13), %s321_s26, 1024, %s323_s25, %s311_s28, %s4682_s19, %s4682_s19, %s4683_s21  }
  0x2a   : > { %334 = sbr.rel (%p4781_p5) target bundleno = 2641 (0xa51), region = 56 }
  0x2f   : > { %s336_s24 = sand.u32 1, %s4669_s10  }
  0x30   : > { %s4128_s12 = sshll.u32 %s336_s24, 6  ;;  %s337_s20 = scalar_lea.sflag [#allocation5], %s336_s24 }
  0x31   : > { %s4830_s3 = scalar_lea.vmem [#allocation4], %s4128_s12 }
  0x32   : > { %4648 = dma.done.wait (%p4774_p4), %s337_s20, 1024  }
  0x33   : > { %4650 = vsyncadd (%p4774_p4), %s337_s20, 4294966272 }
  0x34   : > { %4652 = dma.done.wait (%p46_p1), [#allocation6], 16  }
  0x35   : > { %4654 = vsyncadd (%p46_p1), [#allocation6], 4294967280 }
  0x36   : > { %4656 = dma.done.wait (%p46_p1), [#allocation9], 16  }
  0x37   : > { %4658 = vsyncadd (%p46_p1), [#allocation9], 4294967280 }
  0x38   : > { %4660 = dma.done.wait (%p46_p1), [#allocation11], 64  }
  0x39   : > { %4662 = vsyncadd (%p46_p1), [#allocation11], 4294967232 }
  0x3a   : > { %361 = sfence }
  0x3b   : > { %v579_v0 = vld [vmem:[%s7302_s2 + $0x8] sm:$0xff]  ;;  %v578_v1 = vld [vmem:[%s7302_s2] sm:$0xff]  ;;  %vm406_vm0 = vcmask 130048   ;;  %v4865_v4 = vld [vmem:[%s4830_s3 + $0x10] sm:$0xff]  ;;  %v4684_v59 = vmov 256.0   ;;  %vm415_vm12 = vcmask 123905  }
  0x3c   : > { %v4855_v2 = vld [vmem:[%s4830_s3] sm:$0xff]  ;;  %618 = vmatpush.msra.mxu0 %v579_v0  ;;  %v4860_v3 = vld [vmem:[%s4830_s3 + $0x8] sm:$0xff]  ;;  %7345 = vst [vmem:[#allocation18_spill] sm:$0xff] %v4865_v4  ;;  %v4870_v5 = vld [vmem:[%s4830_s3 + $0x18] sm:$0xff]  ;;  %4435 = vrcp.f32 %v4684_v59  ;;  %p392_p1 = scmp.lt.s32.totalorder %s4766_s13, 1 }
  0x3d   : > { %7343 = vst [vmem:[#allocation16_spill] sm:$0xff] %v4855_v2  ;;  %v4877_v6 = vld [vmem:[%s4830_s3 + $0x20] sm:$0xff]  ;;  %v4882_v7 = vld [vmem:[%s4830_s3 + $0x28] sm:$0xff]  ;;  %v4889_v8 = vld [vmem:[%s4830_s3 + $0x30] sm:$0xff]  ;;  %v2098_v21 = vsel %vm406_vm0, %v4855_v2, 0.0  ;;  %v2099_v22 = vsel %vm406_vm0, %v4860_v3, 0.0 }
  0x3e   : > { %407 = vst.msk [vmem:[#allocation2 + $0x61] sm:$0xff] %vm406_vm0, %v4855_v2  ;;  %619 = vmatpush.msra.mxu0 %v578_v1  ;;  %v4896_v9 = vld [vmem:[%s4830_s3 + $0x38] sm:$0xff]  ;;  %v645_v12 = vld [vmem:[%s7301_s1] sm:$0xff]  ;;  %v646_v14 = vld [vmem:[%s7301_s1 + $0x8] sm:$0xff]  ;;  %v2100_v23 = vadd.f32 %v2099_v22, %v2098_v21  ;;  %s7418_s13 = smov (!%p392_p1, %s4766_s13), 1 }
  0x3f   : > { %7344 = vst [vmem:[#allocation17_spill] sm:$0xff] %v4860_v3  ;;  %4134 = vmatmul.msk.f32.vlgmr.msra.gmra.mxu0 %vm406_vm0, %v4855_v2 }
  0x40   : > { %408 = vst.msk [vmem:[#allocation2 + $0x69] sm:$0xff] %vm406_vm0, %v4860_v3  ;;  %2101 = vadd.xlane.f32.xlu1 %v2100_v23 }
  0x41   : > { %409 = vst.msk [vmem:[#allocation2 + $0x79] sm:$0xff] %vm406_vm0, %v4865_v4 }
  0x42   : > { %7346 = vst [vmem:[#allocation19_spill] sm:$0xff] %v4870_v5  ;;  %v4436_v63 = vpop.eup %4435 }
  0x43   : > { %410 = vst.msk [vmem:[#allocation2 + $0x81] sm:$0xff] %vm406_vm0, %v4870_v5  ;;  %vm2115_vm1 = vweird.f32 %v4436_v63 }
  0x44   : > { %7347 = vst [vmem:[#allocation20_spill] sm:$0xff] %v4877_v6 }
  0x45   : > { %411 = vst.msk [vmem:[#allocation2 + $0x91] sm:$0xff] %vm406_vm0, %v4877_v6 }
  0x46   : > { %7348 = vst [vmem:[#allocation21_spill] sm:$0xff] %v4882_v7 }
  0x47   : > { %412 = vst.msk [vmem:[#allocation2 + $0x99] sm:$0xff] %vm406_vm0, %v4882_v7  ;;  %4135 = vmatmul.msk.f32.gmra.mxu0 %vm406_vm0, %v4860_v3 }
  0x48   : > { %7349 = vst [vmem:[#allocation22_spill] sm:$0xff] %v4889_v8 }
  0x49   : > { %413 = vst.msk [vmem:[#allocation2 + $0xa9] sm:$0xff] %vm406_vm0, %v4889_v8 }
  0x4a   : > { %414 = vst.msk [vmem:[#allocation2 + $0xb1] sm:$0xff] %vm406_vm0, %v4896_v9 }
  0x4b   : > { %416 = vst.msk [vmem:[#allocation2 + $0x5f] sm:$0x2] %vm415_vm12, %v4855_v2 }
  0x4c   : > { %417 = vst.msk [vmem:[#allocation2 + $0x77] sm:$0x2] %vm415_vm12, %v4865_v4 }
  0x4d   : > { %418 = vst.msk [vmem:[#allocation2 + $0x8f] sm:$0x2] %vm415_vm12, %v4877_v6 }
  0x4e   : > { %419 = vst.msk [vmem:[#allocation2 + $0xa7] sm:$0x2] %vm415_vm12, %v4889_v8 }
  0x4f   : > { %4136 = vmatmul.msk.f32.gmra.mxu0 %vm406_vm0, %v4865_v4 }
  0x57   : > { %4137 = vmatmul.msk.f32.gmra.mxu0 %vm406_vm0, %v4870_v5 }
  0x5f   : > { %4138 = vmatmul.msk.f32.gmra.mxu0 %vm406_vm0, %v4877_v6 }
  0x67   : > { %4139 = vmatmul.msk.f32.gmra.mxu0 %vm406_vm0, %v4882_v7 }
  0x6f   : > { %4140 = vmatmul.msk.f32.gmra.mxu0 %vm406_vm0, %v4889_v8 }
  0x77   : > { %4141 = vmatmul.msk.f32.gmra.mxu0 %vm406_vm0, %v4896_v9 }
  0xb3   : > { %v2102_v60 = vpop.xlane.xlu1 %2101 }
  0xb4   : > { %v2103_v62 = vrot.slane %v2102_v60, 4 }
  0xbc   : > { %v621_v10 = vpop.f32.mrf.mxu0 }
  0xc4   : > { %v624_v11 = vpop.f32.mrf.mxu0 }
  0xc5   : > { %667 = vmatpush.msra.mxu1 %v624_v11  ;;  %v2111_v11 = vmul.f32 256.0, %v4436_v63 }
  0xc7   : > { %668 = vmatpush.msra.mxu1 %v621_v10  ;;  %v2104_v10 = vadd.f32 %v2103_v62, %v2102_v60 }
  0xc8   : > { %4142 = vmatmul.msk.f32.vlgmr.msra.gmra.mxu1 %vm406_vm0, %v645_v12 }
  0xcc   : > { %v627_v13 = vpop.f32.mrf.mxu0 }
  0xd0   : > { %4143 = vmatmul.msk.f32.gmra.mxu1 %vm406_vm0, %v646_v14 }
  0xd4   : > { %v630_v15 = vpop.f32.mrf.mxu0 }
  0xd5   : > { %696 = vmatpush.msra.mxu2 %v630_v15 }
  0xd7   : > { %697 = vmatpush.msra.mxu2 %v627_v13 }
  0xd8   : > { %4144 = vmatmul.msk.f32.vlgmr.msra.gmra.mxu2 %vm406_vm0, %v645_v12 }
  0xdc   : > { %v633_v16 = vpop.f32.mrf.mxu0 }
  0xe0   : > { %4145 = vmatmul.msk.f32.gmra.mxu2 %vm406_vm0, %v646_v14 }
  0xe4   : > { %v636_v17 = vpop.f32.mrf.mxu0 }
  0xe5   : > { %725 = vmatpush.msra.mxu3 %v636_v17 }
  0xe7   : > { %726 = vmatpush.msra.mxu3 %v633_v16  ;;  %v2112_v16 = vsub.f32 1.0, %v2111_v11 }
  0xe8   : > { %4146 = vmatmul.msk.f32.vlgmr.msra.gmra.mxu3 %vm406_vm0, %v645_v12 }
  0xe9   : > { %v2113_v22 = vmul.f32 %v4436_v63, %v2112_v16 }
  0xec   : > { %v639_v18 = vpop.f32.mrf.mxu0 }
  0xf0   : > { %4147 = vmatmul.msk.f32.gmra.mxu3 %vm406_vm0, %v646_v14 }
  0xf4   : > { %v642_v19 = vpop.f32.mrf.mxu0 }
  0xf5   : > { %754 = vmatpush.msrb.mxu1 %v642_v19 }
  0xf7   : > { %755 = vmatpush.msrb.mxu1 %v639_v18 }
  0xf8   : > { %4148 = vmatmul.msk.f32.vlgmr.msrb.gmra.mxu1 %vm406_vm0, %v645_v12 }
 0x100   : > { %4149 = vmatmul.msk.f32.gmra.mxu1 %vm406_vm0, %v646_v14  ;;  %v2105_v14 = vrot.slane %v2104_v10, 2 }
 0x102   : > { %v2106_v21 = vadd.f32 %v2105_v14, %v2104_v10 }
 0x145   : > { %v670_v20 = vpop.f32.mrf.mxu1 }
 0x146   : > { %v676_v28 = vsub.f32 %v4855_v2, %v670_v20 }
 0x148   : > { %v678_v35 = vand.u32 2147483647, %v676_v28 }
 0x14d   : > { %v673_v26 = vpop.f32.mrf.mxu1 }
 0x14e   : > { %v677_v33 = vsub.f32 %v4860_v3, %v673_v26  ;;  %v2114_v26 = vadd.f32 %v4436_v63, %v2113_v22 }
 0x150   : > { %v679_v40 = vand.u32 2147483647, %v677_v33 }
 0x15b   : > { %v699_v24 = vpop.f32.mrf.mxu2 }
 0x15c   : > { %v705_v29 = vsub.f32 %v4865_v4, %v699_v24 }
 0x15e   : > { %v707_v36 = vand.u32 2147483647, %v705_v29 }
 0x160   : > { %v709_v42 = vadd.f32 %v707_v36, %v678_v35 }
 0x163   : > { %v702_v27 = vpop.f32.mrf.mxu2 }
 0x164   : > { %v706_v34 = vsub.f32 %v4870_v5, %v702_v27 }
 0x166   : > { %v708_v41 = vand.u32 2147483647, %v706_v34 }
 0x168   : > { %v710_v47 = vadd.f32 %v708_v41, %v679_v40 }
 0x16b   : > { %v728_v25 = vpop.f32.mrf.mxu3 }
 0x16c   : > { %v734_v32 = vsub.f32 %v4877_v6, %v728_v25  ;;  %v2107_v25 = vrot.slane %v2106_v21, 1 }
 0x16e   : > { %v736_v39 = vand.u32 2147483647, %v734_v32  ;;  %v2108_v29 = vadd.f32 %v2107_v25, %v2106_v21  ;;  %v2229_v25 = vsel %vm406_vm0, %v4882_v7, 0.0 }
 0x170   : > { %v738_v46 = vadd.f32 %v736_v39, %v709_v42 }
 0x173   : > { %v731_v30 = vpop.f32.mrf.mxu3 }
 0x174   : > { %v735_v37 = vsub.f32 %v4882_v7, %v731_v30  ;;  %v2116_v30 = vsel %vm2115_vm1, %v4436_v63, %v2114_v26  ;;  %vm485_vm1 = vcmask 130056  }
 0x175   : > { %v757_v31 = vpop.f32.mrf.mxu1 }
 0x176   : > { %v763_v38 = vsub.f32 %v4889_v8, %v757_v31  ;;  %v737_v43 = vand.u32 2147483647, %v735_v37 }
 0x178   : > { %v765_v44 = vand.u32 2147483647, %v763_v38  ;;  %v739_v49 = vadd.f32 %v737_v43, %v710_v47 }
 0x17a   : > { %v4936_v50 = vadd.f32 %v765_v44, %v738_v46 }
 0x17c   : > { %v769_v53 = vsel %vm406_vm0, %v4936_v50, inf  ;;  %v781_v57 = vsel %vm406_vm0, %v4936_v50, -inf }
 0x17d   : > { %v760_v45 = vpop.f32.mrf.mxu1 }
 0x17e   : > { %v764_v48 = vsub.f32 %v4896_v9, %v760_v45 }
 0x180   : > { %v766_v51 = vand.u32 2147483647, %v764_v48  ;;  %v2163_v48 = vsel %vm406_vm0, %v4865_v4, 0.0 }
 0x182   : > { %v4938_v52 = vadd.f32 %v766_v51, %v739_v49  ;;  %v2164_v49 = vsel %vm406_vm0, %v4870_v5, 0.0 }
 0x184   : > { %v770_v54 = vsel %vm406_vm0, %v4938_v52, inf  ;;  %v782_v56 = vsel %vm406_vm0, %v4938_v52, -inf }
 0x185   : > { %v771_v55 = vmin.f32 %v769_v53, %v770_v54  ;;  %v783_v58 = vmax.f32 %v781_v57, %v782_v56  ;;  %v2165_v53 = vadd.f32 %v2164_v49, %v2163_v48 }
 0x187   : > { %772 = vmin.xlane.f32.xlu0 %v771_v55  ;;  %2166 = vadd.xlane.f32.xlu2 %v2165_v53 }
 0x18f   : > { %784 = vmax.xlane.f32.xlu0 %v783_v58 }
 0x1fa   : > { %v773_v61 = vpop.xlane.xlu0 %772 }
 0x1fb   : > { %v774_v0 = vrot.slane %v773_v61, 4 }
 0x1fd   : > { %v775_v1 = vmin.f32 %v773_v61, %v774_v0 }
 0x1ff   : > { %v776_v12 = vrot.slane %v775_v1, 2 }
 0x201   : > { %v777_v13 = vmin.f32 %v775_v1, %v776_v12 }
 0x202   : > { %v785_v15 = vpop.xlane.xlu0 %784 }
 0x203   : > { %v786_v17 = vrot.slane %v785_v15, 4  ;;  %v778_v18 = vrot.slane %v777_v13, 1 }
 0x205   : > { %v787_v19 = vmax.f32 %v785_v15, %v786_v17  ;;  %v779_v20 = vmin.f32 %v777_v13, %v778_v18 }
 0x207   : > { %v788_v23 = vrot.slane %v787_v19, 2  ;;  %4302 = vpush %v779_v20 }
 0x209   : > { %v789_v24 = vmax.f32 %v787_v19, %v788_v23 }
 0x20b   : > { %v790_v27 = vrot.slane %v789_v24, 1 }
 0x20d   : > { %v791_v28 = vmax.f32 %v789_v24, %v790_v27  ;;  %v2228_v24 = vsel %vm406_vm0, %v4877_v6, 0.0 }
 0x20e   : > { %v2230_v26 = vadd.f32 %v2229_v25, %v2228_v24 }
 0x20f   : > { %4304 = vpush %v791_v28 }
 0x210   : > { %4322 = vpush %v2108_v29  ;;  %2231 = vadd.xlane.f32.xlu0 %v2230_v26  ;;  %v425_v26 = vld [vmem:[#allocation2 + $0x60] sm:$0xff] }
 0x211   : > { %4324 = vpush %v2116_v30 }
 0x238   : > { %s4948_s15 = spop %4302 }
 0x239   : > { %v793_v46 = vstv %s4948_s15 }
 0x23a   : > { %v794_v54 = vsub.f32 %v4936_v50, %v793_v46  ;;  %v795_v55 = vsub.f32 %v4938_v52, %v793_v46  ;;  %v2167_v50 = vpop.xlane.xlu2 %2166 }
 0x23b   : > { %v2168_v52 = vrot.slane %v2167_v50, 4 }
 0x23d   : > { %v2169_v12 = vadd.f32 %v2168_v52, %v2167_v50 }
 0x23f   : > { %v2170_v13 = vrot.slane %v2169_v12, 2 }
 0x240   : > { %s4305_s17 = spop %4304 }
 0x241   : > { %s796_s22 = ssub.f32 %s4305_s17, %s4948_s15  ;;  %s4323_s23 = spop %4322  ;;  %v2171_v17 = vadd.f32 %v2170_v13, %v2169_v12 }
 0x242   : > { %s4951_s19 = spop %4324 }
 0x243   : > { %s797_s21 = sadd.f32 1e-08, %s796_s22  ;;  %s4954_s24 = smul.f32 %s4951_s19, %s4323_s23  ;;  %v2172_v20 = vrot.slane %v2171_v17, 1 }
 0x244   : > { %s4685_s22 = smov 127   ;;  %s4686_s23 = smov 1  }
 0x245   : > { %v798_v31 = vstv %s797_s21  ;;  %v2119_v32 = vstv %s4954_s24  ;;  %v2173_v23 = vadd.f32 %v2172_v20, %v2171_v17  ;;  %v426_v17 = vld [vmem:[#allocation2 + $0x68] sm:$0xff]  ;;  %499 = vrot.lane.b32.xlu0 %v425_v26, %s4685_s22 }
 0x246   : > { %4437 = vrcp.f32 %v798_v31  ;;  %v2120_v33 = vsub.f32 %v4855_v2, %v2119_v32  ;;  %v2121_v34 = vsub.f32 %v4860_v3, %v2119_v32  ;;  %v810_v43 = vand.u32 2147483648, %v798_v31 }
 0x247   : > { %v808_v45 = vand.u32 2147483647, %v798_v31  ;;  %vm804_vm3 = vweird.f32 %v798_v31 }
 0x248   : > { %v2122_v35 = vmul.f32 %v2120_v33, %v2120_v33  ;;  %v2123_v36 = vmul.f32 %v2121_v34, %v2121_v34  ;;  %v811_v51 = vor.u32 1.1754944e-38, %v810_v43 }
 0x249   : > { %vm809_vm5 = vcmp.eq.f32.partialorder %v808_v45, 8.507059e+37 }
 0x24a   : > { %v2124_v37 = vsel %vm406_vm0, %v2122_v35, 0.0  ;;  %v2125_v38 = vsel %vm406_vm0, %v2123_v36, 0.0 }
 0x24b   : > { %v2126_v40 = vadd.f32 %v2125_v38, %v2124_v37 }
 0x24c   : > { %v4438_v39 = vpop.eup %4437 }
 0x24d   : > { %v800_v41 = vmul.f32 %v4438_v39, %v798_v31  ;;  %2127 = vadd.xlane.f32.xlu1 %v2126_v40  ;;  %vm805_vm2 = vweird.f32 %v4438_v39 }
 0x24e   : > { %vm806_vm4 = vmor %vm804_vm3, %vm805_vm2  ;;  %vm535_vm2 = vcmask 7168   ;;  %vm550_vm3 = vcmask 121856  }
 0x24f   : > { %v801_v42 = vsub.f32 1.0, %v800_v41 }
 0x251   : > { %v802_v44 = vmul.f32 %v4438_v39, %v801_v42 }
 0x253   : > { %v803_v47 = vadd.f32 %v4438_v39, %v802_v44 }
 0x255   : > { %v807_v56 = vsel %vm806_vm4, %v4438_v39, %v803_v47  ;;  %vm564_vm4 = vcmask 130168  }
 0x256   : > { %v812_v57 = vsel %vm809_vm5, %v811_v51, %v807_v56  ;;  %vm420_vm5 = vcmask 129030  }
 0x257   : > { %v4968_v58 = vmul.f32 %v812_v57, %v794_v54  ;;  %v4970_v59 = vmul.f32 %v812_v57, %v795_v55  ;;  %421 = vst.msk [vmem:[#allocation2 + $0x6b] sm:$0x40] %vm420_vm5, %v4860_v3 }
 0x258   : > { %422 = vst.msk [vmem:[#allocation2 + $0x83] sm:$0x40] %vm420_vm5, %v4870_v5 }
 0x259   : > { %423 = vst.msk [vmem:[#allocation2 + $0x9b] sm:$0x40] %vm420_vm5, %v4882_v7 }
 0x25a   : > { %424 = vst.msk [vmem:[#allocation2 + $0xb3] sm:$0x40] %vm420_vm5, %v4896_v9 }
 0x283   : > { %v2232_v42 = vpop.xlane.xlu0 %2231 }
 0x284   : > { %v2233_v43 = vrot.slane %v2232_v42, 4 }
 0x286   : > { %v2234_v45 = vadd.f32 %v2233_v43, %v2232_v42 }
 0x288   : > { %v2235_v46 = vrot.slane %v2234_v45, 2 }
 0x28a   : > { %v2236_v51 = vadd.f32 %v2235_v46, %v2234_v45 }
 0x28c   : > { %v2237_v55 = vrot.slane %v2236_v51, 1 }
 0x2c0   : > { %v2128_v60 = vpop.xlane.xlu1 %2127 }
 0x2c1   : > { %v2129_v61 = vrot.slane %v2128_v60, 4 }
 0x2c3   : > { %v2130_v62 = vadd.f32 %v2129_v61, %v2128_v60  ;;  %v2238_v60 = vadd.f32 %v2237_v55, %v2236_v51  ;;  %v2293_v61 = vsel %vm406_vm0, %v4889_v8, 0.0  ;;  %v432_v55 = vld [vmem:[#allocation2 + $0x98] sm:$0xff] }
 0x2c5   : > { %v2131_v63 = vrot.slane %v2130_v62, 2 }
 0x2c7   : > { %v2132_v0 = vadd.f32 %v2131_v63, %v2130_v62  ;;  %v2294_v62 = vsel %vm406_vm0, %v4896_v9, 0.0 }
 0x2c8   : > { %v2295_v63 = vadd.f32 %v2294_v62, %v2293_v61  ;;  %v1005_v61 = vmul.f32 %v432_v55, %v432_v55 }
 0x2c9   : > { %v2133_v1 = vrot.slane %v2132_v0, 1 }
 0x2cb   : > { %v2134_v10 = vadd.f32 %v2133_v1, %v2132_v0 }
 0x2cd   : > { %4326 = vpush %v2134_v10 }
 0x2fe   : > { %s4327_s12 = spop %4326 }
 0x2ff   : > { %s2144_s20 = smul.f32 %s4327_s12, %s4951_s19 }
 0x301   : > { %s2145_s14 = sadd.f32 1e-05, %s2144_s20 }
 0x303   : > { %v2146_v11 = vstv %s2145_s14 }
 0x304   : > { %4439 = vrsqrt.f32 %v2146_v11  ;;  %vm2153_vm7 = vweird.f32 %v2146_v11 }
 0x30a   : > { %v4440_v14 = vpop.eup %4439 }
 0x30b   : > { %v2148_v15 = vmul.f32 %v4440_v14, %v2146_v11  ;;  %vm2154_vm6 = vweird.f32 %v4440_v14 }
 0x30c   : > { %vm2155_vm8 = vmor %vm2153_vm7, %vm2154_vm6 }
 0x30d   : > { %v2149_v16 = vmul.f32 %v4440_v14, %v2148_v15 }
 0x30f   : > { %v2150_v18 = vmul.f32 0.5, %v2149_v16 }
 0x311   : > { %v2151_v19 = vsub.f32 1.5, %v2150_v18  ;;  %v979_v18 = vmul.f32 %v426_v17, %v4860_v3 }
 0x313   : > { %v2152_v21 = vmul.f32 %v4440_v14, %v2151_v19  ;;  %v1001_v19 = vmul.f32 %v426_v17, %v426_v17 }
 0x315   : > { %v2156_v22 = vsel %vm2155_vm8, %v4440_v14, %v2152_v21  ;;  %v429_v14 = vld [vmem:[#allocation2 + $0x80] sm:$0xff] }
 0x316   : > { %4328 = vpush %v2156_v22  ;;  %v981_v15 = vmul.f32 %v429_v14, %v4870_v5  ;;  %v1003_v16 = vmul.f32 %v429_v14, %v429_v14  ;;  %v993_v22 = vsel %vm406_vm0, %v979_v18, 0.0  ;;  %457 = vrot.lane.b32.xlu0 %v429_v14, %s4686_s23 }
 0x317   : > { %4330 = vpush %v2173_v23  ;;  %v1015_v23 = vsel %vm406_vm0, %v1001_v19, 0.0 }
 0x318   : > { %v994_v20 = vsel %vm406_vm0, %v981_v15, 0.0  ;;  %v1016_v21 = vsel %vm406_vm0, %v1003_v16, 0.0 }
 0x319   : > { %v995_v24 = vadd.f32 %v994_v20, %v993_v22  ;;  %v1017_v25 = vadd.f32 %v1016_v21, %v1015_v23 }
 0x31e   : > { %501 = vrot.lane.b32.xlu0 %v426_v17, %s4685_s22 }
 0x347   : > { %s4977_s18 = spop %4328 }
 0x348   : > { %s4331_s25 = spop %4330 }
 0x349   : > { %s4980_s26 = smul.f32 %s4331_s25, %s4951_s19 }
 0x34b   : > { %v2184_v27 = vstv %s4980_s26 }
 0x34c   : > { %v2185_v28 = vsub.f32 %v4865_v4, %v2184_v27  ;;  %v2186_v29 = vsub.f32 %v4870_v5, %v2184_v27  ;;  %v978_v27 = vmul.f32 %v425_v26, %v4855_v2 }
 0x34e   : > { %v2187_v30 = vmul.f32 %v2185_v28, %v2185_v28  ;;  %v2188_v31 = vmul.f32 %v2186_v29, %v2186_v29  ;;  %v1000_v28 = vmul.f32 %v425_v26, %v425_v26  ;;  %v428_v29 = vld [vmem:[#allocation2 + $0x78] sm:$0xff] }
 0x350   : > { %v2189_v32 = vsel %vm406_vm0, %v2187_v30, 0.0  ;;  %v2190_v33 = vsel %vm406_vm0, %v2188_v31, 0.0  ;;  %v980_v30 = vmul.f32 %v428_v29, %v4865_v4  ;;  %v1002_v31 = vmul.f32 %v428_v29, %v428_v29 }
 0x351   : > { %v2191_v34 = vadd.f32 %v2190_v33, %v2189_v32  ;;  %v431_v32 = vld [vmem:[#allocation2 + $0x90] sm:$0xff]  ;;  %v986_v33 = vsel %vm406_vm0, %v978_v27, 0.0 }
 0x353   : > { %2192 = vadd.xlane.f32.xlu2 %v2191_v34  ;;  %v1008_v34 = vsel %vm406_vm0, %v1000_v28, 0.0  ;;  %v500_v28 = vpop.permute.xlu0 %499 }
 0x354   : > { %551 = vst.msk [vmem:[#allocation2 + $0xc0] sm:$0xff] %vm550_vm3, %v500_v28 }
 0x35b   : > { %2296 = vadd.xlane.f32.xlu2 %v2295_v63 }
 0x373   : > { %455 = vrot.lane.b32.xlu2 %v428_v29, %s4686_s23 }
 0x37b   : > { %505 = vrot.lane.b32.xlu2 %v428_v29, %s4685_s22  ;;  %v2612_v29 = vld [vmem:[%s7306_s6] sm:$0xff] }
 0x383   : > { %461 = vrot.lane.b32.xlu2 %v431_v32, %s4686_s23 }
 0x38b   : > { %507 = vrot.lane.b32.xlu2 %v429_v14, %s4685_s22 }
 0x3c6   : > { %v2193_v35 = vpop.xlane.xlu2 %2192 }
 0x3c7   : > { %v2194_v36 = vrot.slane %v2193_v35, 4 }
 0x3c9   : > { %v2195_v37 = vadd.f32 %v2194_v36, %v2193_v35  ;;  %v982_v35 = vmul.f32 %v431_v32, %v4877_v6  ;;  %v1004_v36 = vmul.f32 %v431_v32, %v431_v32 }
 0x3cb   : > { %v2196_v38 = vrot.slane %v2195_v37, 2  ;;  %v1011_v42 = vsel %vm406_vm0, %v1004_v36, 0.0 }
 0x3cd   : > { %v2197_v39 = vadd.f32 %v2196_v38, %v2195_v37  ;;  %v987_v37 = vsel %vm406_vm0, %v980_v30, 0.0  ;;  %v1009_v38 = vsel %vm406_vm0, %v1002_v31, 0.0  ;;  %v5050_v30 = vld [vmem:[#allocation2 + $0xb0] sm:$0xff]  ;;  %v4687_v31 = vmov 0  }
 0x3ce   : > { %4433 = vset.pattern.permute.xlu1 %v4687_v31  ;;  %4434 = vset.pattern.permute.xlu0 %v4687_v31  ;;  %v816_v31 = vmul.f32 %v4970_v59, %v4970_v59 }
 0x3cf   : > { %v2198_v40 = vrot.slane %v2197_v39, 1 }
 0x3d1   : > { %v2199_v41 = vadd.f32 %v2198_v40, %v2197_v39  ;;  %v988_v39 = vadd.f32 %v987_v37, %v986_v33  ;;  %v1010_v40 = vadd.f32 %v1009_v38, %v1008_v34  ;;  %v985_v33 = vmul.f32 %v5050_v30, %v4896_v9 }
 0x3d2   : > { %v1007_v34 = vmul.f32 %v5050_v30, %v5050_v30 }
 0x3d3   : > { %4332 = vpush %v2199_v41  ;;  %v989_v41 = vsel %vm406_vm0, %v982_v35, 0.0  ;;  %v998_v36 = vsel %vm406_vm0, %v985_v33, 0.0 }
 0x3d4   : > { %v990_v43 = vadd.f32 %v989_v41, %v988_v39  ;;  %v1020_v37 = vsel %vm406_vm0, %v1007_v34, 0.0 }
 0x404   : > { %s4333_s3 = spop %4332 }
 0x405   : > { %s2209_s27 = smul.f32 %s4333_s3, %s4951_s19 }
 0x407   : > { %s2210_s28 = sadd.f32 1e-05, %s2209_s27 }
 0x409   : > { %v2211_v44 = vstv %s2210_s28 }
 0x40a   : > { %4441 = vrsqrt.f32 %v2211_v44  ;;  %vm2218_vm10 = vweird.f32 %v2211_v44 }
 0x410   : > { %v4442_v47 = vpop.eup %4441 }
 0x411   : > { %v2213_v48 = vmul.f32 %v4442_v47, %v2211_v44  ;;  %vm2219_vm9 = vweird.f32 %v4442_v47  ;;  %v1012_v44 = vadd.f32 %v1011_v42, %v1010_v40  ;;  %v458_v40 = vpop.permute.xlu0 %457  ;;  %v5079_v42 = vld [vmem:[#allocation2 + $0x70] sm:$0x3] }
 0x412   : > { %vm2220_vm11 = vmor %vm2218_vm10, %vm2219_vm9  ;;  %491 = vst.msk [vmem:[#allocation2 + $0x20] sm:$0xff] %vm485_vm1, %v458_v40 }
 0x413   : > { %v2214_v49 = vmul.f32 %v4442_v47, %v2213_v48 }
 0x415   : > { %v2215_v53 = vmul.f32 0.5, %v2214_v49 }
 0x417   : > { %v2216_v54 = vsub.f32 1.5, %v2215_v53 }
 0x419   : > { %v2217_v56 = vmul.f32 %v4442_v47, %v2216_v54  ;;  %v434_v54 = vld [vmem:[#allocation2 + $0xa8] sm:$0xff] }
 0x41a   : > { %467 = vrot.lane.b32.xlu0 %v434_v54, %s4686_s23  ;;  %517 = vrot.lane.b32.xlu2 %v434_v54, %s4685_s22 }
 0x41b   : > { %v2221_v57 = vsel %vm2220_vm11, %v4442_v47, %v2217_v56  ;;  %v984_v56 = vmul.f32 %v434_v54, %v4889_v8 }
 0x41c   : > { %4334 = vpush %v2221_v57  ;;  %v1006_v57 = vmul.f32 %v434_v54, %v434_v54 }
 0x41d   : > { %4336 = vpush %v2238_v60  ;;  %v983_v60 = vmul.f32 %v432_v55, %v4882_v7  ;;  %v991_v62 = vsel %vm406_vm0, %v984_v56, 0.0 }
 0x41e   : > { %v1013_v63 = vsel %vm406_vm0, %v1006_v57, 0.0 }
 0x422   : > { %519 = vrot.lane.b32.xlu2 %v5050_v30, %s4685_s22 }
 0x44d   : > { %s4992_s30 = spop %4334 }
 0x44e   : > { %s4337_s15 = spop %4336 }
 0x44f   : > { %s4995_s17 = smul.f32 %s4337_s15, %s4951_s19 }
 0x451   : > { %v2249_v0 = vstv %s4995_s17 }
 0x452   : > { %v2250_v1 = vsub.f32 %v4877_v6, %v2249_v0  ;;  %v2251_v10 = vsub.f32 %v4882_v7, %v2249_v0  ;;  %v996_v0 = vsel %vm406_vm0, %v983_v60, 0.0 }
 0x454   : > { %v2252_v50 = vmul.f32 %v2250_v1, %v2250_v1  ;;  %v2253_v52 = vmul.f32 %v2251_v10, %v2251_v10  ;;  %v1018_v1 = vsel %vm406_vm0, %v1005_v61, 0.0  ;;  %v5041_v10 = vadd.f32 %v991_v62, %v990_v43  ;;  %v430_v62 = vld [vmem:[#allocation2 + $0x88] sm:$0x3] }
 0x455   : > { %459 = vrot.lane.b32.xlu2 %v430_v62, %s4686_s23 }
 0x456   : > { %v2254_v11 = vsel %vm406_vm0, %v2252_v50, 0.0  ;;  %v2255_v12 = vsel %vm406_vm0, %v2253_v52, 0.0  ;;  %v5043_v50 = vadd.f32 %v1013_v63, %v1012_v44  ;;  %v997_v52 = vadd.f32 %v996_v0, %v995_v24 }
 0x457   : > { %v2256_v13 = vadd.f32 %v2255_v12, %v2254_v11  ;;  %v1019_v11 = vadd.f32 %v1018_v1, %v1017_v25  ;;  %v2297_v12 = vpop.xlane.xlu2 %2296  ;;  %v848_v0 = vmul.f32 %v4855_v2, %v4855_v2  ;;  %v850_v1 = vmul.f32 %v4865_v4, %v4865_v4 }
 0x458   : > { %v5064_v38 = vadd.f32 %v998_v36, %v997_v52  ;;  %v852_v52 = vmul.f32 %v4877_v6, %v4877_v6 }
 0x459   : > { %2257 = vadd.xlane.f32.xlu1 %v2256_v13  ;;  %v2298_v13 = vrot.slane %v2297_v12, 4  ;;  %v5066_v39 = vadd.f32 %v1020_v37, %v1019_v11  ;;  %v854_v11 = vmul.f32 %v4889_v8, %v4889_v8 }
 0x45a   : > { %7350 = vst [vmem:[#allocation23_spill] sm:$0xff] %v5064_v38 }
 0x45b   : > { %v2299_v15 = vadd.f32 %v2298_v13, %v2297_v12  ;;  %v856_v12 = vsel %vm406_vm0, %v848_v0, 0.0  ;;  %v857_v13 = vsel %vm406_vm0, %v850_v1, 0.0  ;;  %v5148_v0 = vmax.f32 %v5066_v39, 1e-24 }
 0x45d   : > { %v2300_v16 = vrot.slane %v2299_v15, 2 }
 0x45f   : > { %v2301_v20 = vadd.f32 %v2300_v16, %v2299_v15  ;;  %v456_v27 = vpop.permute.xlu2 %455  ;;  %v859_v15 = vsel %vm406_vm0, %v852_v52, 0.0  ;;  %v4688_v16 = vmov 0.10000001  }
 0x460   : > { %490 = vst.msk [vmem:[#allocation2 + $0x18] sm:$0xff] %vm485_vm1, %v456_v27 }
 0x461   : > { %v2302_v23 = vrot.slane %v2301_v20, 1 }
 0x463   : > { %v2303_v25 = vadd.f32 %v2302_v23, %v2301_v20 }
 0x467   : > { %v506_v35 = vpop.permute.xlu2 %505 }
 0x468   : > { %540 = vst.msk [vmem:[#allocation2 + $0x18] sm:$0xff] %vm535_vm2, %v506_v35 }
 0x469   : > { %555 = vst.msk [vmem:[#allocation2 + $0xd8] sm:$0xff] %vm550_vm3, %v506_v35  ;;  %v5140_v35 = vmul.f32 %v816_v31, %v816_v31 }
 0x46a   : > { %569 = vst.msk [vmem:[#allocation2 + $0xd8] sm:$0xff] %vm564_vm4, %v456_v27 }
 0x46b   : > { %vm820_vm5 = vcmp.gt.f32.partialorder %v5140_v35, 0.9 }
 0x46f   : > { %v462_v41 = vpop.permute.xlu2 %461  ;;  %v894_v31 = vld [vmem:[#allocation2 + $0x18] sm:$0xff] }
 0x470   : > { %493 = vst.msk [vmem:[#allocation2 + $0x30] sm:$0xff] %vm485_vm1, %v462_v41 }
 0x472   : > { %449 = vrot.lane.b32.xlu1 %v425_v26, %s4686_s23 }
 0x477   : > { %v508_v44 = vpop.permute.xlu2 %507 }
 0x478   : > { %541 = vst.msk [vmem:[#allocation2 + $0x20] sm:$0xff] %vm535_vm2, %v508_v44 }
 0x479   : > { %556 = vst.msk [vmem:[#allocation2 + $0xe0] sm:$0xff] %vm550_vm3, %v508_v44 }
 0x47a   : > { %451 = vrot.lane.b32.xlu1 %v426_v17, %s4686_s23  ;;  %570 = vst.msk [vmem:[#allocation2 + $0xe0] sm:$0xff] %vm564_vm4, %v458_v40 }
 0x47f   : > { %v518_v57 = vpop.permute.xlu2 %517 }
 0x480   : > { %561 = vst.msk [vmem:[#allocation2 + $0x108] sm:$0xff] %vm550_vm3, %v518_v57 }
 0x482   : > { %511 = vrot.lane.b32.xlu1 %v431_v32, %s4685_s22 }
 0x48a   : > { %463 = vrot.lane.b32.xlu1 %v432_v55, %s4686_s23 }
 0x492   : > { %513 = vrot.lane.b32.xlu1 %v432_v55, %s4685_s22 }
 0x49a   : > { %2620 = vperm.xlu1 %4433, %v2612_v29  }
 0x4a2   : > { %503 = vrot.lane.b32.xlu1 %v5079_v42, %s4685_s22 }
 0x4cc   : > { %v2258_v45 = vpop.xlane.xlu1 %2257 }
 0x4cd   : > { %v2259_v46 = vrot.slane %v2258_v45, 4 }
 0x4cf   : > { %v2260_v47 = vadd.f32 %v2259_v46, %v2258_v45  ;;  %v502_v45 = vpop.permute.xlu0 %501 }
 0x4d0   : > { %552 = vst.msk [vmem:[#allocation2 + $0xc8] sm:$0xff] %vm550_vm3, %v502_v45 }
 0x4d1   : > { %v2261_v48 = vrot.slane %v2260_v47, 2 }
 0x4d3   : > { %v2262_v49 = vadd.f32 %v2261_v48, %v2260_v47 }
 0x4d5   : > { %v2263_v51 = vrot.slane %v2262_v49, 1 }
 0x4d7   : > { %v2264_v53 = vadd.f32 %v2263_v51, %v2262_v49  ;;  %v468_v61 = vpop.permute.xlu0 %467 }
 0x4d8   : > { %496 = vst.msk [vmem:[#allocation2 + $0x48] sm:$0xff] %vm485_vm1, %v468_v61 }
 0x4d9   : > { %4338 = vpush %v2264_v53  ;;  %v433_v53 = vld [vmem:[#allocation2 + $0xa0] sm:$0x3] }
 0x4da   : > { %515 = vrot.lane.b32.xlu1 %v433_v53, %s4685_s22  ;;  %546 = vst.msk [vmem:[#allocation2 + $0x48] sm:$0xff] %vm535_vm2, %v518_v57  ;;  %465 = vrot.lane.b32.xlu2 %v433_v53, %s4686_s23 }
 0x4db   : > { %575 = vst.msk [vmem:[#allocation2 + $0x108] sm:$0xff] %vm564_vm4, %v468_v61 }
 0x4e4   : > { %v450_v32 = vpop.permute.xlu1 %449 }
 0x4e5   : > { %486 = vst.msk [vmem:[#allocation2] sm:$0xff] %vm485_vm1, %v450_v32 }
 0x4e6   : > { %536 = vst.msk [vmem:[#allocation2] sm:$0xff] %vm535_vm2, %v500_v28  ;;  %v815_v28 = vmul.f32 %v4968_v58, %v4968_v58 }
 0x4e7   : > { %565 = vst.msk [vmem:[#allocation2 + $0xc0] sm:$0xff] %vm564_vm4, %v450_v32 }
 0x4ec   : > { %v452_v43 = vpop.permute.xlu1 %451 }
 0x4ed   : > { %487 = vst.msk [vmem:[#allocation2 + $0x8] sm:$0xff] %vm485_vm1, %v452_v43 }
 0x4ee   : > { %537 = vst.msk [vmem:[#allocation2 + $0x8] sm:$0xff] %vm535_vm2, %v502_v45 }
 0x4ef   : > { %566 = vst.msk [vmem:[#allocation2 + $0xc8] sm:$0xff] %vm564_vm4, %v452_v43 }
 0x4f4   : > { %v512_v54 = vpop.permute.xlu1 %511 }
 0x4f5   : > { %543 = vst.msk [vmem:[#allocation2 + $0x30] sm:$0xff] %vm535_vm2, %v512_v54 }
 0x4f6   : > { %558 = vst.msk [vmem:[#allocation2 + $0xf0] sm:$0xff] %vm550_vm3, %v512_v54 }
 0x4f7   : > { %572 = vst.msk [vmem:[#allocation2 + $0xf0] sm:$0xff] %vm564_vm4, %v462_v41  ;;  %v4153_v41 = vadd.f32 -0.9, %v5140_v35 }
 0x4fc   : > { %v464_v63 = vpop.permute.xlu1 %463 }
 0x4fd   : > { %494 = vst.msk [vmem:[#allocation2 + $0x38] sm:$0xff] %vm485_vm1, %v464_v63 }
 0x50a   : > { %s4339_s21 = spop %4338 }
 0x50b   : > { %s2274_s12 = smul.f32 %s4339_s21, %s4951_s19  ;;  %s4244_s21 = sld [smem:[#allocation7 + $0x1]] }
 0x50d   : > { %s2275_s20 = sadd.f32 1e-05, %s2274_s12 }
 0x50f   : > { %v2276_v14 = vstv %s2275_s20  ;;  %s2160_s20 = sld [smem:[#allocation8]] }
 0x510   : > { %4443 = vrsqrt.f32 %v2276_v14  ;;  %vm2283_vm14 = vweird.f32 %v2276_v14 }
 0x511   : > { %4445 = vrcp.f32 %v4688_v16  ;;  %s6496_s25 = smul.f32 %s4992_s30, %s4244_s21 }
 0x513   : > { %s2226_s30 = smul.f32 %s6496_s25, %s4980_s26 }
 0x516   : > { %v4444_v17 = vpop.eup %4443 }
 0x517   : > { %v2278_v18 = vmul.f32 %v4444_v17, %v2276_v14  ;;  %vm2284_vm13 = vweird.f32 %v4444_v17  ;;  %v858_v14 = vadd.f32 %v857_v13, %v856_v12  ;;  %v4446_v23 = vpop.eup %4445 }
 0x518   : > { %vm2285_vm15 = vmor %vm2283_vm14, %vm2284_vm13  ;;  %vm832_vm6 = vweird.f32 %v4446_v23 }
 0x519   : > { %v2279_v19 = vmul.f32 %v4444_v17, %v2278_v18  ;;  %v514_v18 = vpop.permute.xlu1 %513 }
 0x51a   : > { %544 = vst.msk [vmem:[#allocation2 + $0x38] sm:$0xff] %vm535_vm2, %v514_v18 }
 0x51b   : > { %v2280_v21 = vmul.f32 0.5, %v2279_v19  ;;  %v860_v19 = vadd.f32 %v859_v15, %v858_v14  ;;  %559 = vst.msk [vmem:[#allocation2 + $0xf8] sm:$0xff] %vm550_vm3, %v514_v18 }
 0x51c   : > { %573 = vst.msk [vmem:[#allocation2 + $0xf8] sm:$0xff] %vm564_vm4, %v464_v63 }
 0x51d   : > { %v2281_v22 = vsub.f32 1.5, %v2280_v21  ;;  %v436_v21 = vld [vmem:[#allocation2 + $0xb8] sm:$0x3] }
 0x51e   : > { %521 = vrot.lane.b32.xlu2 %v436_v21, %s4685_s22 }
 0x51f   : > { %v2282_v26 = vmul.f32 %v4444_v17, %v2281_v22 }
 0x521   : > { %v2286_v24 = vsel %vm2285_vm15, %v4444_v17, %v2282_v26  ;;  %v861_v17 = vsel %vm406_vm0, %v854_v11, 0.0  ;;  %v1022_v26 = vmax.f32 %v5043_v50, 1e-24  ;;  %v5138_v50 = vmul.f32 %v815_v28, %v815_v28  ;;  %v1368_v11 = vld [vmem:[#allocation2 + $0x92] sm:$0xff] }
 0x522   : > { %4340 = vpush %v2286_v24  ;;  %v5125_v20 = vadd.f32 %v861_v17, %v860_v19  ;;  %v828_v24 = vmul.f32 0.10000001, %v4446_v23  ;;  %v1398_v16 = vmul.f32 %v1368_v11, %v1368_v11  ;;  %v1370_v19 = vld [vmem:[#allocation2 + $0xaa] sm:$0xff] }
 0x523   : > { %4342 = vpush %v2303_v25  ;;  %v4152_v37 = vadd.f32 -0.9, %v5138_v50  ;;  %vm1030_vm9 = vweird.f32 %v1022_v26  ;;  %vm819_vm15 = vcmp.gt.f32.partialorder %v5138_v50, 0.9 }
 0x524   : > { %v870_v22 = vmax.f32 %v5125_v20, 1e-24  ;;  %v829_v25 = vsub.f32 1.0, %v828_v24  ;;  %v1400_v24 = vmul.f32 %v1370_v19, %v1370_v19 }
 0x526   : > { %4447 = vrsqrt.f32 %v870_v22  ;;  %vm878_vm7 = vweird.f32 %v870_v22 }
 0x527   : > { %4449 = vrsqrt.f32 %v1022_v26 }
 0x528   : > { %4451 = vrsqrt.f32 %v5148_v0 }
 0x52c   : > { %v4448_v27 = vpop.eup %4447 }
 0x52d   : > { %v4450_v29 = vpop.eup %4449  ;;  %v873_v32 = vmul.f32 %v4448_v27, %v870_v22  ;;  %vm879_vm8 = vweird.f32 %v4448_v27 }
 0x52e   : > { %v1025_v33 = vmul.f32 %v4450_v29, %v1022_v26  ;;  %vm1031_vm10 = vweird.f32 %v4450_v29  ;;  %vm880_vm11 = vmor %vm878_vm7, %vm879_vm8  ;;  %v1405_v26 = vsel %vm406_vm0, %v1398_v16, 0.0  ;;  %v5195_v16 = vld [vmem:[#allocation2 + $0x48] sm:$0xff] }
 0x52f   : > { %v874_v36 = vmul.f32 %v4448_v27, %v873_v32  ;;  %vm1032_vm12 = vmor %vm1030_vm9, %vm1031_vm10  ;;  %v892_v32 = vld [vmem:[#allocation2] sm:$0xff] }
 0x530   : > { %v1026_v40 = vmul.f32 %v4450_v29, %v1025_v33  ;;  %v1407_v33 = vsel %vm406_vm0, %v1400_v24, 0.0  ;;  %v928_v24 = vmul.f32 %v5195_v16, %v5195_v16 }
 0x532   : > { %v1027_v43 = vmul.f32 0.5, %v1026_v40 }
 0x553   : > { %s5077_s3 = spop %4340 }
 0x554   : > { %s4343_s27 = spop %4342 }
 0x555   : > { %s5085_s28 = smul.f32 %s4343_s27, %s4951_s19 }
 0x557   : > { %v2314_v46 = vstv %s5085_s28 }
 0x558   : > { %v2315_v47 = vsub.f32 %v4889_v8, %v2314_v46  ;;  %v2316_v48 = vsub.f32 %v4896_v9, %v2314_v46 }
 0x55a   : > { %v2317_v49 = vmul.f32 %v2315_v47, %v2315_v47  ;;  %v2318_v51 = vmul.f32 %v2316_v48, %v2316_v48  ;;  %v1028_v47 = vsub.f32 1.5, %v1027_v43  ;;  %v922_v43 = vmul.f32 %v892_v32, %v892_v32 }
 0x55c   : > { %v2319_v55 = vsel %vm406_vm0, %v2317_v49, 0.0  ;;  %v2320_v56 = vsel %vm406_vm0, %v2318_v51, 0.0  ;;  %v1029_v53 = vmul.f32 %v4450_v29, %v1028_v47 }
 0x55d   : > { %v2321_v60 = vadd.f32 %v2320_v56, %v2319_v55  ;;  %v1366_v55 = vld [vmem:[#allocation2 + $0x7a] sm:$0xff]  ;;  %v1364_v56 = vld [vmem:[#allocation2 + $0x62] sm:$0xff] }
 0x55e   : > { %v1033_v61 = vsel %vm1032_vm12, %v4450_v29, %v1029_v53  ;;  %v1394_v63 = vmul.f32 %v1364_v56, %v1364_v56  ;;  %vm553_vm12 = vcmask 115712  }
 0x55f   : > { %2322 = vadd.xlane.f32.xlu0 %v2321_v60 }
 0x560   : > { %v1402_v15 = vsel %vm406_vm0, %v1394_v63, 0.0  ;;  %v930_v63 = vsel %vm406_vm0, %v922_v43, 0.0 }
 0x573   : > { %469 = vrot.lane.b32.xlu0 %v5050_v30, %s4686_s23  ;;  %v830_v30 = vmul.f32 %v4446_v23, %v829_v25 }
 0x575   : > { %v831_v34 = vadd.f32 %v4446_v23, %v830_v30 }
 0x577   : > { %v833_v58 = vsel %vm832_vm6, %v4446_v23, %v831_v34  ;;  %vm1040_vm6 = vweird.f32 %v5148_v0 }
 0x578   : > { %v834_v59 = vmul.f32 %v4152_v37, %v833_v58  ;;  %v835_v44 = vmul.f32 %v4153_v41, %v833_v58  ;;  %v1048_v37 = vld [vmem:[#allocation2 + $0xc0] sm:$0xff]  ;;  %v1374_v41 = vmul.f32 %v1366_v55, %v4865_v4 }
 0x579   : > { %v1078_v47 = vmul.f32 %v1048_v37, %v1048_v37 }
 0x57a   : > { %v836_v46 = vmul.f32 15.0, %v834_v59  ;;  %v837_v48 = vmul.f32 15.0, %v835_v44  ;;  %v924_v59 = vmul.f32 %v894_v31, %v894_v31 }
 0x57b   : > { %453 = vrot.lane.b32.xlu0 %v5079_v42, %s4686_s23  ;;  %v875_v42 = vmul.f32 0.5, %v874_v36  ;;  %v1050_v36 = vld [vmem:[#allocation2 + $0xd8] sm:$0xff] }
 0x57c   : > { %v4308_v51 = vcvt.f32.s32 %v836_v46  ;;  %v4316_v54 = vcvt.f32.s32 %v837_v48  ;;  %v4311_v17 = vand.u32 2147483648, %v836_v46  ;;  %v4306_v39 = vand.u32 2147483647, %v836_v46 }
 0x57d   : > { %v876_v45 = vsub.f32 1.5, %v875_v42  ;;  %v4319_v22 = vand.u32 2147483648, %v837_v48  ;;  %v1372_v42 = vmul.f32 %v1364_v56, %v4855_v2  ;;  %v1381_v56 = vsel %vm406_vm0, %v1374_v41, 0.0 }
 0x57e   : > { %v4309_v60 = vcvt.s32.f32 %v4308_v51  ;;  %v4317_v52 = vcvt.s32.f32 %v4316_v54  ;;  %vm4307_vm13 = vcmp.lt.f32.partialorder %v4306_v39, 8388608.0  ;;  %v5180_v54 = vld [vmem:[#allocation2 + $0xf0] sm:$0xff] }
 0x57f   : > { %v877_v49 = vmul.f32 %v4448_v27, %v876_v45 }
 0x580   : > { %v4310_v13 = vand.u32 2147483647, %v4309_v60  ;;  %v4318_v18 = vand.u32 2147483647, %v4317_v52  ;;  %v1380_v60 = vsel %vm406_vm0, %v1372_v42, 0.0  ;;  %v1365_v42 = vld [vmem:[#allocation2 + $0x6a] sm:$0xff] }
 0x581   : > { %v5145_v57 = vsel %vm880_vm11, %v4448_v27, %v877_v49  ;;  %v5158_v27 = vpop.eup %4451  ;;  %v5173_v49 = vld [vmem:[#allocation2 + $0x30] sm:$0xff] }
 0x582   : > { %v1044_v1 = vmul.f32 %v5041_v10, %v5145_v57  ;;  %v4314_v10 = vand.u32 2147483647, %v837_v48  ;;  %v4320_v25 = vor.u32 %v4319_v22, %v4318_v18  ;;  %7352 = vst [vmem:[#allocation25_spill] sm:$0xff] %v5158_v27  ;;  %v1035_v40 = vmul.f32 %v5158_v27, %v5148_v0  ;;  %v5197_v18 = vld [vmem:[#allocation2 + $0x108] sm:$0xff] }
 0x583   : > { %509 = vrot.lane.b32.xlu0 %v430_v62, %s4685_s22  ;;  %v1396_v62 = vmul.f32 %v1366_v55, %v1366_v55  ;;  %v926_v50 = vmul.f32 %v5173_v49, %v5173_v49  ;;  %v1378_v22 = vmul.f32 %v1370_v19, %v4889_v8  ;;  %v1084_v30 = vmul.f32 %v5197_v18, %v5197_v18 }
 0x584   : > { %v5152_v12 = vmul.f32 %v1044_v1, %v1033_v61  ;;  %vm5160_vm14 = vcmp.lt.f32.partialorder %v4314_v10, 8388608.0  ;;  %v1036_v53 = vmul.f32 %v5158_v27, %v1035_v40  ;;  %v1376_v61 = vmul.f32 %v1368_v11, %v4877_v6 }
 0x585   : > { %v1403_v14 = vsel %vm406_vm0, %v1396_v62, 0.0  ;;  %v4321_v34 = vsel %vm5160_vm14, %v4320_v25, %v837_v48  ;;  %v7310_v48 = vmov 0.0   ;;  %v931_v62 = vsel %vm406_vm0, %v924_v59, 0.0 }
 0x586   : > { %7351 = vst [vmem:[#allocation24_spill] sm:$0xff] %v5152_v12  ;;  %v1404_v23 = vadd.f32 %v1403_v14, %v1402_v15  ;;  %v841_v45 = vmax.f32 %v4321_v34, 0.0  ;;  %v4150_v51 = vsel %vm819_vm15, 1.0, %v7310_v48  ;;  %v4151_v35 = vsel %vm820_vm5, 1.0, %v7310_v48  ;;  %v1286_v48 = vld [vmem:[#allocation2 + $0x2] sm:$0xff] }
 0x587   : > { %v1086_v14 = vsel %vm406_vm0, %v1078_v47, 0.0  ;;  %v1082_v15 = vmul.f32 %v5180_v54, %v5180_v54  ;;  %v1382_v11 = vadd.f32 %v1381_v56, %v1380_v60  ;;  %v1056_v19 = vmul.f32 %v1048_v37, %v4855_v2  ;;  %v5229_v56 = vpop.permute.xlu2 %519 }
 0x588   : > { %v1406_v29 = vadd.f32 %v1405_v26, %v1404_v23  ;;  %v843_v52 = vmul.f32 %v4151_v35, %v841_v45  ;;  %v932_v23 = vadd.f32 %v931_v62, %v930_v63  ;;  %v933_v26 = vsel %vm406_vm0, %v926_v50, 0.0  ;;  %v1369_v50 = vld [vmem:[#allocation2 + $0x9a] sm:$0xff]  ;;  %562 = vst.msk [vmem:[#allocation2 + $0x110] sm:$0xff] %vm550_vm3, %v5229_v56 }
 0x589   : > { %v902_v40 = vmul.f32 %v894_v31, %v4865_v4  ;;  %v1385_v41 = vsel %vm406_vm0, %v1378_v22, 0.0  ;;  %vm1041_vm7 = vweird.f32 %v5158_v27  ;;  %v895_v31 = vld [vmem:[#allocation2 + $0x20] sm:$0xff]  ;;  %v1064_v47 = vsel %vm406_vm0, %v1056_v19, 0.0  ;;  %v893_v19 = vld [vmem:[#allocation2 + $0x8] sm:$0xff] }
 0x58a   : > { %v1408_v44 = vadd.f32 %v1407_v33, %v1406_v29  ;;  %v845_v25 = vadd.f32 1.0, %v843_v52  ;;  %v1089_v29 = vsel %vm406_vm0, %v1082_v15, 0.0  ;;  %v934_v59 = vadd.f32 %v933_v26, %v932_v23  ;;  %vm5237_vm8 = vmor %vm1040_vm6, %vm1041_vm7  ;;  %v1288_v15 = vld [vmem:[#allocation2 + $0x1a] sm:$0xff] }
 0x58b   : > { %471 = vrot.lane.b32.xlu0 %v436_v21, %s4686_s23  ;;  %v4312_v21 = vor.u32 %v4311_v17, %v4310_v13  ;;  %v1037_v17 = vmul.f32 0.5, %v1036_v53  ;;  %v1373_v35 = vmul.f32 %v1365_v42, %v4860_v3  ;;  %v1395_v53 = vmul.f32 %v1365_v42, %v1365_v42  ;;  %v1049_v42 = vld [vmem:[#allocation2 + $0xc8] sm:$0xff]  ;;  %s6463_s23 = sld [smem:[#allocation7]] }
 0x58c   : > { %v5187_v1 = vmax.f32 %v1408_v44, 1e-24  ;;  %v5218_v45 = vmin.f32 %v845_v25, 9.0  ;;  %v909_v60 = vsel %vm406_vm0, %v902_v40, 0.0  ;;  %v7358_v62 = vmov 0 }
 0x58d   : > { %v4313_v28 = vsel %vm4307_vm13, %v4312_v21, %v836_v46  ;;  %v1080_v46 = vmul.f32 %v1050_v36, %v1050_v36  ;;  %v1383_v21 = vsel %vm406_vm0, %v1376_v61, 0.0  ;;  %v1038_v34 = vsub.f32 1.5, %v1037_v17 }
 0x58e   : > { %v840_v58 = vmax.f32 %v4313_v28, 0.0  ;;  %4453 = vrsqrt.f32 %v5187_v1  ;;  %v1058_v28 = vmul.f32 %v1050_v36, %v4865_v4  ;;  %v1384_v33 = vadd.f32 %v1383_v21, %v1382_v11  ;;  %7356 = vst [vmem:[#allocation27_spill] sm:$0xff] %v5218_v45 }
 0x58f   : > { %v1087_v13 = vsel %vm406_vm0, %v1080_v46, 0.0  ;;  %v935_v36 = vsel %vm406_vm0, %v928_v24, 0.0  ;;  %v7359_v62 = vsel %vm5237_vm8, 4294967295, %v7358_v62  ;;  %v1377_v11 = vmul.f32 %v1369_v50, %v4882_v7  ;;  %v1051_v24 = vld [vmem:[#allocation2 + $0xe0] sm:$0xff] }
 0x590   : > { %v842_v55 = vmul.f32 %v4150_v51, %v840_v58  ;;  %v1088_v10 = vadd.f32 %v1087_v13, %v1086_v14  ;;  %v900_v58 = vmul.f32 %v892_v32, %v4855_v2  ;;  %v1065_v37 = vsel %vm406_vm0, %v1058_v28, 0.0  ;;  %7360 = vst [vmem:[#allocation29_spill] sm:$0xff] %v7359_v62  ;;  %v1210_v28 = vld [vmem:[#allocation2 + $0xd9] sm:$0xff] }
 0x591   : > { %v1091_v32 = vsel %vm406_vm0, %v1084_v30, 0.0  ;;  %v5226_v51 = vmul.f32 %v5158_v27, %v1038_v34  ;;  %v5241_v63 = vadd.f32 %v1385_v41, %v1384_v33  ;;  %v936_v52 = vadd.f32 %v935_v36, %v934_v59  ;;  %v1444_v33 = vld [vmem:[#allocation2 + $0xda] sm:$0xff]  ;;  %s2159_s12 = smul.f32 %s4977_s18, %s6463_s23  ;;  %s6601_s18 = sld [smem:[#allocation7 + $0x2]] }
 0x592   : > { %v844_v39 = vadd.f32 1.0, %v842_v55  ;;  %v1090_v43 = vadd.f32 %v1089_v29, %v1088_v10  ;;  %v1128_v55 = vld [vmem:[#allocation2 + $0x19] sm:$0xff]  ;;  %v908_v61 = vsel %vm406_vm0, %v900_v58, 0.0  ;;  %v903_v13 = vmul.f32 %v895_v31, %v4870_v5 }
 0x593   : > { %7357 = vst [vmem:[#allocation28_spill] sm:$0xff] %v5226_v51  ;;  %v925_v14 = vmul.f32 %v895_v31, %v895_v31  ;;  %v1136_v21 = vmul.f32 %v1128_v55, %v4865_v4  ;;  %v1158_v22 = vmul.f32 %v1128_v55, %v1128_v55  ;;  %v5259_v10 = vsel %vm406_vm0, %v1373_v35, 0.0  ;;  %s2161_s14 = smul.f32 %s2159_s12, %s4954_s24  ;;  %s6597_s24 = sld [smem:[#allocation8 + $0x1]] }
 0x594   : > { %v5216_v44 = vmin.f32 %v844_v39, 9.0  ;;  %v5222_v46 = vpop.eup %4453  ;;  %v1092_v17 = vadd.f32 %v1091_v32, %v1090_v43  ;;  %v5247_v39 = vadd.f32 %v1065_v37, %v1064_v47  ;;  %v5262_v26 = vsel %vm406_vm0, %v1395_v53, 0.0  ;;  %v1126_v47 = vld [vmem:[#allocation2 + $0x1] sm:$0xff] }
 0x595   : > { %v5251_v0 = vmul.f32 %v5222_v46, %v5187_v1  ;;  %v5264_v25 = vadd.f32 %v909_v60, %v908_v61  ;;  %v1296_v29 = vmul.f32 %v1288_v15, %v4865_v4  ;;  %v1318_v30 = vmul.f32 %v1288_v15, %v1288_v15  ;;  %s6498_s27 = ssub.f32 %s2160_s20, %s2161_s14 }
 0x596   : > { %7355 = vst [vmem:[#allocation26_spill] sm:$0xff] %v5216_v44  ;;  %v5267_v34 = vmul.f32 %v1369_v50, %v1369_v50  ;;  %v5269_v40 = vmax.f32 %v936_v52, 1e-24  ;;  %v916_v58 = vsel %vm406_vm0, %v903_v13, 0.0  ;;  %v938_v41 = vsel %vm406_vm0, %v925_v14, 0.0 }
 0x597   : > { %v5274_v59 = vsel %vm406_vm0, %v1377_v11, 0.0  ;;  %v5276_v36 = vmax.f32 %v1092_v17, 1e-24  ;;  %v1059_v43 = vmul.f32 %v1051_v24, %v4870_v5  ;;  %v1081_v37 = vmul.f32 %v1051_v24, %v1051_v24 }
 0x598   : > { %v1143_v31 = vsel %vm406_vm0, %v1136_v21, 0.0  ;;  %v1165_v32 = vsel %vm406_vm0, %v1158_v22, 0.0  ;;  %v1218_v35 = vmul.f32 %v1210_v28, %v4865_v4  ;;  %v1240_v53 = vmul.f32 %v1210_v28, %v1210_v28 }
 0x599   : > { %v901_v55 = vmul.f32 %v893_v19, %v4860_v3  ;;  %v923_v60 = vmul.f32 %v893_v19, %v893_v19  ;;  %v1452_v61 = vmul.f32 %v1444_v33, %v4865_v4  ;;  %v1474_v50 = vmul.f32 %v1444_v33, %v1444_v33  ;;  %v1208_v33 = vld [vmem:[#allocation2 + $0xc1] sm:$0xff]  ;;  %s6626_s26 = ssub.f32 %s6597_s24, %s2226_s30  ;;  %s4691_s30 = smov 16  }
 0x59a   : > { %v1057_v52 = vmul.f32 %v1049_v42, %v4860_v3  ;;  %4455 = vrsqrt.f32 %v5269_v40  ;;  %v1079_v13 = vmul.f32 %v1049_v42, %v1049_v42  ;;  %v1134_v14 = vmul.f32 %v1126_v47, %v4855_v2 }
 0x59b   : > { %v1156_v15 = vmul.f32 %v1126_v47, %v1126_v47  ;;  %4457 = vrsqrt.f32 %v5276_v36  ;;  %v1072_v11 = vsel %vm406_vm0, %v1059_v43, 0.0  ;;  %v1094_v17 = vsel %vm406_vm0, %v1081_v37, 0.0 }
 0x59c   : > { %v1303_v21 = vsel %vm406_vm0, %v1296_v29, 0.0  ;;  %v5292_v22 = vsel %vm406_vm0, %v1318_v30, 0.0  ;;  %v915_v24 = vsel %vm406_vm0, %v901_v55, 0.0  ;;  %v937_v28 = vsel %vm406_vm0, %v923_v60, 0.0 }
 0x59d   : > { %v849_v19 = vmul.f32 %v4860_v3, %v4860_v3  ;;  %v851_v42 = vmul.f32 %v4870_v5, %v4870_v5  ;;  %v1225_v43 = vsel %vm406_vm0, %v1218_v35, 0.0  ;;  %v1247_v37 = vsel %vm406_vm0, %v1240_v53, 0.0 }
 0x59e   : > { %v5303_v29 = vsel %vm406_vm0, %v1452_v61, 0.0  ;;  %v1071_v30 = vsel %vm406_vm0, %v1057_v52, 0.0  ;;  %v5307_v47 = vsel %vm406_vm0, %v1474_v50, 0.0  ;;  %v1093_v55 = vsel %vm406_vm0, %v1079_v13, 0.0 }
 0x59f   : > { %v1142_v60 = vsel %vm406_vm0, %v1134_v14, 0.0  ;;  %v1164_v23 = vsel %vm406_vm0, %v1156_v15, 0.0  ;;  %v5314_v35 = vadd.f32 %v916_v58, %v915_v24  ;;  %v5316_v53 = vadd.f32 %v938_v41, %v937_v28  ;;  %v1442_v28 = vld [vmem:[#allocation2 + $0xc2] sm:$0xff] }
 0x5a0   : > { %v5312_v4 = vpop.eup %4455  ;;  %v1216_v61 = vmul.f32 %v1208_v33, %v4855_v2  ;;  %v1238_v45 = vmul.f32 %v1208_v33, %v1208_v33  ;;  %v5321_v50 = vadd.f32 %v1072_v11, %v1071_v30  ;;  %v853_v13 = vmul.f32 %v4882_v7, %v4882_v7  ;;  %v1367_v33 = vld [vmem:[#allocation2 + $0x82] sm:$0xff] }
 0x5a1   : > { %v5319_v52 = vpop.eup %4457  ;;  %v863_v14 = vsel %vm406_vm0, %v849_v19, 0.0  ;;  %v864_v15 = vsel %vm406_vm0, %v851_v42, 0.0  ;;  %v5327_v44 = vadd.f32 %v1094_v17, %v1093_v55  ;;  %v5329_v58 = vadd.f32 %v1143_v31, %v1142_v60  ;;  %v5345_v55 = vpop.permute.xlu1 %2620 }
 0x5a2   : > { %v5331_v41 = vadd.f32 %v1165_v32, %v1164_v23  ;;  %v1294_v24 = vmul.f32 %v1286_v48, %v4855_v2  ;;  %v1316_v51 = vmul.f32 %v1286_v48, %v1286_v48  ;;  %v904_v11 = vmul.f32 %v5173_v49, %v4877_v6  ;;  %7361 = vst [vmem:[#allocation30_spill] sm:$0xff] %v5345_v55 }
 0x5a3   : > { %v1060_v30 = vmul.f32 %v5180_v54, %v4877_v6  ;;  %v947_v19 = vmul.f32 %v5312_v4, %v5269_v40  ;;  %v1224_v17 = vsel %vm406_vm0, %v1216_v61, 0.0  ;;  %v1246_v31 = vsel %vm406_vm0, %v1238_v45, 0.0 }
 0x5a4   : > { %v1103_v23 = vmul.f32 %v5319_v52, %v5276_v36  ;;  %v865_v32 = vadd.f32 %v864_v15, %v863_v14  ;;  %v1450_v42 = vmul.f32 %v1442_v28, %v4855_v2  ;;  %v1397_v48 = vmul.f32 %v1367_v33, %v1367_v33 }
 0x5a5   : > { %v855_v49 = vmul.f32 %v4896_v9, %v4896_v9  ;;  %v866_v54 = vsel %vm406_vm0, %v853_v13, 0.0  ;;  %v1302_v60 = vsel %vm406_vm0, %v1294_v24, 0.0  ;;  %v1472_v27 = vmul.f32 %v1442_v28, %v1442_v28 }
 0x5a6   : > { %v906_v45 = vmul.f32 %v5195_v16, %v4889_v8  ;;  %v1375_v61 = vmul.f32 %v1367_v33, %v4870_v5  ;;  %v911_v14 = vsel %vm406_vm0, %v904_v11, 0.0  ;;  %v1067_v15 = vsel %vm406_vm0, %v1060_v30, 0.0 }
 0x5a7   : > { %v948_v2 = vmul.f32 %v5312_v4, %v947_v19  ;;  %v1062_v55 = vmul.f32 %v5197_v18, %v4889_v8  ;;  %v5359_v62 = vadd.f32 %v1225_v43, %v1224_v17  ;;  %v5361_v13 = vadd.f32 %v1247_v37, %v1246_v31  ;;  %v1371_v37 = vld [vmem:[#allocation2 + $0xb2] sm:$0xff] }
 0x5a8   : > { %v1104_v24 = vmul.f32 %v5319_v52, %v1103_v23  ;;  %v867_v28 = vadd.f32 %v866_v54, %v865_v32  ;;  %v5364_v38 = vadd.f32 %v1303_v21, %v1302_v60  ;;  %v1324_v16 = vsel %vm406_vm0, %v1316_v51, 0.0 }
 0x5a9   : > { %v1410_v33 = vsel %vm406_vm0, %v1397_v48, 0.0  ;;  %v868_v11 = vsel %vm406_vm0, %v855_v49, 0.0  ;;  %v912_v30 = vadd.f32 %v911_v14, %v5264_v25  ;;  %v913_v19 = vsel %vm406_vm0, %v906_v45, 0.0 }
 0x5aa   : > { %v1068_v18 = vadd.f32 %v1067_v15, %v5247_v39  ;;  %v1388_v43 = vsel %vm406_vm0, %v1375_v61, 0.0  ;;  %v949_v17 = vmul.f32 0.5, %v948_v2  ;;  %v1069_v31 = vsel %vm406_vm0, %v1062_v55, 0.0 }
 0x5ab   : > { %v1379_v21 = vmul.f32 %v1371_v37, %v4896_v9  ;;  %v1420_v51 = vmul.f32 %v5222_v46, %v5251_v0  ;;  %v5378_v23 = vadd.f32 %v5292_v22, %v1324_v16  ;;  %v1105_v32 = vmul.f32 0.5, %v1104_v24  ;;  %v5389_v24 = vpop.permute.xlu1 %503 }
 0x5ac   : > { %v1411_v25 = vadd.f32 %v1410_v33, %v5262_v26  ;;  %v5381_v49 = vadd.f32 %v868_v11, %v867_v28  ;;  %v1412_v39 = vsel %vm406_vm0, %v5267_v34, 0.0  ;;  %v1389_v2 = vadd.f32 %v1388_v43, %v5259_v10  ;;  %v897_v26 = vld [vmem:[#allocation2 + $0x38] sm:$0xff]  ;;  %554 = vst.msk [vmem:[#allocation2 + $0xd0] sm:$0x3] %vm553_vm12, %v5389_v24 }
 0x5ad   : > { %v1401_v55 = vmul.f32 %v1371_v37, %v1371_v37  ;;  %v1458_v60 = vsel %vm406_vm0, %v1450_v42, 0.0  ;;  %v1480_v0 = vsel %vm406_vm0, %v1472_v27, 0.0  ;;  %v914_v45 = vadd.f32 %v913_v19, %v912_v30  ;;  %v5395_v42 = vpop.permute.xlu2 %459 }
 0x5ae   : > { %v1070_v22 = vadd.f32 %v1069_v31, %v1068_v18  ;;  %v950_v61 = vsub.f32 1.5, %v949_v17  ;;  %v1392_v14 = vsel %vm406_vm0, %v1379_v21, 0.0  ;;  %v1421_v28 = vmul.f32 0.5, %v1420_v51  ;;  %v1130_v51 = vld [vmem:[#allocation2 + $0x31] sm:$0xff] }
 0x5af   : > { %vm952_vm3 = vweird.f32 %v5269_v40  ;;  %v1106_v34 = vsub.f32 1.5, %v1105_v32  ;;  %v1413_v10 = vadd.f32 %v1412_v39, %v1411_v25  ;;  %v5393_v16 = vmax.f32 %v5381_v49, 1e-24 }
 0x5b0   : > { %vm953_vm9 = vweird.f32 %v5312_v4  ;;  %v1391_v27 = vadd.f32 %v5274_v59, %v1389_v2  ;;  %v1414_v33 = vsel %vm406_vm0, %v1401_v55, 0.0  ;;  %vm1108_vm10 = vweird.f32 %v5276_v36  ;;  %v1053_v36 = vld [vmem:[#allocation2 + $0xf8] sm:$0xff] }
 0x5b1   : > { %vm1109_vm11 = vweird.f32 %v5319_v52  ;;  %v905_v30 = vmul.f32 %v897_v26, %v4882_v7  ;;  %v951_v19 = vmul.f32 %v5312_v4, %v950_v61  ;;  %vm488_vm13 = vcmask 123912   ;;  %vm5408_vm14 = vmor %vm952_vm3, %vm953_vm9 }
 0x5b2   : > { %v1422_v43 = vsub.f32 1.5, %v1421_v28  ;;  %v1107_v37 = vmul.f32 %v5319_v52, %v1106_v34  ;;  %v1415_v17 = vadd.f32 %v1414_v33, %v1413_v10  ;;  %v927_v31 = vmul.f32 %v897_v26, %v897_v26  ;;  %492 = vst.msk [vmem:[#allocation2 + $0x28] sm:$0x3] %vm488_vm13, %v5395_v42  ;;  %vm5423_vm15 = vmor %vm1108_vm10, %vm1109_vm11 }
 0x5b3   : > { %4459 = vrsqrt.f32 %v5393_v16  ;;  %v5417_v21 = vadd.f32 %v5303_v29, %v1458_v60  ;;  %vm1424_vm5 = vweird.f32 %v5187_v1  ;;  %vm1425_vm6 = vweird.f32 %v5222_v46  ;;  %v516_v28 = vpop.permute.xlu1 %515 }
 0x5b4   : > { %v5430_v25 = vadd.f32 %v5307_v47, %v1480_v0  ;;  %v966_v29 = vmul.f32 %v914_v45, %v5145_v57  ;;  %v918_v39 = vsel %vm406_vm0, %v905_v30, 0.0  ;;  %v955_v2 = vsel %vm5408_vm14, %v5312_v4, %v951_v19  ;;  %vm5450_vm7 = vmor %vm1424_vm5, %vm1425_vm6  ;;  %560 = vst.msk [vmem:[#allocation2 + $0x100] sm:$0x3] %vm553_vm12, %v516_v28 }
 0x5b5   : > { %v1122_v55 = vmul.f32 %v1070_v22, %v5145_v57  ;;  %v1423_v60 = vmul.f32 %v5222_v46, %v1422_v43  ;;  %v1111_v47 = vsel %vm5423_vm15, %v5319_v52, %v1107_v37  ;;  %v5444_v0 = vmax.f32 %v1415_v17, 1e-24  ;;  %v1446_v43 = vld [vmem:[#allocation2 + $0xf2] sm:$0xff] }
 0x5b6   : > { %v940_v45 = vsel %vm406_vm0, %v927_v31, 0.0  ;;  %v1138_v61 = vmul.f32 %v1130_v51, %v4877_v6  ;;  %v1061_v4 = vmul.f32 %v1053_v36, %v4882_v7  ;;  %v1083_v22 = vmul.f32 %v1053_v36, %v1053_v36 }
 0x5b7   : > { %v1160_v26 = vmul.f32 %v1130_v51, %v1130_v51  ;;  %v1204_v52 = vmul.f32 %v5145_v57, %v5125_v20  ;;  %v5459_v10 = vmul.f32 %v966_v29, %v955_v2  ;;  %v5462_v1 = vadd.f32 %v918_v39, %v5314_v35  ;;  %v1212_v20 = vld [vmem:[#allocation2 + $0xf1] sm:$0xff] }
 0x5b8   : > { %vm567_vm3 = vcmask 124024   ;;  %v1438_v33 = vmul.f32 %v5241_v63, %v5145_v57  ;;  %v5470_v30 = vadd.f32 %v940_v45, %v5316_v53  ;;  %vm538_vm9 = vcmask 1024  }
 0x5b9   : > { %v5457_v34 = vpop.eup %4459  ;;  %v1427_v35 = vsel %vm5450_vm7, %v5222_v46, %v1423_v60  ;;  %4461 = vrsqrt.f32 %v5444_v0  ;;  %v1145_v19 = vsel %vm406_vm0, %v1138_v61, 0.0  ;;  %v1074_v53 = vsel %vm406_vm0, %v1061_v4, 0.0 }
 0x5ba   : > { %v1096_v59 = vsel %vm406_vm0, %v1083_v22, 0.0  ;;  %v883_v37 = vmul.f32 %v5457_v34, %v5393_v16  ;;  %v5486_v46 = vmul.f32 %v1204_v52, %v5145_v57  ;;  %v1220_v17 = vmul.f32 %v1212_v20, %v4877_v6 }
 0x5bb   : > { %v5489_v31 = vmul.f32 %v1438_v33, %v1427_v35  ;;  %vm1520_vm10 = vcmp.ge.f32.partialorder %v5459_v10, %v5152_v12  ;;  %v1167_v40 = vsel %vm406_vm0, %v1160_v26, 0.0  ;;  %v1242_v51 = vmul.f32 %v1212_v20, %v1212_v20 }
 0x5bc   : > { %v5500_v39 = vadd.f32 %v1145_v19, %v5329_v58  ;;  %v7370_v60 = vmov 0.0   ;;  %vm1556_vm15 = vcmp.ge.f32.partialorder %v5459_v10, %v5486_v46  ;;  %v1168_v61 = vadd.f32 %v1167_v40, %v5331_v41 }
 0x5bd   : > { %7369 = vst [vmem:[#allocation32_spill] sm:$0xff] %v5489_v31  ;;  %v1249_v4 = vsel %vm406_vm0, %v1242_v51, 0.0  ;;  %v1097_v19 = vadd.f32 %v1096_v59, %v5327_v44  ;;  %vm888_vm5 = vweird.f32 %v5393_v16  ;;  %vm889_vm6 = vweird.f32 %v5457_v34 }
 0x5be   : > { %vm5606_vm7 = vmor %vm888_vm5, %vm889_vm6 }
 0x5bf   : > { %v5512_v58 = vpop.eup %4461 }
 0x5c0   : > { %v5537_v33 = vmul.f32 %v5512_v58, %v5444_v0 }
 0x5d2   : > { %v2323_v48 = vpop.xlane.xlu0 %2322 }
 0x5d3   : > { %v2324_v54 = vrot.slane %v2323_v48, 4 }
 0x5d5   : > { %v2325_v15 = vadd.f32 %v2324_v54, %v2323_v48  ;;  %v5433_v48 = vadd.f32 %v1392_v14, %v1391_v27  ;;  %v466_v27 = vpop.permute.xlu2 %465  ;;  %v1227_v14 = vsel %vm406_vm0, %v1220_v17, 0.0 }
 0x5d6   : > { %495 = vst.msk [vmem:[#allocation2 + $0x40] sm:$0x3] %vm488_vm13, %v466_v27 }
 0x5d7   : > { %v2326_v11 = vrot.slane %v2325_v15, 2  ;;  %545 = vst.msk [vmem:[#allocation2 + $0x40] sm:$0x3] %vm538_vm9, %v516_v28 }
 0x5d8   : > { %574 = vst.msk [vmem:[#allocation2 + $0x100] sm:$0x3] %vm567_vm3, %v466_v27  ;;  %v5533_v27 = vsel %vm1556_vm15, 1.0, %v7370_v60 }
 0x5d9   : > { %v2327_v18 = vadd.f32 %v2326_v11, %v2325_v15  ;;  %v1290_v15 = vld [vmem:[#allocation2 + $0x32] sm:$0xff]  ;;  %v5467_v11 = vmul.f32 %v1122_v55, %v1111_v47  ;;  %v1476_v55 = vmul.f32 %v1446_v43, %v1446_v43  ;;  %v4154_v47 = vsel %vm1520_vm10, 1.0, %v7370_v60 }
 0x5da   : > { %v1320_v63 = vmul.f32 %v1290_v15, %v1290_v15  ;;  %v1528_v28 = vsub.f32 1.0, %v4154_v47 }
 0x5db   : > { %v2328_v32 = vrot.slane %v2327_v18, 1  ;;  %7368 = vst [vmem:[#allocation31_spill] sm:$0xff] %v5467_v11  ;;  %vm1532_vm11 = vcmp.ge.f32.partialorder %v5459_v10, %v5467_v11  ;;  %vm1616_vm14 = vcmp.ge.f32.partialorder %v5152_v12, %v5467_v11 }
 0x5dc   : > { %v1327_v2 = vsel %vm406_vm0, %v1320_v63, 0.0  ;;  %v4156_v45 = vsel %vm1532_vm11, 1.0, %v7370_v60  ;;  %v1250_v63 = vadd.f32 %v1249_v4, %v5361_v13 }
 0x5dd   : > { %v2329_v54 = vadd.f32 %v2328_v32, %v2327_v18  ;;  %v1298_v18 = vmul.f32 %v1290_v15, %v4877_v6  ;;  %v1454_v32 = vmul.f32 %v1446_v43, %v4877_v6  ;;  %v5528_v26 = vadd.f32 %v1327_v2, %v5378_v23 }
 0x5de   : > { %v1483_v15 = vsel %vm406_vm0, %v1476_v55, 0.0  ;;  %v1540_v52 = vsub.f32 1.0, %v4156_v45  ;;  %v5543_v23 = vadd.f32 %v1074_v53, %v5321_v50 }
 0x5df   : > { %4344 = vpush %v2329_v54  ;;  %v1305_v36 = vsel %vm406_vm0, %v1298_v18, 0.0  ;;  %v884_v54 = vmul.f32 %v5457_v34, %v883_v37  ;;  %v1461_v41 = vsel %vm406_vm0, %v1454_v32, 0.0  ;;  %v5547_v18 = vadd.f32 %v1227_v14, %v5359_v62 }
 0x5e0   : > { %v5525_v22 = vadd.f32 %v1305_v36, %v5364_v38  ;;  %v5551_v43 = vadd.f32 %v1461_v41, %v5417_v21  ;;  %v5554_v37 = vadd.f32 %v1483_v15, %v5430_v25  ;;  %v5560_v44 = vadd.f32 %v1540_v52, %v1528_v28 }
 0x5e1   : > { %v885_v20 = vmul.f32 0.5, %v884_v54 }
 0x5e3   : > { %v886_v21 = vsub.f32 1.5, %v885_v20 }
 0x5e5   : > { %v470_v29 = vpop.permute.xlu0 %469  ;;  %v887_v28 = vmul.f32 %v5457_v34, %v886_v21 }
 0x5e6   : > { %497 = vst.msk [vmem:[#allocation2 + $0x50] sm:$0xff] %vm485_vm1, %v470_v29  ;;  %vm1592_vm1 = vcmp.ge.f32.partialorder %v5459_v10, %v5489_v31 }
 0x5e7   : > { %547 = vst.msk [vmem:[#allocation2 + $0x50] sm:$0xff] %vm535_vm2, %v5229_v56  ;;  %v4170_v56 = vsel %vm1616_vm14, 1.0, %v7370_v60  ;;  %v5540_v38 = vsel %vm1592_vm1, 1.0, %v7370_v60  ;;  %vm1640_vm2 = vcmp.ge.f32.partialorder %v5152_v12, %v5486_v46 }
 0x5e8   : > { %576 = vst.msk [vmem:[#allocation2 + $0x110] sm:$0xff] %vm564_vm4, %v470_v29  ;;  %v1624_v35 = vsub.f32 1.0, %v4170_v56  ;;  %v5563_v13 = vadd.f32 %v4170_v56, %v4156_v45  ;;  %vm1676_vm4 = vcmp.ge.f32.partialorder %v5152_v12, %v5489_v31  ;;  %v5577_v54 = vsel %vm1640_vm2, 1.0, %v7370_v60 }
 0x5e9   : > { %v5586_v56 = vsel %vm1676_vm4, 1.0, %v7370_v60 }
 0x5ea   : > { %7371 = vst [vmem:[#allocation33_spill] sm:$0xff] %v5563_v13  ;;  %v5569_v29 = vadd.f32 %v4154_v47, %v1624_v35  ;;  %v1213_v47 = vld [vmem:[#allocation2 + $0xf9] sm:$0xff] }
 0x5eb   : > { %v1447_v35 = vld [vmem:[#allocation2 + $0xfa] sm:$0xff] }
 0x5ec   : > { %7372 = vst [vmem:[#allocation34_spill] sm:$0xff] %v5569_v29 }
 0x5ed   : > { %v454_v17 = vpop.permute.xlu0 %453 }
 0x5ee   : > { %v899_v50 = vld [vmem:[#allocation2 + $0x50] sm:$0xff]  ;;  %489 = vst.msk [vmem:[#allocation2 + $0x10] sm:$0x3] %vm488_vm13, %v454_v17 }
 0x5ef   : > { %v1132_v53 = vld [vmem:[#allocation2 + $0x49] sm:$0xff]  ;;  %v929_v25 = vmul.f32 %v899_v50, %v899_v50  ;;  %539 = vst.msk [vmem:[#allocation2 + $0x10] sm:$0x3] %vm538_vm9, %v5389_v24  ;;  %v907_v36 = vmul.f32 %v899_v50, %v4896_v9 }
 0x5f0   : > { %v1055_v59 = vld [vmem:[#allocation2 + $0x110] sm:$0xff]  ;;  %v1162_v51 = vmul.f32 %v1132_v53, %v1132_v53  ;;  %568 = vst.msk [vmem:[#allocation2 + $0xd0] sm:$0x3] %vm567_vm3, %v454_v17  ;;  %v1140_v15 = vmul.f32 %v1132_v53, %v4889_v8 }
 0x5f1   : > { %v1214_v32 = vld [vmem:[#allocation2 + $0x109] sm:$0xff]  ;;  %v1085_v2 = vmul.f32 %v1055_v59, %v1055_v59  ;;  %v942_v45 = vsel %vm406_vm0, %v929_v25, 0.0  ;;  %v1063_v14 = vmul.f32 %v1055_v59, %v4896_v9  ;;  %v920_v17 = vsel %vm406_vm0, %v907_v36, 0.0 }
 0x5f2   : > { %v1244_v55 = vmul.f32 %v1214_v32, %v1214_v32  ;;  %v1169_v24 = vsel %vm406_vm0, %v1162_v51, 0.0  ;;  %v943_v4 = vadd.f32 %v942_v45, %v5470_v30  ;;  %v1221_v59 = vmul.f32 %v1213_v47, %v4882_v7  ;;  %v1292_v21 = vld [vmem:[#allocation2 + $0x4a] sm:$0xff] }
 0x5f3   : > { %v1098_v41 = vsel %vm406_vm0, %v1085_v2, 0.0  ;;  %v1170_v20 = vadd.f32 %v1169_v24, %v1168_v61  ;;  %v1076_v30 = vsel %vm406_vm0, %v1063_v14, 0.0  ;;  %v1243_v2 = vmul.f32 %v1213_v47, %v1213_v47 }
 0x5f4   : > { %v1099_v52 = vadd.f32 %v1098_v41, %v1097_v19  ;;  %v5595_v50 = vmax.f32 %v943_v4, 1e-24  ;;  %v1251_v25 = vsel %vm406_vm0, %v1244_v55, 0.0  ;;  %v1147_v19 = vsel %vm406_vm0, %v1140_v15, 0.0  ;;  %v1448_v55 = vld [vmem:[#allocation2 + $0x10a] sm:$0xff]  ;;  %v522_v4 = vpop.permute.xlu2 %521 }
 0x5f5   : > { %v5602_v53 = vmax.f32 %v1170_v20, 1e-24  ;;  %v510_v45 = vpop.permute.xlu0 %509  ;;  %v1252_v36 = vadd.f32 %v1251_v25, %v1250_v63  ;;  %v1455_v14 = vmul.f32 %v1447_v35, %v4882_v7  ;;  %v921_v24 = vadd.f32 %v920_v17, %v5462_v1  ;;  %563 = vst.msk [vmem:[#allocation2 + $0x118] sm:$0x3] %vm553_vm12, %v522_v4 }
 0x5f6   : > { %v5600_v51 = vmax.f32 %v1099_v52, 1e-24  ;;  %4463 = vrsqrt.f32 %v5595_v50  ;;  %542 = vst.msk [vmem:[#allocation2 + $0x28] sm:$0x3] %vm538_vm9, %v510_v45  ;;  %v1222_v16 = vmul.f32 %v1214_v32, %v4889_v8  ;;  %v1477_v47 = vmul.f32 %v1447_v35, %v1447_v35 }
 0x5f7   : > { %557 = vst.msk [vmem:[#allocation2 + $0xe8] sm:$0x3] %vm553_vm12, %v510_v45  ;;  %v1077_v41 = vadd.f32 %v1076_v30, %v5543_v23  ;;  %v5620_v63 = vmax.f32 %v1252_v36, 1e-24  ;;  %v1322_v15 = vmul.f32 %v1292_v21, %v1292_v21  ;;  %v5627_v1 = vsel %vm5606_vm7, %v5457_v34, %v887_v28 }
 0x5f8   : > { %4465 = vrsqrt.f32 %v5600_v51  ;;  %571 = vst.msk [vmem:[#allocation2 + $0xe8] sm:$0x3] %vm567_vm3, %v5395_v42  ;;  %v1148_v32 = vadd.f32 %v1147_v19, %v5500_v39  ;;  %v1300_v52 = vmul.f32 %v1292_v21, %v4889_v8  ;;  %v1478_v20 = vmul.f32 %v1448_v55, %v1448_v55 }
 0x5f9   : > { %4467 = vrsqrt.f32 %v5602_v53  ;;  %v1329_v23 = vsel %vm406_vm0, %v1322_v15, 0.0  ;;  %v5635_v35 = vsel %vm406_vm0, %v1221_v59, 0.0  ;;  %v5638_v42 = vsel %vm406_vm0, %v1243_v2, 0.0 }
 0x5fa   : > { %4469 = vrsqrt.f32 %v5620_v63  ;;  %v1229_v34 = vsel %vm406_vm0, %v1222_v16, 0.0  ;;  %v1330_v28 = vadd.f32 %v1329_v23, %v5528_v26  ;;  %v1485_v39 = vsel %vm406_vm0, %v1478_v20, 0.0 }
 0x5fb   : > { %v5644_v17 = vsel %vm406_vm0, %v1455_v14, 0.0  ;;  %v5649_v30 = vmul.f32 %v921_v24, %v5627_v1  ;;  %v5652_v59 = vmul.f32 %v1077_v41, %v5627_v1  ;;  %v1486_v21 = vadd.f32 %v1485_v39, %v5554_v37 }
 0x5fc   : > { %v5646_v25 = vpop.eup %4463  ;;  %v5656_v2 = vsel %vm406_vm0, %v1477_v47, 0.0  ;;  %v5663_v61 = vmul.f32 %v1148_v32, %v5145_v57  ;;  %v1307_v19 = vsel %vm406_vm0, %v1300_v52, 0.0  ;;  %v5666_v36 = vmax.f32 %v1330_v28, 1e-24  ;;  %v1127_v52 = vld [vmem:[#allocation2 + $0x9] sm:$0xff] }
 0x5fd   : > { %v957_v26 = vmul.f32 %v5646_v25, %v5595_v50  ;;  %v472_v14 = vpop.permute.xlu0 %471  ;;  %v1230_v16 = vadd.f32 %v1229_v34, %v5547_v18  ;;  %v1456_v47 = vmul.f32 %v1448_v55, %v4889_v8  ;;  %v5674_v41 = vmax.f32 %v1486_v21, 1e-24  ;;  %v1209_v28 = vld [vmem:[#allocation2 + $0xc9] sm:$0xff] }
 0x5fe   : > { %v5658_v45 = vpop.eup %4465  ;;  %498 = vst.msk [vmem:[#allocation2 + $0x58] sm:$0x3] %vm488_vm13, %v472_v14  ;;  %vm962_vm12 = vweird.f32 %v5595_v50  ;;  %4471 = vrsqrt.f32 %v5666_v36  ;;  %vm1118_vm10 = vweird.f32 %v5600_v51  ;;  %v1308_v55 = vadd.f32 %v1307_v19, %v5525_v22 }
 0x5ff   : > { %v5668_v24 = vpop.eup %4467  ;;  %v1113_v37 = vmul.f32 %v5658_v45, %v5600_v51  ;;  %v958_v15 = vmul.f32 %v5646_v25, %v957_v26  ;;  %548 = vst.msk [vmem:[#allocation2 + $0x58] sm:$0x3] %vm538_vm9, %v522_v4  ;;  %4473 = vrsqrt.f32 %v5674_v41  ;;  %vm1186_vm13 = vweird.f32 %v5602_v53 }
 0x600   : > { %v1181_v32 = vmul.f32 %v5668_v24, %v5602_v53  ;;  %v5683_v20 = vpop.eup %4469  ;;  %577 = vst.msk [vmem:[#allocation2 + $0x118] sm:$0x3] %vm567_vm3, %v472_v14  ;;  %v5695_v21 = vmul.f32 %v1230_v16, %v5145_v57  ;;  %v1463_v26 = vsel %vm406_vm0, %v1456_v47, 0.0  ;;  %v5699_v22 = vmul.f32 %v1127_v52, %v4860_v3 }
 0x601   : > { %v1114_v18 = vmul.f32 %v5658_v45, %v1113_v37  ;;  %v959_v23 = vmul.f32 0.5, %v958_v15  ;;  %v1263_v4 = vmul.f32 %v5683_v20, %v5620_v63  ;;  %v5702_v15 = vmul.f32 %v1127_v52, %v1127_v52 }
 0x602   : > { %v1182_v34 = vmul.f32 %v5668_v24, %v1181_v32  ;;  %v5705_v62 = vmul.f32 %v1308_v55, %v5145_v57  ;;  %v1239_v40 = vmul.f32 %v1209_v28, %v1209_v28  ;;  %vm963_vm3 = vweird.f32 %v5646_v25 }
 0x603   : > { %v1115_v39 = vmul.f32 0.5, %v1114_v18  ;;  %v960_v19 = vsub.f32 1.5, %v959_v23  ;;  %v1264_v37 = vmul.f32 %v5683_v20, %v1263_v4  ;;  %v1217_v18 = vmul.f32 %v1209_v28, %v4860_v3  ;;  %v1287_v28 = vld [vmem:[#allocation2 + $0xa] sm:$0xff]  ;;  %vm5730_vm15 = vmor %vm962_vm12, %vm963_vm3 }
 0x604   : > { %v1183_v14 = vmul.f32 0.5, %v1182_v34  ;;  %v5708_v16 = vpop.eup %4471  ;;  %vm1268_vm9 = vweird.f32 %v5620_v63  ;;  %v5713_v23 = vadd.f32 %v1463_v26, %v5551_v43  ;;  %vm1119_vm11 = vweird.f32 %v5658_v45 }
 0x605   : > { %v1116_v32 = vsub.f32 1.5, %v1115_v39  ;;  %v1265_v8 = vmul.f32 0.5, %v1264_v37  ;;  %v5715_v52 = vpop.eup %4473  ;;  %v961_v34 = vmul.f32 %v5646_v25, %v960_v19  ;;  %v1341_v4 = vmul.f32 %v5708_v16, %v5666_v36  ;;  %v1443_v39 = vld [vmem:[#allocation2 + $0xca] sm:$0xff]  ;;  %vm5744_vm2 = vmor %vm1118_vm10, %vm1119_vm11 }
 0x606   : > { %v1184_v47 = vsub.f32 1.5, %v1183_v14  ;;  %vm1187_vm14 = vweird.f32 %v5668_v24  ;;  %v1497_v43 = vmul.f32 %v5715_v52, %v5674_v41  ;;  %vm1269_vm1 = vweird.f32 %v5683_v20 }
 0x607   : > { %v1117_v55 = vmul.f32 %v5658_v45, %v1116_v32  ;;  %v1266_v37 = vsub.f32 1.5, %v1265_v8  ;;  %v1342_v19 = vmul.f32 %v5708_v16, %v1341_v4  ;;  %v5737_v32 = vsel %vm406_vm0, %v1217_v18, 0.0  ;;  %v1129_v4 = vld [vmem:[#allocation2 + $0x21] sm:$0xff]  ;;  %vm5765_vm4 = vmor %vm1186_vm13, %vm1187_vm14  ;;  %v1449_v12 = vld [vmem:[#allocation2 + $0x112] sm:$0xff] }
 0x608   : > { %v1185_v14 = vmul.f32 %v5668_v24, %v1184_v47  ;;  %v5740_v8 = vsel %vm406_vm0, %v1239_v40, 0.0  ;;  %v1131_v47 = vld [vmem:[#allocation2 + $0x39] sm:$0xff]  ;;  %v1498_v50 = vmul.f32 %v5715_v52, %v1497_v43  ;;  %v5750_v13 = vmul.f32 %v1287_v28, %v4860_v3  ;;  %vm5793_vm7 = vmor %vm1268_vm9, %vm1269_vm1 }
 0x609   : > { %v5752_v29 = vmul.f32 %v1287_v28, %v1287_v28  ;;  %v1451_v18 = vmul.f32 %v1443_v39, %v4860_v3  ;;  %v965_v40 = vsel %vm5730_vm15, %v5646_v25, %v961_v34  ;;  %v1121_v51 = vsel %vm5744_vm2, %v5658_v45, %v1117_v55  ;;  %v1291_v55 = vld [vmem:[#allocation2 + $0x3a] sm:$0xff] }
 0x60a   : > { %v1343_v28 = vmul.f32 0.5, %v1342_v19  ;;  %vm1346_vm5 = vweird.f32 %v5666_v36  ;;  %v1473_v3 = vmul.f32 %v1443_v39, %v1443_v39  ;;  %v1189_v25 = vsel %vm5765_vm4, %v5668_v24, %v1185_v14 }
 0x60b   : > { %v1267_v34 = vmul.f32 %v5683_v20, %v1266_v37  ;;  %v1499_v6 = vmul.f32 0.5, %v1498_v50  ;;  %v1139_v45 = vmul.f32 %v1131_v47, %v4882_v7  ;;  %vm1347_vm6 = vweird.f32 %v5708_v16  ;;  %v1211_v37 = vld [vmem:[#allocation2 + $0xe1] sm:$0xff] }
 0x60c   : > { %v1344_v26 = vsub.f32 1.5, %v1343_v28  ;;  %v1161_v53 = vmul.f32 %v1131_v47, %v1131_v47  ;;  %v1137_v31 = vmul.f32 %v1129_v4, %v4870_v5  ;;  %v5778_v19 = vmul.f32 %v5649_v30, %v965_v40  ;;  %v1289_v50 = vld [vmem:[#allocation2 + $0x22] sm:$0xff]  ;;  %vm5824_vm12 = vmor %vm1346_vm5, %vm1347_vm6 }
 0x60d   : > { %v5781_v39 = vmul.f32 %v5652_v59, %v1121_v51  ;;  %v5784_v24 = vsel %vm406_vm0, %v1451_v18, 0.0  ;;  %v1159_v14 = vmul.f32 %v1129_v4, %v1129_v4  ;;  %v5787_v43 = vmul.f32 %v5663_v61, %v1189_v25 }
 0x60e   : > { %v1487_v30 = vsel %vm406_vm0, %v1473_v3, 0.0  ;;  %v1299_v59 = vmul.f32 %v1291_v55, %v4882_v7  ;;  %v1321_v18 = vmul.f32 %v1291_v55, %v1291_v55  ;;  %v1271_v4 = vsel %vm5793_vm7, %v5683_v20, %v1267_v34  ;;  %v1445_v34 = vld [vmem:[#allocation2 + $0xe2] sm:$0xff] }
 0x60f   : > { %v5803_v61 = vmul.f32 %v5708_v16, %v1344_v26  ;;  %v1500_v40 = vsub.f32 1.5, %v1499_v6  ;;  %v1172_v51 = vsel %vm406_vm0, %v1159_v14, 0.0  ;;  %v1150_v63 = vsel %vm406_vm0, %v1137_v31, 0.0  ;;  %v1133_v14 = vld [vmem:[#allocation2 + $0x51] sm:$0xff] }
 0x610   : > { %v1171_v28 = vsel %vm406_vm0, %v5702_v15, 0.0  ;;  %v1241_v25 = vmul.f32 %v1211_v37, %v1211_v37  ;;  %v1297_v3 = vmul.f32 %v1289_v50, %v4870_v5  ;;  %v1152_v55 = vsel %vm406_vm0, %v1139_v45, 0.0  ;;  %s5838_s15 = spop %4344 }
 0x611   : > { %v1174_v7 = vsel %vm406_vm0, %v1161_v53, 0.0  ;;  %v1173_v47 = vadd.f32 %v1172_v51, %v1171_v28  ;;  %v1219_v20 = vmul.f32 %v1211_v37, %v4870_v5  ;;  %v5814_v6 = vmul.f32 %v5695_v21, %v1271_v4  ;;  %v1215_v51 = vld [vmem:[#allocation2 + $0x111] sm:$0xff]  ;;  %s2339_s22 = smul.f32 %s5838_s15, %s4951_s19 }
 0x612   : > { %v1312_v26 = vsel %vm406_vm0, %v1299_v59, 0.0  ;;  %v1334_v31 = vsel %vm406_vm0, %v1321_v18, 0.0  ;;  %v1149_v15 = vsel %vm406_vm0, %v5699_v22, 0.0  ;;  %v5829_v53 = vmul.f32 %v5715_v52, %v1500_v40  ;;  %s6630_s15 = smul.f32 %s5077_s3, %s6601_s18  ;;  %s6643_s3 = sld [smem:[#allocation8 + $0x2]] }
 0x613   : > { %v1151_v21 = vadd.f32 %v1150_v63, %v1149_v15  ;;  %v1254_v37 = vsel %vm406_vm0, %v1241_v25, 0.0  ;;  %v1319_v59 = vmul.f32 %v1289_v50, %v1289_v50  ;;  %v1349_v22 = vsel %vm5824_vm12, %v5708_v16, %v5803_v61  ;;  %s2340_s19 = sadd.f32 1e-05, %s2339_s22  ;;  %s4690_s18 = smov 32  }
 0x614   : > { %v1310_v18 = vsel %vm406_vm0, %v1297_v3, 0.0  ;;  %v1453_v36 = vmul.f32 %v1445_v34, %v4870_v5  ;;  %v1475_v4 = vmul.f32 %v1445_v34, %v1445_v34  ;;  %v1175_v40 = vadd.f32 %v1174_v7, %v1173_v47  ;;  %v1293_v34 = vld [vmem:[#allocation2 + $0x52] sm:$0xff]  ;;  %s6649_s22 = sld [smem:[#allocation7 + $0x3]] }
 0x615   : > { %v1232_v63 = vsel %vm406_vm0, %v1219_v20, 0.0  ;;  %v1332_v50 = vsel %vm406_vm0, %v1319_v59, 0.0  ;;  %v1163_v28 = vmul.f32 %v1133_v14, %v1133_v14  ;;  %v1255_v25 = vadd.f32 %v1254_v37, %v5740_v8 }
 0x616   : > { %v1309_v16 = vsel %vm406_vm0, %v5750_v13, 0.0  ;;  %v1488_v61 = vsel %vm406_vm0, %v1475_v4, 0.0  ;;  %v1141_v3 = vmul.f32 %v1133_v14, %v4896_v9  ;;  %v1331_v45 = vsel %vm406_vm0, %v5752_v29, 0.0 }
 0x617   : > { %v1311_v15 = vadd.f32 %v1310_v18, %v1309_v16  ;;  %v1176_v7 = vsel %vm406_vm0, %v1163_v28, 0.0  ;;  %v1223_v47 = vmul.f32 %v1215_v51, %v4896_v9  ;;  %v1233_v20 = vadd.f32 %v1232_v63, %v5737_v32 }
 0x618   : > { %v1333_v8 = vadd.f32 %v1332_v50, %v1331_v45  ;;  %v1466_v37 = vsel %vm406_vm0, %v1453_v36, 0.0  ;;  %v1177_v13 = vadd.f32 %v1176_v7, %v1175_v40  ;;  %v1153_v59 = vadd.f32 %v1152_v55, %v1151_v21 }
 0x619   : > { %v1489_v4 = vadd.f32 %v1488_v61, %v1487_v30  ;;  %v1245_v5 = vmul.f32 %v1215_v51, %v1215_v51  ;;  %v1301_v14 = vmul.f32 %v1293_v34, %v4896_v9  ;;  %v1154_v18 = vsel %vm406_vm0, %v1141_v3, 0.0 }
 0x61a   : > { %v5857_v16 = vmax.f32 %v1177_v13, 1e-24  ;;  %v1257_v29 = vadd.f32 %v5638_v42, %v1255_v25  ;;  %v1323_v28 = vmul.f32 %v1293_v34, %v1293_v34  ;;  %v1313_v11 = vadd.f32 %v1312_v26, %v1311_v15 }
 0x61b   : > { %v1467_v32 = vadd.f32 %v1466_v37, %v5784_v24  ;;  %v1236_v63 = vsel %vm406_vm0, %v1223_v47, 0.0  ;;  %v1258_v36 = vsel %vm406_vm0, %v1245_v5, 0.0  ;;  %v1335_v30 = vadd.f32 %v1334_v31, %v1333_v8  ;;  %v7388_v8 = vld [vmem:[#allocation28_spill] sm:$0xff] }
 0x61c   : > { %4475 = vrsqrt.f32 %v5857_v16  ;;  %v1235_v55 = vadd.f32 %v5635_v35, %v1233_v20  ;;  %v1259_v21 = vadd.f32 %v1258_v36, %v1257_v29  ;;  %v1155_v51 = vadd.f32 %v1154_v18, %v1153_v59  ;;  %v7385_v35 = vld [vmem:[#allocation23_spill] sm:$0xff]  ;;  %v7387_v20 = vld [vmem:[#allocation25_spill] sm:$0xff] }
 0x61d   : > { %v1314_v40 = vsel %vm406_vm0, %v1301_v14, 0.0  ;;  %v1336_v42 = vsel %vm406_vm0, %v1323_v28, 0.0  ;;  %v1479_v50 = vmul.f32 %v1449_v12, %v1449_v12  ;;  %v1491_v61 = vadd.f32 %v5656_v2, %v1489_v4 }
 0x61e   : > { %v1237_v26 = vadd.f32 %v1236_v63, %v1235_v55  ;;  %v5867_v25 = vmax.f32 %v1259_v21, 1e-24  ;;  %v1337_v24 = vadd.f32 %v1336_v42, %v1335_v30  ;;  %v1457_v5 = vmul.f32 %v1449_v12, %v4896_v9 }
 0x61f   : > { %v1492_v31 = vsel %vm406_vm0, %v1479_v50, 0.0  ;;  %v5872_v3 = vstv %s2340_s19  ;;  %v1045_v34 = vmul.f32 %v7385_v35, %v5627_v1  ;;  %v1315_v15 = vadd.f32 %v1314_v40, %v1313_v11  ;;  %s2291_s19 = smul.f32 %s6630_s15, %s4995_s17 }
 0x620   : > { %4477 = vrsqrt.f32 %v5867_v25  ;;  %v5877_v45 = vmax.f32 %v1337_v24, 1e-24  ;;  %v1493_v7 = vadd.f32 %v1492_v31, %v1491_v61  ;;  %v5880_v47 = vmul.f32 %v5705_v62, %v1349_v22 }
 0x621   : > { %v5883_v2 = vmul.f32 %v1155_v51, %v5627_v1  ;;  %4479 = vrsqrt.f32 %v5872_v3  ;;  %v7389_v37 = vsel %vm5237_vm8, %v7387_v20, %v7388_v8  ;;  %v5895_v11 = vadd.f32 %v5644_v17, %v1467_v32  ;;  %s2292_s23 = ssub.f32 %s6643_s3, %s2291_s19  ;;  %s4693_s19 = smov 48  }
 0x622   : > { %v5891_v13 = vmul.f32 %v1045_v34, %v7389_v37  ;;  %v4476_v59 = vpop.eup %4475  ;;  %4481 = vrsqrt.f32 %v5877_v45  ;;  %v5897_v62 = vmax.f32 %v1493_v7, 1e-24  ;;  %v1205_v22 = vmul.f32 %v5627_v1, %v5381_v49 }
 0x623   : > { %v1191_v4 = vmul.f32 %v4476_v59, %v5857_v16  ;;  %vm1196_vm10 = vweird.f32 %v5857_v16  ;;  %v5904_v14 = vmul.f32 %v1237_v26, %v5627_v1  ;;  %v1430_v18 = vmul.f32 %v5512_v58, %v5537_v33 }
 0x624   : > { %v5909_v29 = vmul.f32 %v1315_v15, %v5627_v1  ;;  %v5912_v17 = vsel %vm406_vm0, %v1457_v5, 0.0  ;;  %4483 = vrsqrt.f32 %v5897_v62  ;;  %v5916_v49 = vmul.f32 %v1205_v22, %v5627_v1 }
 0x625   : > { %v1192_v28 = vmul.f32 %v4476_v59, %v1191_v4  ;;  %vm1197_vm8 = vweird.f32 %v4476_v59  ;;  %v1431_v32 = vmul.f32 0.5, %v1430_v18  ;;  %vm1521_vm13 = vcmp.ge.f32.partialorder %v5778_v19, %v5891_v13 }
 0x626   : > { %v4478_v63 = vpop.eup %4477  ;;  %vm1434_vm3 = vweird.f32 %v5444_v0  ;;  %vm1435_vm9 = vweird.f32 %v5512_v58  ;;  %v5924_v33 = vmul.f32 %v5433_v48, %v5627_v1  ;;  %vm1533_vm11 = vcmp.ge.f32.partialorder %v5778_v19, %v5781_v39 }
 0x627   : > { %v5928_v36 = vpop.eup %4479  ;;  %v1193_v30 = vmul.f32 0.5, %v1192_v28  ;;  %v1273_v55 = vmul.f32 %v4478_v63, %v5867_v25  ;;  %vm1278_vm14 = vweird.f32 %v5867_v25  ;;  %v1432_v21 = vsub.f32 1.5, %v1431_v32 }
 0x628   : > { %vm1544_vm15 = vcmp.ge.f32.partialorder %v5459_v10, %v5787_v43  ;;  %v4482_v51 = vpop.eup %4481  ;;  %vm1279_vm1 = vweird.f32 %v4478_v63  ;;  %v2343_v48 = vmul.f32 %v5928_v36, %v5872_v3  ;;  %vm2348_vm2 = vweird.f32 %v5872_v3 }
 0x629   : > { %v5941_v40 = vsel %vm1521_vm13, 1.0, %v7370_v60  ;;  %vm1557_vm4 = vcmp.ge.f32.partialorder %v5778_v19, %v5916_v49  ;;  %vm1503_vm5 = vweird.f32 %v5715_v52  ;;  %v1194_v42 = vsub.f32 1.5, %v1193_v30  ;;  %vm1198_vm13 = vmor %vm1196_vm10, %vm1197_vm8 }
 0x62a   : > { %v1274_v50 = vmul.f32 %v4478_v63, %v1273_v55  ;;  %v1351_v26 = vmul.f32 %v4482_v51, %v5877_v45  ;;  %vm1356_vm6 = vweird.f32 %v5877_v45  ;;  %v5952_v24 = vsel %vm1533_vm11, 1.0, %v7370_v60  ;;  %v5954_v61 = vpop.eup %4483  ;;  %vm1280_vm8 = vmor %vm1278_vm14, %vm1279_vm1 }
 0x62b   : > { %v2344_v5 = vmul.f32 %v5928_v36, %v2343_v48  ;;  %vm2349_vm7 = vweird.f32 %v5928_v36  ;;  %v1433_v31 = vmul.f32 %v5512_v58, %v1432_v21  ;;  %v5963_v35 = vsel %vm1544_vm15, 1.0, %v7370_v60  ;;  %vm5975_vm15 = vmor %vm1434_vm3, %vm1435_vm9 }
 0x62c   : > { %vm1502_vm12 = vweird.f32 %v5674_v41  ;;  %v1195_v34 = vmul.f32 %v4476_v59, %v1194_v42  ;;  %v1275_v15 = vmul.f32 0.5, %v1274_v50  ;;  %v1352_v7 = vmul.f32 %v4482_v51, %v1351_v26  ;;  %vm2350_vm9 = vmor %vm2348_vm2, %vm2349_vm7  ;;  %v7400_v41 = vld [vmem:[#allocation34_spill] sm:$0xff] }
 0x62d   : > { %v1507_v12 = vmul.f32 %v5954_v61, %v5897_v62  ;;  %vm1357_vm11 = vweird.f32 %v4482_v51  ;;  %v2345_v20 = vmul.f32 0.5, %v2344_v5  ;;  %v1529_v37 = vsub.f32 1.0, %v5941_v40  ;;  %vm6027_vm2 = vmor %vm1502_vm12, %vm1503_vm5 }
 0x62e   : > { %v1541_v16 = vsub.f32 1.0, %v5952_v24  ;;  %v1199_v22 = vsel %vm1198_vm13, %v4476_v59, %v1195_v34  ;;  %v1276_v4 = vsub.f32 1.5, %v1275_v15  ;;  %v1353_v18 = vmul.f32 0.5, %v1352_v7  ;;  %vm1358_vm14 = vmor %vm1356_vm6, %vm1357_vm11 }
 0x62f   : > { %v1508_v28 = vmul.f32 %v5954_v61, %v1507_v12  ;;  %v5983_v32 = vmul.f32 %v5883_v2, %v1199_v22  ;;  %vm1513_vm10 = vweird.f32 %v5954_v61  ;;  %v2346_v30 = vsub.f32 1.5, %v2345_v20  ;;  %v7397_v22 = vld [vmem:[#allocation31_spill] sm:$0xff] }
 0x630   : > { %v1552_v0 = vsub.f32 1.0, %v5963_v35  ;;  %v1277_v55 = vmul.f32 %v4478_v63, %v1276_v4  ;;  %v1354_v21 = vsub.f32 1.5, %v1353_v18  ;;  %v1437_v42 = vsel %vm5975_vm15, %v5512_v58, %v1433_v31 }
 0x631   : > { %v1509_v48 = vmul.f32 0.5, %v1508_v28  ;;  %v2347_v59 = vmul.f32 %v5928_v36, %v2346_v30  ;;  %v1543_v2 = vadd.f32 %v1541_v16, %v1529_v37  ;;  %vm1545_vm3 = vcmp.ge.f32.partialorder %v5778_v19, %v5983_v32 }
 0x632   : > { %v6000_v50 = vsel %vm1557_vm4, 1.0, %v7370_v60  ;;  %v1281_v26 = vsel %vm1280_vm8, %v4478_v63, %v1277_v55  ;;  %v1355_v5 = vmul.f32 %v4482_v51, %v1354_v21  ;;  %v6007_v58 = vsel %vm1545_vm3, 1.0, %v7370_v60 }
 0x633   : > { %v1510_v34 = vsub.f32 1.5, %v1509_v48  ;;  %v6010_v25 = vmul.f32 %v5904_v14, %v1281_v26  ;;  %v2351_v31 = vsel %vm2350_vm9, %v5928_v36, %v2347_v59  ;;  %v1553_v63 = vsub.f32 1.0, %v6007_v58 }
 0x634   : > { %v1554_v15 = vadd.f32 %v1552_v0, %v5560_v44  ;;  %v1359_v7 = vsel %vm1358_vm14, %v4482_v51, %v1355_v5  ;;  %v1471_v3 = vadd.f32 %v5912_v17, %v5895_v11  ;;  %4346 = vpush %v2351_v31  ;;  %vm1568_vm1 = vcmp.ge.f32.partialorder %v5459_v10, %v5814_v6  ;;  %v7398_v0 = vld [vmem:[#allocation24_spill] sm:$0xff] }
 0x635   : > { %v1511_v12 = vmul.f32 %v5954_v61, %v1510_v34  ;;  %v6032_v44 = vmul.f32 %v5909_v29, %v1359_v7  ;;  %vm1512_vm4 = vweird.f32 %v5897_v62  ;;  %v1555_v11 = vadd.f32 %v1553_v63, %v1543_v2 }
 0x636   : > { %vm1569_vm6 = vcmp.ge.f32.partialorder %v5778_v19, %v6010_v25  ;;  %v1505_v14 = vsel %vm6027_vm2, %v5715_v52, %v5829_v53  ;;  %vm6043_vm5 = vmor %vm1512_vm4, %vm1513_vm10  ;;  %v6048_v29 = vmul.f32 %v5924_v33, %v1437_v42  ;;  %v1565_v62 = vsub.f32 1.0, %v6000_v50  ;;  %v7399_v42 = vld [vmem:[#allocation32_spill] sm:$0xff] }
 0x637   : > { %v6052_v17 = vsel %vm1568_vm1, 1.0, %v7370_v60  ;;  %v1515_v36 = vsel %vm6043_vm5, %v5954_v61, %v1511_v12  ;;  %v7396_v52 = vsub.f32 1.0, %v5533_v27  ;;  %v6060_v51 = vsel %vm1569_vm6, 1.0, %v7370_v60 }
 0x638   : > { %vm1580_vm7 = vcmp.ge.f32.partialorder %v5459_v10, %v5880_v47  ;;  %v1516_v33 = vmul.f32 %v5713_v23, %v5145_v57  ;;  %v1517_v20 = vmul.f32 %v1471_v3, %v5627_v1  ;;  %v1567_v8 = vadd.f32 %v1565_v62, %v1555_v11 }
 0x639   : > { %v1566_v53 = vadd.f32 %v7396_v52, %v1554_v15  ;;  %vm1581_vm12 = vcmp.ge.f32.partialorder %v5778_v19, %v6032_v44  ;;  %v1576_v61 = vsub.f32 1.0, %v6052_v17  ;;  %v1646_v37 = vadd.f32 %v5577_v54, %v5533_v27 }
 0x63a   : > { %v1682_v16 = vadd.f32 %v5586_v56, %v5540_v38  ;;  %vm1712_vm13 = vcmp.ge.f32.partialorder %v7397_v22, %v5486_v46  ;;  %v6076_v4 = vmul.f32 %v1516_v33, %v1505_v14  ;;  %v6078_v57 = vmul.f32 %v1517_v20, %v1515_v36 }
 0x63b   : > { %v1577_v1 = vsub.f32 1.0, %v6060_v51  ;;  %v6082_v23 = vsel %vm1580_vm7, 1.0, %v7370_v60  ;;  %v1578_v18 = vadd.f32 %v1576_v61, %v1566_v53  ;;  %v6085_v28 = vsel %vm1581_vm12, 1.0, %v7370_v60 }
 0x63c   : > { %vm1593_vm11 = vcmp.ge.f32.partialorder %v5778_v19, %v6048_v29  ;;  %vm1617_vm15 = vcmp.ge.f32.partialorder %v5891_v13, %v5781_v39  ;;  %vm1628_vm10 = vcmp.ge.f32.partialorder %v7398_v0, %v5787_v43  ;;  %v6095_v55 = vsel %vm1712_vm13, 1.0, %v7370_v60 }
 0x63d   : > { %v1579_v27 = vadd.f32 %v1577_v1, %v1567_v8  ;;  %v4171_v30 = vsel %vm1617_vm15, 1.0, %v7370_v60  ;;  %v1588_v21 = vsub.f32 1.0, %v6082_v23  ;;  %vm1629_vm8 = vcmp.ge.f32.partialorder %v5891_v13, %v5983_v32 }
 0x63e   : > { %v1625_v48 = vsub.f32 1.0, %v4171_v30  ;;  %vm1748_vm3 = vcmp.ge.f32.partialorder %v7397_v22, %v7399_v42  ;;  %v1589_v59 = vsub.f32 1.0, %v6085_v28  ;;  %v6104_v2 = vsel %vm1593_vm11, 1.0, %v7370_v60 }
 0x63f   : > { %v4172_v26 = vsel %vm1628_vm10, 1.0, %v7370_v60  ;;  %v4173_v5 = vsel %vm1629_vm8, 1.0, %v7370_v60  ;;  %v1590_v34 = vadd.f32 %v1588_v21, %v1578_v18  ;;  %vm1604_vm9 = vcmp.ge.f32.partialorder %v5459_v10, %v6076_v4 }
 0x640   : > { %vm1605_vm14 = vcmp.ge.f32.partialorder %v5778_v19, %v6078_v57  ;;  %vm1641_vm1 = vcmp.ge.f32.partialorder %v5891_v13, %v5916_v49  ;;  %v1591_v31 = vadd.f32 %v1589_v59, %v1579_v27  ;;  %v1636_v63 = vsub.f32 1.0, %v4172_v26 }
 0x641   : > { %v1637_v15 = vsub.f32 1.0, %v4173_v5  ;;  %v6115_v7 = vsel %vm1748_vm3, 1.0, %v7370_v60  ;;  %v1601_v3 = vsub.f32 1.0, %v6104_v2  ;;  %v1627_v12 = vadd.f32 %v5941_v40, %v1625_v48 }
 0x642   : > { %v1648_v45 = vsub.f32 1.0, %v5577_v54  ;;  %vm1652_vm2 = vcmp.ge.f32.partialorder %v7398_v0, %v5814_v6  ;;  %v6123_v11 = vsel %vm1604_vm9, 1.0, %v7370_v60  ;;  %v6126_v14 = vsel %vm1605_vm14, 1.0, %v7370_v60 }
 0x643   : > { %v1638_v62 = vadd.f32 %v1636_v63, %v7400_v41  ;;  %v4175_v36 = vsel %vm1641_vm1, 1.0, %v7370_v60  ;;  %v7401_v52 = vsub.f32 1.0, %v5540_v38  ;;  %v1639_v33 = vadd.f32 %v1637_v15, %v1627_v12 }
 0x644   : > { %v1649_v40 = vsub.f32 1.0, %v4175_v36  ;;  %vm1653_vm4 = vcmp.ge.f32.partialorder %v5891_v13, %v6010_v25  ;;  %v1603_v54 = vadd.f32 %v1601_v3, %v1591_v31  ;;  %v4176_v20 = vsel %vm1652_vm2, 1.0, %v7370_v60 }
 0x645   : > { %v1602_v53 = vadd.f32 %v7401_v52, %v1590_v34  ;;  %v6136_v8 = vadd.f32 %v6095_v55, %v1646_v37  ;;  %v6139_v61 = vadd.f32 %v6115_v7, %v1682_v16  ;;  %v1612_v1 = vsub.f32 1.0, %v6123_v11  ;;  %v7402_v52 = vld [vmem:[#allocation33_spill] sm:$0xff] }
 0x646   : > { %v1650_v18 = vadd.f32 %v1648_v45, %v1638_v62  ;;  %vm1664_vm6 = vcmp.ge.f32.partialorder %v7398_v0, %v5880_v47  ;;  %v1720_v38 = vsub.f32 1.0, %v6095_v55  ;;  %v1613_v27 = vsub.f32 1.0, %v6126_v14 }
 0x647   : > { %v4177_v21 = vsel %vm1653_vm4, 1.0, %v7370_v60  ;;  %vm1665_vm5 = vcmp.ge.f32.partialorder %v5891_v13, %v6032_v44  ;;  %v1756_v37 = vsub.f32 1.0, %v6115_v7  ;;  %v6150_v48 = vadd.f32 %v1612_v1, %v1602_v53 }
 0x648   : > { %v1623_v16 = vadd.f32 %v4171_v30, %v5952_v24  ;;  %v1651_v59 = vadd.f32 %v1649_v40, %v1639_v33  ;;  %v1660_v34 = vsub.f32 1.0, %v4176_v20  ;;  %v6153_v31 = vadd.f32 %v1613_v27, %v1603_v54 }
 0x649   : > { %v1634_v63 = vadd.f32 %v4172_v26, %v5963_v35  ;;  %v1635_v55 = vadd.f32 %v4173_v5, %v6007_v58  ;;  %v4178_v15 = vsel %vm1664_vm6, 1.0, %v7370_v60  ;;  %v1647_v3 = vadd.f32 %v4175_v36, %v6000_v50 }
 0x64a   : > { %v1661_v12 = vsub.f32 1.0, %v4177_v21  ;;  %v1662_v45 = vadd.f32 %v1660_v34, %v1650_v18  ;;  %v4179_v41 = vsel %vm1665_vm5, 1.0, %v7370_v60  ;;  %v1658_v62 = vadd.f32 %v4176_v20, %v6052_v17 }
 0x64b   : > { %vm1677_vm7 = vcmp.ge.f32.partialorder %v5891_v13, %v6048_v29  ;;  %v1684_v24 = vsub.f32 1.0, %v5586_v56  ;;  %vm1700_vm12 = vcmp.ge.f32.partialorder %v7397_v22, %v5787_v43  ;;  %v1672_v58 = vsub.f32 1.0, %v4178_v15 }
 0x64c   : > { %v1663_v35 = vadd.f32 %v1661_v12, %v1651_v59  ;;  %vm1701_vm13 = vcmp.ge.f32.partialorder %v5781_v39, %v5983_v32  ;;  %v4184_v50 = vsel %vm1700_vm12, 1.0, %v7370_v60  ;;  %v1673_v30 = vsub.f32 1.0, %v4179_v41 }
 0x64d   : > { %v4185_v26 = vsel %vm1701_vm13, 1.0, %v7370_v60  ;;  %v1708_v5 = vsub.f32 1.0, %v4184_v50  ;;  %vm1713_vm11 = vcmp.ge.f32.partialorder %v5781_v39, %v5916_v49  ;;  %v1674_v17 = vadd.f32 %v1672_v58, %v1662_v45 }
 0x64e   : > { %v4181_v56 = vsel %vm1677_vm7, 1.0, %v7370_v60  ;;  %vm1688_vm15 = vcmp.ge.f32.partialorder %v7398_v0, %v6076_v4  ;;  %v1709_v36 = vsub.f32 1.0, %v4185_v26  ;;  %vm1689_vm10 = vcmp.ge.f32.partialorder %v5891_v13, %v6078_v57 }
 0x64f   : > { %v1710_v53 = vadd.f32 %v1708_v5, %v7402_v52  ;;  %v4187_v33 = vsel %vm1713_vm11, 1.0, %v7370_v60  ;;  %vm1724_vm8 = vcmp.ge.f32.partialorder %v7397_v22, %v5814_v6  ;;  %v1675_v40 = vadd.f32 %v1673_v30, %v1663_v35 }
 0x650   : > { %v1685_v54 = vsub.f32 1.0, %v4181_v56  ;;  %v1711_v20 = vadd.f32 %v1709_v36, %v1623_v16  ;;  %vm1725_vm3 = vcmp.ge.f32.partialorder %v5781_v39, %v6010_v25  ;;  %v1659_v1 = vadd.f32 %v4177_v21, %v6060_v51 }
 0x651   : > { %v1670_v18 = vadd.f32 %v4178_v15, %v6082_v23  ;;  %v1671_v27 = vadd.f32 %v4179_v41, %v6085_v28  ;;  %v4182_v59 = vsel %vm1688_vm15, 1.0, %v7370_v60  ;;  %v1686_v34 = vadd.f32 %v1684_v24, %v1674_v17 }
 0x652   : > { %v4183_v12 = vsel %vm1689_vm10, 1.0, %v7370_v60  ;;  %v1721_v45 = vsub.f32 1.0, %v4187_v33  ;;  %v4188_v58 = vsel %vm1724_vm8, 1.0, %v7370_v60  ;;  %v1683_v35 = vadd.f32 %v4181_v56, %v6104_v2 }
 0x653   : > { %v1722_v16 = vadd.f32 %v1720_v38, %v1710_v53  ;;  %v4189_v30 = vsel %vm1725_vm3, 1.0, %v7370_v60  ;;  %vm1736_vm9 = vcmp.ge.f32.partialorder %v7397_v22, %v5880_v47  ;;  %v1687_v51 = vadd.f32 %v1685_v54, %v1675_v40 }
 0x654   : > { %v1696_v23 = vsub.f32 1.0, %v4182_v59  ;;  %v1723_v21 = vadd.f32 %v1721_v45, %v1711_v20  ;;  %vm1737_vm14 = vcmp.ge.f32.partialorder %v5781_v39, %v6032_v44  ;;  %v1694_v28 = vadd.f32 %v4182_v59, %v6123_v11 }
 0x655   : > { %v1695_v15 = vadd.f32 %v4183_v12, %v6126_v14  ;;  %v1697_v41 = vsub.f32 1.0, %v4183_v12  ;;  %v1732_v24 = vsub.f32 1.0, %v4188_v58  ;;  %v1706_v2 = vadd.f32 %v4184_v50, %v1634_v63 }
 0x656   : > { %v6197_v5 = vadd.f32 %v1696_v23, %v1686_v34  ;;  %v1733_v38 = vsub.f32 1.0, %v4189_v30  ;;  %v4190_v17 = vsel %vm1736_vm9, 1.0, %v7370_v60  ;;  %v4191_v36 = vsel %vm1737_vm14, 1.0, %v7370_v60 }
 0x657   : > { %v1734_v56 = vadd.f32 %v1732_v24, %v1722_v16  ;;  %vm1749_vm1 = vcmp.ge.f32.partialorder %v5781_v39, %v6048_v29  ;;  %vm1772_vm2 = vcmp.ge.f32.partialorder %v5787_v43, %v5486_v46  ;;  %v6205_v11 = vadd.f32 %v1697_v41, %v1687_v51 }
 0x658   : > { %v1707_v14 = vadd.f32 %v4185_v26, %v1635_v55  ;;  %v1719_v52 = vadd.f32 %v4187_v33, %v1647_v3  ;;  %v1735_v53 = vadd.f32 %v1733_v38, %v1723_v21  ;;  %v1730_v40 = vadd.f32 %v4188_v58, %v1658_v62 }
 0x659   : > { %v1744_v54 = vsub.f32 1.0, %v4190_v17  ;;  %vm1773_vm4 = vcmp.ge.f32.partialorder %v5983_v32, %v5916_v49  ;;  %v4196_v63 = vsel %vm1772_vm2, 1.0, %v7370_v60  ;;  %v1745_v50 = vsub.f32 1.0, %v4191_v36 }
 0x65a   : > { %v4193_v20 = vsel %vm1749_vm1, 1.0, %v7370_v60  ;;  %vm1760_vm6 = vcmp.ge.f32.partialorder %v7397_v22, %v6076_v4  ;;  %v4197_v59 = vsel %vm1773_vm4, 1.0, %v7370_v60  ;;  %vm1761_vm5 = vcmp.ge.f32.partialorder %v5781_v39, %v6078_v57 }
 0x65b   : > { %v1746_v34 = vadd.f32 %v1744_v54, %v1734_v56  ;;  %v1780_v55 = vsub.f32 1.0, %v4196_v63  ;;  %vm1784_vm7 = vcmp.ge.f32.partialorder %v5787_v43, %v5814_v6  ;;  %v1747_v3 = vadd.f32 %v1745_v50, %v1735_v53 }
 0x65c   : > { %v1781_v62 = vsub.f32 1.0, %v4197_v59  ;;  %vm1785_vm12 = vcmp.ge.f32.partialorder %v5983_v32, %v6010_v25  ;;  %v4198_v26 = vsel %vm1784_vm7, 1.0, %v7370_v60  ;;  %v1731_v33 = vadd.f32 %v4189_v30, %v1659_v1 }
 0x65d   : > { %v1782_v12 = vadd.f32 %v1780_v55, %v1706_v2  ;;  %v4199_v45 = vsel %vm1785_vm12, 1.0, %v7370_v60  ;;  %vm1796_vm13 = vcmp.ge.f32.partialorder %v5787_v43, %v5880_v47  ;;  %v1757_v58 = vsub.f32 1.0, %v4193_v20 }
 0x65e   : > { %v4194_v16 = vsel %vm1760_vm6, 1.0, %v7370_v60  ;;  %v1783_v51 = vadd.f32 %v1781_v62, %v1707_v14  ;;  %vm1797_vm11 = vcmp.ge.f32.partialorder %v5983_v32, %v6032_v44  ;;  %v1742_v23 = vadd.f32 %v4190_v17, %v1670_v18 }
 0x65f   : > { %v1758_v21 = vadd.f32 %v1756_v37, %v1746_v34  ;;  %v4195_v1 = vsel %vm1761_vm5, 1.0, %v7370_v60  ;;  %v1792_v30 = vsub.f32 1.0, %v4198_v26  ;;  %v1743_v41 = vadd.f32 %v4191_v36, %v1671_v27 }
 0x660   : > { %v1759_v24 = vadd.f32 %v1757_v58, %v1747_v3  ;;  %v1793_v2 = vsub.f32 1.0, %v4199_v45  ;;  %v4200_v38 = vsel %vm1796_vm13, 1.0, %v7370_v60  ;;  %v1768_v56 = vsub.f32 1.0, %v4194_v16 }
 0x661   : > { %v1794_v14 = vadd.f32 %v1792_v30, %v1782_v12  ;;  %v4201_v53 = vsel %vm1797_vm11, 1.0, %v7370_v60  ;;  %vm1808_vm15 = vcmp.ge.f32.partialorder %v5787_v43, %v7399_v42  ;;  %v1755_v7 = vadd.f32 %v4193_v20, %v1683_v35 }
 0x662   : > { %v1769_v37 = vsub.f32 1.0, %v4195_v1  ;;  %v1795_v18 = vadd.f32 %v1793_v2, %v1783_v51  ;;  %vm1809_vm10 = vcmp.ge.f32.partialorder %v5983_v32, %v6048_v29  ;;  %v1766_v17 = vadd.f32 %v4194_v16, %v1694_v28 }
 0x663   : > { %v1767_v54 = vadd.f32 %v4195_v1, %v1695_v15  ;;  %v6239_v27 = vadd.f32 %v1768_v56, %v1758_v21  ;;  %v1804_v36 = vsub.f32 1.0, %v4200_v38  ;;  %v1778_v34 = vadd.f32 %v4196_v63, %v6136_v8 }
 0x664   : > { %v6241_v50 = vadd.f32 %v1769_v37, %v1759_v24  ;;  %v1805_v55 = vsub.f32 1.0, %v4201_v53  ;;  %v4202_v3 = vsel %vm1808_vm15, 1.0, %v7370_v60  ;;  %v4203_v35 = vsel %vm1809_vm10, 1.0, %v7370_v60 }
 0x665   : > { %v1806_v62 = vadd.f32 %v1804_v36, %v1794_v14  ;;  %vm1820_vm8 = vcmp.ge.f32.partialorder %v5787_v43, %v6076_v4  ;;  %vm1832_vm3 = vcmp.ge.f32.partialorder %v5486_v46, %v5814_v6  ;;  %vm1821_vm9 = vcmp.ge.f32.partialorder %v5983_v32, %v6078_v57  ;;  %s4347_s17 = spop %4346 }
 0x666   : > { %v1807_v28 = vadd.f32 %v1805_v55, %v1795_v18  ;;  %vm1833_vm14 = vcmp.ge.f32.partialorder %v5916_v49, %v6010_v25  ;;  %v4206_v8 = vsel %vm1832_vm3, 1.0, %v7370_v60  ;;  %v1816_v15 = vsub.f32 1.0, %v4202_v3  ;;  %s6678_s21 = smul.f32 %s4347_s17, %s6649_s22  ;;  %s4694_s17 = smov 96  }
 0x667   : > { %v4207_v63 = vsel %vm1833_vm14, 1.0, %v7370_v60  ;;  %v1840_v20 = vsub.f32 1.0, %v4206_v8  ;;  %vm1844_vm1 = vcmp.ge.f32.partialorder %v5486_v46, %v5880_v47  ;;  %v1779_v12 = vadd.f32 %v4197_v59, %v1719_v52 }
 0x668   : > { %v1790_v58 = vadd.f32 %v4198_v26, %v1730_v40  ;;  %v1817_v16 = vsub.f32 1.0, %v4203_v35  ;;  %v4204_v51 = vsel %vm1820_vm8, 1.0, %v7370_v60  ;;  %v1791_v21 = vadd.f32 %v4199_v45, %v1731_v33  ;;  %s2356_s20 = smul.f32 %s6678_s21, %s5085_s28 }
 0x669   : > { %v1818_v1 = vadd.f32 %v1816_v15, %v1806_v62  ;;  %v4205_v30 = vsel %vm1821_vm9, 1.0, %v7370_v60  ;;  %vm1845_vm2 = vcmp.ge.f32.partialorder %v5916_v49, %v6032_v44  ;;  %v1802_v24 = vadd.f32 %v4200_v38, %v1742_v23 }
 0x66a   : > { %v1819_v2 = vadd.f32 %v1817_v16, %v1807_v28  ;;  %v1841_v56 = vsub.f32 1.0, %v4207_v63  ;;  %v4208_v14 = vsel %vm1844_vm1, 1.0, %v7370_v60  ;;  %v1803_v37 = vadd.f32 %v4201_v53, %v1743_v41 }
 0x66b   : > { %v1814_v18 = vadd.f32 %v4202_v3, %v6139_v61  ;;  %v1828_v52 = vsub.f32 1.0, %v4204_v51  ;;  %v1842_v40 = vadd.f32 %v1840_v20, %v1778_v34  ;;  %v1815_v59 = vadd.f32 %v4203_v35, %v1755_v7 }
 0x66c   : > { %v1826_v26 = vadd.f32 %v4204_v51, %v1766_v17  ;;  %v1829_v36 = vsub.f32 1.0, %v4205_v30  ;;  %v4209_v33 = vsel %vm1845_vm2, 1.0, %v7370_v60  ;;  %v1827_v45 = vadd.f32 %v4205_v30, %v1767_v54 }
 0x66d   : > { %v6265_v55 = vadd.f32 %v1828_v52, %v1818_v1  ;;  %v1852_v62 = vsub.f32 1.0, %v4208_v14  ;;  %vm1856_vm4 = vcmp.ge.f32.partialorder %v5486_v46, %v7399_v42  ;;  %v1838_v38 = vadd.f32 %v4206_v8, %v1790_v58 }
 0x66e   : > { %v6269_v23 = vadd.f32 %v1829_v36, %v1819_v2  ;;  %v1843_v41 = vadd.f32 %v1841_v56, %v1779_v12  ;;  %vm1857_vm6 = vcmp.ge.f32.partialorder %v5916_v49, %v6048_v29  ;;  %v1839_v61 = vadd.f32 %v4207_v63, %v1791_v21 }
 0x66f   : > { %v1853_v53 = vsub.f32 1.0, %v4209_v33  ;;  %v1854_v7 = vadd.f32 %v1852_v62, %v1842_v40  ;;  %vm1880_vm5 = vcmp.ge.f32.partialorder %v5814_v6, %v5880_v47  ;;  %v4210_v17 = vsel %vm1856_vm4, 1.0, %v7370_v60 }
 0x670   : > { %vm1868_vm7 = vcmp.ge.f32.partialorder %v5486_v46, %v6076_v4  ;;  %vm1881_vm12 = vcmp.ge.f32.partialorder %v6010_v25, %v6032_v44  ;;  %v4214_v54 = vsel %vm1880_vm5, 1.0, %v7370_v60  ;;  %v4211_v34 = vsel %vm1857_vm6, 1.0, %v7370_v60 }
 0x671   : > { %vm1869_vm13 = vcmp.ge.f32.partialorder %v5916_v49, %v6078_v57  ;;  %v4215_v3 = vsel %vm1881_vm12, 1.0, %v7370_v60  ;;  %vm1892_vm11 = vcmp.ge.f32.partialorder %v5814_v6, %v7399_v42  ;;  %v1855_v35 = vadd.f32 %v1853_v53, %v1843_v41 }
 0x672   : > { %v1864_v28 = vsub.f32 1.0, %v4210_v17  ;;  %v1865_v8 = vsub.f32 1.0, %v4211_v34  ;;  %vm1893_vm15 = vcmp.ge.f32.partialorder %v6010_v25, %v6048_v29  ;;  %v1850_v15 = vadd.f32 %v4208_v14, %v1802_v24 }
 0x673   : > { %v1851_v63 = vadd.f32 %v4209_v33, %v1803_v37  ;;  %v1862_v20 = vadd.f32 %v4210_v17, %v1814_v18  ;;  %v1888_v12 = vsub.f32 1.0, %v4214_v54  ;;  %v4212_v58 = vsel %vm1868_vm7, 1.0, %v7370_v60 }
 0x674   : > { %v4213_v16 = vsel %vm1869_vm13, 1.0, %v7370_v60  ;;  %v1889_v51 = vsub.f32 1.0, %v4215_v3  ;;  %v4216_v21 = vsel %vm1892_vm11, 1.0, %v7370_v60  ;;  %v1863_v1 = vadd.f32 %v4211_v34, %v1815_v59 }
 0x675   : > { %v1890_v30 = vadd.f32 %v1888_v12, %v1838_v38  ;;  %v4217_v2 = vsel %vm1893_vm15, 1.0, %v7370_v60  ;;  %vm1904_vm10 = vcmp.ge.f32.partialorder %v5814_v6, %v6076_v4  ;;  %v1866_v56 = vadd.f32 %v1864_v28, %v1854_v7 }
 0x676   : > { %v1867_v52 = vadd.f32 %v1865_v8, %v1855_v35  ;;  %v1891_v24 = vadd.f32 %v1889_v51, %v1839_v61  ;;  %vm1905_vm8 = vcmp.ge.f32.partialorder %v6010_v25, %v6078_v57  ;;  %v1874_v14 = vadd.f32 %v4212_v58, %v1826_v26 }
 0x677   : > { %v1876_v37 = vsub.f32 1.0, %v4212_v58  ;;  %v1877_v18 = vsub.f32 1.0, %v4213_v16  ;;  %v1900_v40 = vsub.f32 1.0, %v4216_v21  ;;  %v1901_v36 = vsub.f32 1.0, %v4217_v2 }
 0x678   : > { %v4218_v33 = vsel %vm1904_vm10, 1.0, %v7370_v60  ;;  %vm1916_vm3 = vcmp.ge.f32.partialorder %v5880_v47, %v7399_v42  ;;  %vm1917_vm9 = vcmp.ge.f32.partialorder %v6032_v44, %v6048_v29  ;;  %v1875_v59 = vadd.f32 %v4213_v16, %v1827_v45 }
 0x679   : > { %v1898_v62 = vadd.f32 %v4216_v21, %v1862_v20  ;;  %v1902_v38 = vadd.f32 %v1900_v40, %v1890_v30  ;;  %v4219_v41 = vsel %vm1905_vm8, 1.0, %v7370_v60  ;;  %v6303_v61 = vadd.f32 %v1876_v37, %v1866_v56 }
 0x67a   : > { %v6305_v26 = vadd.f32 %v1877_v18, %v1867_v52  ;;  %v1899_v53 = vadd.f32 %v4217_v2, %v1863_v1  ;;  %v1903_v7 = vadd.f32 %v1901_v36, %v1891_v24  ;;  %v1912_v17 = vsub.f32 1.0, %v4218_v33 }
 0x67b   : > { %v4220_v34 = vsel %vm1916_vm3, 1.0, %v7370_v60  ;;  %v4221_v35 = vsel %vm1917_vm9, 1.0, %v7370_v60  ;;  %vm1928_vm14 = vcmp.ge.f32.partialorder %v5880_v47, %v6076_v4  ;;  %v1886_v28 = vadd.f32 %v4214_v54, %v1850_v15  ;;  %v7403_v54 = vld [vmem:[#allocation26_spill] sm:$0xff] }
 0x67c   : > { %v1887_v45 = vadd.f32 %v4215_v3, %v1851_v63  ;;  %v1910_v8 = vadd.f32 %v4218_v33, %v1874_v14  ;;  %v1913_v20 = vsub.f32 1.0, %v4219_v41  ;;  %v1911_v12 = vadd.f32 %v4219_v41, %v1875_v59  ;;  %v7404_v3 = vld [vmem:[#allocation27_spill] sm:$0xff] }
 0x67d   : > { %v6311_v58 = vadd.f32 %v1912_v17, %v1902_v38  ;;  %v1922_v16 = vadd.f32 %v4220_v34, %v1898_v62  ;;  %vm1929_vm1 = vcmp.ge.f32.partialorder %v6032_v44, %v6078_v57  ;;  %v1924_v21 = vsub.f32 1.0, %v4220_v34 }
 0x67e   : > { %v6315_v51 = vadd.f32 %v1913_v20, %v1903_v7  ;;  %v1925_v1 = vsub.f32 1.0, %v4221_v35  ;;  %v4222_v30 = vsel %vm1928_vm14, 1.0, %v7370_v60  ;;  %v1923_v2 = vadd.f32 %v4221_v35, %v1899_v53 }
 0x67f   : > { %vm1940_vm2 = vcmp.ge.f32.partialorder %v7399_v42, %v6076_v4  ;;  %vm1956_vm4 = vcmp.lt.f32.partialorder %v6150_v48, %v7403_v54  ;;  %vm1957_vm6 = vcmp.lt.f32.partialorder %v6153_v31, %v7404_v3  ;;  %v1926_v15 = vadd.f32 %v1924_v21, %v1886_v28 }
 0x680   : > { %v1927_v63 = vadd.f32 %v1925_v1, %v1887_v45  ;;  %v4223_v56 = vsel %vm1929_vm1, 1.0, %v7370_v60  ;;  %v1934_v52 = vadd.f32 %v4222_v30, %v1910_v8  ;;  %v1936_v24 = vsub.f32 1.0, %v4222_v30 }
 0x681   : > { %v1964_v14 = vmul.f32 1.442695, %v7398_v0  ;;  %v1966_v37 = vmul.f32 1.442695, %v5891_v13  ;;  %vm1968_vm5 = vcmp.lt.f32.partialorder %v6197_v5, %v7403_v54  ;;  %v1935_v18 = vadd.f32 %v4223_v56, %v1911_v12 }
 0x682   : > { %vm1941_vm7 = vcmp.ge.f32.partialorder %v6048_v29, %v6078_v57  ;;  %v4224_v40 = vsel %vm1940_vm2, 1.0, %v7370_v60  ;;  %vm1969_vm12 = vcmp.lt.f32.partialorder %v6205_v11, %v7404_v3  ;;  %v1952_v36 = vmul.f32 1.442695, %v5459_v10 }
 0x683   : > { %4485 = vpow2.f32 %v1964_v14  ;;  %vm1980_vm13 = vcmp.lt.f32.partialorder %v6239_v27, %v7403_v54  ;;  %vm1981_vm11 = vcmp.lt.f32.partialorder %v6241_v50, %v7404_v3  ;;  %v1937_v13 = vsub.f32 1.0, %v4223_v56 }
 0x684   : > { %v6339_v0 = vadd.f32 %v1936_v24, %v1926_v15  ;;  %v1954_v33 = vmul.f32 1.442695, %v5778_v19  ;;  %4487 = vpow2.f32 %v1966_v37  ;;  %v4225_v59 = vsel %vm1941_vm7, 1.0, %v7370_v60 }
 0x685   : > { %v1976_v62 = vmul.f32 1.442695, %v7397_v22  ;;  %vm1992_vm15 = vcmp.lt.f32.partialorder %v6265_v55, %v7403_v54  ;;  %vm1993_vm10 = vcmp.lt.f32.partialorder %v6269_v23, %v7404_v3  ;;  %v6348_v10 = vadd.f32 %v1937_v13, %v1927_v63 }
 0x686   : > { %v6350_v38 = vadd.f32 %v4224_v40, %v1934_v52  ;;  %v6352_v41 = vadd.f32 %v4225_v59, %v1935_v18  ;;  %v1948_v53 = vsub.f32 1.0, %v4224_v40  ;;  %4489 = vpow2.f32 %v1952_v36 }
 0x687   : > { %v4228_v19 = vsel %vm1968_vm5, 1.0, %v7370_v60  ;;  %v1978_v22 = vmul.f32 1.442695, %v5781_v39  ;;  %vm2004_vm8 = vcmp.lt.f32.partialorder %v6303_v61, %v7403_v54  ;;  %4491 = vpow2.f32 %v1954_v33 }
 0x688   : > { %v4229_v7 = vsel %vm1969_vm12, 1.0, %v7370_v60  ;;  %v1988_v17 = vmul.f32 1.442695, %v5787_v43  ;;  %vm2005_vm3 = vcmp.lt.f32.partialorder %v6305_v26, %v7404_v3  ;;  %v1949_v35 = vsub.f32 1.0, %v4225_v59 }
 0x689   : > { %v4486_v34 = vpop.eup %4485  ;;  %v6368_v5 = vadd.f32 %v1948_v53, %v1922_v16  ;;  %4493 = vpow2.f32 %v1976_v62  ;;  %v1990_v39 = vmul.f32 1.442695, %v5983_v32  ;;  %v2000_v8 = vmul.f32 1.442695, %v5486_v46 }
 0x68a   : > { %v4488_v28 = vpop.eup %4487  ;;  %v6371_v45 = vmul.f32 %v4486_v34, %v4228_v19  ;;  %vm2016_vm9 = vcmp.lt.f32.partialorder %v6311_v58, %v7403_v54  ;;  %vm2017_vm14 = vcmp.lt.f32.partialorder %v6315_v51, %v7404_v3  ;;  %v6378_v43 = vadd.f32 %v1949_v35, %v1923_v2 }
 0x68b   : > { %v6380_v11 = vmul.f32 %v4488_v28, %v4229_v7  ;;  %4495 = vpow2.f32 %v1978_v22  ;;  %v2002_v20 = vmul.f32 1.442695, %v5916_v49  ;;  %v4226_v32 = vsel %vm1956_vm4, 1.0, %v7370_v60 }
 0x68c   : > { %v4227_v46 = vsel %vm1957_vm6, 1.0, %v7370_v60  ;;  %4497 = vpow2.f32 %v1988_v17  ;;  %v2012_v12 = vmul.f32 1.442695, %v5814_v6  ;;  %v4490_v16 = vpop.eup %4489  ;;  %v2014_v21 = vmul.f32 1.442695, %v6010_v25 }
 0x68d   : > { %4499 = vpow2.f32 %v1990_v39  ;;  %vm2028_vm1 = vcmp.lt.f32.partialorder %v6339_v0, %v7403_v54  ;;  %vm2029_vm2 = vcmp.lt.f32.partialorder %v6348_v10, %v7404_v3  ;;  %v4492_v49 = vpop.eup %4491  ;;  %v4230_v48 = vsel %vm1980_vm13, 1.0, %v7370_v60 }
 0x68e   : > { %v4231_v6 = vsel %vm1981_vm11, 1.0, %v7370_v60  ;;  %4501 = vpow2.f32 %v2000_v8  ;;  %v2024_v25 = vmul.f32 1.442695, %v5880_v47  ;;  %v6406_v1 = vmul.f32 %v4490_v16, %v4226_v32 }
 0x68f   : > { %v4494_v31 = vpop.eup %4493  ;;  %4503 = vpow2.f32 %v2002_v20  ;;  %v2026_v30 = vmul.f32 1.442695, %v6032_v44  ;;  %vm2040_vm4 = vcmp.lt.f32.partialorder %v6368_v5, %v7403_v54  ;;  %v6411_v2 = vmul.f32 %v4492_v49, %v4227_v46 }
 0x690   : > { %4505 = vpow2.f32 %v2012_v12  ;;  %v2036_v27 = vmul.f32 1.442695, %v7399_v42  ;;  %vm2041_vm6 = vcmp.lt.f32.partialorder %v6378_v43, %v7404_v3  ;;  %v4232_v47 = vsel %vm1992_vm15, 1.0, %v7370_v60 }
 0x691   : > { %v4496_v50 = vpop.eup %4495  ;;  %4507 = vpow2.f32 %v2014_v21  ;;  %v2038_v44 = vmul.f32 1.442695, %v6048_v29  ;;  %v4233_v63 = vsel %vm1993_vm10, 1.0, %v7370_v60  ;;  %vm2052_vm5 = vcmp.lt.f32.partialorder %v6350_v38, %v7403_v54 }
 0x692   : > { %v4498_v15 = vpop.eup %4497  ;;  %4509 = vpow2.f32 %v2024_v25  ;;  %vm2053_vm7 = vcmp.lt.f32.partialorder %v6352_v41, %v7404_v3  ;;  %v6429_v56 = vmul.f32 %v4494_v31, %v4230_v48  ;;  %v6431_v55 = vmul.f32 %v4496_v50, %v4231_v6 }
 0x693   : > { %v4500_v42 = vpop.eup %4499  ;;  %v4234_v29 = vsel %vm2004_vm8, 1.0, %v7370_v60  ;;  %4511 = vpow2.f32 %v2026_v30  ;;  %v2048_v52 = vmul.f32 1.442695, %v6076_v4  ;;  %v2060_v24 = vadd.f32 %v6371_v45, %v6406_v1 }
 0x694   : > { %v4502_v23 = vpop.eup %4501  ;;  %4513 = vpow2.f32 %v2036_v27  ;;  %v2061_v14 = vadd.f32 %v6380_v11, %v6411_v2  ;;  %v4235_v18 = vsel %vm2005_vm3, 1.0, %v7370_v60  ;;  %v2050_v61 = vmul.f32 1.442695, %v6078_v57 }
 0x695   : > { %v4504_v37 = vpop.eup %4503  ;;  %4515 = vpow2.f32 %v2038_v44  ;;  %v6447_v36 = vmul.f32 %v4498_v15, %v4232_v47  ;;  %v6449_v13 = vmul.f32 %v4500_v42, %v4233_v63  ;;  %v2062_v4 = vadd.f32 %v2060_v24, %v6429_v56  ;;  %v7405_v15 = vld [vmem:[#allocation16_spill] sm:$0xff]  ;;  %v7407_v24 = vld [vmem:[#allocation18_spill] sm:$0xff] }
 0x696   : > { %v4506_v40 = vpop.eup %4505  ;;  %v2063_v33 = vadd.f32 %v2061_v14, %v6431_v55  ;;  %v6453_v62 = vmul.f32 %v4502_v23, %v4234_v29  ;;  %v4236_v26 = vsel %vm2016_vm9, 1.0, %v7370_v60  ;;  %v4237_v57 = vsel %vm2017_vm14, 1.0, %v7370_v60  ;;  %v7406_v29 = vld [vmem:[#allocation17_spill] sm:$0xff] }
 0x697   : > { %v4508_v59 = vpop.eup %4507  ;;  %v2011_v19 = vmul.f32 %v4504_v37, %v4235_v18  ;;  %4517 = vpow2.f32 %v2048_v52  ;;  %v2064_v22 = vadd.f32 %v2062_v4, %v6447_v36  ;;  %v4238_v58 = vsel %vm2028_vm1, 1.0, %v7370_v60  ;;  %v7408_v37 = vld [vmem:[#allocation19_spill] sm:$0xff] }
 0x698   : > { %v4510_v53 = vpop.eup %4509  ;;  %v2065_v7 = vadd.f32 %v2063_v33, %v6449_v13  ;;  %v4239_v51 = vsel %vm2029_vm2, 1.0, %v7370_v60  ;;  %4519 = vpow2.f32 %v2050_v61  ;;  %v2022_v35 = vmul.f32 %v4506_v40, %v4236_v26 }
 0x699   : > { %v4512_v17 = vpop.eup %4511  ;;  %v2023_v39 = vmul.f32 %v4508_v59, %v4237_v57  ;;  %v2066_v28 = vadd.f32 %v2064_v22, %v6453_v62  ;;  %v4240_v0 = vsel %vm2040_vm4, 1.0, %v7370_v60  ;;  %v4241_v10 = vsel %vm2041_vm6, 1.0, %v7370_v60 }
 0x69a   : > { %v4514_v34 = vpop.eup %4513  ;;  %v2067_v8 = vadd.f32 %v2065_v7, %v2011_v19  ;;  %v2034_v32 = vmul.f32 %v4510_v53, %v4238_v58  ;;  %v2035_v46 = vmul.f32 %v4512_v17, %v4239_v51  ;;  %v4242_v21 = vsel %vm2052_vm5, 1.0, %v7370_v60  ;;  %v2367_v7 = vld [vmem:[#allocation2 + $0x68] sm:$0xff] }
 0x69b   : > { %v4516_v20 = vpop.eup %4515  ;;  %v2068_v12 = vadd.f32 %v2066_v28, %v2022_v35  ;;  %v4243_v5 = vsel %vm2053_vm7, 1.0, %v7370_v60  ;;  %v2046_v48 = vmul.f32 %v4514_v34, %v4240_v0  ;;  %v2408_v60 = vstv %s2159_s12  ;;  %v4525_v34 = vld [vmem:[#allocation2] sm:$0xff]  ;;  %v2379_v0 = vld [vmem:[#allocation2 + $0x9] sm:$0xff]  ;;  %s6680_s12 = sld [smem:[#allocation8 + $0x3]] }
 0x69c   : > { %v2069_v16 = vadd.f32 %v2067_v8, %v2023_v39  ;;  %v2047_v43 = vmul.f32 %v4516_v20, %v4241_v10  ;;  %v2471_v41 = vstv %s6496_s25  ;;  %v6502_v63 = vmul.f32 %v2408_v60, %v7405_v15  ;;  %v2396_v10 = vld [vmem:[#allocation2 + $0x62] sm:$0xff] }
 0x69d   : > { %v4518_v49 = vpop.eup %4517  ;;  %v2070_v6 = vadd.f32 %v2068_v12, %v2034_v32  ;;  %v6505_v23 = vmul.f32 %v2408_v60, %v7406_v29  ;;  %v2413_v52 = vstv %s6498_s27  ;;  %v6509_v14 = vmul.f32 %v2471_v41, %v7407_v24 }
 0x69e   : > { %v2071_v25 = vadd.f32 %v2069_v16, %v2035_v46  ;;  %v4520_v31 = vpop.eup %4519  ;;  %v2058_v30 = vmul.f32 %v4518_v49, %v4242_v21  ;;  %v6512_v18 = vmul.f32 %v2471_v41, %v7408_v37  ;;  %v4528_v16 = vld [vmem:[#allocation2 + $0xc8] sm:$0xff]  ;;  %vm2628_vm12 = vcmask 1041409  }
 0x69f   : > { %v2059_v27 = vmul.f32 %v4520_v31, %v4243_v5  ;;  %v2072_v50 = vadd.f32 %v2070_v6, %v2046_v48  ;;  %v4529_v5 = vld [vmem:[#allocation2 + $0x1] sm:$0xff]  ;;  %v2385_v6 = vld [vmem:[#allocation2 + $0xc9] sm:$0xff]  ;;  %vm2634_vm13 = vcmask 1043459   ;;  %vm2640_vm11 = vcmask 1043456  }
 0x6a0   : > { %v2073_v54 = vadd.f32 %v2071_v25, %v2047_v43  ;;  %v2403_v41 = vld [vmem:[#allocation2 + $0xca] sm:$0xff]  ;;  %vm2636_vm15 = vcmask 31744   ;;  %vm2669_vm10 = vcmask 64512   ;;  %vm2711_vm8 = vcmask 1045509  }
 0x6a1   : > { %v2074_v38 = vadd.f32 %v2072_v50, %v2058_v30  ;;  %v2390_v50 = vld [vmem:[#allocation2 + $0x2] sm:$0xff]  ;;  %s2357_s28 = ssub.f32 %s6680_s12, %s2356_s20  ;;  %vm2715_vm3 = vcmask 1046534   ;;  %vm2719_vm9 = vcmask 1047559   ;;  %vm2722_vm14 = vcmask 125952  }
 0x6a2   : > { %v2075_v47 = vadd.f32 %v2073_v54, %v2059_v27  ;;  %v2391_v54 = vld [vmem:[#allocation2 + $0xa] sm:$0xff]  ;;  %vm2809_vm1 = vcmask 257152   ;;  %vm2896_vm2 = vcmask 388352   ;;  %vm2983_vm4 = vcmask 519552  }
 0x6a3   : > { %v2076_v44 = vadd.f32 1e-08, %v2074_v38  ;;  %v2402_v38 = vld [vmem:[#allocation2 + $0xc2] sm:$0xff]  ;;  %vm3070_vm6 = vcmask 650752   ;;  %vm3157_vm5 = vcmask 781952   ;;  %vm3244_vm7 = vcmask 913152  }
 0x6a4   : > { %v2077_v3 = vadd.f32 1e-08, %v2075_v47 }
 0x6a5   : > { %4521 = vrcp.f32 %v2076_v44 }
 0x6a6   : > { %4523 = vrcp.f32 %v2077_v3 }
 0x6ab   : > { %v4522_v42 = vpop.eup %4521 }
 0x6ac   : > { %v4524_v61 = vpop.eup %4523  ;;  %v6515_v40 = vmul.f32 %v4522_v42, %v6406_v1  ;;  %v6518_v4 = vmul.f32 %v4522_v42, %v6371_v45  ;;  %v6521_v33 = vmul.f32 %v4522_v42, %v6429_v56  ;;  %v6524_v59 = vmul.f32 %v4522_v42, %v6447_v36 }
 0x6ad   : > { %v6527_v26 = vmul.f32 %v4524_v61, %v6411_v2  ;;  %v6530_v57 = vmul.f32 %v4524_v61, %v6380_v11  ;;  %v6533_v53 = vmul.f32 %v4524_v61, %v6431_v55  ;;  %v6536_v1 = vmul.f32 %v4524_v61, %v6449_v13  ;;  %v2366_v2 = vld [vmem:[#allocation2 + $0x60] sm:$0xff] }
 0x6ae   : > { %v6539_v45 = vmul.f32 %v4522_v42, %v6453_v62  ;;  %v6541_v56 = vmul.f32 %v4524_v61, %v2011_v19  ;;  %v6543_v22 = vmul.f32 %v4522_v42, %v2022_v35  ;;  %v6545_v36 = vmul.f32 %v4524_v61, %v2023_v39  ;;  %v4526_v39 = vld [vmem:[#allocation2 + $0x8] sm:$0xff] }
 0x6af   : > { %v6547_v17 = vmul.f32 %v4522_v42, %v2034_v32  ;;  %v6549_v11 = vmul.f32 %v4524_v61, %v2035_v46  ;;  %v6551_v55 = vmul.f32 %v4522_v42, %v2046_v48  ;;  %v6553_v58 = vmul.f32 %v4524_v61, %v2047_v43  ;;  %v2397_v32 = vld [vmem:[#allocation2 + $0x6a] sm:$0xff]  ;;  %v4527_v46 = vld [vmem:[#allocation2 + $0xc0] sm:$0xff] }
 0x6b0   : > { %v6555_v13 = vmul.f32 %v4522_v42, %v2058_v30  ;;  %v6557_v62 = vmul.f32 %v4524_v61, %v2059_v27  ;;  %v2358_v19 = vmul.f32 %v6539_v45, %v7405_v15  ;;  %v2359_v51 = vmul.f32 %v6541_v56, %v7406_v29  ;;  %v2384_v43 = vld [vmem:[#allocation2 + $0xc1] sm:$0xff]  ;;  %v2428_v15 = vld [vmem:[#allocation2 + $0x78] sm:$0xff] }
 0x6b1   : > { %v2362_v35 = vmul.f32 %v4525_v34, %v6515_v40  ;;  %v2363_v28 = vmul.f32 %v4526_v39, %v6527_v26  ;;  %v2368_v8 = vmul.f32 %v2366_v2, %v6518_v4  ;;  %v2369_v20 = vmul.f32 %v2367_v7, %v6530_v57  ;;  %v2429_v42 = vld [vmem:[#allocation2 + $0x80] sm:$0xff]  ;;  %v4530_v34 = vld [vmem:[#allocation2 + $0x18] sm:$0xff] }
 0x6b2   : > { %v2374_v12 = vmul.f32 %v4527_v46, %v6521_v33  ;;  %v2375_v21 = vmul.f32 %v4528_v16, %v6533_v53  ;;  %v2380_v49 = vmul.f32 %v4529_v5, %v6524_v59  ;;  %v2381_v48 = vmul.f32 %v2379_v0, %v6536_v1  ;;  %v4531_v39 = vld [vmem:[#allocation2 + $0x20] sm:$0xff]  ;;  %v4532_v16 = vld [vmem:[#allocation2 + $0xd8] sm:$0xff] }
 0x6b3   : > { %v2364_v25 = vadd.f32 %v2362_v35, %v2358_v19  ;;  %v2365_v31 = vadd.f32 %v2363_v28, %v2359_v51  ;;  %v2386_v30 = vmul.f32 %v2384_v43, %v6543_v22  ;;  %v2387_v27 = vmul.f32 %v2385_v6, %v6545_v36  ;;  %v4533_v5 = vld [vmem:[#allocation2 + $0xe0] sm:$0xff] }
 0x6b4   : > { %v2392_v47 = vmul.f32 %v2390_v50, %v6547_v17  ;;  %v2393_v44 = vmul.f32 %v2391_v54, %v6549_v11  ;;  %v6576_v3 = vmul.f32 %v2396_v10, %v6551_v55  ;;  %v6579_v60 = vmul.f32 %v2397_v32, %v6553_v58  ;;  %v2447_v43 = vld [vmem:[#allocation2 + $0xd9] sm:$0xff]  ;;  %v2448_v54 = vld [vmem:[#allocation2 + $0xe1] sm:$0xff] }
 0x6b5   : > { %v2370_v29 = vadd.f32 %v2368_v8, %v2364_v25  ;;  %v2371_v61 = vadd.f32 %v2369_v20, %v2365_v31  ;;  %v6582_v2 = vmul.f32 %v2402_v38, %v6555_v13  ;;  %v6585_v7 = vmul.f32 %v2403_v41, %v6557_v62  ;;  %v4534_v31 = vld [vmem:[#allocation2 + $0x19] sm:$0xff]  ;;  %v2460_v41 = vld [vmem:[#allocation2 + $0x82] sm:$0xff] }
 0x6b6   : > { %v2418_v19 = vmul.f32 %v6539_v45, %v7407_v24  ;;  %v2419_v51 = vmul.f32 %v6541_v56, %v7408_v37  ;;  %v2423_v35 = vmul.f32 %v4530_v34, %v6515_v40  ;;  %v2424_v28 = vmul.f32 %v4531_v39, %v6527_v26  ;;  %v2459_v38 = vld [vmem:[#allocation2 + $0x7a] sm:$0xff] }
 0x6b7   : > { %v2376_v8 = vadd.f32 %v2374_v12, %v2370_v29  ;;  %v2377_v20 = vadd.f32 %v2375_v21, %v2371_v61  ;;  %v2430_v0 = vmul.f32 %v2428_v15, %v6518_v4  ;;  %v2431_v10 = vmul.f32 %v2429_v42, %v6530_v57  ;;  %v4535_v21 = vld [vmem:[#allocation2 + $0x21] sm:$0xff] }
 0x6b8   : > { %v2425_v32 = vadd.f32 %v2423_v35, %v2418_v19  ;;  %v2426_v46 = vadd.f32 %v2424_v28, %v2419_v51  ;;  %v2437_v24 = vmul.f32 %v4532_v16, %v6521_v33  ;;  %v2438_v37 = vmul.f32 %v4533_v5, %v6533_v53  ;;  %v2453_v19 = vld [vmem:[#allocation2 + $0x1a] sm:$0xff]  ;;  %v2492_v5 = vld [vmem:[#allocation2 + $0x90] sm:$0xff] }
 0x6b9   : > { %v2382_v6 = vadd.f32 %v2380_v49, %v2376_v8  ;;  %v2383_v25 = vadd.f32 %v2381_v48, %v2377_v20  ;;  %v2443_v12 = vmul.f32 %v4534_v31, %v6524_v59  ;;  %v2444_v50 = vmul.f32 %v4535_v21, %v6536_v1  ;;  %v2454_v49 = vld [vmem:[#allocation2 + $0x22] sm:$0xff]  ;;  %v4536_v21 = vld [vmem:[#allocation2 + $0x30] sm:$0xff] }
 0x6ba   : > { %v2432_v15 = vadd.f32 %v2430_v0, %v2425_v32  ;;  %v2433_v42 = vadd.f32 %v2431_v10, %v2426_v46  ;;  %v2449_v29 = vmul.f32 %v2447_v43, %v6543_v22  ;;  %v2450_v61 = vmul.f32 %v2448_v54, %v6545_v36  ;;  %v2465_v0 = vld [vmem:[#allocation2 + $0xda] sm:$0xff]  ;;  %v2466_v10 = vld [vmem:[#allocation2 + $0xe2] sm:$0xff] }
 0x6bb   : > { %v2388_v48 = vadd.f32 %v2386_v30, %v2382_v6  ;;  %v2389_v51 = vadd.f32 %v2387_v27, %v2383_v25  ;;  %v2455_v34 = vmul.f32 %v2453_v19, %v6547_v17  ;;  %v2456_v35 = vmul.f32 %v2454_v49, %v6549_v11  ;;  %v2493_v27 = vld [vmem:[#allocation2 + $0x98] sm:$0xff]  ;;  %v7409_v25 = vld [vmem:[#allocation20_spill] sm:$0xff] }
 0x6bc   : > { %v2439_v39 = vadd.f32 %v2437_v24, %v2432_v15  ;;  %v2440_v28 = vadd.f32 %v2438_v37, %v2433_v42  ;;  %v2461_v8 = vmul.f32 %v2459_v38, %v6551_v55  ;;  %v2462_v20 = vmul.f32 %v2460_v41, %v6553_v58  ;;  %v7410_v37 = vld [vmem:[#allocation21_spill] sm:$0xff]  ;;  %v4537_v38 = vld [vmem:[#allocation2 + $0x38] sm:$0xff] }
 0x6bd   : > { %v2394_v32 = vadd.f32 %v2392_v47, %v2388_v48  ;;  %v2395_v46 = vadd.f32 %v2393_v44, %v2389_v51  ;;  %v2467_v16 = vmul.f32 %v2465_v0, %v6555_v13  ;;  %v2468_v30 = vmul.f32 %v2466_v10, %v6557_v62 }
 0x6be   : > { %v2445_v43 = vadd.f32 %v2443_v12, %v2439_v39  ;;  %v2446_v6 = vadd.f32 %v2444_v50, %v2440_v28  ;;  %v2482_v24 = vmul.f32 %v6539_v45, %v7409_v25  ;;  %v2483_v31 = vmul.f32 %v6541_v56, %v7410_v37  ;;  %v4539_v39 = vld [vmem:[#allocation2 + $0xf8] sm:$0xff] }
 0x6bf   : > { %v2400_v47 = vadd.f32 %v6576_v3, %v2394_v32  ;;  %v2401_v44 = vadd.f32 %v6579_v60, %v2395_v46  ;;  %v2487_v54 = vmul.f32 %v4536_v21, %v6515_v40  ;;  %v2488_v12 = vmul.f32 %v4537_v38, %v6527_v26  ;;  %v2506_v32 = vld [vmem:[#allocation2 + $0x39] sm:$0xff] }
 0x6c0   : > { %v2451_v50 = vadd.f32 %v2449_v29, %v2445_v43  ;;  %v2452_v41 = vadd.f32 %v2450_v61, %v2446_v6  ;;  %v2494_v15 = vmul.f32 %v2492_v5, %v6518_v4  ;;  %v2495_v42 = vmul.f32 %v2493_v27, %v6530_v57  ;;  %v4538_v29 = vld [vmem:[#allocation2 + $0xf0] sm:$0xff] }
 0x6c1   : > { %v2406_v19 = vadd.f32 %v6582_v2, %v2400_v47  ;;  %v2407_v49 = vadd.f32 %v6585_v7, %v2401_v44  ;;  %v2489_v48 = vadd.f32 %v2487_v54, %v2482_v24  ;;  %v2490_v3 = vadd.f32 %v2488_v12, %v2483_v31  ;;  %v4540_v5 = vld [vmem:[#allocation2 + $0x31] sm:$0xff]  ;;  %v2524_v54 = vld [vmem:[#allocation2 + $0x9a] sm:$0xff] }
 0x6c2   : > { %v2457_v60 = vadd.f32 %v2455_v34, %v2451_v50  ;;  %v2458_v51 = vadd.f32 %v2456_v35, %v2452_v41  ;;  %v2501_v61 = vmul.f32 %v4538_v29, %v6521_v33  ;;  %v2502_v28 = vmul.f32 %v4539_v39, %v6533_v53  ;;  %v2517_v41 = vld [vmem:[#allocation2 + $0x32] sm:$0xff] }
 0x6c3   : > { %v2411_v2 = vadd.f32 %v6502_v63, %v2406_v19  ;;  %v2412_v7 = vadd.f32 %v6505_v23, %v2407_v49  ;;  %v2496_v0 = vadd.f32 %v2494_v15, %v2489_v48  ;;  %v2497_v10 = vadd.f32 %v2495_v42, %v2490_v3  ;;  %v2511_v63 = vld [vmem:[#allocation2 + $0xf1] sm:$0xff]  ;;  %v2518_v15 = vld [vmem:[#allocation2 + $0x3a] sm:$0xff] }
 0x6c4   : > { %v2463_v46 = vadd.f32 %v2461_v8, %v2457_v60  ;;  %v2464_v34 = vadd.f32 %v2462_v20, %v2458_v51  ;;  %v2507_v35 = vmul.f32 %v4540_v5, %v6524_v59  ;;  %v2508_v27 = vmul.f32 %v2506_v32, %v6536_v1  ;;  %v2512_v8 = vld [vmem:[#allocation2 + $0xf9] sm:$0xff]  ;;  %v2556_v51 = vld [vmem:[#allocation2 + $0xa8] sm:$0xff]  ;;  %v2557_v29 = vld [vmem:[#allocation2 + $0xb0] sm:$0xff] }
 0x6c5   : > { %v2414_v43 = vadd.f32 %v2413_v52, %v2411_v2  ;;  %v2415_v6 = vadd.f32 %v2413_v52, %v2412_v7  ;;  %v2503_v24 = vadd.f32 %v2501_v61, %v2496_v0  ;;  %v2504_v31 = vadd.f32 %v2502_v28, %v2497_v10  ;;  %v2523_v20 = vld [vmem:[#allocation2 + $0x92] sm:$0xff]  ;;  %v2549_v2 = vld [vmem:[#allocation2 + $0x48] sm:$0xff] }
 0x6c6   : > { %v2476_v47 = vstv %s6626_s26  ;;  %v2535_v23 = vstv %s6630_s15  ;;  %v2469_v44 = vadd.f32 %v2467_v16, %v2463_v46  ;;  %v2470_v21 = vadd.f32 %v2468_v30, %v2464_v34  ;;  %v7411_v28 = vld [vmem:[#allocation22_spill] sm:$0xff]  ;;  %s4301_s26 = sshll.u32 %s7418_s13, 3  ;;  %s4692_s13 = smov 64  }
 0x6c7   : > { %2416 = vst.msk [vmem:[#allocation3] sm:$0xff] %vm406_vm0, %v2414_v43  ;;  %v2509_v38 = vadd.f32 %v2507_v35, %v2503_v24  ;;  %v2510_v12 = vadd.f32 %v2508_v27, %v2504_v31  ;;  %v2513_v50 = vmul.f32 %v2511_v63, %v6543_v22  ;;  %v2514_v52 = vmul.f32 %v2512_v8, %v6545_v36  ;;  %v2550_v7 = vld [vmem:[#allocation2 + $0x50] sm:$0xff]  ;;  %v2530_v46 = vld [vmem:[#allocation2 + $0xfa] sm:$0xff]  ;;  %v2563_v31 = vld [vmem:[#allocation2 + $0x108] sm:$0xff]  ;;  %s6967_s22 = scalar_lea.vmem %s7309_s9, %s4301_s26 }
 0x6c8   : > { %2417 = vst.msk [vmem:[#allocation3 + $0x8] sm:$0xff] %vm406_vm0, %v2415_v6  ;;  %v2474_v16 = vadd.f32 %v6509_v14, %v2469_v44  ;;  %v2475_v30 = vadd.f32 %v6512_v18, %v2470_v21  ;;  %v2519_v42 = vmul.f32 %v2517_v41, %v6547_v17  ;;  %v2520_v19 = vmul.f32 %v2518_v15, %v6549_v11  ;;  %v2529_v32 = vld [vmem:[#allocation2 + $0xf2] sm:$0xff] }
 0x6c9   : > { %v2515_v49 = vadd.f32 %v2513_v50, %v2509_v38  ;;  %v2516_v48 = vadd.f32 %v2514_v52, %v2510_v12  ;;  %v2525_v3 = vmul.f32 %v2523_v20, %v6551_v55  ;;  %v2526_v60 = vmul.f32 %v2524_v54, %v6553_v58  ;;  %v2569_v54 = vld [vmem:[#allocation2 + $0x49] sm:$0xff]  ;;  %v2570_v38 = vld [vmem:[#allocation2 + $0x51] sm:$0xff] }
 0x6ca   : > { %v2477_v61 = vadd.f32 %v2476_v47, %v2474_v16  ;;  %v2478_v39 = vadd.f32 %v2476_v47, %v2475_v30  ;;  %v2546_v14 = vmul.f32 %v6539_v45, %v7411_v28  ;;  %v2547_v18 = vmul.f32 %v6541_v56, %v4896_v9  ;;  %v2575_v50 = vld [vmem:[#allocation2 + $0x109] sm:$0xff]  ;;  %v2576_v52 = vld [vmem:[#allocation2 + $0x111] sm:$0xff] }
 0x6cb   : > { %v2521_v0 = vadd.f32 %v2519_v42, %v2515_v49  ;;  %v2522_v10 = vadd.f32 %v2520_v19, %v2516_v48  ;;  %v2551_v34 = vmul.f32 %v2549_v2, %v6515_v40  ;;  %v2552_v5 = vmul.f32 %v2550_v7, %v6527_v26  ;;  %v2564_v26 = vld [vmem:[#allocation2 + $0x110] sm:$0xff] }
 0x6cc   : > { %2480 = vst.msk [vmem:[#allocation3 + $0x10] sm:$0xff] %vm406_vm0, %v2477_v61  ;;  %v2531_v35 = vmul.f32 %v2529_v32, %v6555_v13  ;;  %v2532_v45 = vmul.f32 %v2530_v46, %v6557_v62  ;;  %v2558_v27 = vmul.f32 %v2556_v51, %v6518_v4  ;;  %v2559_v56 = vmul.f32 %v2557_v29, %v6530_v57  ;;  %v2581_v49 = vld [vmem:[#allocation2 + $0x4a] sm:$0xff]  ;;  %v2594_v7 = vld [vmem:[#allocation2 + $0x112] sm:$0xff] }
 0x6cd   : > { %2481 = vst.msk [vmem:[#allocation3 + $0x18] sm:$0xff] %vm406_vm0, %v2478_v39  ;;  %v2527_v43 = vadd.f32 %v2525_v3, %v2521_v0  ;;  %v2528_v6 = vadd.f32 %v2526_v60, %v2522_v10  ;;  %v2553_v24 = vadd.f32 %v2551_v34, %v2546_v14  ;;  %v2554_v40 = vadd.f32 %v2552_v5, %v2547_v18  ;;  %v2587_v48 = vld [vmem:[#allocation2 + $0xaa] sm:$0xff]  ;;  %v2588_v3 = vld [vmem:[#allocation2 + $0xb2] sm:$0xff] }
 0x6ce   : > { %v2536_v63 = vmul.f32 %v2535_v23, %v7409_v25  ;;  %v2537_v47 = vmul.f32 %v2535_v23, %v7410_v37  ;;  %v2565_v44 = vmul.f32 %v2563_v31, %v6521_v33  ;;  %v2566_v4 = vmul.f32 %v2564_v26, %v6533_v53  ;;  %v2593_v2 = vld [vmem:[#allocation2 + $0x10a] sm:$0xff] }
 0x6cf   : > { %v2533_v57 = vadd.f32 %v2531_v35, %v2527_v43  ;;  %v2534_v21 = vadd.f32 %v2532_v45, %v2528_v6  ;;  %v2560_v8 = vadd.f32 %v2558_v27, %v2553_v24  ;;  %v2561_v20 = vadd.f32 %v2559_v56, %v2554_v40 }
 0x6d0   : > { %v2571_v12 = vmul.f32 %v2569_v54, %v6524_v59  ;;  %v2572_v25 = vmul.f32 %v2570_v38, %v6536_v1  ;;  %v2540_v41 = vstv %s2292_s23  ;;  %v2577_v15 = vmul.f32 %v2575_v50, %v6543_v22  ;;  %v2582_v1 = vld [vmem:[#allocation2 + $0x52] sm:$0xff]  ;;  %v6735_v54 = vld [vmem:[#allocation3 + $0x2] sm:$0x1]  ;;  %v6737_v38 = vld [vmem:[#allocation3 + $0x8] sm:$0x1]  ;;  %s4695_s23 = smov 80  }
 0x6d1   : > { %v2538_v37 = vadd.f32 %v2536_v63, %v2533_v57  ;;  %v2539_v33 = vadd.f32 %v2537_v47, %v2534_v21  ;;  %v2567_v23 = vadd.f32 %v2565_v44, %v2560_v8  ;;  %v2568_v53 = vadd.f32 %v2566_v4, %v2561_v20  ;;  %v6723_v63 = vld [vmem:[#allocation3] sm:$0x1] }
 0x6d2   : > { %v2578_v16 = vmul.f32 %v2576_v52, %v6545_v36  ;;  %v2583_v29 = vmul.f32 %v2581_v49, %v6547_v17  ;;  %v2584_v22 = vmul.f32 %v2582_v1, %v6549_v11  ;;  %v2599_v36 = vstv %s6678_s21  ;;  %v2613_v17 = vld [vmem:[%s7308_s8] sm:$0xf]  ;;  %s4696_s21 = smov 112  }
 0x6d3   : > { %v2541_v30 = vadd.f32 %v2540_v41, %v2538_v37  ;;  %v2542_v42 = vadd.f32 %v2540_v41, %v2539_v33  ;;  %v2573_v19 = vadd.f32 %v2571_v12, %v2567_v23  ;;  %v2574_v59 = vadd.f32 %v2572_v25, %v2568_v53  ;;  %2666 = vperm.xlu1 %4433, %v2613_v17   ;;  %v6703_v27 = vld [vmem:[#allocation3 + $0x10] sm:$0x1]  ;;  %v6707_v6 = vld [vmem:[#allocation3 + $0x12] sm:$0x1]  ;;  %v6709_v24 = vld [vmem:[#allocation3 + $0x11] sm:$0x1] }
 0x6d4   : > { %v2589_v14 = vmul.f32 %v2587_v48, %v6551_v55  ;;  %v2590_v18 = vmul.f32 %v2588_v3, %v6553_v58  ;;  %v2595_v0 = vmul.f32 %v2593_v2, %v6555_v13  ;;  %v2596_v32 = vmul.f32 %v2594_v7, %v6557_v62  ;;  %v6705_v13 = vld [vmem:[#allocation3 + $0x18] sm:$0x1]  ;;  %v6711_v62 = vld [vmem:[#allocation3 + $0x1a] sm:$0x1]  ;;  %v6714_v40 = vld [vmem:[#allocation3 + $0x1c] sm:$0x1] }
 0x6d5   : > { %2544 = vst.msk [vmem:[#allocation3 + $0x20] sm:$0xff] %vm406_vm0, %v2541_v30  ;;  %v2579_v60 = vadd.f32 %v2577_v15, %v2573_v19  ;;  %v2580_v51 = vadd.f32 %v2578_v16, %v2574_v59  ;;  %v2600_v46 = vmul.f32 %v2599_v36, %v7411_v28  ;;  %v2601_v58 = vmul.f32 %v2599_v36, %v4896_v9  ;;  %v6743_v33 = vld [vmem:[#allocation3 + $0x1] sm:$0x1]  ;;  %v6747_v53 = vld [vmem:[#allocation3 + $0xa] sm:$0x1] }
 0x6d6   : > { %2545 = vst.msk [vmem:[#allocation3 + $0x28] sm:$0xff] %vm406_vm0, %v2542_v42  ;;  %v2604_v5 = vstv %s2357_s28  ;;  %v2627_v28 = vrot.slane %v6703_v27, 7  ;;  %v3341_v26 = vrot.slane %v6705_v13, 7  ;;  %v2819_v47 = vrot.slane %v6707_v6, 7  ;;  %v6760_v19 = vld [vmem:[#allocation3 + $0xc] sm:$0x1] }
 0x6d7   : > { %v2585_v61 = vadd.f32 %v2583_v29, %v2579_v60  ;;  %v2586_v39 = vadd.f32 %v2584_v22, %v2580_v51  ;;  %v2732_v44 = vrot.slane %v6709_v24, 7  ;;  %v3511_v4 = vrot.slane %v6711_v62, 7  ;;  %v6789_v17 = vld [vmem:[#allocation3 + $0x1e] sm:$0x1] }
 0x6d8   : > { %v3683_v25 = vrot.slane %v6714_v40, 7  ;;  %v2629_v37 = vsel %vm2628_vm12, %v2627_v28, %v6723_v63  ;;  %v3342_v23 = vsel %vm2628_vm12, %v3341_v26, %v6737_v38  ;;  %v2820_v16 = vsel %vm2628_vm12, %v2819_v47, %v6735_v54  ;;  %v6816_v28 = vld [vmem:[#allocation3 + $0xe] sm:$0x1] }
 0x6d9   : > { %v2591_v10 = vadd.f32 %v2589_v14, %v2585_v61  ;;  %v2592_v11 = vadd.f32 %v2590_v18, %v2586_v39  ;;  %v2733_v30 = vsel %vm2628_vm12, %v2732_v44, %v6743_v33  ;;  %v3512_v42 = vsel %vm2628_vm12, %v3511_v4, %v6747_v53  ;;  %v6782_v14 = vld [vmem:[%s7305_s5] sm:$0xff] }
 0x6da   : > { %v3684_v60 = vsel %vm2628_vm12, %v3683_v25, %v6760_v19  ;;  %v6836_v25 = vld [vmem:[#allocation3 + $0x14] sm:$0x1] }
 0x6db   : > { %v2597_v34 = vadd.f32 %v2595_v0, %v2591_v10  ;;  %v2598_v55 = vadd.f32 %v2596_v32, %v2592_v11 }
 0x6dc   : > { %v6717_v9 = vld [vmem:[#allocation3 + $0x20] sm:$0x1]  ;;  %v6728_v57 = vld [vmem:[#allocation3 + $0x22] sm:$0x1]  ;;  %v6730_v21 = vld [vmem:[#allocation3 + $0x21] sm:$0x1] }
 0x6dd   : > { %v2602_v35 = vadd.f32 %v2600_v46, %v2597_v34  ;;  %v2603_v45 = vadd.f32 %v2601_v58, %v2598_v55  ;;  %v6719_v31 = vld [vmem:[#allocation3 + $0x28] sm:$0x1]  ;;  %v6732_v8 = vld [vmem:[#allocation3 + $0x2a] sm:$0x1]  ;;  %v2630_v20 = vrot.slane %v6717_v9, 6  ;;  %v2821_v50 = vrot.slane %v6728_v57, 6 }
 0x6de   : > { %v3343_v12 = vrot.slane %v6719_v31, 6  ;;  %v2734_v52 = vrot.slane %v6730_v21, 6  ;;  %v3513_v41 = vrot.slane %v6732_v8, 6  ;;  %v6752_v15 = vld [vmem:[#allocation3 + $0x2c] sm:$0x1] }
 0x6df   : > { %v2605_v56 = vadd.f32 %v2604_v5, %v2602_v35  ;;  %v2606_v43 = vadd.f32 %v2604_v5, %v2603_v45  ;;  %v3685_v61 = vrot.slane %v6752_v15, 6  ;;  %v6806_v35 = vld [vmem:[#allocation3 + $0x2e] sm:$0x1]  ;;  %v3855_v45 = vrot.slane %v6789_v17, 7 }
 0x6e0   : > { %v3857_v26 = vrot.slane %v6806_v35, 6 }
 0x6e1   : > { %2608 = vst.msk [vmem:[#allocation3 + $0x30] sm:$0xff] %vm406_vm0, %v2605_v56  ;;  %v3856_v47 = vsel %vm2628_vm12, %v3855_v45, %v6816_v28 }
 0x6e2   : > { %2609 = vst.msk [vmem:[#allocation3 + $0x38] sm:$0xff] %vm406_vm0, %v2606_v43  ;;  %vm2631_vm0 = vcmask 1042434  }
 0x6e3   : > { %v2632_v49 = vsel %vm2631_vm0, %v2630_v20, %v2629_v37  ;;  %v3344_v3 = vsel %vm2631_vm0, %v3343_v12, %v3342_v23  ;;  %v2822_v39 = vsel %vm2631_vm0, %v2821_v50, %v2820_v16  ;;  %v2735_v18 = vsel %vm2631_vm0, %v2734_v52, %v2733_v30  ;;  %v6838_v37 = vld [vmem:[#allocation3 + $0x24] sm:$0x1] }
 0x6e4   : > { %v3514_v0 = vsel %vm2631_vm0, %v3513_v41, %v3512_v42  ;;  %v3686_v5 = vsel %vm2631_vm0, %v3685_v61, %v3684_v60  ;;  %v3858_v4 = vsel %vm2631_vm0, %v3857_v26, %v3856_v47  ;;  %v2993_v23 = vrot.slane %v6836_v25, 7  ;;  %v7412_v41 = vld [vmem:[#allocation30_spill] sm:$0xff]  ;;  %v6844_v30 = vld [vmem:[#allocation3 + $0x4] sm:$0x1] }
 0x6e5   : > { %v2995_v42 = vrot.slane %v6838_v37, 6 }
 0x6e8   : > { %v6762_v59 = vld [vmem:[#allocation3 + $0x30] sm:$0x1]  ;;  %v6765_v1 = vld [vmem:[#allocation3 + $0x32] sm:$0x1]  ;;  %v6767_v48 = vld [vmem:[#allocation3 + $0x31] sm:$0x1] }
 0x6e9   : > { %v2633_v51 = vrot.slane %v6762_v59, 5  ;;  %v2823_v29 = vrot.slane %v6765_v1, 5  ;;  %v2736_v22 = vrot.slane %v6767_v48, 5  ;;  %v6775_v36 = vld [vmem:[#allocation3 + $0x38] sm:$0x1] }
 0x6ea   : > { %v3345_v2 = vrot.slane %v6775_v36, 5  ;;  %v6786_v7 = vld [vmem:[#allocation3 + $0x3a] sm:$0x1]  ;;  %v6795_v34 = vld [vmem:[#allocation3 + $0x3c] sm:$0x1] }
 0x6eb   : > { %v2635_v10 = vsel %vm2634_vm13, %v2633_v51, %v2632_v49  ;;  %v2824_v11 = vsel %vm2634_vm13, %v2823_v29, %v2822_v39  ;;  %v2737_v32 = vsel %vm2634_vm13, %v2736_v22, %v2735_v18  ;;  %v3515_v46 = vrot.slane %v6786_v7, 5  ;;  %v6822_v44 = vld [vmem:[#allocation3 + $0x3e] sm:$0x1]  ;;  %v6841_v50 = vld [vmem:[#allocation3 + $0x34] sm:$0x1] }
 0x6ec   : > { %4250 = vmatpush.msk.msrb.mxu2 %vm2640_vm11, %v2635_v10  ;;  %4256 = vmatpush.msk.msra.mxu1 %vm2640_vm11, %v2824_v11  ;;  %v3346_v55 = vsel %vm2634_vm13, %v3345_v2, %v3344_v3  ;;  %v3687_v56 = vrot.slane %v6795_v34, 5  ;;  %v3859_v20 = vrot.slane %v6822_v44, 5  ;;  %v2994_v49 = vsel %vm2628_vm12, %v2993_v23, %v6844_v30  ;;  %v6850_v51 = vld [vmem:[#allocation10] sm:$0xf]  ;;  %v6858_v2 = vld [vmem:[#allocation3 + $0x13] sm:$0x1] }
 0x6ed   : > { %4251 = vmatmul.msk.f32.vlgmr.msrb.gmra.mxu2 %vm2636_vm15, %v6782_v14  ;;  %4257 = vmatmul.msk.f32.vlgmr.msra.gmra.mxu1 %vm2636_vm15, %v6782_v14  ;;  %v3516_v58 = vsel %vm2634_vm13, %v3515_v46, %v3514_v0  ;;  %v2997_v3 = vrot.slane %v6841_v50, 5  ;;  %v2996_v29 = vsel %vm2631_vm0, %v2995_v42, %v2994_v49  ;;  %v6862_v0 = vld [vmem:[#allocation3 + $0x23] sm:$0x1]  ;;  %v2906_v10 = vrot.slane %v6858_v2, 7  ;;  %v6865_v11 = vld [vmem:[#allocation3 + $0x33] sm:$0x1] }
 0x6ee   : > { %4253 = vmatpush.msk.msra.mxu2 %vm2640_vm11, %v2737_v32  ;;  %4274 = vmatpush.msk.msrb.mxu0 %vm2640_vm11, %v3346_v55  ;;  %v3688_v43 = vsel %vm2634_vm13, %v3687_v56, %v3686_v5  ;;  %v3860_v12 = vsel %vm2634_vm13, %v3859_v20, %v3858_v4  ;;  %v6870_v55 = vld [vmem:[#allocation3 + $0x3] sm:$0x1]  ;;  %v2910_v45 = vrot.slane %v6865_v11, 5 }
 0x6ef   : > { %4275 = vmatmul.msk.f32.vlgmr.msrb.gmra.mxu0 %vm2636_vm15, %v6782_v14  ;;  %v2998_v61 = vsel %vm2634_vm13, %v2997_v3, %v2996_v29  ;;  %v2907_v5 = vsel %vm2628_vm12, %v2906_v10, %v6870_v55 }
 0x6f0   : > { %4280 = vmatpush.msk.msra.mxu0 %vm2640_vm11, %v3516_v58  ;;  %v2908_v58 = vrot.slane %v6862_v0, 6 }
 0x6f2   : > { %4286 = vmatpush.msk.msrb.mxu0 %vm2640_vm11, %v3688_v43  ;;  %v2909_v43 = vsel %vm2631_vm0, %v2908_v58, %v2907_v5 }
 0x6f3   : > { %v2911_v26 = vsel %vm2634_vm13, %v2910_v45, %v2909_v43 }
 0x6f5   : > { %4254 = vmatmul.msk.f32.vlgmr.msra.gmra.mxu2 %vm2636_vm15, %v6782_v14 }
 0x6f7   : > { %4281 = vmatmul.msk.f32.vlgmr.msra.gmra.mxu0 %vm2636_vm15, %v6782_v14 }
 0x6f8   : > { %4292 = vmatpush.msk.msra.mxu0 %vm2640_vm11, %v3860_v12 }
 0x6ff   : > { %4287 = vmatmul.msk.f32.vlgmr.msrb.gmra.mxu0 %vm2636_vm15, %v6782_v14 }
 0x707   : > { %4293 = vmatmul.msk.f32.vlgmr.msra.gmra.mxu0 %vm2636_vm15, %v6782_v14 }
 0x745   : > { %v6883_v47 = vpop.permute.xlu1 %2666 }
 0x76a   : > { %v2844_v52 = vpop.f32.mrf.mxu1 }
 0x76b   : > { %v2845_v16 = vadd.f32 %v2844_v52, %v7412_v41 }
 0x76d   : > { %v2847_v60 = vmax.f32 %v2845_v16, 0.0  ;;  %v6886_v16 = vld [vmem:[#allocation3 + $0x16] sm:$0x1] }
 0x76f   : > { %2863 = vmatpush.msrb.mxu2 %v2847_v60  ;;  %v6892_v60 = vld [vmem:[#allocation3 + $0x26] sm:$0x1] }
 0x770   : > { %v2660_v22 = vpop.f32.mrf.mxu2  ;;  %4258 = vmatmul.msk.f32.vlgmr.msrb.gmra.mxu2 %vm2669_vm10, %v6850_v51 }
 0x771   : > { %v2661_v39 = vadd.f32 %v2660_v22, %v7412_v41  ;;  %4262 = vmatpush.msk.msra.mxu2 %vm2640_vm11, %v2998_v61  ;;  %v3167_v22 = vrot.slane %v6886_v16, 7 }
 0x773   : > { %v2663_v18 = vmax.f32 %v2661_v39, 0.0 }
 0x775   : > { %2688 = vmatpush.msrb.mxu3 %v2663_v18  ;;  %v6896_v18 = vld [vmem:[#allocation3 + $0x36] sm:$0x1] }
 0x776   : > { %4252 = vmatmul.msk.f32.vlgmr.msrb.gmra.mxu3 %vm2669_vm10, %v6850_v51 }
 0x778   : > { %v2757_v32 = vpop.f32.mrf.mxu2  ;;  %4263 = vmatmul.msk.f32.vlgmr.msra.gmra.mxu2 %vm2636_vm15, %v6782_v14 }
 0x779   : > { %v2758_v46 = vadd.f32 %v2757_v32, %v7412_v41  ;;  %v3169_v32 = vrot.slane %v6892_v60, 6 }
 0x77b   : > { %v2760_v56 = vmax.f32 %v2758_v46, 0.0 }
 0x77d   : > { %2776 = vmatpush.msra.mxu3 %v2760_v56 }
 0x77e   : > { %4255 = vmatmul.msk.f32.vlgmr.msra.gmra.mxu3 %vm2669_vm10, %v6850_v51 }
 0x77f   : > { %4259 = vmatpush.msk.msrb.mxu3 %vm2640_vm11, %v2911_v26 }
 0x786   : > { %4260 = vmatmul.msk.f32.vlgmr.msrb.gmra.mxu3 %vm2636_vm15, %v6782_v14 }
 0x7f3   : > { %v2865_v4 = vpop.f32.mrf.mxu2 }
 0x7f4   : > { %v2866_v20 = vadd.f32 %v2865_v4, %v6883_v47 }
 0x7f6   : > { %v2869_v12 = vrot.slane %v2866_v20, 1  ;;  %v2870_v23 = vrot.slane %v2866_v20, 2  ;;  %v2871_v52 = vrot.slane %v2866_v20, 3  ;;  %v2876_v61 = vadd.f32 %v2866_v20, %v6735_v54 }
 0x7f7   : > { %v3171_v54 = vrot.slane %v6896_v18, 5 }
 0x7f8   : > { %v2877_v42 = vadd.f32 %v2869_v12, %v6707_v6  ;;  %v2878_v49 = vadd.f32 %v2870_v23, %v6728_v57  ;;  %v2879_v10 = vadd.f32 %v2871_v52, %v6765_v1  ;;  %v6901_v57 = vld [vmem:[#allocation3 + $0x6] sm:$0x1] }
 0x7f9   : > { %v6890_v3 = vpop.f32.mrf.mxu3  ;;  %v3168_v5 = vsel %vm2628_vm12, %v3167_v22, %v6901_v57 }
 0x7fa   : > { %v2884_v29 = vrot.slane %v2877_v42, 7  ;;  %v2887_v58 = vrot.slane %v2878_v49, 6  ;;  %v2890_v43 = vrot.slane %v2879_v10, 5  ;;  %v3170_v20 = vsel %vm2631_vm0, %v3169_v32, %v3168_v5  ;;  %v6923_v32 = vld [vmem:[#allocation3 + $0x25] sm:$0x1] }
 0x7fb   : > { %v3018_v39 = vpop.f32.mrf.mxu2  ;;  %v3172_v52 = vsel %vm2634_vm13, %v3171_v54, %v3170_v20  ;;  %v6927_v5 = vld [vmem:[#allocation3 + $0x35] sm:$0x1] }
 0x7fc   : > { %v3019_v6 = vadd.f32 %v3018_v39, %v7412_v41  ;;  %v2885_v46 = vsel %vm2628_vm12, %v2884_v29, %v2876_v61  ;;  %v6919_v61 = vld [vmem:[#allocation3 + $0x15] sm:$0x1] }
 0x7fd   : > { %v2886_v45 = vsel %vm2711_vm8, %v2884_v29, %v2885_v46 }
 0x7fe   : > { %v3021_v56 = vmax.f32 %v3019_v6, 0.0  ;;  %v2888_v1 = vsel %vm2631_vm0, %v2887_v58, %v2886_v45  ;;  %v3080_v6 = vrot.slane %v6919_v61, 7 }
 0x7ff   : > { %v2889_v26 = vsel %vm2715_vm3, %v2887_v58, %v2888_v1 }
 0x800   : > { %3037 = vmatpush.msra.mxu3 %v3021_v56  ;;  %v2891_v12 = vsel %vm2634_vm13, %v2890_v43, %v2889_v26  ;;  %v3084_v26 = vrot.slane %v6927_v5, 5 }
 0x801   : > { %v2778_v4 = vpop.f32.mrf.mxu3  ;;  %4264 = vmatmul.msk.f32.vlgmr.msra.gmra.mxu3 %vm2669_vm10, %v6850_v51  ;;  %v2892_v42 = vsel %vm2719_vm9, %v2890_v43, %v2891_v12 }
 0x802   : > { %v2779_v23 = vadd.f32 %v2778_v4, %v6883_v47  ;;  %4268 = vmatpush.msk.msrb.mxu3 %vm2640_vm11, %v3172_v52  ;;  %2893 = vrot.lane.b32.xlu2 %v2892_v42, %s4690_s18 }
 0x804   : > { %v2782_v49 = vrot.slane %v2779_v23, 1  ;;  %v2783_v29 = vrot.slane %v2779_v23, 2  ;;  %v2784_v22 = vrot.slane %v2779_v23, 3  ;;  %v2789_v46 = vadd.f32 %v2779_v23, %v6743_v33 }
 0x806   : > { %v2790_v39 = vadd.f32 %v2782_v49, %v6709_v24  ;;  %v2791_v10 = vadd.f32 %v2783_v29, %v6730_v21  ;;  %v2792_v54 = vadd.f32 %v2784_v22, %v6767_v48  ;;  %v6933_v24 = vld [vmem:[#allocation3 + $0x5] sm:$0x1]  ;;  %v3082_v21 = vrot.slane %v6923_v32, 6 }
 0x807   : > { %v3081_v33 = vsel %vm2628_vm12, %v3080_v6, %v6933_v24  ;;  %v2691_v22 = vadd.f32 %v6890_v3, %v6883_v47 }
 0x808   : > { %v2797_v58 = vrot.slane %v2790_v39, 7  ;;  %v2800_v43 = vrot.slane %v2791_v10, 6  ;;  %v2803_v12 = vrot.slane %v2792_v54, 5  ;;  %v3083_v52 = vsel %vm2631_vm0, %v3082_v21, %v3081_v33 }
 0x809   : > { %v2931_v45 = vpop.f32.mrf.mxu3  ;;  %4269 = vmatmul.msk.f32.vlgmr.msrb.gmra.mxu3 %vm2636_vm15, %v6782_v14  ;;  %v3085_v49 = vsel %vm2634_vm13, %v3084_v26, %v3083_v52  ;;  %v2694_v39 = vrot.slane %v2691_v22, 1  ;;  %v2695_v6 = vrot.slane %v2691_v22, 2  ;;  %v2696_v54 = vrot.slane %v2691_v22, 3 }
 0x80a   : > { %v2932_v56 = vadd.f32 %v2931_v45, %v7412_v41  ;;  %v2798_v1 = vsel %vm2628_vm12, %v2797_v58, %v2789_v46 }
 0x80b   : > { %v2799_v48 = vsel %vm2711_vm8, %v2797_v58, %v2798_v1  ;;  %v2702_v10 = vadd.f32 %v2694_v39, %v6703_v27  ;;  %v2701_v58 = vadd.f32 %v2691_v22, %v6723_v63  ;;  %v2703_v45 = vadd.f32 %v2695_v6, %v6717_v9 }
 0x80c   : > { %v2934_v4 = vmax.f32 %v2932_v56, 0.0  ;;  %v2801_v20 = vsel %vm2631_vm0, %v2800_v43, %v2799_v48  ;;  %v2704_v1 = vadd.f32 %v2696_v54, %v6762_v59  ;;  %v3366_v59 = vpop.f32.mrf.mxu0 }
 0x80d   : > { %v2802_v23 = vsel %vm2715_vm3, %v2800_v43, %v2801_v20  ;;  %v2709_v46 = vrot.slane %v2702_v10, 7  ;;  %v2713_v43 = vrot.slane %v2703_v45, 6  ;;  %v3367_v54 = vadd.f32 %v3366_v59, %v7412_v41 }
 0x80e   : > { %2950 = vmatpush.msrb.mxu1 %v2934_v4  ;;  %v2804_v42 = vsel %vm2634_vm13, %v2803_v12, %v2802_v23  ;;  %v2717_v27 = vrot.slane %v2704_v1, 5 }
 0x80f   : > { %4261 = vmatmul.msk.f32.vlgmr.msrb.gmra.mxu1 %vm2669_vm10, %v6850_v51  ;;  %v2805_v29 = vsel %vm2719_vm9, %v2803_v12, %v2804_v42  ;;  %v2710_v56 = vsel %vm2628_vm12, %v2709_v46, %v2701_v58  ;;  %v6982_v58 = vld [vmem:[#allocation3 + $0x19] sm:$0x1] }
 0x810   : > { %4265 = vmatpush.msk.msra.mxu1 %vm2640_vm11, %v3085_v49  ;;  %2806 = vrot.lane.b32.xlu0 %v2805_v29, %s4691_s30  ;;  %v2712_v21 = vsel %vm2711_vm8, %v2709_v46, %v2710_v56 }
 0x811   : > { %v2714_v3 = vsel %vm2631_vm0, %v2713_v43, %v2712_v21 }
 0x812   : > { %v2716_v9 = vsel %vm2715_vm3, %v2713_v43, %v2714_v3  ;;  %v6988_v43 = vld [vmem:[#allocation3 + $0x17] sm:$0x1] }
 0x813   : > { %v2718_v63 = vsel %vm2634_vm13, %v2717_v27, %v2716_v9 }
 0x814   : > { %v2720_v33 = vsel %vm2719_vm9, %v2717_v27, %v2718_v63  ;;  %v3536_v20 = vpop.f32.mrf.mxu0 }
 0x815   : > { %2723 = vst.msk [vmem:[%s6967_s22] sm:$0xf] %vm2722_vm14, %v2720_v33  ;;  %v3537_v45 = vadd.f32 %v3536_v20, %v7412_v41  ;;  %v3369_v20 = vmax.f32 %v3367_v54, 0.0  ;;  %v7015_v54 = vld [vmem:[#allocation3 + $0x7] sm:$0x1] }
 0x817   : > { %4266 = vmatmul.msk.f32.vlgmr.msra.gmra.mxu1 %vm2636_vm15, %v6782_v14 }
 0x81c   : > { %v3708_v9 = vpop.f32.mrf.mxu0 }
 0x882   : > { %v2807_v26 = vpop.permute.xlu0 %2806 }
 0x883   : > { %2810 = vst.msk [vmem:[%s6967_s22] sm:$0xf] %vm2809_vm1, %v2807_v26 }
 0x884   : > { %v3039_v48 = vpop.f32.mrf.mxu3 }
 0x885   : > { %v3040_v4 = vadd.f32 %v3039_v48, %v6883_v47  ;;  %v6995_v48 = vld [vmem:[#allocation3 + $0x27] sm:$0x1] }
 0x887   : > { %v3043_v12 = vrot.slane %v3040_v4, 1  ;;  %v3044_v23 = vrot.slane %v3040_v4, 2  ;;  %v3045_v52 = vrot.slane %v3040_v4, 3  ;;  %v3050_v29 = vadd.f32 %v3040_v4, %v6844_v30  ;;  %v6997_v4 = vld [vmem:[#allocation3 + $0x29] sm:$0x1] }
 0x889   : > { %v3051_v42 = vadd.f32 %v3043_v12, %v6836_v25  ;;  %v3052_v49 = vadd.f32 %v3044_v23, %v6838_v37  ;;  %v3053_v46 = vadd.f32 %v3045_v52, %v6841_v50  ;;  %v3425_v50 = vrot.slane %v6982_v58, 7 }
 0x88a   : > { %v3539_v12 = vmax.f32 %v3537_v45, 0.0  ;;  %v3254_v52 = vrot.slane %v6988_v43, 7 }
 0x88b   : > { %v3058_v22 = vrot.slane %v3051_v42, 7  ;;  %v3061_v1 = vrot.slane %v3052_v49, 6  ;;  %v3064_v26 = vrot.slane %v3053_v46, 5  ;;  %v7010_v46 = vld [vmem:[#allocation3 + $0x9] sm:$0x1] }
 0x88c   : > { %v2952_v39 = vpop.f32.mrf.mxu1  ;;  %v3192_v6 = vpop.f32.mrf.mxu3 }
 0x88d   : > { %v2953_v10 = vadd.f32 %v2952_v39, %v6883_v47  ;;  %v3193_v56 = vadd.f32 %v3192_v6, %v7412_v41  ;;  %v3059_v25 = vsel %vm2628_vm12, %v3058_v22, %v3050_v29  ;;  %v3256_v6 = vrot.slane %v6995_v48, 6 }
 0x88e   : > { %v3060_v27 = vsel %vm2711_vm8, %v3058_v22, %v3059_v25  ;;  %v7020_v25 = vld [vmem:[#allocation3 + $0x1b] sm:$0x1] }
 0x88f   : > { %v2956_v37 = vrot.slane %v2953_v10, 1  ;;  %v2957_v21 = vrot.slane %v2953_v10, 2  ;;  %v2958_v30 = vrot.slane %v2953_v10, 3  ;;  %v3195_v3 = vmax.f32 %v3193_v56, 0.0 }
 0x890   : > { %v3062_v59 = vsel %vm2631_vm0, %v3061_v1, %v3060_v27  ;;  %v2963_v42 = vadd.f32 %v2953_v10, %v6870_v55  ;;  %v3427_v55 = vrot.slane %v6997_v4, 6 }
 0x891   : > { %v2964_v63 = vadd.f32 %v2956_v37, %v6858_v2  ;;  %v2965_v33 = vadd.f32 %v2957_v21, %v6862_v0  ;;  %3211 = vmatpush.msrb.mxu1 %v3195_v3  ;;  %v3063_v23 = vsel %vm2715_vm3, %v3061_v1, %v3062_v59  ;;  %v7005_v0 = vld [vmem:[#allocation3 + $0x37] sm:$0x1]  ;;  %v2966_v29 = vadd.f32 %v2958_v30, %v6865_v11  ;;  %v7026_v1 = vld [vmem:[#allocation3 + $0x39] sm:$0x1] }
 0x892   : > { %4270 = vmatmul.msk.f32.vlgmr.msrb.gmra.mxu1 %vm2669_vm10, %v6850_v51  ;;  %v3065_v2 = vsel %vm2634_vm13, %v3064_v26, %v3063_v23  ;;  %v3426_v11 = vsel %vm2628_vm12, %v3425_v50, %v7010_v46  ;;  %v3709_v37 = vadd.f32 %v3708_v9, %v7412_v41  ;;  %v3255_v21 = vsel %vm2628_vm12, %v3254_v52, %v7015_v54 }
 0x893   : > { %v2971_v49 = vrot.slane %v2964_v63, 7  ;;  %3385 = vmatpush.msra.mxu1 %v3369_v20  ;;  %v3066_v22 = vsel %vm2719_vm9, %v3064_v26, %v3065_v2  ;;  %v2974_v56 = vrot.slane %v2965_v33, 6  ;;  %v3258_v30 = vrot.slane %v7005_v0, 5  ;;  %v7032_v26 = vld [vmem:[#allocation3 + $0x2b] sm:$0x1]  ;;  %v3880_v2 = vpop.f32.mrf.mxu0 }
 0x894   : > { %v3105_v39 = vpop.f32.mrf.mxu1  ;;  %3067 = vrot.lane.b32.xlu0 %v3066_v22, %s4692_s13  ;;  %v2977_v50 = vrot.slane %v2966_v29, 5  ;;  %v3428_v59 = vsel %vm2631_vm0, %v3427_v55, %v3426_v11  ;;  %v3597_v9 = vrot.slane %v7020_v25, 7  ;;  %v3257_v20 = vsel %vm2631_vm0, %v3256_v6, %v3255_v21  ;;  %v7046_v22 = vld [vmem:[#allocation3 + $0xb] sm:$0x1]  ;;  %v7053_v55 = vld [vmem:[#allocation3 + $0x3b] sm:$0x1] }
 0x895   : > { %3555 = vmatpush.msrb.mxu1 %v3539_v12  ;;  %v3106_v10 = vadd.f32 %v3105_v39, %v7412_v41  ;;  %v2972_v45 = vsel %vm2628_vm12, %v2971_v49, %v2963_v42  ;;  %v3429_v12 = vrot.slane %v7026_v1, 5  ;;  %v3711_v52 = vmax.f32 %v3709_v37, 0.0  ;;  %v7060_v37 = vld [vmem:[#allocation3 + $0x2d] sm:$0x1] }
 0x896   : > { %v2973_v3 = vsel %vm2711_vm8, %v2971_v49, %v2972_v45  ;;  %v3259_v42 = vsel %vm2634_vm13, %v3258_v30, %v3257_v20  ;;  %v3599_v39 = vrot.slane %v7032_v26, 6  ;;  %v3598_v6 = vsel %vm2628_vm12, %v3597_v9, %v7046_v22 }
 0x897   : > { %v3108_v27 = vmax.f32 %v3106_v10, 0.0  ;;  %v2975_v63 = vsel %vm2631_vm0, %v2974_v56, %v2973_v3  ;;  %v3430_v29 = vsel %vm2634_vm13, %v3429_v12, %v3428_v59  ;;  %v7055_v10 = vld [vmem:[#allocation3 + $0x1d] sm:$0x1]  ;;  %v3881_v11 = vadd.f32 %v3880_v2, %v7412_v41  ;;  %v7080_v12 = vld [vmem:[#allocation3 + $0x2f] sm:$0x1] }
 0x898   : > { %v2976_v33 = vsel %vm2715_vm3, %v2974_v56, %v2975_v63  ;;  %v3600_v45 = vsel %vm2631_vm0, %v3599_v39, %v3598_v6  ;;  %v3601_v56 = vrot.slane %v7053_v55, 5  ;;  %v3769_v21 = vrot.slane %v7055_v10, 7  ;;  %v7074_v59 = vld [vmem:[#allocation3 + $0x3d] sm:$0x1] }
 0x899   : > { %3124 = vmatpush.msrb.mxu2 %v3108_v27  ;;  %v2978_v23 = vsel %vm2634_vm13, %v2977_v50, %v2976_v33  ;;  %v3883_v30 = vmax.f32 %v3881_v11, 0.0  ;;  %v7069_v27 = vld [vmem:[#allocation3 + $0xd] sm:$0x1]  ;;  %v3771_v63 = vrot.slane %v7060_v37, 6  ;;  %v7076_v33 = vld [vmem:[#allocation3 + $0x1f] sm:$0x1] }
 0x89a   : > { %4267 = vmatmul.msk.f32.vlgmr.msrb.gmra.mxu2 %vm2669_vm10, %v6850_v51  ;;  %v2979_v49 = vsel %vm2719_vm9, %v2977_v50, %v2978_v23  ;;  %4276 = vmatmul.msk.f32.vlgmr.msra.gmra.mxu1 %vm2669_vm10, %v6850_v51  ;;  %v3602_v3 = vsel %vm2634_vm13, %v3601_v56, %v3600_v45  ;;  %v3770_v50 = vsel %vm2628_vm12, %v3769_v21, %v7069_v27  ;;  %v3773_v20 = vrot.slane %v7074_v59, 5  ;;  %v2894_v45 = vpop.permute.xlu2 %2893 }
 0x89b   : > { %4271 = vmatpush.msk.msra.mxu2 %vm2640_vm11, %v3259_v42  ;;  %3727 = vmatpush.msra.mxu1 %v3711_v52  ;;  %v3772_v9 = vsel %vm2631_vm0, %v3771_v63, %v3770_v50  ;;  %v3941_v23 = vrot.slane %v7076_v33, 7  ;;  %v7089_v42 = vld [vmem:[#allocation3 + $0xf] sm:$0x1]  ;;  %2897 = vst.msk [vmem:[%s6967_s22] sm:$0xf] %vm2896_vm2, %v2894_v45 }
 0x89c   : > { %2980 = vrot.lane.b32.xlu1 %v2979_v49, %s4693_s19  ;;  %v3774_v52 = vsel %vm2634_vm13, %v3773_v20, %v3772_v9  ;;  %v3943_v49 = vrot.slane %v7080_v12, 6 }
 0x89d   : > { %4277 = vmatpush.msk.msrb.mxu2 %vm2640_vm11, %v3430_v29  ;;  %v3942_v2 = vsel %vm2628_vm12, %v3941_v23, %v7089_v42  ;;  %v7094_v29 = vld [vmem:[#allocation3 + $0x3f] sm:$0x1] }
 0x89e   : > { %v3944_v39 = vsel %vm2631_vm0, %v3943_v49, %v3942_v2  ;;  %v3945_v6 = vrot.slane %v7094_v29, 5 }
 0x8a0   : > { %v3946_v11 = vsel %vm2634_vm13, %v3945_v6, %v3944_v39 }
 0x8a2   : > { %4272 = vmatmul.msk.f32.vlgmr.msra.gmra.mxu2 %vm2636_vm15, %v6782_v14  ;;  %4282 = vmatmul.msk.f32.vlgmr.msrb.gmra.mxu1 %vm2669_vm10, %v6850_v51 }
 0x8a3   : > { %4283 = vmatpush.msk.msra.mxu2 %vm2640_vm11, %v3602_v3  ;;  %3899 = vmatpush.msrb.mxu1 %v3883_v30 }
 0x8aa   : > { %4278 = vmatmul.msk.f32.vlgmr.msrb.gmra.mxu2 %vm2636_vm15, %v6782_v14  ;;  %4288 = vmatmul.msk.f32.vlgmr.msra.gmra.mxu1 %vm2669_vm10, %v6850_v51 }
 0x8ab   : > { %4289 = vmatpush.msk.msrb.mxu2 %vm2640_vm11, %v3774_v52 }
 0x8b2   : > { %4284 = vmatmul.msk.f32.vlgmr.msra.gmra.mxu2 %vm2636_vm15, %v6782_v14  ;;  %4294 = vmatmul.msk.f32.vlgmr.msrb.gmra.mxu1 %vm2669_vm10, %v6850_v51 }
 0x8b3   : > { %4295 = vmatpush.msk.msra.mxu2 %vm2640_vm11, %v3946_v11 }
 0x8ba   : > { %4290 = vmatmul.msk.f32.vlgmr.msrb.gmra.mxu2 %vm2636_vm15, %v6782_v14 }
 0x8c2   : > { %4296 = vmatmul.msk.f32.vlgmr.msra.gmra.mxu2 %vm2636_vm15, %v6782_v14 }
 0x90e   : > { %v2981_v56 = vpop.permute.xlu1 %2980 }
 0x90f   : > { %2984 = vst.msk [vmem:[%s6967_s22] sm:$0xf] %vm2983_vm4, %v2981_v56  ;;  %v3213_v21 = vpop.f32.mrf.mxu1 }
 0x910   : > { %v3214_v30 = vadd.f32 %v3213_v21, %v6883_v47 }
 0x912   : > { %v3217_v3 = vrot.slane %v3214_v30, 1  ;;  %v3218_v63 = vrot.slane %v3214_v30, 2  ;;  %v3219_v50 = vrot.slane %v3214_v30, 3  ;;  %v3224_v23 = vadd.f32 %v3214_v30, %v6901_v57 }
 0x914   : > { %v3225_v9 = vadd.f32 %v3217_v3, %v6886_v16  ;;  %v3226_v20 = vadd.f32 %v3218_v63, %v6892_v60  ;;  %v3227_v14 = vadd.f32 %v3219_v50, %v6896_v18 }
 0x916   : > { %v3232_v52 = vrot.slane %v3225_v9, 7  ;;  %v3235_v6 = vrot.slane %v3226_v20, 6  ;;  %v3238_v45 = vrot.slane %v3227_v14, 5 }
 0x917   : > { %v7116_v49 = vpop.f32.mrf.mxu1 }
 0x918   : > { %v3233_v2 = vsel %vm2628_vm12, %v3232_v52, %v3224_v23 }
 0x919   : > { %v3234_v39 = vsel %vm2711_vm8, %v3232_v52, %v3233_v2 }
 0x91a   : > { %v3236_v11 = vsel %vm2631_vm0, %v3235_v6, %v3234_v39 }
 0x91b   : > { %v3237_v16 = vsel %vm2715_vm3, %v3235_v6, %v3236_v11 }
 0x91c   : > { %v3239_v57 = vsel %vm2634_vm13, %v3238_v45, %v3237_v16 }
 0x91d   : > { %v3126_v56 = vpop.f32.mrf.mxu2  ;;  %v3240_v21 = vsel %vm2719_vm9, %v3238_v45, %v3239_v57 }
 0x91e   : > { %v3127_v60 = vadd.f32 %v3126_v56, %v6883_v47  ;;  %3241 = vrot.lane.b32.xlu2 %v3240_v21, %s4694_s17 }
 0x91f   : > { %v3557_v63 = vpop.f32.mrf.mxu1 }
 0x920   : > { %v3130_v30 = vrot.slane %v3127_v60, 1  ;;  %v3131_v3 = vrot.slane %v3127_v60, 2  ;;  %v3132_v18 = vrot.slane %v3127_v60, 3  ;;  %v3558_v50 = vadd.f32 %v3557_v63, %v6883_v47 }
 0x921   : > { %v3137_v14 = vadd.f32 %v3127_v60, %v6933_v24 }
 0x922   : > { %v3138_v9 = vadd.f32 %v3130_v30, %v6919_v61  ;;  %v3139_v20 = vadd.f32 %v3131_v3, %v6923_v32  ;;  %v3561_v23 = vrot.slane %v3558_v50, 1  ;;  %v3562_v52 = vrot.slane %v3558_v50, 2 }
 0x923   : > { %v3140_v39 = vadd.f32 %v3132_v18, %v6927_v5  ;;  %v3563_v61 = vrot.slane %v3558_v50, 3  ;;  %v3568_v32 = vadd.f32 %v3558_v50, %v6747_v53 }
 0x924   : > { %v3145_v2 = vrot.slane %v3138_v9, 7  ;;  %v3569_v6 = vadd.f32 %v3561_v23, %v6711_v62  ;;  %v3570_v45 = vadd.f32 %v3562_v52, %v6732_v8  ;;  %v3148_v57 = vrot.slane %v3139_v20, 6 }
 0x925   : > { %v3279_v11 = vpop.f32.mrf.mxu2  ;;  %v3151_v3 = vrot.slane %v3140_v39, 5  ;;  %v3571_v23 = vadd.f32 %v3563_v61, %v6786_v7 }
 0x926   : > { %v3280_v56 = vadd.f32 %v3279_v11, %v7412_v41  ;;  %v3146_v16 = vsel %vm2628_vm12, %v3145_v2, %v3137_v14  ;;  %v3576_v21 = vrot.slane %v3569_v6, 7  ;;  %v3579_v53 = vrot.slane %v3570_v45, 6 }
 0x927   : > { %v3147_v30 = vsel %vm2711_vm8, %v3145_v2, %v3146_v16  ;;  %v3729_v60 = vpop.f32.mrf.mxu1 }
 0x928   : > { %v3282_v24 = vmax.f32 %v3280_v56, 0.0  ;;  %v3149_v5 = vsel %vm2631_vm0, %v3148_v57, %v3147_v30  ;;  %v3730_v62 = vadd.f32 %v3729_v60, %v6883_v47  ;;  %v3577_v18 = vsel %vm2628_vm12, %v3576_v21, %v3568_v32 }
 0x929   : > { %v3150_v8 = vsel %vm2715_vm3, %v3148_v57, %v3149_v5  ;;  %v3578_v9 = vsel %vm2711_vm8, %v3576_v21, %v3577_v18  ;;  %v3582_v57 = vrot.slane %v3571_v23, 5 }
 0x92a   : > { %3298 = vmatpush.msra.mxu3 %v3282_v24  ;;  %v3152_v63 = vsel %vm2634_vm13, %v3151_v3, %v3150_v8  ;;  %v3733_v50 = vrot.slane %v3730_v62, 1  ;;  %v3734_v20 = vrot.slane %v3730_v62, 2  ;;  %v3735_v52 = vrot.slane %v3730_v62, 3 }
 0x92b   : > { %4273 = vmatmul.msk.f32.vlgmr.msra.gmra.mxu3 %vm2669_vm10, %v6850_v51  ;;  %v3153_v14 = vsel %vm2719_vm9, %v3151_v3, %v3152_v63  ;;  %v3580_v2 = vsel %vm2631_vm0, %v3579_v53, %v3578_v9  ;;  %v3740_v16 = vadd.f32 %v3730_v62, %v6760_v19 }
 0x92c   : > { %v3741_v39 = vadd.f32 %v3733_v50, %v6714_v40  ;;  %3154 = vrot.lane.b32.xlu1 %v3153_v14, %s4695_s23  ;;  %v3742_v11 = vadd.f32 %v3734_v20, %v6752_v15  ;;  %v3581_v56 = vsel %vm2715_vm3, %v3579_v53, %v3580_v2  ;;  %v3743_v21 = vadd.f32 %v3735_v52, %v6795_v34 }
 0x92d   : > { %v3450_v6 = vpop.f32.mrf.mxu2  ;;  %v3583_v30 = vsel %vm2634_vm13, %v3582_v57, %v3581_v56 }
 0x92e   : > { %v3451_v45 = vadd.f32 %v3450_v6, %v7412_v41  ;;  %v3748_v7 = vrot.slane %v3741_v39, 7  ;;  %v3751_v60 = vrot.slane %v3742_v11, 6  ;;  %v3584_v19 = vsel %vm2719_vm9, %v3582_v57, %v3583_v30 }
 0x92f   : > { %v3901_v32 = vpop.f32.mrf.mxu1  ;;  %v3754_v62 = vrot.slane %v3743_v21, 5 }
 0x930   : > { %v3453_v61 = vmax.f32 %v3451_v45, 0.0  ;;  %v3902_v40 = vadd.f32 %v3901_v32, %v6883_v47  ;;  %v3749_v24 = vsel %vm2628_vm12, %v3748_v7, %v3740_v16 }
 0x931   : > { %v3750_v15 = vsel %vm2711_vm8, %v3748_v7, %v3749_v24 }
 0x932   : > { %3469 = vmatpush.msrb.mxu3 %v3453_v61  ;;  %v3905_v5 = vrot.slane %v3902_v40, 1  ;;  %v3906_v3 = vrot.slane %v3902_v40, 2  ;;  %v3907_v8 = vrot.slane %v3902_v40, 3  ;;  %v3752_v34 = vsel %vm2631_vm0, %v3751_v60, %v3750_v15 }
 0x933   : > { %4279 = vmatmul.msk.f32.vlgmr.msrb.gmra.mxu3 %vm2669_vm10, %v6850_v51  ;;  %v3753_v53 = vsel %vm2715_vm3, %v3751_v60, %v3752_v34  ;;  %v3912_v23 = vadd.f32 %v3902_v40, %v6816_v28  ;;  %v3388_v61 = vadd.f32 %v7116_v49, %v6883_v47  ;;  %v3068_v40 = vpop.permute.xlu0 %3067 }
 0x934   : > { %v3913_v18 = vadd.f32 %v3905_v5, %v6789_v17  ;;  %v3914_v63 = vadd.f32 %v3906_v3, %v6806_v35  ;;  %3585 = vrot.lane.b32.xlu1 %v3584_v19, %s4690_s18  ;;  %v3755_v20 = vsel %vm2634_vm13, %v3754_v62, %v3753_v53  ;;  %v3915_v2 = vadd.f32 %v3907_v8, %v6822_v44 }
 0x935   : > { %v3622_v9 = vpop.f32.mrf.mxu2  ;;  %v3756_v14 = vsel %vm2719_vm9, %v3754_v62, %v3755_v20  ;;  %v3391_v30 = vrot.slane %v3388_v61, 1  ;;  %3071 = vst.msk [vmem:[%s6967_s22] sm:$0xf] %vm3070_vm6, %v3068_v40  ;;  %v3392_v60 = vrot.slane %v3388_v61, 2  ;;  %v3398_v49 = vadd.f32 %v3388_v61, %v6737_v38 }
 0x936   : > { %v3623_v50 = vadd.f32 %v3622_v9, %v7412_v41  ;;  %v3920_v52 = vrot.slane %v3913_v18, 7  ;;  %3757 = vrot.lane.b32.xlu2 %v3756_v14, %s4692_s13  ;;  %v3923_v35 = vrot.slane %v3914_v63, 6  ;;  %v3926_v28 = vrot.slane %v3915_v2, 5 }
 0x937   : > { %v3399_v15 = vadd.f32 %v3391_v30, %v6705_v13  ;;  %v3393_v3 = vrot.slane %v3388_v61, 3 }
 0x938   : > { %v3625_v39 = vmax.f32 %v3623_v50, 0.0  ;;  %v3921_v17 = vsel %vm2628_vm12, %v3920_v52, %v3912_v23 }
 0x939   : > { %v3922_v6 = vsel %vm2711_vm8, %v3920_v52, %v3921_v17  ;;  %v3406_v5 = vrot.slane %v3399_v15, 7  ;;  %v3401_v34 = vadd.f32 %v3393_v3, %v6775_v36 }
 0x93a   : > { %3641 = vmatpush.msra.mxu3 %v3625_v39  ;;  %v3924_v11 = vsel %vm2631_vm0, %v3923_v35, %v3922_v6 }
 0x93b   : > { %4285 = vmatmul.msk.f32.vlgmr.msra.gmra.mxu3 %vm2669_vm10, %v6850_v51  ;;  %v3925_v45 = vsel %vm2715_vm3, %v3923_v35, %v3924_v11  ;;  %v3407_v8 = vsel %vm2628_vm12, %v3406_v5, %v3398_v49  ;;  %v3412_v18 = vrot.slane %v3401_v34, 5 }
 0x93c   : > { %v3927_v44 = vsel %vm2634_vm13, %v3926_v28, %v3925_v45  ;;  %v3408_v19 = vsel %vm2711_vm8, %v3406_v5, %v3407_v8 }
 0x93d   : > { %v3794_v56 = vpop.f32.mrf.mxu2  ;;  %v3928_v7 = vsel %vm2719_vm9, %v3926_v28, %v3927_v44 }
 0x93e   : > { %v3795_v16 = vadd.f32 %v3794_v56, %v7412_v41  ;;  %3929 = vrot.lane.b32.xlu1 %v3928_v7, %s4694_s17 }
 0x940   : > { %v3797_v57 = vmax.f32 %v3795_v16, 0.0 }
 0x942   : > { %3813 = vmatpush.msrb.mxu3 %v3797_v57 }
 0x943   : > { %4291 = vmatmul.msk.f32.vlgmr.msrb.gmra.mxu3 %vm2669_vm10, %v6850_v51 }
 0x945   : > { %v3966_v32 = vpop.f32.mrf.mxu2 }
 0x946   : > { %v3967_v21 = vadd.f32 %v3966_v32, %v7412_v41  ;;  %v3400_v41 = vadd.f32 %v3392_v60, %v6719_v31 }
 0x948   : > { %v3969_v24 = vmax.f32 %v3967_v21, 0.0  ;;  %v3409_v62 = vrot.slane %v3400_v41, 6 }
 0x94a   : > { %3985 = vmatpush.msra.mxu3 %v3969_v24 }
 0x94b   : > { %4297 = vmatmul.msk.f32.vlgmr.msra.gmra.mxu3 %vm2669_vm10, %v6850_v51  ;;  %v3410_v51 = vsel %vm2631_vm0, %v3409_v62, %v3408_v19 }
 0x94c   : > { %v3411_v13 = vsel %vm2715_vm3, %v3409_v62, %v3410_v51 }
 0x94d   : > { %v3413_v63 = vsel %vm2634_vm13, %v3412_v18, %v3411_v13 }
 0x94e   : > { %v3414_v9 = vsel %vm2719_vm9, %v3412_v18, %v3413_v63 }
 0x94f   : > { %3416 = vst.msk [vmem:[%s6967_s22 + $0x4] sm:$0xf] %vm2722_vm14, %v3414_v9 }
 0x99e   : > { %v3155_v31 = vpop.permute.xlu1 %3154 }
 0x99f   : > { %3158 = vst.msk [vmem:[%s6967_s22] sm:$0xf] %vm3157_vm5, %v3155_v31 }
 0x9ae   : > { %v3300_v38 = vpop.f32.mrf.mxu3 }
 0x9af   : > { %v7212_v17 = vadd.f32 %v3300_v38, %v6883_v47 }
 0x9b1   : > { %v3305_v3 = vrot.slane %v7212_v17, 2  ;;  %v3311_v51 = vadd.f32 %v7212_v17, %v7015_v54 }
 0x9b3   : > { %v3313_v38 = vadd.f32 %v3305_v3, %v6995_v48 }
 0x9b6   : > { %v3471_v53 = vpop.f32.mrf.mxu3 }
 0x9b7   : > { %v3472_v36 = vadd.f32 %v3471_v53, %v6883_v47 }
 0x9b9   : > { %v3475_v50 = vrot.slane %v3472_v36, 1  ;;  %v3476_v20 = vrot.slane %v3472_v36, 2  ;;  %v3477_v23 = vrot.slane %v3472_v36, 3  ;;  %v3482_v2 = vadd.f32 %v3472_v36, %v7010_v46 }
 0x9bb   : > { %v3483_v52 = vadd.f32 %v3475_v50, %v6982_v58  ;;  %v3484_v14 = vadd.f32 %v3476_v20, %v6997_v4  ;;  %v3485_v6 = vadd.f32 %v3477_v23, %v7026_v1  ;;  %v3304_v4 = vrot.slane %v7212_v17, 1 }
 0x9bc   : > { %v3306_v50 = vrot.slane %v7212_v17, 3 }
 0x9bd   : > { %v3490_v39 = vrot.slane %v3483_v52, 7  ;;  %v3493_v56 = vrot.slane %v3484_v14, 6  ;;  %v3496_v7 = vrot.slane %v3485_v6, 5  ;;  %v3312_v24 = vadd.f32 %v3304_v4, %v6988_v43 }
 0x9be   : > { %v3643_v35 = vpop.f32.mrf.mxu3 }
 0x9bf   : > { %v3644_v11 = vadd.f32 %v3643_v35, %v6883_v47  ;;  %v3491_v28 = vsel %vm2628_vm12, %v3490_v39, %v3482_v2  ;;  %v3319_v8 = vrot.slane %v3312_v24, 7 }
 0x9c0   : > { %v3492_v45 = vsel %vm2711_vm8, %v3490_v39, %v3491_v28 }
 0x9c1   : > { %v3647_v44 = vrot.slane %v3644_v11, 1  ;;  %v3648_v58 = vrot.slane %v3644_v11, 2  ;;  %v3649_v16 = vrot.slane %v3644_v11, 3  ;;  %v3494_v46 = vsel %vm2631_vm0, %v3493_v56, %v3492_v45 }
 0x9c2   : > { %v3495_v61 = vsel %vm2715_vm3, %v3493_v56, %v3494_v46  ;;  %v3654_v21 = vadd.f32 %v3644_v11, %v7046_v22  ;;  %v3320_v36 = vsel %vm2628_vm12, %v3319_v8, %v3311_v51  ;;  %v3314_v11 = vadd.f32 %v3306_v50, %v7005_v0  ;;  %v3242_v46 = vpop.permute.xlu2 %3241 }
 0x9c3   : > { %v3655_v57 = vadd.f32 %v3647_v44, %v7020_v25  ;;  %v3656_v1 = vadd.f32 %v3648_v58, %v7032_v26  ;;  %v3497_v32 = vsel %vm2634_vm13, %v3496_v7, %v3495_v61  ;;  %v3657_v60 = vadd.f32 %v3649_v16, %v7053_v55  ;;  %3245 = vst.msk [vmem:[%s6967_s22] sm:$0xf] %vm3244_vm7, %v3242_v46 }
 0x9c4   : > { %v3498_v30 = vsel %vm2719_vm9, %v3496_v7, %v3497_v32  ;;  %v3321_v48 = vsel %vm2711_vm8, %v3319_v8, %v3320_v36  ;;  %v3325_v0 = vrot.slane %v3314_v11, 5 }
 0x9c5   : > { %v3662_v40 = vrot.slane %v3655_v57, 7  ;;  %3499 = vrot.lane.b32.xlu2 %v3498_v30, %s4691_s30  ;;  %v3665_v49 = vrot.slane %v3656_v1, 6  ;;  %v3668_v34 = vrot.slane %v3657_v60, 5  ;;  %v3586_v30 = vpop.permute.xlu1 %3585 }
 0x9c6   : > { %v3815_v15 = vpop.f32.mrf.mxu3 }
 0x9c7   : > { %v3816_v25 = vadd.f32 %v3815_v15, %v6883_v47  ;;  %v3663_v5 = vsel %vm2628_vm12, %v3662_v40, %v3654_v21 }
 0x9c8   : > { %v3664_v26 = vsel %vm2711_vm8, %v3662_v40, %v3663_v5 }
 0x9c9   : > { %v3819_v22 = vrot.slane %v3816_v25, 1  ;;  %v3820_v41 = vrot.slane %v3816_v25, 2  ;;  %v3821_v19 = vrot.slane %v3816_v25, 3  ;;  %v3666_v43 = vsel %vm2631_vm0, %v3665_v49, %v3664_v26 }
 0x9ca   : > { %v3667_v55 = vsel %vm2715_vm3, %v3665_v49, %v3666_v43  ;;  %v3826_v63 = vadd.f32 %v3816_v25, %v7069_v27  ;;  %v3758_v21 = vpop.permute.xlu2 %3757 }
 0x9cb   : > { %v3827_v62 = vadd.f32 %v3819_v22, %v7055_v10  ;;  %v3828_v18 = vadd.f32 %v3820_v41, %v7060_v37  ;;  %v3669_v13 = vsel %vm2634_vm13, %v3668_v34, %v3667_v55  ;;  %v3829_v10 = vadd.f32 %v3821_v19, %v7074_v59 }
 0x9cc   : > { %v3670_v31 = vsel %vm2719_vm9, %v3668_v34, %v3669_v13  ;;  %v3322_v59 = vrot.slane %v3313_v38, 6 }
 0x9cd   : > { %v3834_v9 = vrot.slane %v3827_v62, 7  ;;  %3671 = vrot.lane.b32.xlu0 %v3670_v31, %s4693_s19  ;;  %v3837_v20 = vrot.slane %v3828_v18, 6  ;;  %v3840_v39 = vrot.slane %v3829_v10, 5  ;;  %v3930_v60 = vpop.permute.xlu1 %3929 }
 0x9ce   : > { %v3987_v53 = vpop.f32.mrf.mxu3  ;;  %v3323_v28 = vsel %vm2631_vm0, %v3322_v59, %v3321_v48 }
 0x9cf   : > { %v3988_v54 = vadd.f32 %v3987_v53, %v6883_v47  ;;  %v3835_v37 = vsel %vm2628_vm12, %v3834_v9, %v3826_v63  ;;  %v3324_v4 = vsel %vm2715_vm3, %v3322_v59, %v3323_v28 }
 0x9d0   : > { %v3836_v27 = vsel %vm2711_vm8, %v3834_v9, %v3835_v37  ;;  %v3326_v57 = vsel %vm2634_vm13, %v3325_v0, %v3324_v4 }
 0x9d1   : > { %v3991_v23 = vrot.slane %v3988_v54, 1  ;;  %v3992_v52 = vrot.slane %v3988_v54, 2  ;;  %v3993_v14 = vrot.slane %v3988_v54, 3  ;;  %v3838_v2 = vsel %vm2631_vm0, %v3837_v20, %v3836_v27 }
 0x9d2   : > { %v3839_v6 = vsel %vm2715_vm3, %v3837_v20, %v3838_v2  ;;  %v3998_v45 = vadd.f32 %v3988_v54, %v7089_v42  ;;  %v3327_v32 = vsel %vm2719_vm9, %v3325_v0, %v3326_v57 }
 0x9d3   : > { %v3999_v35 = vadd.f32 %v3991_v23, %v7076_v33  ;;  %v4000_v47 = vadd.f32 %v3992_v52, %v7080_v12  ;;  %v3841_v17 = vsel %vm2634_vm13, %v3840_v39, %v3839_v6  ;;  %v4001_v58 = vadd.f32 %v3993_v14, %v7094_v29 }
 0x9d4   : > { %v3842_v44 = vsel %vm2719_vm9, %v3840_v39, %v3841_v17 }
 0x9d5   : > { %v4006_v56 = vrot.slane %v3999_v35, 7  ;;  %3843 = vrot.lane.b32.xlu0 %v3842_v44, %s4695_s23  ;;  %v4009_v12 = vrot.slane %v4000_v47, 6  ;;  %v4012_v7 = vrot.slane %v4001_v58, 5 }
 0x9d7   : > { %v4007_v33 = vsel %vm2628_vm12, %v4006_v56, %v3998_v45  ;;  %vm3331_vm12 = vcmask 1044352  }
 0x9d8   : > { %v4008_v16 = vsel %vm2711_vm8, %v4006_v56, %v4007_v33 }
 0x9d9   : > { %v4010_v42 = vsel %vm2631_vm0, %v4009_v12, %v4008_v16 }
 0x9da   : > { %v4011_v29 = vsel %vm2715_vm3, %v4009_v12, %v4010_v42 }
 0x9db   : > { %v4013_v61 = vsel %vm2634_vm13, %v4012_v7, %v4011_v29 }
 0x9dc   : > { %v4014_v1 = vsel %vm2719_vm9, %v4012_v7, %v4013_v61 }
 0x9dd   : > { %4015 = vrot.lane.b32.xlu2 %v4014_v1, %s4696_s21  ;;  %3328 = vrot.lane.b32.xlu0 %v3327_v32, %s4696_s21 }
 0xa1f   : > { %v3500_v40 = vpop.permute.xlu2 %3499 }
 0xa20   : > { %3502 = vst.msk [vmem:[%s6967_s22 + $0x4] sm:$0xf] %vm2809_vm1, %v3500_v40 }
 0xa21   : > { %3588 = vst.msk [vmem:[%s6967_s22 + $0x4] sm:$0xf] %vm2896_vm2, %v3586_v30 }
 0xa37   : > { %v4016_v25 = vpop.permute.xlu2 %4015 }
 0xa3f   : > { %v3672_v24 = vpop.permute.xlu0 %3671 }
 0xa40   : > { %3674 = vst.msk [vmem:[%s6967_s22 + $0x4] sm:$0xf] %vm2983_vm4, %v3672_v24 }
 0xa41   : > { %3760 = vst.msk [vmem:[%s6967_s22 + $0x4] sm:$0xf] %vm3070_vm6, %v3758_v21 }
 0xa47   : > { %v3844_v15 = vpop.permute.xlu0 %3843 }
 0xa48   : > { %3846 = vst.msk [vmem:[%s6967_s22 + $0x4] sm:$0xf] %vm3157_vm5, %v3844_v15 }
 0xa49   : > { %3932 = vst.msk [vmem:[%s6967_s22 + $0x4] sm:$0xf] %vm3244_vm7, %v3930_v60 }
 0xa4a   : > { %4018 = vst.msk [vmem:[%s6967_s22 + $0x4] sm:$0xf] %vm3331_vm12, %v4016_v25 }
 0xa4f   : > { %v3329_v5 = vpop.permute.xlu0 %3328 }
 0xa50   : > { %3332 = vst.msk [vmem:[%s6967_s22] sm:$0xf] %vm3331_vm12, %v3329_v5 }
 0xa51 PF: > { %p22_p4 = scmp.ge.s32.totalorder %s4796_s29, 4   ;;  %s7413_s30 = smov %s4669_s10 }
 0xa52   : > { %s7414_s10 = smov %s4673_s11  ;;  %s7415_s11 = smov %s4806_s16 }
 0xa53   : > { %s7416_s12 = smov %s4796_s29  ;;  %24 = sbr.rel (!%p22_p4) target bundleno = 8 (0x8), region = 123 }
 0xa58   :  { %4040 = vsyncpa [#allocation5], 1 }
 0xa59   :  { %4042 = vsyncpa [#allocation5 + $0x1], 1 }
 0xa5a   :  { %4043 = vsyncpa [#allocation11], 1 }
 0xa5b   :  { %4044 = vsyncpa [#allocation6], 1 }
 0xa5c   :  { %4046 = vsyncpa [#allocation6 + $0x1], 1 }
 0xa5d   :  { %4047 = vsyncpa [#allocation9], 1 }

</bundles_post_ra>
